<compile_context>
chip_gen: v7x
topology: tpu7x:2x2x1
jax: 0.10.0
libtpu: 0.0.40
codegen_flags: <defaults>
</compile_context>

<pallas_src>
import functools

import jax
import jax.numpy as jnp
from jax.experimental import pallas as pl
from jax.experimental.pallas import tpu as pltpu


def _round_up(v, m):
    return (v + m - 1) // m * m


def _pick_tile(p, cap):
    """Largest multiple of 128 that divides `p` (a multiple of 128) and is <= cap."""
    best = 128
    t = 128
    while t <= min(cap, p):
        if p % t == 0:
            best = t
        t += 128
    return best


# -----------------------------------------------------------------------------
# Pallas kernel: fused  O = act(A @ W + bias)    (BN scale pre-folded into W)
# -----------------------------------------------------------------------------
def _matmul_fused_kernel(a_ref, w_ref, b_ref, o_ref, acc_ref, *, activation):
    @pl.when(pl.program_id(2) == 0)
    def _():
        acc_ref[...] = jnp.zeros_like(acc_ref)

    acc_ref[...] += jnp.dot(a_ref[...], w_ref[...],
                            preferred_element_type=jnp.float32)

    @pl.when(pl.program_id(2) == pl.num_programs(2) - 1)
    def _():
        y = acc_ref[...] + b_ref[...]
        if activation == "relu":
            y = jnp.maximum(y, 0.0)
        elif activation == "sigmoid":
            y = jax.nn.sigmoid(y)
        o_ref[...] = y.astype(o_ref.dtype)


def fused_matmul(a, w_p, b_p, n_out, activation="relu", out_dtype=jnp.bfloat16):
    """a: [M, K] float; w_p: [pK, pN] bf16 (pre-padded, BN scale folded);
    b_p: [1, pN] f32.  Returns act(a @ w + b)[:, :n_out] as out_dtype."""
    M, K = a.shape
    pK, pN = w_p.shape
    assert K <= pK and n_out <= pN

    # Feed the MXU bf16; f32 accumulation lives in the VMEM scratch.
    a = a.astype(jnp.bfloat16)

    tm = min(256, _round_up(M, 16))          # match tm to the real M (no 128-row padding)
    pM = _round_up(M, tm)
    tn = _pick_tile(pN, 256)
    tk = _pick_tile(pK, 512)
    # Keep >= 2 parallel output tiles when possible so both v7x TensorCores get work.
    if (pM // tm) * (pN // tn) == 1 and tn > 128:
        tn = 128

    if (pM, pK) != (M, K):
        a = jnp.pad(a, ((0, pM - M), (0, pK - K)))

    kernel = functools.partial(_matmul_fused_kernel, activation=activation)
    out = pl.pallas_call(
        kernel,
        out_shape=jax.ShapeDtypeStruct((pM, pN), out_dtype),
        grid_spec=pltpu.PrefetchScalarGridSpec(
            num_scalar_prefetch=0,
            grid=(pM // tm, pN // tn, pK // tk),
            in_specs=[
                pl.BlockSpec((tm, tk), lambda i, j, k: (i, k)),
                pl.BlockSpec((tk, tn), lambda i, j, k: (k, j)),
                pl.BlockSpec((1, tn), lambda i, j, k: (0, j)),
            ],
            out_specs=pl.BlockSpec((tm, tn), lambda i, j, k: (i, j)),
            scratch_shapes=[pltpu.VMEM((tm, tn), jnp.float32)],
        ),
        compiler_params=pltpu.CompilerParams(
            dimension_semantics=("parallel", "parallel", "arbitrary")),
    )(a, w_p, b_p)
    return out[:M, :n_out]


# -----------------------------------------------------------------------------
# Convolution = implicit-padding im2col (JAX glue) + fused Pallas matmul
# -----------------------------------------------------------------------------
def _tap_slab(x, out_h, out_w, stride, padding, dilation, dy, dx):
    """Output-sized slab of x for one conv tap (implicit zero padding).
    Returns None when the tap is statically all-zero (entirely outside the
    input) so the caller can drop both the slab and the matching weight rows."""
    N, H, W, C = x.shape
    off_y = dy * dilation - padding
    off_x = dx * dilation - padding
    oy_lo = max(0, -(off_y // stride))
    oy_hi = min(out_h - 1, (H - 1 - off_y) // stride)
    ox_lo = max(0, -(off_x // stride))
    ox_hi = min(out_w - 1, (W - 1 - off_x) // stride)
    if oy_hi < oy_lo or ox_hi < ox_lo:            # tap entirely outside the input
        return None
    ny, nx = oy_hi - oy_lo + 1, ox_hi - ox_lo + 1
    iy0, ix0 = oy_lo * stride + off_y, ox_lo * stride + off_x
    sl = x[:, iy0:iy0 + (ny - 1) * stride + 1:stride,
              ix0:ix0 + (nx - 1) * stride + 1:stride, :]
    return jnp.pad(sl, ((0, 0),
                        (oy_lo, out_h - 1 - oy_hi),
                        (ox_lo, out_w - 1 - ox_hi),
                        (0, 0)))


def conv2d_bn_act(x, layer, stride=1, padding=0, dilation=1,
                  activation="relu", out_dtype=jnp.bfloat16):
    """x: NHWC.  layer: (w_p [pK,pN] bf16, b_p [1,pN] f32, k, cin, cout)."""
    w_p, b_p, k, cin, cout = layer
    N, H, W, C = x.shape
    assert C == cin
    out_h = (H + 2 * padding - dilation * (k - 1) - 1) // stride + 1
    out_w = (W + 2 * padding - dilation * (k - 1) - 1) // stride + 1

    if k == 1 and stride == 1 and padding == 0:
        a = x.reshape(N * H * W, cin)              # 1x1 conv: no im2col at all
        w_use = w_p
    else:
        slabs, w_rows = [], []
        for t, (dy, dx) in enumerate((dy, dx) for dy in range(k) for dx in range(k)):
            slab = _tap_slab(x, out_h, out_w, stride, padding, dilation, dy, dx)
            if slab is None:
                continue                           # statically-zero tap: skip slab + weights
            slabs.append(slab)
            w_rows.append(w_p[t * cin:(t + 1) * cin, :])
        assert slabs, "conv has no contributing taps"
        a = jnp.concatenate(slabs, axis=-1).reshape(N * out_h * out_w, len(slabs) * cin)
        if len(slabs) == k * k:
            w_use = w_p                            # all taps active: use pre-padded weights
        else:
            w_sel = jnp.concatenate(w_rows, axis=0)          # constant-folded by XLA
            pk_sel = _round_up(w_sel.shape[0], 128)
            w_use = jnp.pad(w_sel, ((0, pk_sel - w_sel.shape[0]), (0, 0)))

    out = fused_matmul(a, w_use, b_p, cout, activation, out_dtype)
    return out.reshape(N, out_h, out_w, cout)


# -----------------------------------------------------------------------------
# Bilinear interpolation (glue; matches torch F.interpolate semantics)
# -----------------------------------------------------------------------------
def bilinear_resize(x, out_h, out_w, align_corners):
    N, H, W, C = x.shape
    dt = x.dtype
    xf = x.astype(jnp.float32)

    def coords(out_size, in_size):
        if out_size == 1:
            return jnp.zeros((1,), jnp.float32)
        if align_corners:
            return jnp.arange(out_size, dtype=jnp.float32) * (in_size - 1) / (out_size - 1)
        s = (jnp.arange(out_size, dtype=jnp.float32) + 0.5) * in_size / out_size - 0.5
        return jnp.clip(s, 0.0, in_size - 1)

    ys, xs = coords(out_h, H), coords(out_w, W)
    y0 = jnp.floor(ys).astype(jnp.int32)
    y1 = jnp.minimum(y0 + 1, H - 1)
    wy = (ys - y0)[None, :, None, None]
    x0 = jnp.floor(xs).astype(jnp.int32)
    x1 = jnp.minimum(x0 + 1, W - 1)
    wx = (xs - x0)[None, None, :, None]

    x_y0 = xf[:, y0]                 # row gathers hoisted: each done once, used twice
    x_y1 = xf[:, y1]
    top = x_y0[:, :, x0] * (1 - wx) + x_y0[:, :, x1] * wx
    bot = x_y1[:, :, x0] * (1 - wx) + x_y1[:, :, x1] * wx
    return (top * (1 - wy) + bot * wy).astype(dt)


# -----------------------------------------------------------------------------
# Parameter construction (deterministic; BN folded; weights pre-transposed,
# scale-folded, pre-padded, bf16)
# -----------------------------------------------------------------------------
def make_layer(key, cin, cout, k, conv_bias=False, bn=True):
    keys = jax.random.split(key, 6)
    fan_in = cin * k * k
    w = jax.random.normal(keys[0], (cout, cin, k, k), jnp.float32) / jnp.sqrt(fan_in)
    b = (0.01 * jax.random.normal(keys[1], (cout,), jnp.float32)
         if conv_bias else jnp.zeros((cout,), jnp.float32))
    if bn:
        gamma = 1.0 + 0.1 * jax.random.normal(keys[2], (cout,), jnp.float32)
        beta = 0.1 * jax.random.normal(keys[3], (cout,), jnp.float32)
        r_mean = 0.01 * jax.random.normal(keys[4], (cout,), jnp.float32)
        r_var = 1.0 + 0.1 * jax.random.uniform(keys[5], (cout,), jnp.float32)
        scale = gamma / jnp.sqrt(r_var + 1e-5)
        bias = (b - r_mean) * scale + beta
    else:
        scale = jnp.ones((cout,), jnp.float32)
        bias = b
    # [Cout,Cin,kh,kw] -> [kh*kw*Cin, Cout], fold BN scale into columns, pad, cast bf16.
    K = k * k * cin
    w_mat = jnp.transpose(w, (2, 3, 1, 0)).reshape(K, cout) * scale[None, :]
    pK, pN = _round_up(K, 128), _round_up(cout, 128)
    w_p = jnp.pad(w_mat, ((0, pK - K), (0, pN - cout))).astype(jnp.bfloat16)
    b_p = jnp.pad(bias.reshape(1, cout), ((0, 0), (0, pN - cout))).astype(jnp.float32)
    return (w_p, b_p, k, cin, cout)


def build_params(key, num_bands=4):
    specs = {
        # --- backbone stand-in (shapes/strides of Xception65_feat outputs) ---
        "bb_conv1": (num_bands, 32, 3, False, True),
        "bb_conv2": (32, 64, 3, False, True),
        "bb_block1": (64, 128, 3, False, True),
        "bb_block2": (128, 256, 3, False, True),
        "bb_block3": (256, 512, 3, False, True),
        "bb_conv5": (512, 2048, 1, False, True),
        # --- ASPP ---
        "aspp0": (2048, 256, 1, False, True),
        "aspp1": (2048, 256, 3, False, True),
        "aspp2": (2048, 256, 3, False, True),
        "aspp3": (2048, 256, 3, False, True),
        "aspp_pool": (2048, 256, 1, False, True),
        "aspp_proj": (5 * 256, 256, 1, False, True),
        # --- decoder ---
        "low_block": (128, 48, 1, True, True),
        "hl1": (304, 256, 3, True, True),
        "hl2": (256, 256, 3, True, True),
        "outp": (256, 1, 1, True, False),
    }
    params = {}
    keys = jax.random.split(key, len(specs))
    for k_, (name, spec) in zip(keys, specs.items()):
        cin, cout, ks, cb, bn = spec
        params[name] = make_layer(k_, cin, cout, ks, conv_bias=cb, bn=bn)
    return params


# -----------------------------------------------------------------------------
# Forward pass
# -----------------------------------------------------------------------------
def deeplabv3plus_forward(x_nchw, params):
    x = jnp.transpose(x_nchw, (0, 2, 3, 1)).astype(jnp.bfloat16)   # NHWC, bf16 activations
    in_h, in_w = x.shape[1], x.shape[2]

    # ---- backbone: fea_low (128ch @ stride 4) and fea_high (2048ch @ stride 16)
    # TODO(synk): the Xception65 class is not provided in the source; its entry/middle/exit
    # flows are replaced by plain conv+BN+ReLU stand-ins with matching strides/channels.
    h = conv2d_bn_act(x, params["bb_conv1"], stride=2, padding=1)
    h = conv2d_bn_act(h, params["bb_conv2"], stride=1, padding=1)
    fea_low = conv2d_bn_act(h, params["bb_block1"], stride=2, padding=1)        # [N,H/4,W/4,128]
    h = conv2d_bn_act(fea_low, params["bb_block2"], stride=2, padding=1)
    h = conv2d_bn_act(h, params["bb_block3"], stride=2, padding=1)
    fea_high = conv2d_bn_act(h, params["bb_conv5"])                             # [N,H/16,W/16,2048]

    # ---- ASPP (in=2048, rates 12/24/36, out=256); dilated convs use implicit tap
    # padding, and statically-zero taps (dilation beyond the feature map) are skipped.
    b0 = conv2d_bn_act(fea_high, params["aspp0"])
    b1 = conv2d_bn_act(fea_high, params["aspp1"], padding=12, dilation=12)
    b2 = conv2d_bn_act(fea_high, params["aspp2"], padding=24, dilation=24)
    b3 = conv2d_bn_act(fea_high, params["aspp3"], padding=36, dilation=36)

    # pooling branch: global avg pool -> 1x1 conv (Pallas matmul) -> broadcast
    pooled = jnp.mean(fea_high.astype(jnp.float32), axis=(1, 2))                # [N, 2048]
    wp, bp, _, _, cout_p = params["aspp_pool"]
    pc = fused_matmul(pooled, wp, bp, cout_p, activation="relu")                # [N, 256]
    b4 = jnp.broadcast_to(pc[:, None, None, :], b0.shape)   # bilinear from 1x1 == broadcast

    cat = jnp.concatenate([b0, b1, b2, b3, b4], axis=-1)                        # [N,h,w,1280]
    x_high = conv2d_bn_act(cat, params["aspp_proj"])     # Dropout(0.5) -> identity (inference)

    # ---- decoder
    x_high = bilinear_resize(x_high, fea_low.shape[1], fea_low.shape[2], align_corners=True)
    x_low = conv2d_bn_act(fea_low, params["low_block"])
    x_cat = jnp.concatenate([x_high, x_low], axis=-1)                           # [N,H/4,W/4,304]
    x_cat = conv2d_bn_act(x_cat, params["hl1"], padding=1)     # Dropout(0.5) -> identity
    x_cat = conv2d_bn_act(x_cat, params["hl2"], padding=1)     # Dropout(0.1) -> identity

    prob = conv2d_bn_act(x_cat, params["outp"], activation="sigmoid",
                         out_dtype=jnp.float32)                                 # [N,H/4,W/4,1]
    prob = bilinear_resize(prob, in_h, in_w, align_corners=True)
    return jnp.transpose(prob, (0, 3, 1, 2))                                    # NCHW [N,1,H,W]


if __name__ == "__main__":
    key = jax.random.PRNGKey(0)
    k_params, k_x = jax.random.split(key)
    params = build_params(k_params, num_bands=4)

    # small shapes: batch=2, bands=4, spatial=32 -> fea_low 8x8, fea_high 2x2
    x = jax.random.normal(k_x, (2, 4, 32, 32), jnp.float32)

    fwd = jax.jit(lambda xx: deeplabv3plus_forward(xx, params))
    out = jax.block_until_ready(fwd(x))

    assert out.shape == (2, 1, 32, 32), out.shape
    assert bool(jnp.all(jnp.isfinite(out)))
    assert bool(jnp.all((out >= 0.0) & (out <= 1.0 + 1e-5)))  # sigmoid output (fp tolerance)
    print("KERNEL_OK")
</pallas_src>

<mosaic_0001>
module attributes {stable_mosaic.version = 11 : i64} {
  func.func @_matmul_fused_kernel(%arg0: i32, %arg1: i32, %arg2: i32, %arg3: memref<256x128xbf16, #tpu.memory_space<vmem>>, %arg4: memref<128x128xbf16, #tpu.memory_space<vmem>>, %arg5: memref<1x128xf32, #tpu.memory_space<vmem>>, %arg6: memref<256x128xbf16, #tpu.memory_space<vmem>>, %arg7: memref<256x128xf32, #tpu.memory_space<vmem>>) attributes {dimension_semantics = [#tpu.dimension_semantics<parallel>, #tpu.dimension_semantics<parallel>, #tpu.dimension_semantics<arbitrary>], iteration_bounds = array<i64: 2, 1, 1>, scalar_prefetch = 0 : i64, scratch_operands = 1 : i64, tpu.core_type = #tpu.core_type<tc>, window_params = [{transform_indices = @transform_0, window_bounds = array<i64: 256, 128>}, {transform_indices = @transform_1, window_bounds = array<i64: 128, 128>}, {transform_indices = @transform_2, window_bounds = array<i64: 1, 128>}, {transform_indices = @transform_3, window_bounds = array<i64: 256, 128>}]} {
    %c0_i32 = arith.constant 0 : i32
    %0 = arith.cmpi eq, %arg2, %c0_i32 : i32
    %1 = arith.extui %0 : i1 to i32
    %c0_i32_0 = arith.constant 0 : i32
    %2 = arith.cmpi ne, %1, %c0_i32_0 : i32
    scf.if %2 {
      %cst_10 = arith.constant 0.000000e+00 : f32
      %12 = vector.broadcast %cst_10 : f32 to vector<256x128xf32>
      %c0_11 = arith.constant 0 : index
      %c0_12 = arith.constant 0 : index
      %13 = vector.load %arg7[%c0_11, %c0_12] : memref<256x128xf32, #tpu.memory_space<vmem>>, vector<256x128xf32>
      tpu.vector_store %arg7[%c0_11, %c0_12], %12 {strides = array<i32>} : memref<256x128xf32, #tpu.memory_space<vmem>>, vector<256x128xf32>,
    } else {
    }
    %c0 = arith.constant 0 : index
    %c0_1 = arith.constant 0 : index
    %3 = vector.load %arg7[%c0, %c0_1] : memref<256x128xf32, #tpu.memory_space<vmem>>, vector<256x128xf32>
    %c0_2 = arith.constant 0 : index
    %c0_3 = arith.constant 0 : index
    %4 = vector.load %arg3[%c0_2, %c0_3] : memref<256x128xbf16, #tpu.memory_space<vmem>>, vector<256x128xbf16>
    %c0_4 = arith.constant 0 : index
    %c0_5 = arith.constant 0 : index
    %5 = vector.load %arg4[%c0_4, %c0_5] : memref<128x128xbf16, #tpu.memory_space<vmem>>, vector<128x128xbf16>
    %cst = arith.constant dense<0.000000e+00> : vector<256x128xf32>
    %6 = tpu.matmul %4, %5, %cst {dimension_numbers = #tpu.dot_dimension_numbers<[1], [0], [0], [1], [0, 0, 1, 1], [], []>} : vector<256x128xbf16>, vector<128x128xbf16>, vector<256x128xf32> -> vector<256x128xf32>
    %7 = arith.addf %3, %6 : vector<256x128xf32>
    %c0_6 = arith.constant 0 : index
    %c0_7 = arith.constant 0 : index
    %8 = vector.load %arg7[%c0_6, %c0_7] : memref<256x128xf32, #tpu.memory_space<vmem>>, vector<256x128xf32>
    tpu.vector_store %arg7[%c0_6, %c0_7], %7 {strides = array<i32>} : memref<256x128xf32, #tpu.memory_space<vmem>>, vector<256x128xf32>,
    %c0_i32_8 = arith.constant 0 : i32
    %9 = arith.cmpi eq, %arg2, %c0_i32_8 : i32
    %10 = arith.extui %9 : i1 to i32
    %c0_i32_9 = arith.constant 0 : i32
    %11 = arith.cmpi ne, %10, %c0_i32_9 : i32
    scf.if %11 {
      %c0_10 = arith.constant 0 : index
      %c0_11 = arith.constant 0 : index
      %12 = vector.load %arg7[%c0_10, %c0_11] : memref<256x128xf32, #tpu.memory_space<vmem>>, vector<256x128xf32>
      %c0_12 = arith.constant 0 : index
      %c0_13 = arith.constant 0 : index
      %13 = vector.load %arg5[%c0_12, %c0_13] : memref<1x128xf32, #tpu.memory_space<vmem>>, vector<1x128xf32>
      %14 = vector.broadcast %13 : vector<1x128xf32> to vector<256x128xf32>
      %15 = arith.addf %12, %14 : vector<256x128xf32>
      %cst_14 = arith.constant 0.000000e+00 : f32
      %16 = vector.broadcast %cst_14 : f32 to vector<256x128xf32>
      %17 = arith.maximumf %15, %16 : vector<256x128xf32>
      %18 = arith.truncf %17 : vector<256x128xf32> to vector<256x128xbf16>
      %c0_15 = arith.constant 0 : index
      %c0_16 = arith.constant 0 : index
      %19 = vector.load %arg6[%c0_15, %c0_16] : memref<256x128xbf16, #tpu.memory_space<vmem>>, vector<256x128xbf16>
      tpu.vector_store %arg6[%c0_15, %c0_16], %18 {strides = array<i32>} : memref<256x128xbf16, #tpu.memory_space<vmem>>, vector<256x128xbf16>,
    } else {
    }
    return
  }
  func.func @transform_0(%arg0: i32, %arg1: i32, %arg2: i32) -> (i32, i32) {
    %c0_i32 = arith.constant 0 : i32
    return %arg0, %arg2 : i32, i32
  }
  func.func @transform_1(%arg0: i32, %arg1: i32, %arg2: i32) -> (i32, i32) {
    %c0_i32 = arith.constant 0 : i32
    return %arg2, %arg1 : i32, i32
  }
  func.func @transform_2(%arg0: i32, %arg1: i32, %arg2: i32) -> (i32, i32) {
    %c0_i32 = arith.constant 0 : i32
    %c0_i32_0 = arith.constant 0 : i32
    return %c0_i32, %arg1 : i32, i32
  }
  func.func @transform_3(%arg0: i32, %arg1: i32, %arg2: i32) -> (i32, i32) {
    %c0_i32 = arith.constant 0 : i32
    return %arg0, %arg1 : i32, i32
  }
}

module attributes {stable_mosaic.version = 11 : i64} {
  func.func @_matmul_fused_kernel(%arg0: i32, %arg1: i32, %arg2: i32, %arg3: memref<256x384xbf16, #tpu.memory_space<vmem>>, %arg4: memref<384x128xbf16, #tpu.memory_space<vmem>>, %arg5: memref<1x128xf32, #tpu.memory_space<vmem>>, %arg6: memref<256x128xbf16, #tpu.memory_space<vmem>>, %arg7: memref<256x128xf32, #tpu.memory_space<vmem>>) attributes {dimension_semantics = [#tpu.dimension_semantics<parallel>, #tpu.dimension_semantics<parallel>, #tpu.dimension_semantics<arbitrary>], iteration_bounds = array<i64: 2, 1, 1>, scalar_prefetch = 0 : i64, scratch_operands = 1 : i64, tpu.core_type = #tpu.core_type<tc>, window_params = [{transform_indices = @transform_0, window_bounds = array<i64: 256, 384>}, {transform_indices = @transform_1, window_bounds = array<i64: 384, 128>}, {transform_indices = @transform_2, window_bounds = array<i64: 1, 128>}, {transform_indices = @transform_3, window_bounds = array<i64: 256, 128>}]} {
    %c0_i32 = arith.constant 0 : i32
    %0 = arith.cmpi eq, %arg2, %c0_i32 : i32
    %1 = arith.extui %0 : i1 to i32
    %c0_i32_0 = arith.constant 0 : i32
    %2 = arith.cmpi ne, %1, %c0_i32_0 : i32
    scf.if %2 {
      %cst_10 = arith.constant 0.000000e+00 : f32
      %12 = vector.broadcast %cst_10 : f32 to vector<256x128xf32>
      %c0_11 = arith.constant 0 : index
      %c0_12 = arith.constant 0 : index
      %13 = vector.load %arg7[%c0_11, %c0_12] : memref<256x128xf32, #tpu.memory_space<vmem>>, vector<256x128xf32>
      tpu.vector_store %arg7[%c0_11, %c0_12], %12 {strides = array<i32>} : memref<256x128xf32, #tpu.memory_space<vmem>>, vector<256x128xf32>,
    } else {
    }
    %c0 = arith.constant 0 : index
    %c0_1 = arith.constant 0 : index
    %3 = vector.load %arg7[%c0, %c0_1] : memref<256x128xf32, #tpu.memory_space<vmem>>, vector<256x128xf32>
    %c0_2 = arith.constant 0 : index
    %c0_3 = arith.constant 0 : index
    %4 = vector.load %arg3[%c0_2, %c0_3] : memref<256x384xbf16, #tpu.memory_space<vmem>>, vector<256x384xbf16>
    %c0_4 = arith.constant 0 : index
    %c0_5 = arith.constant 0 : index
    %5 = vector.load %arg4[%c0_4, %c0_5] : memref<384x128xbf16, #tpu.memory_space<vmem>>, vector<384x128xbf16>
    %cst = arith.constant dense<0.000000e+00> : vector<256x128xf32>
    %6 = tpu.matmul %4, %5, %cst {dimension_numbers = #tpu.dot_dimension_numbers<[1], [0], [0], [1], [0, 0, 1, 1], [], []>} : vector<256x384xbf16>, vector<384x128xbf16>, vector<256x128xf32> -> vector<256x128xf32>
    %7 = arith.addf %3, %6 : vector<256x128xf32>
    %c0_6 = arith.constant 0 : index
    %c0_7 = arith.constant 0 : index
    %8 = vector.load %arg7[%c0_6, %c0_7] : memref<256x128xf32, #tpu.memory_space<vmem>>, vector<256x128xf32>
    tpu.vector_store %arg7[%c0_6, %c0_7], %7 {strides = array<i32>} : memref<256x128xf32, #tpu.memory_space<vmem>>, vector<256x128xf32>,
    %c0_i32_8 = arith.constant 0 : i32
    %9 = arith.cmpi eq, %arg2, %c0_i32_8 : i32
    %10 = arith.extui %9 : i1 to i32
    %c0_i32_9 = arith.constant 0 : i32
    %11 = arith.cmpi ne, %10, %c0_i32_9 : i32
    scf.if %11 {
      %c0_10 = arith.constant 0 : index
      %c0_11 = arith.constant 0 : index
      %12 = vector.load %arg7[%c0_10, %c0_11] : memref<256x128xf32, #tpu.memory_space<vmem>>, vector<256x128xf32>
      %c0_12 = arith.constant 0 : index
      %c0_13 = arith.constant 0 : index
      %13 = vector.load %arg5[%c0_12, %c0_13] : memref<1x128xf32, #tpu.memory_space<vmem>>, vector<1x128xf32>
      %14 = vector.broadcast %13 : vector<1x128xf32> to vector<256x128xf32>
      %15 = arith.addf %12, %14 : vector<256x128xf32>
      %cst_14 = arith.constant 0.000000e+00 : f32
      %16 = vector.broadcast %cst_14 : f32 to vector<256x128xf32>
      %17 = arith.maximumf %15, %16 : vector<256x128xf32>
      %18 = arith.truncf %17 : vector<256x128xf32> to vector<256x128xbf16>
      %c0_15 = arith.constant 0 : index
      %c0_16 = arith.constant 0 : index
      %19 = vector.load %arg6[%c0_15, %c0_16] : memref<256x128xbf16, #tpu.memory_space<vmem>>, vector<256x128xbf16>
      tpu.vector_store %arg6[%c0_15, %c0_16], %18 {strides = array<i32>} : memref<256x128xbf16, #tpu.memory_space<vmem>>, vector<256x128xbf16>,
    } else {
    }
    return
  }
  func.func @transform_0(%arg0: i32, %arg1: i32, %arg2: i32) -> (i32, i32) {
    %c0_i32 = arith.constant 0 : i32
    return %arg0, %arg2 : i32, i32
  }
  func.func @transform_1(%arg0: i32, %arg1: i32, %arg2: i32) -> (i32, i32) {
    %c0_i32 = arith.constant 0 : i32
    return %arg2, %arg1 : i32, i32
  }
  func.func @transform_2(%arg0: i32, %arg1: i32, %arg2: i32) -> (i32, i32) {
    %c0_i32 = arith.constant 0 : i32
    %c0_i32_0 = arith.constant 0 : i32
    return %c0_i32, %arg1 : i32, i32
  }
  func.func @transform_3(%arg0: i32, %arg1: i32, %arg2: i32) -> (i32, i32) {
    %c0_i32 = arith.constant 0 : i32
    return %arg0, %arg1 : i32, i32
  }
}

module attributes {stable_mosaic.version = 11 : i64} {
  func.func @_matmul_fused_kernel(%arg0: i32, %arg1: i32, %arg2: i32, %arg3: memref<128x128xbf16, #tpu.memory_space<vmem>>, %arg4: memref<128x128xbf16, #tpu.memory_space<vmem>>, %arg5: memref<1x128xf32, #tpu.memory_space<vmem>>, %arg6: memref<128x128xbf16, #tpu.memory_space<vmem>>, %arg7: memref<128x128xf32, #tpu.memory_space<vmem>>) attributes {dimension_semantics = [#tpu.dimension_semantics<parallel>, #tpu.dimension_semantics<parallel>, #tpu.dimension_semantics<arbitrary>], iteration_bounds = array<i64: 1, 1, 5>, scalar_prefetch = 0 : i64, scratch_operands = 1 : i64, tpu.core_type = #tpu.core_type<tc>, window_params = [{transform_indices = @transform_0, window_bounds = array<i64: 128, 128>}, {transform_indices = @transform_1, window_bounds = array<i64: 128, 128>}, {transform_indices = @transform_2, window_bounds = array<i64: 1, 128>}, {transform_indices = @transform_3, window_bounds = array<i64: 128, 128>}]} {
    %c0_i32 = arith.constant 0 : i32
    %0 = arith.cmpi eq, %arg2, %c0_i32 : i32
    %1 = arith.extui %0 : i1 to i32
    %c0_i32_0 = arith.constant 0 : i32
    %2 = arith.cmpi ne, %1, %c0_i32_0 : i32
    scf.if %2 {
      %cst_9 = arith.constant 0.000000e+00 : f32
      %12 = vector.broadcast %cst_9 : f32 to vector<128x128xf32>
      %c0_10 = arith.constant 0 : index
      %c0_11 = arith.constant 0 : index
      %13 = vector.load %arg7[%c0_10, %c0_11] : memref<128x128xf32, #tpu.memory_space<vmem>>, vector<128x128xf32>
      tpu.vector_store %arg7[%c0_10, %c0_11], %12 {strides = array<i32>} : memref<128x128xf32, #tpu.memory_space<vmem>>, vector<128x128xf32>,
    } else {
    }
    %c0 = arith.constant 0 : index
    %c0_1 = arith.constant 0 : index
    %3 = vector.load %arg7[%c0, %c0_1] : memref<128x128xf32, #tpu.memory_space<vmem>>, vector<128x128xf32>
    %c0_2 = arith.constant 0 : index
    %c0_3 = arith.constant 0 : index
    %4 = vector.load %arg3[%c0_2, %c0_3] : memref<128x128xbf16, #tpu.memory_space<vmem>>, vector<128x128xbf16>
    %c0_4 = arith.constant 0 : index
    %c0_5 = arith.constant 0 : index
    %5 = vector.load %arg4[%c0_4, %c0_5] : memref<128x128xbf16, #tpu.memory_space<vmem>>, vector<128x128xbf16>
    %cst = arith.constant dense<0.000000e+00> : vector<128x128xf32>
    %6 = tpu.matmul %4, %5, %cst {dimension_numbers = #tpu.dot_dimension_numbers<[1], [0], [0], [1], [0, 0, 1, 1], [], []>} : vector<128x128xbf16>, vector<128x128xbf16>, vector<128x128xf32> -> vector<128x128xf32>
    %7 = arith.addf %3, %6 : vector<128x128xf32>
    %c0_6 = arith.constant 0 : index
    %c0_7 = arith.constant 0 : index
    %8 = vector.load %arg7[%c0_6, %c0_7] : memref<128x128xf32, #tpu.memory_space<vmem>>, vector<128x128xf32>
    tpu.vector_store %arg7[%c0_6, %c0_7], %7 {strides = array<i32>} : memref<128x128xf32, #tpu.memory_space<vmem>>, vector<128x128xf32>,
    %c4_i32 = arith.constant 4 : i32
    %9 = arith.cmpi eq, %arg2, %c4_i32 : i32
    %10 = arith.extui %9 : i1 to i32
    %c0_i32_8 = arith.constant 0 : i32
    %11 = arith.cmpi ne, %10, %c0_i32_8 : i32
    scf.if %11 {
      %c0_9 = arith.constant 0 : index
      %c0_10 = arith.constant 0 : index
      %12 = vector.load %arg7[%c0_9, %c0_10] : memref<128x128xf32, #tpu.memory_space<vmem>>, vector<128x128xf32>
      %c0_11 = arith.constant 0 : index
      %c0_12 = arith.constant 0 : index
      %13 = vector.load %arg5[%c0_11, %c0_12] : memref<1x128xf32, #tpu.memory_space<vmem>>, vector<1x128xf32>
      %14 = vector.broadcast %13 : vector<1x128xf32> to vector<128x128xf32>
      %15 = arith.addf %12, %14 : vector<128x128xf32>
      %cst_13 = arith.constant 0.000000e+00 : f32
      %16 = vector.broadcast %cst_13 : f32 to vector<128x128xf32>
      %17 = arith.maximumf %15, %16 : vector<128x128xf32>
      %18 = arith.truncf %17 : vector<128x128xf32> to vector<128x128xbf16>
      %c0_14 = arith.constant 0 : index
      %c0_15 = arith.constant 0 : index
      %19 = vector.load %arg6[%c0_14, %c0_15] : memref<128x128xbf16, #tpu.memory_space<vmem>>, vector<128x128xbf16>
      tpu.vector_store %arg6[%c0_14, %c0_15], %18 {strides = array<i32>} : memref<128x128xbf16, #tpu.memory_space<vmem>>, vector<128x128xbf16>,
    } else {
    }
    return
  }
  func.func @transform_0(%arg0: i32, %arg1: i32, %arg2: i32) -> (i32, i32) {
    %c0_i32 = arith.constant 0 : i32
    return %arg0, %arg2 : i32, i32
  }
  func.func @transform_1(%arg0: i32, %arg1: i32, %arg2: i32) -> (i32, i32) {
    %c0_i32 = arith.constant 0 : i32
    return %arg2, %arg1 : i32, i32
  }
  func.func @transform_2(%arg0: i32, %arg1: i32, %arg2: i32) -> (i32, i32) {
    %c0_i32 = arith.constant 0 : i32
    %c0_i32_0 = arith.constant 0 : i32
    return %c0_i32, %arg1 : i32, i32
  }
  func.func @transform_3(%arg0: i32, %arg1: i32, %arg2: i32) -> (i32, i32) {
    %c0_i32 = arith.constant 0 : i32
    return %arg0, %arg1 : i32, i32
  }
}

module attributes {stable_mosaic.version = 11 : i64} {
  func.func @_matmul_fused_kernel(%arg0: i32, %arg1: i32, %arg2: i32, %arg3: memref<32x384xbf16, #tpu.memory_space<vmem>>, %arg4: memref<384x128xbf16, #tpu.memory_space<vmem>>, %arg5: memref<1x128xf32, #tpu.memory_space<vmem>>, %arg6: memref<32x128xbf16, #tpu.memory_space<vmem>>, %arg7: memref<32x128xf32, #tpu.memory_space<vmem>>) attributes {dimension_semantics = [#tpu.dimension_semantics<parallel>, #tpu.dimension_semantics<parallel>, #tpu.dimension_semantics<arbitrary>], iteration_bounds = array<i64: 1, 2, 3>, scalar_prefetch = 0 : i64, scratch_operands = 1 : i64, tpu.core_type = #tpu.core_type<tc>, window_params = [{transform_indices = @transform_0, window_bounds = array<i64: 32, 384>}, {transform_indices = @transform_1, window_bounds = array<i64: 384, 128>}, {transform_indices = @transform_2, window_bounds = array<i64: 1, 128>}, {transform_indices = @transform_3, window_bounds = array<i64: 32, 128>}]} {
    %c0_i32 = arith.constant 0 : i32
    %0 = arith.cmpi eq, %arg2, %c0_i32 : i32
    %1 = arith.extui %0 : i1 to i32
    %c0_i32_0 = arith.constant 0 : i32
    %2 = arith.cmpi ne, %1, %c0_i32_0 : i32
    scf.if %2 {
      %cst_9 = arith.constant 0.000000e+00 : f32
      %12 = vector.broadcast %cst_9 : f32 to vector<32x128xf32>
      %c0_10 = arith.constant 0 : index
      %c0_11 = arith.constant 0 : index
      %13 = vector.load %arg7[%c0_10, %c0_11] : memref<32x128xf32, #tpu.memory_space<vmem>>, vector<32x128xf32>
      tpu.vector_store %arg7[%c0_10, %c0_11], %12 {strides = array<i32>} : memref<32x128xf32, #tpu.memory_space<vmem>>, vector<32x128xf32>,
    } else {
    }
    %c0 = arith.constant 0 : index
    %c0_1 = arith.constant 0 : index
    %3 = vector.load %arg7[%c0, %c0_1] : memref<32x128xf32, #tpu.memory_space<vmem>>, vector<32x128xf32>
    %c0_2 = arith.constant 0 : index
    %c0_3 = arith.constant 0 : index
    %4 = vector.load %arg3[%c0_2, %c0_3] : memref<32x384xbf16, #tpu.memory_space<vmem>>, vector<32x384xbf16>
    %c0_4 = arith.constant 0 : index
    %c0_5 = arith.constant 0 : index
    %5 = vector.load %arg4[%c0_4, %c0_5] : memref<384x128xbf16, #tpu.memory_space<vmem>>, vector<384x128xbf16>
    %cst = arith.constant dense<0.000000e+00> : vector<32x128xf32>
    %6 = tpu.matmul %4, %5, %cst {dimension_numbers = #tpu.dot_dimension_numbers<[1], [0], [0], [1], [0, 0, 1, 1], [], []>} : vector<32x384xbf16>, vector<384x128xbf16>, vector<32x128xf32> -> vector<32x128xf32>
    %7 = arith.addf %3, %6 : vector<32x128xf32>
    %c0_6 = arith.constant 0 : index
    %c0_7 = arith.constant 0 : index
    %8 = vector.load %arg7[%c0_6, %c0_7] : memref<32x128xf32, #tpu.memory_space<vmem>>, vector<32x128xf32>
    tpu.vector_store %arg7[%c0_6, %c0_7], %7 {strides = array<i32>} : memref<32x128xf32, #tpu.memory_space<vmem>>, vector<32x128xf32>,
    %c2_i32 = arith.constant 2 : i32
    %9 = arith.cmpi eq, %arg2, %c2_i32 : i32
    %10 = arith.extui %9 : i1 to i32
    %c0_i32_8 = arith.constant 0 : i32
    %11 = arith.cmpi ne, %10, %c0_i32_8 : i32
    scf.if %11 {
      %c0_9 = arith.constant 0 : index
      %c0_10 = arith.constant 0 : index
      %12 = vector.load %arg7[%c0_9, %c0_10] : memref<32x128xf32, #tpu.memory_space<vmem>>, vector<32x128xf32>
      %c0_11 = arith.constant 0 : index
      %c0_12 = arith.constant 0 : index
      %13 = vector.load %arg5[%c0_11, %c0_12] : memref<1x128xf32, #tpu.memory_space<vmem>>, vector<1x128xf32>
      %14 = vector.broadcast %13 : vector<1x128xf32> to vector<32x128xf32>
      %15 = arith.addf %12, %14 : vector<32x128xf32>
      %cst_13 = arith.constant 0.000000e+00 : f32
      %16 = vector.broadcast %cst_13 : f32 to vector<32x128xf32>
      %17 = arith.maximumf %15, %16 : vector<32x128xf32>
      %18 = arith.truncf %17 : vector<32x128xf32> to vector<32x128xbf16>
      %c0_14 = arith.constant 0 : index
      %c0_15 = arith.constant 0 : index
      %19 = vector.load %arg6[%c0_14, %c0_15] : memref<32x128xbf16, #tpu.memory_space<vmem>>, vector<32x128xbf16>
      tpu.vector_store %arg6[%c0_14, %c0_15], %18 {strides = array<i32>} : memref<32x128xbf16, #tpu.memory_space<vmem>>, vector<32x128xbf16>,
    } else {
    }
    return
  }
  func.func @transform_0(%arg0: i32, %arg1: i32, %arg2: i32) -> (i32, i32) {
    %c0_i32 = arith.constant 0 : i32
    return %arg0, %arg2 : i32, i32
  }
  func.func @transform_1(%arg0: i32, %arg1: i32, %arg2: i32) -> (i32, i32) {
    %c0_i32 = arith.constant 0 : i32
    return %arg2, %arg1 : i32, i32
  }
  func.func @transform_2(%arg0: i32, %arg1: i32, %arg2: i32) -> (i32, i32) {
    %c0_i32 = arith.constant 0 : i32
    %c0_i32_0 = arith.constant 0 : i32
    return %c0_i32, %arg1 : i32, i32
  }
  func.func @transform_3(%arg0: i32, %arg1: i32, %arg2: i32) -> (i32, i32) {
    %c0_i32 = arith.constant 0 : i32
    return %arg0, %arg1 : i32, i32
  }
}

module attributes {stable_mosaic.version = 11 : i64} {
  func.func @_matmul_fused_kernel(%arg0: i32, %arg1: i32, %arg2: i32, %arg3: memref<16x384xbf16, #tpu.memory_space<vmem>>, %arg4: memref<384x256xbf16, #tpu.memory_space<vmem>>, %arg5: memref<1x256xf32, #tpu.memory_space<vmem>>, %arg6: memref<16x256xbf16, #tpu.memory_space<vmem>>, %arg7: memref<16x256xf32, #tpu.memory_space<vmem>>) attributes {dimension_semantics = [#tpu.dimension_semantics<parallel>, #tpu.dimension_semantics<parallel>, #tpu.dimension_semantics<arbitrary>], iteration_bounds = array<i64: 1, 2, 6>, scalar_prefetch = 0 : i64, scratch_operands = 1 : i64, tpu.core_type = #tpu.core_type<tc>, window_params = [{transform_indices = @transform_0, window_bounds = array<i64: 16, 384>}, {transform_indices = @transform_1, window_bounds = array<i64: 384, 256>}, {transform_indices = @transform_2, window_bounds = array<i64: 1, 256>}, {transform_indices = @transform_3, window_bounds = array<i64: 16, 256>}]} {
    %c0_i32 = arith.constant 0 : i32
    %0 = arith.cmpi eq, %arg2, %c0_i32 : i32
    %1 = arith.extui %0 : i1 to i32
    %c0_i32_0 = arith.constant 0 : i32
    %2 = arith.cmpi ne, %1, %c0_i32_0 : i32
    scf.if %2 {
      %cst_9 = arith.constant 0.000000e+00 : f32
      %12 = vector.broadcast %cst_9 : f32 to vector<16x256xf32>
      %c0_10 = arith.constant 0 : index
      %c0_11 = arith.constant 0 : index
      %13 = vector.load %arg7[%c0_10, %c0_11] : memref<16x256xf32, #tpu.memory_space<vmem>>, vector<16x256xf32>
      tpu.vector_store %arg7[%c0_10, %c0_11], %12 {strides = array<i32>} : memref<16x256xf32, #tpu.memory_space<vmem>>, vector<16x256xf32>,
    } else {
    }
    %c0 = arith.constant 0 : index
    %c0_1 = arith.constant 0 : index
    %3 = vector.load %arg7[%c0, %c0_1] : memref<16x256xf32, #tpu.memory_space<vmem>>, vector<16x256xf32>
    %c0_2 = arith.constant 0 : index
    %c0_3 = arith.constant 0 : index
    %4 = vector.load %arg3[%c0_2, %c0_3] : memref<16x384xbf16, #tpu.memory_space<vmem>>, vector<16x384xbf16>
    %c0_4 = arith.constant 0 : index
    %c0_5 = arith.constant 0 : index
    %5 = vector.load %arg4[%c0_4, %c0_5] : memref<384x256xbf16, #tpu.memory_space<vmem>>, vector<384x256xbf16>
    %cst = arith.constant dense<0.000000e+00> : vector<16x256xf32>
    %6 = tpu.matmul %4, %5, %cst {dimension_numbers = #tpu.dot_dimension_numbers<[1], [0], [0], [1], [0, 0, 1, 1], [], []>} : vector<16x384xbf16>, vector<384x256xbf16>, vector<16x256xf32> -> vector<16x256xf32>
    %7 = arith.addf %3, %6 : vector<16x256xf32>
    %c0_6 = arith.constant 0 : index
    %c0_7 = arith.constant 0 : index
    %8 = vector.load %arg7[%c0_6, %c0_7] : memref<16x256xf32, #tpu.memory_space<vmem>>, vector<16x256xf32>
    tpu.vector_store %arg7[%c0_6, %c0_7], %7 {strides = array<i32>} : memref<16x256xf32, #tpu.memory_space<vmem>>, vector<16x256xf32>,
    %c5_i32 = arith.constant 5 : i32
    %9 = arith.cmpi eq, %arg2, %c5_i32 : i32
    %10 = arith.extui %9 : i1 to i32
    %c0_i32_8 = arith.constant 0 : i32
    %11 = arith.cmpi ne, %10, %c0_i32_8 : i32
    scf.if %11 {
      %c0_9 = arith.constant 0 : index
      %c0_10 = arith.constant 0 : index
      %12 = vector.load %arg7[%c0_9, %c0_10] : memref<16x256xf32, #tpu.memory_space<vmem>>, vector<16x256xf32>
      %c0_11 = arith.constant 0 : index
      %c0_12 = arith.constant 0 : index
      %13 = vector.load %arg5[%c0_11, %c0_12] : memref<1x256xf32, #tpu.memory_space<vmem>>, vector<1x256xf32>
      %14 = vector.broadcast %13 : vector<1x256xf32> to vector<16x256xf32>
      %15 = arith.addf %12, %14 : vector<16x256xf32>
      %cst_13 = arith.constant 0.000000e+00 : f32
      %16 = vector.broadcast %cst_13 : f32 to vector<16x256xf32>
      %17 = arith.maximumf %15, %16 : vector<16x256xf32>
      %18 = arith.truncf %17 : vector<16x256xf32> to vector<16x256xbf16>
      %c0_14 = arith.constant 0 : index
      %c0_15 = arith.constant 0 : index
      %19 = vector.load %arg6[%c0_14, %c0_15] : memref<16x256xbf16, #tpu.memory_space<vmem>>, vector<16x256xbf16>
      tpu.vector_store %arg6[%c0_14, %c0_15], %18 {strides = array<i32>} : memref<16x256xbf16, #tpu.memory_space<vmem>>, vector<16x256xbf16>,
    } else {
    }
    return
  }
  func.func @transform_0(%arg0: i32, %arg1: i32, %arg2: i32) -> (i32, i32) {
    %c0_i32 = arith.constant 0 : i32
    return %arg0, %arg2 : i32, i32
  }
  func.func @transform_1(%arg0: i32, %arg1: i32, %arg2: i32) -> (i32, i32) {
    %c0_i32 = arith.constant 0 : i32
    return %arg2, %arg1 : i32, i32
  }
  func.func @transform_2(%arg0: i32, %arg1: i32, %arg2: i32) -> (i32, i32) {
    %c0_i32 = arith.constant 0 : i32
    %c0_i32_0 = arith.constant 0 : i32
    return %c0_i32, %arg1 : i32, i32
  }
  func.func @transform_3(%arg0: i32, %arg1: i32, %arg2: i32) -> (i32, i32) {
    %c0_i32 = arith.constant 0 : i32
    return %arg0, %arg1 : i32, i32
  }
}

module attributes {stable_mosaic.version = 11 : i64} {
  func.func @_matmul_fused_kernel(%arg0: i32, %arg1: i32, %arg2: i32, %arg3: memref<16x512xbf16, #tpu.memory_space<vmem>>, %arg4: memref<512x256xbf16, #tpu.memory_space<vmem>>, %arg5: memref<1x256xf32, #tpu.memory_space<vmem>>, %arg6: memref<16x256xbf16, #tpu.memory_space<vmem>>, %arg7: memref<16x256xf32, #tpu.memory_space<vmem>>) attributes {dimension_semantics = [#tpu.dimension_semantics<parallel>, #tpu.dimension_semantics<parallel>, #tpu.dimension_semantics<arbitrary>], iteration_bounds = array<i64: 1, 8, 1>, scalar_prefetch = 0 : i64, scratch_operands = 1 : i64, tpu.core_type = #tpu.core_type<tc>, window_params = [{transform_indices = @transform_0, window_bounds = array<i64: 16, 512>}, {transform_indices = @transform_1, window_bounds = array<i64: 512, 256>}, {transform_indices = @transform_2, window_bounds = array<i64: 1, 256>}, {transform_indices = @transform_3, window_bounds = array<i64: 16, 256>}]} {
    %c0_i32 = arith.constant 0 : i32
    %0 = arith.cmpi eq, %arg2, %c0_i32 : i32
    %1 = arith.extui %0 : i1 to i32
    %c0_i32_0 = arith.constant 0 : i32
    %2 = arith.cmpi ne, %1, %c0_i32_0 : i32
    scf.if %2 {
      %cst_10 = arith.constant 0.000000e+00 : f32
      %12 = vector.broadcast %cst_10 : f32 to vector<16x256xf32>
      %c0_11 = arith.constant 0 : index
      %c0_12 = arith.constant 0 : index
      %13 = vector.load %arg7[%c0_11, %c0_12] : memref<16x256xf32, #tpu.memory_space<vmem>>, vector<16x256xf32>
      tpu.vector_store %arg7[%c0_11, %c0_12], %12 {strides = array<i32>} : memref<16x256xf32, #tpu.memory_space<vmem>>, vector<16x256xf32>,
    } else {
    }
    %c0 = arith.constant 0 : index
    %c0_1 = arith.constant 0 : index
    %3 = vector.load %arg7[%c0, %c0_1] : memref<16x256xf32, #tpu.memory_space<vmem>>, vector<16x256xf32>
    %c0_2 = arith.constant 0 : index
    %c0_3 = arith.constant 0 : index
    %4 = vector.load %arg3[%c0_2, %c0_3] : memref<16x512xbf16, #tpu.memory_space<vmem>>, vector<16x512xbf16>
    %c0_4 = arith.constant 0 : index
    %c0_5 = arith.constant 0 : index
    %5 = vector.load %arg4[%c0_4, %c0_5] : memref<512x256xbf16, #tpu.memory_space<vmem>>, vector<512x256xbf16>
    %cst = arith.constant dense<0.000000e+00> : vector<16x256xf32>
    %6 = tpu.matmul %4, %5, %cst {dimension_numbers = #tpu.dot_dimension_numbers<[1], [0], [0], [1], [0, 0, 1, 1], [], []>} : vector<16x512xbf16>, vector<512x256xbf16>, vector<16x256xf32> -> vector<16x256xf32>
    %7 = arith.addf %3, %6 : vector<16x256xf32>
    %c0_6 = arith.constant 0 : index
    %c0_7 = arith.constant 0 : index
    %8 = vector.load %arg7[%c0_6, %c0_7] : memref<16x256xf32, #tpu.memory_space<vmem>>, vector<16x256xf32>
    tpu.vector_store %arg7[%c0_6, %c0_7], %7 {strides = array<i32>} : memref<16x256xf32, #tpu.memory_space<vmem>>, vector<16x256xf32>,
    %c0_i32_8 = arith.constant 0 : i32
    %9 = arith.cmpi eq, %arg2, %c0_i32_8 : i32
    %10 = arith.extui %9 : i1 to i32
    %c0_i32_9 = arith.constant 0 : i32
    %11 = arith.cmpi ne, %10, %c0_i32_9 : i32
    scf.if %11 {
      %c0_10 = arith.constant 0 : index
      %c0_11 = arith.constant 0 : index
      %12 = vector.load %arg7[%c0_10, %c0_11] : memref<16x256xf32, #tpu.memory_space<vmem>>, vector<16x256xf32>
      %c0_12 = arith.constant 0 : index
      %c0_13 = arith.constant 0 : index
      %13 = vector.load %arg5[%c0_12, %c0_13] : memref<1x256xf32, #tpu.memory_space<vmem>>, vector<1x256xf32>
      %14 = vector.broadcast %13 : vector<1x256xf32> to vector<16x256xf32>
      %15 = arith.addf %12, %14 : vector<16x256xf32>
      %cst_14 = arith.constant 0.000000e+00 : f32
      %16 = vector.broadcast %cst_14 : f32 to vector<16x256xf32>
      %17 = arith.maximumf %15, %16 : vector<16x256xf32>
      %18 = arith.truncf %17 : vector<16x256xf32> to vector<16x256xbf16>
      %c0_15 = arith.constant 0 : index
      %c0_16 = arith.constant 0 : index
      %19 = vector.load %arg6[%c0_15, %c0_16] : memref<16x256xbf16, #tpu.memory_space<vmem>>, vector<16x256xbf16>
      tpu.vector_store %arg6[%c0_15, %c0_16], %18 {strides = array<i32>} : memref<16x256xbf16, #tpu.memory_space<vmem>>, vector<16x256xbf16>,
    } else {
    }
    return
  }
  func.func @transform_0(%arg0: i32, %arg1: i32, %arg2: i32) -> (i32, i32) {
    %c0_i32 = arith.constant 0 : i32
    return %arg0, %arg2 : i32, i32
  }
  func.func @transform_1(%arg0: i32, %arg1: i32, %arg2: i32) -> (i32, i32) {
    %c0_i32 = arith.constant 0 : i32
    return %arg2, %arg1 : i32, i32
  }
  func.func @transform_2(%arg0: i32, %arg1: i32, %arg2: i32) -> (i32, i32) {
    %c0_i32 = arith.constant 0 : i32
    %c0_i32_0 = arith.constant 0 : i32
    return %c0_i32, %arg1 : i32, i32
  }
  func.func @transform_3(%arg0: i32, %arg1: i32, %arg2: i32) -> (i32, i32) {
    %c0_i32 = arith.constant 0 : i32
    return %arg0, %arg1 : i32, i32
  }
}

module attributes {stable_mosaic.version = 11 : i64} {
  func.func @_matmul_fused_kernel(%arg0: i32, %arg1: i32, %arg2: i32, %arg3: memref<16x512xbf16, #tpu.memory_space<vmem>>, %arg4: memref<512x128xbf16, #tpu.memory_space<vmem>>, %arg5: memref<1x128xf32, #tpu.memory_space<vmem>>, %arg6: memref<16x128xbf16, #tpu.memory_space<vmem>>, %arg7: memref<16x128xf32, #tpu.memory_space<vmem>>) attributes {dimension_semantics = [#tpu.dimension_semantics<parallel>, #tpu.dimension_semantics<parallel>, #tpu.dimension_semantics<arbitrary>], iteration_bounds = array<i64: 1, 2, 4>, scalar_prefetch = 0 : i64, scratch_operands = 1 : i64, tpu.core_type = #tpu.core_type<tc>, window_params = [{transform_indices = @transform_0, window_bounds = array<i64: 16, 512>}, {transform_indices = @transform_1, window_bounds = array<i64: 512, 128>}, {transform_indices = @transform_2, window_bounds = array<i64: 1, 128>}, {transform_indices = @transform_3, window_bounds = array<i64: 16, 128>}]} {
    %c0_i32 = arith.constant 0 : i32
    %0 = arith.cmpi eq, %arg2, %c0_i32 : i32
    %1 = arith.extui %0 : i1 to i32
    %c0_i32_0 = arith.constant 0 : i32
    %2 = arith.cmpi ne, %1, %c0_i32_0 : i32
    scf.if %2 {
      %cst_9 = arith.constant 0.000000e+00 : f32
      %12 = vector.broadcast %cst_9 : f32 to vector<16x128xf32>
      %c0_10 = arith.constant 0 : index
      %c0_11 = arith.constant 0 : index
      %13 = vector.load %arg7[%c0_10, %c0_11] : memref<16x128xf32, #tpu.memory_space<vmem>>, vector<16x128xf32>
      tpu.vector_store %arg7[%c0_10, %c0_11], %12 {strides = array<i32>} : memref<16x128xf32, #tpu.memory_space<vmem>>, vector<16x128xf32>,
    } else {
    }
    %c0 = arith.constant 0 : index
    %c0_1 = arith.constant 0 : index
    %3 = vector.load %arg7[%c0, %c0_1] : memref<16x128xf32, #tpu.memory_space<vmem>>, vector<16x128xf32>
    %c0_2 = arith.constant 0 : index
    %c0_3 = arith.constant 0 : index
    %4 = vector.load %arg3[%c0_2, %c0_3] : memref<16x512xbf16, #tpu.memory_space<vmem>>, vector<16x512xbf16>
    %c0_4 = arith.constant 0 : index
    %c0_5 = arith.constant 0 : index
    %5 = vector.load %arg4[%c0_4, %c0_5] : memref<512x128xbf16, #tpu.memory_space<vmem>>, vector<512x128xbf16>
    %cst = arith.constant dense<0.000000e+00> : vector<16x128xf32>
    %6 = tpu.matmul %4, %5, %cst {dimension_numbers = #tpu.dot_dimension_numbers<[1], [0], [0], [1], [0, 0, 1, 1], [], []>} : vector<16x512xbf16>, vector<512x128xbf16>, vector<16x128xf32> -> vector<16x128xf32>
    %7 = arith.addf %3, %6 : vector<16x128xf32>
    %c0_6 = arith.constant 0 : index
    %c0_7 = arith.constant 0 : index
    %8 = vector.load %arg7[%c0_6, %c0_7] : memref<16x128xf32, #tpu.memory_space<vmem>>, vector<16x128xf32>
    tpu.vector_store %arg7[%c0_6, %c0_7], %7 {strides = array<i32>} : memref<16x128xf32, #tpu.memory_space<vmem>>, vector<16x128xf32>,
    %c3_i32 = arith.constant 3 : i32
    %9 = arith.cmpi eq, %arg2, %c3_i32 : i32
    %10 = arith.extui %9 : i1 to i32
    %c0_i32_8 = arith.constant 0 : i32
    %11 = arith.cmpi ne, %10, %c0_i32_8 : i32
    scf.if %11 {
      %c0_9 = arith.constant 0 : index
      %c0_10 = arith.constant 0 : index
      %12 = vector.load %arg7[%c0_9, %c0_10] : memref<16x128xf32, #tpu.memory_space<vmem>>, vector<16x128xf32>
      %c0_11 = arith.constant 0 : index
      %c0_12 = arith.constant 0 : index
      %13 = vector.load %arg5[%c0_11, %c0_12] : memref<1x128xf32, #tpu.memory_space<vmem>>, vector<1x128xf32>
      %14 = vector.broadcast %13 : vector<1x128xf32> to vector<16x128xf32>
      %15 = arith.addf %12, %14 : vector<16x128xf32>
      %cst_13 = arith.constant 0.000000e+00 : f32
      %16 = vector.broadcast %cst_13 : f32 to vector<16x128xf32>
      %17 = arith.maximumf %15, %16 : vector<16x128xf32>
      %18 = arith.truncf %17 : vector<16x128xf32> to vector<16x128xbf16>
      %c0_14 = arith.constant 0 : index
      %c0_15 = arith.constant 0 : index
      %19 = vector.load %arg6[%c0_14, %c0_15] : memref<16x128xbf16, #tpu.memory_space<vmem>>, vector<16x128xbf16>
      tpu.vector_store %arg6[%c0_14, %c0_15], %18 {strides = array<i32>} : memref<16x128xbf16, #tpu.memory_space<vmem>>, vector<16x128xbf16>,
    } else {
    }
    return
  }
  func.func @transform_0(%arg0: i32, %arg1: i32, %arg2: i32) -> (i32, i32) {
    %c0_i32 = arith.constant 0 : i32
    return %arg0, %arg2 : i32, i32
  }
  func.func @transform_1(%arg0: i32, %arg1: i32, %arg2: i32) -> (i32, i32) {
    %c0_i32 = arith.constant 0 : i32
    return %arg2, %arg1 : i32, i32
  }
  func.func @transform_2(%arg0: i32, %arg1: i32, %arg2: i32) -> (i32, i32) {
    %c0_i32 = arith.constant 0 : i32
    %c0_i32_0 = arith.constant 0 : i32
    return %c0_i32, %arg1 : i32, i32
  }
  func.func @transform_3(%arg0: i32, %arg1: i32, %arg2: i32) -> (i32, i32) {
    %c0_i32 = arith.constant 0 : i32
    return %arg0, %arg1 : i32, i32
  }
}

module attributes {stable_mosaic.version = 11 : i64} {
  func.func @_matmul_fused_kernel(%arg0: i32, %arg1: i32, %arg2: i32, %arg3: memref<16x256xbf16, #tpu.memory_space<vmem>>, %arg4: memref<256x128xbf16, #tpu.memory_space<vmem>>, %arg5: memref<1x128xf32, #tpu.memory_space<vmem>>, %arg6: memref<16x128xbf16, #tpu.memory_space<vmem>>, %arg7: memref<16x128xf32, #tpu.memory_space<vmem>>) attributes {dimension_semantics = [#tpu.dimension_semantics<parallel>, #tpu.dimension_semantics<parallel>, #tpu.dimension_semantics<arbitrary>], iteration_bounds = array<i64: 1, 2, 5>, scalar_prefetch = 0 : i64, scratch_operands = 1 : i64, tpu.core_type = #tpu.core_type<tc>, window_params = [{transform_indices = @transform_0, window_bounds = array<i64: 16, 256>}, {transform_indices = @transform_1, window_bounds = array<i64: 256, 128>}, {transform_indices = @transform_2, window_bounds = array<i64: 1, 128>}, {transform_indices = @transform_3, window_bounds = array<i64: 16, 128>}]} {
    %c0_i32 = arith.constant 0 : i32
    %0 = arith.cmpi eq, %arg2, %c0_i32 : i32
    %1 = arith.extui %0 : i1 to i32
    %c0_i32_0 = arith.constant 0 : i32
    %2 = arith.cmpi ne, %1, %c0_i32_0 : i32
    scf.if %2 {
      %cst_9 = arith.constant 0.000000e+00 : f32
      %12 = vector.broadcast %cst_9 : f32 to vector<16x128xf32>
      %c0_10 = arith.constant 0 : index
      %c0_11 = arith.constant 0 : index
      %13 = vector.load %arg7[%c0_10, %c0_11] : memref<16x128xf32, #tpu.memory_space<vmem>>, vector<16x128xf32>
      tpu.vector_store %arg7[%c0_10, %c0_11], %12 {strides = array<i32>} : memref<16x128xf32, #tpu.memory_space<vmem>>, vector<16x128xf32>,
    } else {
    }
    %c0 = arith.constant 0 : index
    %c0_1 = arith.constant 0 : index
    %3 = vector.load %arg7[%c0, %c0_1] : memref<16x128xf32, #tpu.memory_space<vmem>>, vector<16x128xf32>
    %c0_2 = arith.constant 0 : index
    %c0_3 = arith.constant 0 : index
    %4 = vector.load %arg3[%c0_2, %c0_3] : memref<16x256xbf16, #tpu.memory_space<vmem>>, vector<16x256xbf16>
    %c0_4 = arith.constant 0 : index
    %c0_5 = arith.constant 0 : index
    %5 = vector.load %arg4[%c0_4, %c0_5] : memref<256x128xbf16, #tpu.memory_space<vmem>>, vector<256x128xbf16>
    %cst = arith.constant dense<0.000000e+00> : vector<16x128xf32>
    %6 = tpu.matmul %4, %5, %cst {dimension_numbers = #tpu.dot_dimension_numbers<[1], [0], [0], [1], [0, 0, 1, 1], [], []>} : vector<16x256xbf16>, vector<256x128xbf16>, vector<16x128xf32> -> vector<16x128xf32>
    %7 = arith.addf %3, %6 : vector<16x128xf32>
    %c0_6 = arith.constant 0 : index
    %c0_7 = arith.constant 0 : index
    %8 = vector.load %arg7[%c0_6, %c0_7] : memref<16x128xf32, #tpu.memory_space<vmem>>, vector<16x128xf32>
    tpu.vector_store %arg7[%c0_6, %c0_7], %7 {strides = array<i32>} : memref<16x128xf32, #tpu.memory_space<vmem>>, vector<16x128xf32>,
    %c4_i32 = arith.constant 4 : i32
    %9 = arith.cmpi eq, %arg2, %c4_i32 : i32
    %10 = arith.extui %9 : i1 to i32
    %c0_i32_8 = arith.constant 0 : i32
    %11 = arith.cmpi ne, %10, %c0_i32_8 : i32
    scf.if %11 {
      %c0_9 = arith.constant 0 : index
      %c0_10 = arith.constant 0 : index
      %12 = vector.load %arg7[%c0_9, %c0_10] : memref<16x128xf32, #tpu.memory_space<vmem>>, vector<16x128xf32>
      %c0_11 = arith.constant 0 : index
      %c0_12 = arith.constant 0 : index
      %13 = vector.load %arg5[%c0_11, %c0_12] : memref<1x128xf32, #tpu.memory_space<vmem>>, vector<1x128xf32>
      %14 = vector.broadcast %13 : vector<1x128xf32> to vector<16x128xf32>
      %15 = arith.addf %12, %14 : vector<16x128xf32>
      %cst_13 = arith.constant 0.000000e+00 : f32
      %16 = vector.broadcast %cst_13 : f32 to vector<16x128xf32>
      %17 = arith.maximumf %15, %16 : vector<16x128xf32>
      %18 = arith.truncf %17 : vector<16x128xf32> to vector<16x128xbf16>
      %c0_14 = arith.constant 0 : index
      %c0_15 = arith.constant 0 : index
      %19 = vector.load %arg6[%c0_14, %c0_15] : memref<16x128xbf16, #tpu.memory_space<vmem>>, vector<16x128xbf16>
      tpu.vector_store %arg6[%c0_14, %c0_15], %18 {strides = array<i32>} : memref<16x128xbf16, #tpu.memory_space<vmem>>, vector<16x128xbf16>,
    } else {
    }
    return
  }
  func.func @transform_0(%arg0: i32, %arg1: i32, %arg2: i32) -> (i32, i32) {
    %c0_i32 = arith.constant 0 : i32
    return %arg0, %arg2 : i32, i32
  }
  func.func @transform_1(%arg0: i32, %arg1: i32, %arg2: i32) -> (i32, i32) {
    %c0_i32 = arith.constant 0 : i32
    return %arg2, %arg1 : i32, i32
  }
  func.func @transform_2(%arg0: i32, %arg1: i32, %arg2: i32) -> (i32, i32) {
    %c0_i32 = arith.constant 0 : i32
    %c0_i32_0 = arith.constant 0 : i32
    return %c0_i32, %arg1 : i32, i32
  }
  func.func @transform_3(%arg0: i32, %arg1: i32, %arg2: i32) -> (i32, i32) {
    %c0_i32 = arith.constant 0 : i32
    return %arg0, %arg1 : i32, i32
  }
}

module attributes {stable_mosaic.version = 11 : i64} {
  func.func @_matmul_fused_kernel(%arg0: i32, %arg1: i32, %arg2: i32, %arg3: memref<128x128xbf16, #tpu.memory_space<vmem>>, %arg4: memref<128x128xbf16, #tpu.memory_space<vmem>>, %arg5: memref<1x128xf32, #tpu.memory_space<vmem>>, %arg6: memref<128x128xbf16, #tpu.memory_space<vmem>>, %arg7: memref<128x128xf32, #tpu.memory_space<vmem>>) attributes {dimension_semantics = [#tpu.dimension_semantics<parallel>, #tpu.dimension_semantics<parallel>, #tpu.dimension_semantics<arbitrary>], iteration_bounds = array<i64: 1, 1, 1>, scalar_prefetch = 0 : i64, scratch_operands = 1 : i64, tpu.core_type = #tpu.core_type<tc>, window_params = [{transform_indices = @transform_0, window_bounds = array<i64: 128, 128>}, {transform_indices = @transform_1, window_bounds = array<i64: 128, 128>}, {transform_indices = @transform_2, window_bounds = array<i64: 1, 128>}, {transform_indices = @transform_3, window_bounds = array<i64: 128, 128>}]} {
    %c0_i32 = arith.constant 0 : i32
    %0 = arith.cmpi eq, %arg2, %c0_i32 : i32
    %1 = arith.extui %0 : i1 to i32
    %c0_i32_0 = arith.constant 0 : i32
    %2 = arith.cmpi ne, %1, %c0_i32_0 : i32
    scf.if %2 {
      %cst_10 = arith.constant 0.000000e+00 : f32
      %12 = vector.broadcast %cst_10 : f32 to vector<128x128xf32>
      %c0_11 = arith.constant 0 : index
      %c0_12 = arith.constant 0 : index
      %13 = vector.load %arg7[%c0_11, %c0_12] : memref<128x128xf32, #tpu.memory_space<vmem>>, vector<128x128xf32>
      tpu.vector_store %arg7[%c0_11, %c0_12], %12 {strides = array<i32>} : memref<128x128xf32, #tpu.memory_space<vmem>>, vector<128x128xf32>,
    } else {
    }
    %c0 = arith.constant 0 : index
    %c0_1 = arith.constant 0 : index
    %3 = vector.load %arg7[%c0, %c0_1] : memref<128x128xf32, #tpu.memory_space<vmem>>, vector<128x128xf32>
    %c0_2 = arith.constant 0 : index
    %c0_3 = arith.constant 0 : index
    %4 = vector.load %arg3[%c0_2, %c0_3] : memref<128x128xbf16, #tpu.memory_space<vmem>>, vector<128x128xbf16>
    %c0_4 = arith.constant 0 : index
    %c0_5 = arith.constant 0 : index
    %5 = vector.load %arg4[%c0_4, %c0_5] : memref<128x128xbf16, #tpu.memory_space<vmem>>, vector<128x128xbf16>
    %cst = arith.constant dense<0.000000e+00> : vector<128x128xf32>
    %6 = tpu.matmul %4, %5, %cst {dimension_numbers = #tpu.dot_dimension_numbers<[1], [0], [0], [1], [0, 0, 1, 1], [], []>} : vector<128x128xbf16>, vector<128x128xbf16>, vector<128x128xf32> -> vector<128x128xf32>
    %7 = arith.addf %3, %6 : vector<128x128xf32>
    %c0_6 = arith.constant 0 : index
    %c0_7 = arith.constant 0 : index
    %8 = vector.load %arg7[%c0_6, %c0_7] : memref<128x128xf32, #tpu.memory_space<vmem>>, vector<128x128xf32>
    tpu.vector_store %arg7[%c0_6, %c0_7], %7 {strides = array<i32>} : memref<128x128xf32, #tpu.memory_space<vmem>>, vector<128x128xf32>,
    %c0_i32_8 = arith.constant 0 : i32
    %9 = arith.cmpi eq, %arg2, %c0_i32_8 : i32
    %10 = arith.extui %9 : i1 to i32
    %c0_i32_9 = arith.constant 0 : i32
    %11 = arith.cmpi ne, %10, %c0_i32_9 : i32
    scf.if %11 {
      %c0_10 = arith.constant 0 : index
      %c0_11 = arith.constant 0 : index
      %12 = vector.load %arg7[%c0_10, %c0_11] : memref<128x128xf32, #tpu.memory_space<vmem>>, vector<128x128xf32>
      %c0_12 = arith.constant 0 : index
      %c0_13 = arith.constant 0 : index
      %13 = vector.load %arg5[%c0_12, %c0_13] : memref<1x128xf32, #tpu.memory_space<vmem>>, vector<1x128xf32>
      %14 = vector.broadcast %13 : vector<1x128xf32> to vector<128x128xf32>
      %15 = arith.addf %12, %14 : vector<128x128xf32>
      %cst_14 = arith.constant 0.000000e+00 : f32
      %16 = vector.broadcast %cst_14 : f32 to vector<128x128xf32>
      %17 = arith.maximumf %15, %16 : vector<128x128xf32>
      %18 = arith.truncf %17 : vector<128x128xf32> to vector<128x128xbf16>
      %c0_15 = arith.constant 0 : index
      %c0_16 = arith.constant 0 : index
      %19 = vector.load %arg6[%c0_15, %c0_16] : memref<128x128xbf16, #tpu.memory_space<vmem>>, vector<128x128xbf16>
      tpu.vector_store %arg6[%c0_15, %c0_16], %18 {strides = array<i32>} : memref<128x128xbf16, #tpu.memory_space<vmem>>, vector<128x128xbf16>,
    } else {
    }
    return
  }
  func.func @transform_0(%arg0: i32, %arg1: i32, %arg2: i32) -> (i32, i32) {
    %c0_i32 = arith.constant 0 : i32
    return %arg0, %arg2 : i32, i32
  }
  func.func @transform_1(%arg0: i32, %arg1: i32, %arg2: i32) -> (i32, i32) {
    %c0_i32 = arith.constant 0 : i32
    return %arg2, %arg1 : i32, i32
  }
  func.func @transform_2(%arg0: i32, %arg1: i32, %arg2: i32) -> (i32, i32) {
    %c0_i32 = arith.constant 0 : i32
    %c0_i32_0 = arith.constant 0 : i32
    return %c0_i32, %arg1 : i32, i32
  }
  func.func @transform_3(%arg0: i32, %arg1: i32, %arg2: i32) -> (i32, i32) {
    %c0_i32 = arith.constant 0 : i32
    return %arg0, %arg1 : i32, i32
  }
}

module attributes {stable_mosaic.version = 11 : i64} {
  func.func @_matmul_fused_kernel(%arg0: i32, %arg1: i32, %arg2: i32, %arg3: memref<128x256xbf16, #tpu.memory_space<vmem>>, %arg4: memref<256x128xbf16, #tpu.memory_space<vmem>>, %arg5: memref<1x128xf32, #tpu.memory_space<vmem>>, %arg6: memref<128x128xbf16, #tpu.memory_space<vmem>>, %arg7: memref<128x128xf32, #tpu.memory_space<vmem>>) attributes {dimension_semantics = [#tpu.dimension_semantics<parallel>, #tpu.dimension_semantics<parallel>, #tpu.dimension_semantics<arbitrary>], iteration_bounds = array<i64: 1, 2, 11>, scalar_prefetch = 0 : i64, scratch_operands = 1 : i64, tpu.core_type = #tpu.core_type<tc>, window_params = [{transform_indices = @transform_0, window_bounds = array<i64: 128, 256>}, {transform_indices = @transform_1, window_bounds = array<i64: 256, 128>}, {transform_indices = @transform_2, window_bounds = array<i64: 1, 128>}, {transform_indices = @transform_3, window_bounds = array<i64: 128, 128>}]} {
    %c0_i32 = arith.constant 0 : i32
    %0 = arith.cmpi eq, %arg2, %c0_i32 : i32
    %1 = arith.extui %0 : i1 to i32
    %c0_i32_0 = arith.constant 0 : i32
    %2 = arith.cmpi ne, %1, %c0_i32_0 : i32
    scf.if %2 {
      %cst_9 = arith.constant 0.000000e+00 : f32
      %12 = vector.broadcast %cst_9 : f32 to vector<128x128xf32>
      %c0_10 = arith.constant 0 : index
      %c0_11 = arith.constant 0 : index
      %13 = vector.load %arg7[%c0_10, %c0_11] : memref<128x128xf32, #tpu.memory_space<vmem>>, vector<128x128xf32>
      tpu.vector_store %arg7[%c0_10, %c0_11], %12 {strides = array<i32>} : memref<128x128xf32, #tpu.memory_space<vmem>>, vector<128x128xf32>,
    } else {
    }
    %c0 = arith.constant 0 : index
    %c0_1 = arith.constant 0 : index
    %3 = vector.load %arg7[%c0, %c0_1] : memref<128x128xf32, #tpu.memory_space<vmem>>, vector<128x128xf32>
    %c0_2 = arith.constant 0 : index
    %c0_3 = arith.constant 0 : index
    %4 = vector.load %arg3[%c0_2, %c0_3] : memref<128x256xbf16, #tpu.memory_space<vmem>>, vector<128x256xbf16>
    %c0_4 = arith.constant 0 : index
    %c0_5 = arith.constant 0 : index
    %5 = vector.load %arg4[%c0_4, %c0_5] : memref<256x128xbf16, #tpu.memory_space<vmem>>, vector<256x128xbf16>
    %cst = arith.constant dense<0.000000e+00> : vector<128x128xf32>
    %6 = tpu.matmul %4, %5, %cst {dimension_numbers = #tpu.dot_dimension_numbers<[1], [0], [0], [1], [0, 0, 1, 1], [], []>} : vector<128x256xbf16>, vector<256x128xbf16>, vector<128x128xf32> -> vector<128x128xf32>
    %7 = arith.addf %3, %6 : vector<128x128xf32>
    %c0_6 = arith.constant 0 : index
    %c0_7 = arith.constant 0 : index
    %8 = vector.load %arg7[%c0_6, %c0_7] : memref<128x128xf32, #tpu.memory_space<vmem>>, vector<128x128xf32>
    tpu.vector_store %arg7[%c0_6, %c0_7], %7 {strides = array<i32>} : memref<128x128xf32, #tpu.memory_space<vmem>>, vector<128x128xf32>,
    %c10_i32 = arith.constant 10 : i32
    %9 = arith.cmpi eq, %arg2, %c10_i32 : i32
    %10 = arith.extui %9 : i1 to i32
    %c0_i32_8 = arith.constant 0 : i32
    %11 = arith.cmpi ne, %10, %c0_i32_8 : i32
    scf.if %11 {
      %c0_9 = arith.constant 0 : index
      %c0_10 = arith.constant 0 : index
      %12 = vector.load %arg7[%c0_9, %c0_10] : memref<128x128xf32, #tpu.memory_space<vmem>>, vector<128x128xf32>
      %c0_11 = arith.constant 0 : index
      %c0_12 = arith.constant 0 : index
      %13 = vector.load %arg5[%c0_11, %c0_12] : memref<1x128xf32, #tpu.memory_space<vmem>>, vector<1x128xf32>
      %14 = vector.broadcast %13 : vector<1x128xf32> to vector<128x128xf32>
      %15 = arith.addf %12, %14 : vector<128x128xf32>
      %cst_13 = arith.constant 0.000000e+00 : f32
      %16 = vector.broadcast %cst_13 : f32 to vector<128x128xf32>
      %17 = arith.maximumf %15, %16 : vector<128x128xf32>
      %18 = arith.truncf %17 : vector<128x128xf32> to vector<128x128xbf16>
      %c0_14 = arith.constant 0 : index
      %c0_15 = arith.constant 0 : index
      %19 = vector.load %arg6[%c0_14, %c0_15] : memref<128x128xbf16, #tpu.memory_space<vmem>>, vector<128x128xbf16>
      tpu.vector_store %arg6[%c0_14, %c0_15], %18 {strides = array<i32>} : memref<128x128xbf16, #tpu.memory_space<vmem>>, vector<128x128xbf16>,
    } else {
    }
    return
  }
  func.func @transform_0(%arg0: i32, %arg1: i32, %arg2: i32) -> (i32, i32) {
    %c0_i32 = arith.constant 0 : i32
    return %arg0, %arg2 : i32, i32
  }
  func.func @transform_1(%arg0: i32, %arg1: i32, %arg2: i32) -> (i32, i32) {
    %c0_i32 = arith.constant 0 : i32
    return %arg2, %arg1 : i32, i32
  }
  func.func @transform_2(%arg0: i32, %arg1: i32, %arg2: i32) -> (i32, i32) {
    %c0_i32 = arith.constant 0 : i32
    %c0_i32_0 = arith.constant 0 : i32
    return %c0_i32, %arg1 : i32, i32
  }
  func.func @transform_3(%arg0: i32, %arg1: i32, %arg2: i32) -> (i32, i32) {
    %c0_i32 = arith.constant 0 : i32
    return %arg0, %arg1 : i32, i32
  }
}

module attributes {stable_mosaic.version = 11 : i64} {
  func.func @_matmul_fused_kernel(%arg0: i32, %arg1: i32, %arg2: i32, %arg3: memref<128x384xbf16, #tpu.memory_space<vmem>>, %arg4: memref<384x128xbf16, #tpu.memory_space<vmem>>, %arg5: memref<1x128xf32, #tpu.memory_space<vmem>>, %arg6: memref<128x128xbf16, #tpu.memory_space<vmem>>, %arg7: memref<128x128xf32, #tpu.memory_space<vmem>>) attributes {dimension_semantics = [#tpu.dimension_semantics<parallel>, #tpu.dimension_semantics<parallel>, #tpu.dimension_semantics<arbitrary>], iteration_bounds = array<i64: 1, 2, 6>, scalar_prefetch = 0 : i64, scratch_operands = 1 : i64, tpu.core_type = #tpu.core_type<tc>, window_params = [{transform_indices = @transform_0, window_bounds = array<i64: 128, 384>}, {transform_indices = @transform_1, window_bounds = array<i64: 384, 128>}, {transform_indices = @transform_2, window_bounds = array<i64: 1, 128>}, {transform_indices = @transform_3, window_bounds = array<i64: 128, 128>}]} {
    %c0_i32 = arith.constant 0 : i32
    %0 = arith.cmpi eq, %arg2, %c0_i32 : i32
    %1 = arith.extui %0 : i1 to i32
    %c0_i32_0 = arith.constant 0 : i32
    %2 = arith.cmpi ne, %1, %c0_i32_0 : i32
    scf.if %2 {
      %cst_9 = arith.constant 0.000000e+00 : f32
      %12 = vector.broadcast %cst_9 : f32 to vector<128x128xf32>
      %c0_10 = arith.constant 0 : index
      %c0_11 = arith.constant 0 : index
      %13 = vector.load %arg7[%c0_10, %c0_11] : memref<128x128xf32, #tpu.memory_space<vmem>>, vector<128x128xf32>
      tpu.vector_store %arg7[%c0_10, %c0_11], %12 {strides = array<i32>} : memref<128x128xf32, #tpu.memory_space<vmem>>, vector<128x128xf32>,
    } else {
    }
    %c0 = arith.constant 0 : index
    %c0_1 = arith.constant 0 : index
    %3 = vector.load %arg7[%c0, %c0_1] : memref<128x128xf32, #tpu.memory_space<vmem>>, vector<128x128xf32>
    %c0_2 = arith.constant 0 : index
    %c0_3 = arith.constant 0 : index
    %4 = vector.load %arg3[%c0_2, %c0_3] : memref<128x384xbf16, #tpu.memory_space<vmem>>, vector<128x384xbf16>
    %c0_4 = arith.constant 0 : index
    %c0_5 = arith.constant 0 : index
    %5 = vector.load %arg4[%c0_4, %c0_5] : memref<384x128xbf16, #tpu.memory_space<vmem>>, vector<384x128xbf16>
    %cst = arith.constant dense<0.000000e+00> : vector<128x128xf32>
    %6 = tpu.matmul %4, %5, %cst {dimension_numbers = #tpu.dot_dimension_numbers<[1], [0], [0], [1], [0, 0, 1, 1], [], []>} : vector<128x384xbf16>, vector<384x128xbf16>, vector<128x128xf32> -> vector<128x128xf32>
    %7 = arith.addf %3, %6 : vector<128x128xf32>
    %c0_6 = arith.constant 0 : index
    %c0_7 = arith.constant 0 : index
    %8 = vector.load %arg7[%c0_6, %c0_7] : memref<128x128xf32, #tpu.memory_space<vmem>>, vector<128x128xf32>
    tpu.vector_store %arg7[%c0_6, %c0_7], %7 {strides = array<i32>} : memref<128x128xf32, #tpu.memory_space<vmem>>, vector<128x128xf32>,
    %c5_i32 = arith.constant 5 : i32
    %9 = arith.cmpi eq, %arg2, %c5_i32 : i32
    %10 = arith.extui %9 : i1 to i32
    %c0_i32_8 = arith.constant 0 : i32
    %11 = arith.cmpi ne, %10, %c0_i32_8 : i32
    scf.if %11 {
      %c0_9 = arith.constant 0 : index
      %c0_10 = arith.constant 0 : index
      %12 = vector.load %arg7[%c0_9, %c0_10] : memref<128x128xf32, #tpu.memory_space<vmem>>, vector<128x128xf32>
      %c0_11 = arith.constant 0 : index
      %c0_12 = arith.constant 0 : index
      %13 = vector.load %arg5[%c0_11, %c0_12] : memref<1x128xf32, #tpu.memory_space<vmem>>, vector<1x128xf32>
      %14 = vector.broadcast %13 : vector<1x128xf32> to vector<128x128xf32>
      %15 = arith.addf %12, %14 : vector<128x128xf32>
      %cst_13 = arith.constant 0.000000e+00 : f32
      %16 = vector.broadcast %cst_13 : f32 to vector<128x128xf32>
      %17 = arith.maximumf %15, %16 : vector<128x128xf32>
      %18 = arith.truncf %17 : vector<128x128xf32> to vector<128x128xbf16>
      %c0_14 = arith.constant 0 : index
      %c0_15 = arith.constant 0 : index
      %19 = vector.load %arg6[%c0_14, %c0_15] : memref<128x128xbf16, #tpu.memory_space<vmem>>, vector<128x128xbf16>
      tpu.vector_store %arg6[%c0_14, %c0_15], %18 {strides = array<i32>} : memref<128x128xbf16, #tpu.memory_space<vmem>>, vector<128x128xbf16>,
    } else {
    }
    return
  }
  func.func @transform_0(%arg0: i32, %arg1: i32, %arg2: i32) -> (i32, i32) {
    %c0_i32 = arith.constant 0 : i32
    return %arg0, %arg2 : i32, i32
  }
  func.func @transform_1(%arg0: i32, %arg1: i32, %arg2: i32) -> (i32, i32) {
    %c0_i32 = arith.constant 0 : i32
    return %arg2, %arg1 : i32, i32
  }
  func.func @transform_2(%arg0: i32, %arg1: i32, %arg2: i32) -> (i32, i32) {
    %c0_i32 = arith.constant 0 : i32
    %c0_i32_0 = arith.constant 0 : i32
    return %c0_i32, %arg1 : i32, i32
  }
  func.func @transform_3(%arg0: i32, %arg1: i32, %arg2: i32) -> (i32, i32) {
    %c0_i32 = arith.constant 0 : i32
    return %arg0, %arg1 : i32, i32
  }
}

module attributes {stable_mosaic.version = 11 : i64} {
  func.func @_matmul_fused_kernel(%arg0: i32, %arg1: i32, %arg2: i32, %arg3: memref<128x256xbf16, #tpu.memory_space<vmem>>, %arg4: memref<256x128xbf16, #tpu.memory_space<vmem>>, %arg5: memref<1x128xf32, #tpu.memory_space<vmem>>, %arg6: memref<128x128xf32, #tpu.memory_space<vmem>>, %arg7: memref<128x128xf32, #tpu.memory_space<vmem>>) attributes {dimension_semantics = [#tpu.dimension_semantics<parallel>, #tpu.dimension_semantics<parallel>, #tpu.dimension_semantics<arbitrary>], iteration_bounds = array<i64: 1, 1, 1>, scalar_prefetch = 0 : i64, scratch_operands = 1 : i64, tpu.core_type = #tpu.core_type<tc>, window_params = [{transform_indices = @transform_0, window_bounds = array<i64: 128, 256>}, {transform_indices = @transform_1, window_bounds = array<i64: 256, 128>}, {transform_indices = @transform_2, window_bounds = array<i64: 1, 128>}, {transform_indices = @transform_3, window_bounds = array<i64: 128, 128>}]} {
    %c0_i32 = arith.constant 0 : i32
    %0 = arith.cmpi eq, %arg2, %c0_i32 : i32
    %1 = arith.extui %0 : i1 to i32
    %c0_i32_0 = arith.constant 0 : i32
    %2 = arith.cmpi ne, %1, %c0_i32_0 : i32
    scf.if %2 {
      %cst_10 = arith.constant 0.000000e+00 : f32
      %12 = vector.broadcast %cst_10 : f32 to vector<128x128xf32>
      %c0_11 = arith.constant 0 : index
      %c0_12 = arith.constant 0 : index
      %13 = vector.load %arg7[%c0_11, %c0_12] : memref<128x128xf32, #tpu.memory_space<vmem>>, vector<128x128xf32>
      tpu.vector_store %arg7[%c0_11, %c0_12], %12 {strides = array<i32>} : memref<128x128xf32, #tpu.memory_space<vmem>>, vector<128x128xf32>,
    } else {
    }
    %c0 = arith.constant 0 : index
    %c0_1 = arith.constant 0 : index
    %3 = vector.load %arg7[%c0, %c0_1] : memref<128x128xf32, #tpu.memory_space<vmem>>, vector<128x128xf32>
    %c0_2 = arith.constant 0 : index
    %c0_3 = arith.constant 0 : index
    %4 = vector.load %arg3[%c0_2, %c0_3] : memref<128x256xbf16, #tpu.memory_space<vmem>>, vector<128x256xbf16>
    %c0_4 = arith.constant 0 : index
    %c0_5 = arith.constant 0 : index
    %5 = vector.load %arg4[%c0_4, %c0_5] : memref<256x128xbf16, #tpu.memory_space<vmem>>, vector<256x128xbf16>
    %cst = arith.constant dense<0.000000e+00> : vector<128x128xf32>
    %6 = tpu.matmul %4, %5, %cst {dimension_numbers = #tpu.dot_dimension_numbers<[1], [0], [0], [1], [0, 0, 1, 1], [], []>} : vector<128x256xbf16>, vector<256x128xbf16>, vector<128x128xf32> -> vector<128x128xf32>
    %7 = arith.addf %3, %6 : vector<128x128xf32>
    %c0_6 = arith.constant 0 : index
    %c0_7 = arith.constant 0 : index
    %8 = vector.load %arg7[%c0_6, %c0_7] : memref<128x128xf32, #tpu.memory_space<vmem>>, vector<128x128xf32>
    tpu.vector_store %arg7[%c0_6, %c0_7], %7 {strides = array<i32>} : memref<128x128xf32, #tpu.memory_space<vmem>>, vector<128x128xf32>,
    %c0_i32_8 = arith.constant 0 : i32
    %9 = arith.cmpi eq, %arg2, %c0_i32_8 : i32
    %10 = arith.extui %9 : i1 to i32
    %c0_i32_9 = arith.constant 0 : i32
    %11 = arith.cmpi ne, %10, %c0_i32_9 : i32
    scf.if %11 {
      %c0_10 = arith.constant 0 : index
      %c0_11 = arith.constant 0 : index
      %12 = vector.load %arg7[%c0_10, %c0_11] : memref<128x128xf32, #tpu.memory_space<vmem>>, vector<128x128xf32>
      %c0_12 = arith.constant 0 : index
      %c0_13 = arith.constant 0 : index
      %13 = vector.load %arg5[%c0_12, %c0_13] : memref<1x128xf32, #tpu.memory_space<vmem>>, vector<1x128xf32>
      %14 = vector.broadcast %13 : vector<1x128xf32> to vector<128x128xf32>
      %15 = arith.addf %12, %14 : vector<128x128xf32>
      %16 = arith.negf %15 : vector<128x128xf32>
      %17 = math.exp %16 : vector<128x128xf32>
      %cst_14 = arith.constant 1.000000e+00 : f32
      %18 = vector.broadcast %cst_14 : f32 to vector<128x128xf32>
      %19 = arith.addf %18, %17 : vector<128x128xf32>
      %20 = arith.divf %18, %19 : vector<128x128xf32>
      %c0_15 = arith.constant 0 : index
      %c0_16 = arith.constant 0 : index
      %21 = vector.load %arg6[%c0_15, %c0_16] : memref<128x128xf32, #tpu.memory_space<vmem>>, vector<128x128xf32>
      tpu.vector_store %arg6[%c0_15, %c0_16], %20 {strides = array<i32>} : memref<128x128xf32, #tpu.memory_space<vmem>>, vector<128x128xf32>,
    } else {
    }
    return
  }
  func.func @transform_0(%arg0: i32, %arg1: i32, %arg2: i32) -> (i32, i32) {
    %c0_i32 = arith.constant 0 : i32
    return %arg0, %arg2 : i32, i32
  }
  func.func @transform_1(%arg0: i32, %arg1: i32, %arg2: i32) -> (i32, i32) {
    %c0_i32 = arith.constant 0 : i32
    return %arg2, %arg1 : i32, i32
  }
  func.func @transform_2(%arg0: i32, %arg1: i32, %arg2: i32) -> (i32, i32) {
    %c0_i32 = arith.constant 0 : i32
    %c0_i32_0 = arith.constant 0 : i32
    return %c0_i32, %arg1 : i32, i32
  }
  func.func @transform_3(%arg0: i32, %arg1: i32, %arg2: i32) -> (i32, i32) {
    %c0_i32 = arith.constant 0 : i32
    return %arg0, %arg1 : i32, i32
  }
}

</mosaic_0001>

<bundles_post_ra>
// kernel: _lambda_.16
= control target key start
LH: loop header
LB: loop body
LE: loop exit
PB: predicated region body
PF: predicated region fallthrough
CT: control target
= control target key end

     0   :  { %s1499_s12 = smov 0   ;;  %s1501_s13 = smov 0   ;;  %s1636_s0 = inlined_call_operand.vmem [shape: bf16[512,128], index: 0, kind: input, shape index: {}]   ;;  %s1637_s1 = inlined_call_operand.vmem [shape: bf16[128,128], index: 1, kind: input, shape index: {}]   ;;  %s1638_s2 = inlined_call_operand.vmem [shape: f32[1,128], index: 2, kind: input, shape index: {}]   ;;  %s1639_s3 = inlined_call_operand.vmem [shape: bf16[512,128], index: 3, kind: output, shape index: {}]  }
   0x1   :  { %s1503_s14 = smov 0  }
   0x2 LB: > { %s32_s15 = sadd.s32 1, %s1473_s13  ;;  %p1128_p0 = scmp.ge.s32.totalorder %s1477_s14, 1  ;;  %s1477_s14 = sphi %s1503_s14, %s13_s14   ;;  %s1473_s13 = sphi %s1501_s13, %s1641_s13   ;;  %s1469_s12 = sphi %s1499_s12, %s1640_s12  }
   0x3   : > { %p34_p1 = scmp.ge.s32.totalorder %s32_s15, 2  ;;  %p188_p2 = scmp.lt.s32.totalorder %s1477_s14, 3 }
   0x5   : > { %s1643_s15 = smov (%p34_p1, %s32_s15), 0  ;;  %p189_p3 = pnand %p1128_p0, %p188_p2 }
   0x6   : > { %v1431_v0 = vld [vmem:[%s1637_s1] sm:$0xff] (!%p189_p3)   ;;  %s1129_s18 = sshll.u32 (!%p189_p3), %s1469_s12, 5  ;;  %v1432_v1 = vld [vmem:[%s1637_s1 + $0x8] sm:$0xff] (!%p189_p3)   ;;  %v1433_v2 = vld [vmem:[%s1637_s1 + $0x10] sm:$0xff] (!%p189_p3)  }
   0x7   : > { %192 = sbr.rel (%p189_p3) target bundleno = 285 (0x11d), region = 32  ;;  %p230_p4 = scmp.lt.s32.totalorder (!%p189_p3), %s1129_s18, 63  ;;  %1343 = vmatprep.subr.bf16.mxu0 (!%p189_p3), %v1431_v0  ;;  %1391 = vmatprep.subr.bf16.mxu1 (!%p189_p3), %v1431_v0  ;;  %v1434_v3 = vld [vmem:[%s1637_s1 + $0x18] sm:$0xff] (!%p189_p3)   ;;  %v1435_v6 = vld [vmem:[%s1637_s1 + $0x20] sm:$0xff] (!%p189_p3)   ;;  %v1436_v7 = vld [vmem:[%s1637_s1 + $0x28] sm:$0xff] (!%p189_p3)  }
   0x8   : > { %1344 = vmatpush3.bf16.msra.mxu0 (!%p189_p3), %v1431_v0  ;;  %1399 = vmatpush3.bf16.msra.mxu1 (!%p189_p3), %v1431_v0  ;;  %v1437_v8 = vld [vmem:[%s1637_s1 + $0x30] sm:$0xff] (!%p189_p3)   ;;  %v1438_v9 = vld [vmem:[%s1637_s1 + $0x38] sm:$0xff] (!%p189_p3)   ;;  %v1570_v24 = vld [vmem:[%s1638_s2] ss:$0 sm:$0xff] (!%p189_p3) }
   0x9   : > { %1345 = vmatprep.subr.bf16.mxu0 (!%p189_p3), %v1432_v1  ;;  %1392 = vmatprep.subr.bf16.mxu1 (!%p189_p3), %v1432_v1 }
   0xc   : > { %1346 = vmatpush3.bf16.msra.mxu0 (!%p189_p3), %v1432_v1  ;;  %1400 = vmatpush3.bf16.msra.mxu1 (!%p189_p3), %v1432_v1 }
   0xd   : > { %1347 = vmatprep.subr.bf16.mxu0 (!%p189_p3), %v1433_v2  ;;  %1393 = vmatprep.subr.bf16.mxu1 (!%p189_p3), %v1433_v2 }
   0xe   : > { %s1645_s18 = smov (!%p230_p4, %s1129_s18), 63 }
   0xf   : > { %s1130_s23 = sshll.u32 %s1645_s18, 2 }
  0x10   : > { %s1534_s26 = scalar_lea.vmem %s1636_s0, %s1130_s23  ;;  %1348 = vmatpush3.bf16.msra.mxu0 %v1433_v2  ;;  %1401 = vmatpush3.bf16.msra.mxu1 %v1433_v2  ;;  %s1585_s17 = scalar_lea.vmem %s1639_s3, %s1130_s23 }
  0x11   : > { %v1439_v4 = vld [vmem:[%s1534_s26] sm:$0xff]   ;;  %1349 = vmatprep.subr.bf16.mxu0 %v1434_v3  ;;  %1394 = vmatprep.subr.bf16.mxu1 %v1434_v3  ;;  %v1441_v10 = vld [vmem:[%s1534_s26 + $0x8] sm:$0xff]   ;;  %v1443_v12 = vld [vmem:[%s1534_s26 + $0x10] sm:$0xff]  }
  0x12   : > { %v1440_v5 = vld [vmem:[%s1534_s26 + $0x40] sm:$0xff]   ;;  %1359 = vmatprep.mubr.bf16.mxu0 %v1439_v4  ;;  %v1442_v11 = vld [vmem:[%s1534_s26 + $0x48] sm:$0xff]   ;;  %v1444_v13 = vld [vmem:[%s1534_s26 + $0x50] sm:$0xff]  }
  0x13   : > { %1375 = vmatprep.mubr.bf16.mxu1 %v1440_v5  ;;  %v1445_v14 = vld [vmem:[%s1534_s26 + $0x18] sm:$0xff]   ;;  %v1447_v16 = vld [vmem:[%s1534_s26 + $0x20] sm:$0xff]   ;;  %v1449_v18 = vld [vmem:[%s1534_s26 + $0x28] sm:$0xff]  }
  0x14   : > { %1350 = vmatpush3.bf16.msra.mxu0 %v1434_v3  ;;  %1402 = vmatpush3.bf16.msra.mxu1 %v1434_v3  ;;  %v1446_v15 = vld [vmem:[%s1534_s26 + $0x58] sm:$0xff]   ;;  %v1448_v17 = vld [vmem:[%s1534_s26 + $0x60] sm:$0xff]   ;;  %v1450_v19 = vld [vmem:[%s1534_s26 + $0x68] sm:$0xff]  }
  0x15   : > { %1351 = vmatprep.subr.bf16.mxu0 %v1435_v6  ;;  %1395 = vmatprep.subr.bf16.mxu1 %v1435_v6  ;;  %v1451_v20 = vld [vmem:[%s1534_s26 + $0x30] sm:$0xff]   ;;  %v1453_v22 = vld [vmem:[%s1534_s26 + $0x38] sm:$0xff]  }
  0x16   : > { %v1452_v21 = vld [vmem:[%s1534_s26 + $0x70] sm:$0xff]   ;;  %v1454_v23 = vld [vmem:[%s1534_s26 + $0x78] sm:$0xff]  }
  0x18   : > { %1352 = vmatpush3.bf16.msra.mxu0 %v1435_v6  ;;  %1403 = vmatpush3.bf16.msra.mxu1 %v1435_v6 }
  0x19   : > { %1353 = vmatprep.subr.bf16.mxu0 %v1436_v7  ;;  %1396 = vmatprep.subr.bf16.mxu1 %v1436_v7 }
  0x1c   : > { %1354 = vmatpush3.bf16.msra.mxu0 %v1436_v7  ;;  %1404 = vmatpush3.bf16.msra.mxu1 %v1436_v7 }
  0x1d   : > { %1355 = vmatprep.subr.bf16.mxu0 %v1437_v8  ;;  %1397 = vmatprep.subr.bf16.mxu1 %v1437_v8 }
  0x20   : > { %1356 = vmatpush3.bf16.msra.mxu0 %v1437_v8  ;;  %1405 = vmatpush3.bf16.msra.mxu1 %v1437_v8 }
  0x21   : > { %1357 = vmatprep.subr.bf16.mxu0 %v1438_v9  ;;  %1398 = vmatprep.subr.bf16.mxu1 %v1438_v9 }
  0x24   : > { %1358 = vmatpush3.bf16.msra.mxu0 %v1438_v9  ;;  %1406 = vmatpush3.bf16.msra.mxu1 %v1438_v9 }
  0x27   : > { %1360 = vmatmul.mubr.bf16.vlgmr.msra.gmra.mrb[0].mxu0 %v1441_v10  ;;  %1376 = vmatmul.mubr.bf16.vlgmr.msra.gmra.mrb[0].mxu1 %v1442_v11 }
  0x28   : > { %1363 = vmatprep.mubr.bf16.mxu0 %v1443_v12  ;;  %1379 = vmatprep.mubr.bf16.mxu1 %v1444_v13 }
  0x2f   : > { %1364 = vmatmul.mubr.bf16.gmra.mrb[4].mxu0 %v1445_v14  ;;  %1380 = vmatmul.mubr.bf16.gmra.mrb[4].mxu1 %v1446_v15 }
  0x30   : > { %1367 = vmatprep.mubr.bf16.mxu0 %v1447_v16  ;;  %1383 = vmatprep.mubr.bf16.mxu1 %v1448_v17 }
  0x37   : > { %1368 = vmatmul.mubr.bf16.gmra.mrb[8].mxu0 %v1449_v18  ;;  %1384 = vmatmul.mubr.bf16.gmra.mrb[8].mxu1 %v1450_v19 }
  0x38   : > { %1371 = vmatprep.mubr.bf16.mxu0 %v1451_v20  ;;  %1387 = vmatprep.mubr.bf16.mxu1 %v1452_v21 }
  0x3f   : > { %1372 = vmatmul.mubr.bf16.gmra.mrb[12].mxu0 %v1453_v22  ;;  %1388 = vmatmul.mubr.bf16.gmra.mrb[12].mxu1 %v1454_v23 }
  0xfa   : > { %v1361_v25 = vpop.f32.mrb[0].mxu0  ;;  %v1377_v26 = vpop.f32.mrb[0].mxu1 }
  0xfb   : > { %v789_v27 = vadd.f32 %v1361_v25, %v1570_v24  ;;  %v805_v28 = vadd.f32 %v1377_v26, %v1570_v24  ;;  %v554_v29 = vpop.f32.mrb[1].mxu0  ;;  %v618_v30 = vpop.f32.mrb[1].mxu1 }
  0xfc   : > { %v787_v31 = vadd.f32 %v1570_v24, %v554_v29  ;;  %v803_v32 = vadd.f32 %v1570_v24, %v618_v30  ;;  %v1362_v33 = vpop.f32.mrb[2].mxu0  ;;  %v1378_v34 = vpop.f32.mrb[2].mxu1 }
  0xfd   : > { %v790_v35 = vadd.f32 %v1362_v33, %v1570_v24  ;;  %v806_v36 = vadd.f32 %v1378_v34, %v1570_v24  ;;  %v557_v37 = vpop.f32.mrb[3].mxu0  ;;  %v621_v38 = vpop.f32.mrb[3].mxu1  ;;  %v821_v41 = vmax.f32 %v789_v27, 0.0  ;;  %v837_v42 = vmax.f32 %v805_v28, 0.0 }
  0xfe   : > { %v788_v39 = vadd.f32 %v1570_v24, %v557_v37  ;;  %v804_v40 = vadd.f32 %v1570_v24, %v621_v38  ;;  %v819_v45 = vmax.f32 %v787_v31, 0.0  ;;  %v835_v46 = vmax.f32 %v803_v32, 0.0 }
  0xff   : > { %v822_v43 = vmax.f32 %v790_v35, 0.0  ;;  %v838_v44 = vmax.f32 %v806_v36, 0.0 }
 0x100   : > { %v820_v47 = vmax.f32 %v788_v39, 0.0  ;;  %v836_v48 = vmax.f32 %v804_v40, 0.0 }
 0x101   : > { %v1232_v49 = vpack.c.bf16 %v822_v43, %v821_v41  ;;  %v1272_v50 = vpack.c.bf16 %v838_v44, %v837_v42 }
 0x102   : > { %v1227_v51 = vpack.c.bf16 %v820_v47, %v819_v45  ;;  %v1267_v52 = vpack.c.bf16 %v836_v48, %v835_v46  ;;  %v1365_v53 = vpop.f32.mrb[4].mxu0  ;;  %v1381_v54 = vpop.f32.mrb[4].mxu1 }
 0x103   : > { %1304 = vst [vmem:[%s1585_s17 + $0x8] sm:$0xff] %v1232_v49   ;;  %1312 = vst [vmem:[%s1585_s17 + $0x48] sm:$0xff] %v1272_v50   ;;  %v793_v55 = vadd.f32 %v1365_v53, %v1570_v24  ;;  %v809_v56 = vadd.f32 %v1381_v54, %v1570_v24  ;;  %v570_v57 = vpop.f32.mrb[5].mxu0  ;;  %v634_v58 = vpop.f32.mrb[5].mxu1 }
 0x104   : > { %1228 = vst [vmem:[%s1585_s17] sm:$0xff] %v1227_v51   ;;  %1311 = vst [vmem:[%s1585_s17 + $0x40] sm:$0xff] %v1267_v52   ;;  %v791_v59 = vadd.f32 %v1570_v24, %v570_v57  ;;  %v807_v60 = vadd.f32 %v1570_v24, %v634_v58  ;;  %v1366_v61 = vpop.f32.mrb[6].mxu0  ;;  %v1382_v62 = vpop.f32.mrb[6].mxu1 }
 0x105   : > { %v794_v63 = vadd.f32 %v1366_v61, %v1570_v24  ;;  %v810_v0 = vadd.f32 %v1382_v62, %v1570_v24  ;;  %v573_v1 = vpop.f32.mrb[7].mxu0  ;;  %v637_v2 = vpop.f32.mrb[7].mxu1  ;;  %v825_v5 = vmax.f32 %v793_v55, 0.0  ;;  %v841_v6 = vmax.f32 %v809_v56, 0.0 }
 0x106   : > { %v792_v3 = vadd.f32 %v1570_v24, %v573_v1  ;;  %v808_v4 = vadd.f32 %v1570_v24, %v637_v2  ;;  %v823_v9 = vmax.f32 %v791_v59, 0.0  ;;  %v839_v10 = vmax.f32 %v807_v60, 0.0 }
 0x107   : > { %v826_v7 = vmax.f32 %v794_v63, 0.0  ;;  %v842_v8 = vmax.f32 %v810_v0, 0.0 }
 0x108   : > { %v824_v11 = vmax.f32 %v792_v3, 0.0  ;;  %v840_v12 = vmax.f32 %v808_v4, 0.0 }
 0x109   : > { %v1242_v13 = vpack.c.bf16 %v826_v7, %v825_v5  ;;  %v1282_v14 = vpack.c.bf16 %v842_v8, %v841_v6 }
 0x10a   : > { %v1237_v15 = vpack.c.bf16 %v824_v11, %v823_v9  ;;  %v1277_v16 = vpack.c.bf16 %v840_v12, %v839_v10  ;;  %v1369_v17 = vpop.f32.mrb[8].mxu0  ;;  %v1385_v18 = vpop.f32.mrb[8].mxu1 }
 0x10b   : > { %1306 = vst [vmem:[%s1585_s17 + $0x18] sm:$0xff] %v1242_v13   ;;  %1314 = vst [vmem:[%s1585_s17 + $0x58] sm:$0xff] %v1282_v14   ;;  %v797_v19 = vadd.f32 %v1369_v17, %v1570_v24  ;;  %v813_v20 = vadd.f32 %v1385_v18, %v1570_v24  ;;  %v586_v21 = vpop.f32.mrb[9].mxu0  ;;  %v650_v22 = vpop.f32.mrb[9].mxu1 }
 0x10c   : > { %1305 = vst [vmem:[%s1585_s17 + $0x10] sm:$0xff] %v1237_v15   ;;  %1313 = vst [vmem:[%s1585_s17 + $0x50] sm:$0xff] %v1277_v16   ;;  %v795_v23 = vadd.f32 %v1570_v24, %v586_v21  ;;  %v811_v25 = vadd.f32 %v1570_v24, %v650_v22  ;;  %v1370_v26 = vpop.f32.mrb[10].mxu0  ;;  %v1386_v27 = vpop.f32.mrb[10].mxu1 }
 0x10d   : > { %v798_v28 = vadd.f32 %v1370_v26, %v1570_v24  ;;  %v814_v29 = vadd.f32 %v1386_v27, %v1570_v24  ;;  %v589_v30 = vpop.f32.mrb[11].mxu0  ;;  %v653_v31 = vpop.f32.mrb[11].mxu1  ;;  %v829_v34 = vmax.f32 %v797_v19, 0.0  ;;  %v845_v35 = vmax.f32 %v813_v20, 0.0 }
 0x10e   : > { %v796_v32 = vadd.f32 %v1570_v24, %v589_v30  ;;  %v812_v33 = vadd.f32 %v1570_v24, %v653_v31  ;;  %v827_v38 = vmax.f32 %v795_v23, 0.0  ;;  %v843_v39 = vmax.f32 %v811_v25, 0.0 }
 0x10f   : > { %v830_v36 = vmax.f32 %v798_v28, 0.0  ;;  %v846_v37 = vmax.f32 %v814_v29, 0.0 }
 0x110   : > { %v828_v40 = vmax.f32 %v796_v32, 0.0  ;;  %v844_v41 = vmax.f32 %v812_v33, 0.0 }
 0x111   : > { %v1252_v42 = vpack.c.bf16 %v830_v36, %v829_v34  ;;  %v1292_v43 = vpack.c.bf16 %v846_v37, %v845_v35 }
 0x112   : > { %v1247_v44 = vpack.c.bf16 %v828_v40, %v827_v38  ;;  %v1287_v45 = vpack.c.bf16 %v844_v41, %v843_v39  ;;  %v1373_v46 = vpop.f32.mrb[12].mxu0  ;;  %v1389_v47 = vpop.f32.mrb[12].mxu1 }
 0x113   : > { %1308 = vst [vmem:[%s1585_s17 + $0x28] sm:$0xff] %v1252_v42   ;;  %1316 = vst [vmem:[%s1585_s17 + $0x68] sm:$0xff] %v1292_v43   ;;  %v801_v48 = vadd.f32 %v1373_v46, %v1570_v24  ;;  %v817_v49 = vadd.f32 %v1389_v47, %v1570_v24  ;;  %v602_v50 = vpop.f32.mrb[13].mxu0  ;;  %v666_v51 = vpop.f32.mrb[13].mxu1 }
 0x114   : > { %1307 = vst [vmem:[%s1585_s17 + $0x20] sm:$0xff] %v1247_v44   ;;  %1315 = vst [vmem:[%s1585_s17 + $0x60] sm:$0xff] %v1287_v45   ;;  %v799_v52 = vadd.f32 %v1570_v24, %v602_v50  ;;  %v815_v53 = vadd.f32 %v1570_v24, %v666_v51  ;;  %v1374_v54 = vpop.f32.mrb[14].mxu0  ;;  %v1390_v55 = vpop.f32.mrb[14].mxu1 }
 0x115   : > { %v802_v56 = vadd.f32 %v1374_v54, %v1570_v24  ;;  %v818_v57 = vadd.f32 %v1390_v55, %v1570_v24  ;;  %v605_v58 = vpop.f32.mrb[15].mxu0  ;;  %v669_v59 = vpop.f32.mrb[15].mxu1  ;;  %v833_v62 = vmax.f32 %v801_v48, 0.0  ;;  %v849_v63 = vmax.f32 %v817_v49, 0.0 }
 0x116   : > { %v800_v60 = vadd.f32 %v1570_v24, %v605_v58  ;;  %v816_v61 = vadd.f32 %v1570_v24, %v669_v59  ;;  %v831_v2 = vmax.f32 %v799_v52, 0.0  ;;  %v847_v3 = vmax.f32 %v815_v53, 0.0 }
 0x117   : > { %v834_v0 = vmax.f32 %v802_v56, 0.0  ;;  %v850_v1 = vmax.f32 %v818_v57, 0.0 }
 0x118   : > { %v832_v4 = vmax.f32 %v800_v60, 0.0  ;;  %v848_v5 = vmax.f32 %v816_v61, 0.0 }
 0x119   : > { %v1262_v6 = vpack.c.bf16 %v834_v0, %v833_v62  ;;  %v1302_v7 = vpack.c.bf16 %v850_v1, %v849_v63 }
 0x11a   : > { %v1257_v8 = vpack.c.bf16 %v832_v4, %v831_v2  ;;  %v1297_v9 = vpack.c.bf16 %v848_v5, %v847_v3 }
 0x11b   : > { %1310 = vst [vmem:[%s1585_s17 + $0x38] sm:$0xff] %v1262_v6   ;;  %1318 = vst [vmem:[%s1585_s17 + $0x78] sm:$0xff] %v1302_v7  }
 0x11c   : > { %1309 = vst [vmem:[%s1585_s17 + $0x30] sm:$0xff] %v1257_v8   ;;  %1317 = vst [vmem:[%s1585_s17 + $0x70] sm:$0xff] %v1297_v9  }
 0x11d PF: > { %s13_s14 = sadd.s32 1, %s1477_s14   ;;  %s1640_s12 = smov %s1473_s13 }
 0x11e   : > { %p10_p5 = scmp.ge.s32.totalorder %s13_s14, 4   ;;  %s1641_s13 = smov %s1643_s15 }
 0x120   :  { %12 = sbr.rel (!%p10_p5) target bundleno = 2 (0x2), region = 76 }

// kernel: _lambda_.17
= control target key start
LH: loop header
LB: loop body
LE: loop exit
PB: predicated region body
PF: predicated region fallthrough
CT: control target
= control target key end

     0   :  { %s2216_s12 = smov 0   ;;  %s2218_s13 = smov 0   ;;  %s2460_s0 = inlined_call_operand.vmem [shape: bf16[512,384], index: 0, kind: input, shape index: {}]   ;;  %s2461_s1 = inlined_call_operand.vmem [shape: bf16[384,128], index: 1, kind: input, shape index: {}]   ;;  %s2462_s2 = inlined_call_operand.vmem [shape: f32[1,128], index: 2, kind: input, shape index: {}]   ;;  %s2463_s3 = inlined_call_operand.vmem [shape: bf16[512,128], index: 3, kind: output, shape index: {}]  }
   0x1   :  { %s2220_s14 = smov 0  }
   0x2 LB: > { %s32_s15 = sadd.s32 1, %s2190_s13  ;;  %p1620_p0 = scmp.ge.s32.totalorder %s2194_s14, 1  ;;  %s2194_s14 = sphi %s2220_s14, %s13_s14   ;;  %s2190_s13 = sphi %s2218_s13, %s2465_s13   ;;  %s2186_s12 = sphi %s2216_s12, %s2464_s12  }
   0x3   : > { %p34_p1 = scmp.ge.s32.totalorder %s32_s15, 2  ;;  %p191_p2 = scmp.lt.s32.totalorder %s2194_s14, 3 }
   0x5   : > { %s2467_s15 = smov (%p34_p1, %s32_s15), 0  ;;  %p192_p3 = pnand %p1620_p0, %p191_p2 }
   0x6   : > { %v2084_v0 = vld [vmem:[%s2461_s1 + $0x40] sm:$0xff] (!%p192_p3)   ;;  %s1621_s18 = sshll.u32 (!%p192_p3), %s2186_s12, 5  ;;  %v2086_v2 = vld [vmem:[%s2461_s1 + $0x48] sm:$0xff] (!%p192_p3)   ;;  %v2088_v4 = vld [vmem:[%s2461_s1 + $0x50] sm:$0xff] (!%p192_p3)  }
   0x7   : > { %195 = sbr.rel (%p192_p3) target bundleno = 353 (0x161), region = 32  ;;  %v2085_v1 = vld [vmem:[%s2461_s1] sm:$0xff] (!%p192_p3)   ;;  %1859 = vmatprep.subr.bf16.mxu0 (!%p192_p3), %v2084_v0  ;;  %2043 = vmatprep.subr.bf16.mxu1 (!%p192_p3), %v2084_v0  ;;  %p236_p4 = scmp.lt.s32.totalorder (!%p192_p3), %s1621_s18, 63  ;;  %v2087_v3 = vld [vmem:[%s2461_s1 + $0x8] sm:$0xff] (!%p192_p3)   ;;  %v2089_v5 = vld [vmem:[%s2461_s1 + $0x10] sm:$0xff] (!%p192_p3)  }
   0x8   : > { %1860 = vmatpush3.bf16.msra.mxu0 (!%p192_p3), %v2085_v1  ;;  %2051 = vmatpush3.bf16.msra.mxu1 (!%p192_p3), %v2085_v1  ;;  %v2090_v6 = vld [vmem:[%s2461_s1 + $0x58] sm:$0xff] (!%p192_p3)   ;;  %v2092_v8 = vld [vmem:[%s2461_s1 + $0x60] sm:$0xff] (!%p192_p3)   ;;  %v2094_v10 = vld [vmem:[%s2461_s1 + $0x68] sm:$0xff] (!%p192_p3)  }
   0x9   : > { %1861 = vmatprep.subr.bf16.mxu0 (!%p192_p3), %v2086_v2  ;;  %2044 = vmatprep.subr.bf16.mxu1 (!%p192_p3), %v2086_v2  ;;  %v2091_v7 = vld [vmem:[%s2461_s1 + $0x18] sm:$0xff] (!%p192_p3)   ;;  %v2093_v9 = vld [vmem:[%s2461_s1 + $0x20] sm:$0xff] (!%p192_p3)   ;;  %v2095_v13 = vld [vmem:[%s2461_s1 + $0x28] sm:$0xff] (!%p192_p3)  }
   0xa   : > { %v2096_v14 = vld [vmem:[%s2461_s1 + $0x70] sm:$0xff] (!%p192_p3)   ;;  %v2098_v16 = vld [vmem:[%s2461_s1 + $0x78] sm:$0xff] (!%p192_p3)   ;;  %v2106_v18 = vld [vmem:[%s2461_s1 + $0x80] sm:$0xff] (!%p192_p3)  }
   0xb   : > { %v2097_v15 = vld [vmem:[%s2461_s1 + $0x30] sm:$0xff] (!%p192_p3)   ;;  %v2099_v17 = vld [vmem:[%s2461_s1 + $0x38] sm:$0xff] (!%p192_p3)   ;;  %v2107_v22 = vld [vmem:[%s2461_s1 + $0x88] sm:$0xff] (!%p192_p3)  }
   0xc   : > { %1862 = vmatpush3.bf16.msra.mxu0 (!%p192_p3), %v2087_v3  ;;  %2052 = vmatpush3.bf16.msra.mxu1 (!%p192_p3), %v2087_v3  ;;  %v2114_v25 = vld [vmem:[%s2461_s1 + $0x90] sm:$0xff] (!%p192_p3)   ;;  %v2115_v27 = vld [vmem:[%s2461_s1 + $0x98] sm:$0xff] (!%p192_p3)   ;;  %v2122_v30 = vld [vmem:[%s2461_s1 + $0xa0] sm:$0xff] (!%p192_p3)  }
   0xd   : > { %1863 = vmatprep.subr.bf16.mxu0 (!%p192_p3), %v2088_v4  ;;  %2045 = vmatprep.subr.bf16.mxu1 (!%p192_p3), %v2088_v4  ;;  %v2123_v33 = vld [vmem:[%s2461_s1 + $0xa8] sm:$0xff] (!%p192_p3)   ;;  %v2130_v36 = vld [vmem:[%s2461_s1 + $0xb0] sm:$0xff] (!%p192_p3)   ;;  %v2131_v40 = vld [vmem:[%s2461_s1 + $0xb8] sm:$0xff] (!%p192_p3)  }
   0xe   : > { %s2469_s18 = smov (!%p236_p4, %s1621_s18), 63 }
   0xf   : > { %s2059_s4 = smul.u32 12, %s2469_s18  ;;  %s1624_s25 = sshll.u32 %s2469_s18, 2 }
  0x10   : > { %1864 = vmatpush3.bf16.msra.mxu0 %v2089_v5  ;;  %2053 = vmatpush3.bf16.msra.mxu1 %v2089_v5  ;;  %s2391_s28 = scalar_lea.vmem %s2463_s3, %s1624_s25 }
  0x11   : > { %1865 = vmatprep.subr.bf16.mxu0 %v2090_v6  ;;  %2046 = vmatprep.subr.bf16.mxu1 %v2090_v6  ;;  %s2267_s11 = scalar_lea.vmem %s2460_s0, %s2059_s4 }
  0x12   : > { %v2102_v11 = vld [vmem:[%s2267_s11 + $0x4] ss:$12 sps:$4 sm:$0xff]   ;;  %v2100_v19 = vld [vmem:[%s2267_s11] ss:$12 sps:$4 sm:$0xff]   ;;  %v2108_v21 = vld [vmem:[%s2267_s11 + $0x1c] ss:$12 sps:$4 sm:$0xff]  }
  0x13   : > { %v2105_v12 = vld [vmem:[%s2267_s11 + $0x124] ss:$12 sps:$4 sm:$0xff]   ;;  %880 = vmatprep.mubr.bf16.mxu0 %v2102_v11  ;;  %v2103_v20 = vld [vmem:[%s2267_s11 + $0x120] ss:$12 sps:$4 sm:$0xff]   ;;  %v2110_v23 = vld [vmem:[%s2267_s11 + $0x13c] ss:$12 sps:$4 sm:$0xff]  }
  0x14   : > { %1866 = vmatpush3.bf16.msra.mxu0 %v2091_v7  ;;  %2054 = vmatpush3.bf16.msra.mxu1 %v2091_v7  ;;  %v2112_v24 = vld [vmem:[%s2267_s11 + $0x18] ss:$12 sps:$4 sm:$0xff]   ;;  %v2116_v28 = vld [vmem:[%s2267_s11 + $0x34] ss:$12 sps:$4 sm:$0xff]   ;;  %v2120_v31 = vld [vmem:[%s2267_s11 + $0x30] ss:$12 sps:$4 sm:$0xff]  }
  0x15   : > { %1867 = vmatprep.subr.bf16.mxu0 %v2092_v8  ;;  %2047 = vmatprep.subr.bf16.mxu1 %v2092_v8  ;;  %v2113_v26 = vld [vmem:[%s2267_s11 + $0x138] ss:$12 sps:$4 sm:$0xff]   ;;  %v2118_v29 = vld [vmem:[%s2267_s11 + $0x154] ss:$12 sps:$4 sm:$0xff]   ;;  %v2121_v32 = vld [vmem:[%s2267_s11 + $0x150] ss:$12 sps:$4 sm:$0xff]  }
  0x16   : > { %976 = vmatprep.mubr.bf16.mxu1 %v2105_v12  ;;  %v2124_v34 = vld [vmem:[%s2267_s11 + $0x4c] ss:$12 sps:$4 sm:$0xff]   ;;  %v2128_v37 = vld [vmem:[%s2267_s11 + $0x48] ss:$12 sps:$4 sm:$0xff]   ;;  %v2132_v39 = vld [vmem:[%s2267_s11 + $0x64] ss:$12 sps:$4 sm:$0xff]  }
  0x17   : > { %v2126_v35 = vld [vmem:[%s2267_s11 + $0x16c] ss:$12 sps:$4 sm:$0xff]   ;;  %v2129_v38 = vld [vmem:[%s2267_s11 + $0x168] ss:$12 sps:$4 sm:$0xff]   ;;  %v2141_v47 = vld [vmem:[%s2267_s11 + $0x50] ss:$12 sps:$4 sm:$0xff]  }
  0x18   : > { %1868 = vmatpush3.bf16.msra.mxu0 %v2093_v9  ;;  %2055 = vmatpush3.bf16.msra.mxu1 %v2093_v9  ;;  %v2134_v41 = vld [vmem:[%s2267_s11 + $0x8] ss:$12 sps:$4 sm:$0xff]   ;;  %v2135_v42 = vld [vmem:[%s2267_s11 + $0x60] ss:$12 sps:$4 sm:$0xff]   ;;  %v2139_v45 = vld [vmem:[%s2267_s11 + $0x38] ss:$12 sps:$4 sm:$0xff]  }
  0x19   : > { %1869 = vmatprep.subr.bf16.mxu0 %v2094_v10  ;;  %2048 = vmatprep.subr.bf16.mxu1 %v2094_v10  ;;  %v2136_v43 = vld [vmem:[%s2267_s11 + $0x20] ss:$12 sps:$4 sm:$0xff]   ;;  %v2137_v44 = vld [vmem:[%s2267_s11 + $0x7c] ss:$12 sps:$4 sm:$0xff]   ;;  %v2140_v46 = vld [vmem:[%s2267_s11 + $0x78] ss:$12 sps:$4 sm:$0xff]  }
  0x1a   : > { %v2142_v48 = vld [vmem:[%s2267_s11 + $0x94] ss:$12 sps:$4 sm:$0xff]   ;;  %v2145_v50 = vld [vmem:[%s2267_s11 + $0x90] ss:$12 sps:$4 sm:$0xff]   ;;  %v2147_v52 = vld [vmem:[%s2267_s11 + $0xac] ss:$12 sps:$4 sm:$0xff]  }
  0x1b   : > { %v2144_v49 = vld [vmem:[%s2267_s11 + $0x68] ss:$12 sps:$4 sm:$0xff]   ;;  %v2146_v51 = vld [vmem:[%s2267_s11 + $0x80] ss:$12 sps:$4 sm:$0xff]   ;;  %v2149_v53 = vld [vmem:[%s2267_s11 + $0x98] ss:$12 sps:$4 sm:$0xff]  }
  0x1c   : > { %1870 = vmatpush3.bf16.msra.mxu0 %v2095_v13  ;;  %2056 = vmatpush3.bf16.msra.mxu1 %v2095_v13  ;;  %v2150_v54 = vld [vmem:[%s2267_s11 + $0xa8] ss:$12 sps:$4 sm:$0xff]   ;;  %v2151_v55 = vld [vmem:[%s2267_s11 + $0xb0] ss:$12 sps:$4 sm:$0xff]   ;;  %v2155_v58 = vld [vmem:[%s2267_s11 + $0xc0] ss:$12 sps:$4 sm:$0xff]  }
  0x1d   : > { %1871 = vmatprep.subr.bf16.mxu0 %v2096_v14  ;;  %2049 = vmatprep.subr.bf16.mxu1 %v2096_v14  ;;  %v2152_v56 = vld [vmem:[%s2267_s11 + $0xc4] ss:$12 sps:$4 sm:$0xff]   ;;  %v2154_v57 = vld [vmem:[%s2267_s11 + $0xc8] ss:$12 sps:$4 sm:$0xff]   ;;  %v2156_v59 = vld [vmem:[%s2267_s11 + $0xe0] ss:$12 sps:$4 sm:$0xff]  }
  0x1e   : > { %v2157_v60 = vld [vmem:[%s2267_s11 + $0xdc] ss:$12 sps:$4 sm:$0xff]   ;;  %v2159_v61 = vld [vmem:[%s2267_s11 + $0xf8] ss:$12 sps:$4 sm:$0xff]   ;;  %v2162_v0 = vld [vmem:[%s2267_s11 + $0xf4] ss:$12 sps:$4 sm:$0xff]  }
  0x1f   : > { %v2160_v62 = vld [vmem:[%s2267_s11 + $0xd8] ss:$12 sps:$4 sm:$0xff]   ;;  %v2161_v63 = vld [vmem:[%s2267_s11 + $0x110] ss:$12 sps:$4 sm:$0xff]   ;;  %v2164_v1 = vld [vmem:[%s2267_s11 + $0x128] ss:$12 sps:$4 sm:$0xff]  }
  0x20   : > { %1872 = vmatpush3.bf16.msra.mxu0 %v2097_v15  ;;  %2057 = vmatpush3.bf16.msra.mxu1 %v2097_v15  ;;  %v2165_v2 = vld [vmem:[%s2267_s11 + $0xf0] ss:$12 sps:$4 sm:$0xff]   ;;  %v2166_v3 = vld [vmem:[%s2267_s11 + $0x140] ss:$12 sps:$4 sm:$0xff]   ;;  %v2169_v5 = vld [vmem:[%s2267_s11 + $0x158] ss:$12 sps:$4 sm:$0xff]  }
  0x21   : > { %1873 = vmatprep.subr.bf16.mxu0 %v2098_v16  ;;  %2050 = vmatprep.subr.bf16.mxu1 %v2098_v16  ;;  %v2167_v4 = vld [vmem:[%s2267_s11 + $0x10c] ss:$12 sps:$4 sm:$0xff]   ;;  %v2170_v6 = vld [vmem:[%s2267_s11 + $0x108] ss:$12 sps:$4 sm:$0xff]   ;;  %v2171_v7 = vld [vmem:[%s2267_s11 + $0x170] ss:$12 sps:$4 sm:$0xff]  }
  0x24   : > { %1874 = vmatpush3.bf16.msra.mxu0 %v2099_v17  ;;  %2058 = vmatpush3.bf16.msra.mxu1 %v2099_v17 }
  0x25   : > { %1995 = vmatprep.subr.bf16.mxu1 %v2106_v18 }
  0x27   : > { %881 = vmatmul.mubr.bf16.vlgmr.msra.gmra.mrb[0].mxu0 %v2100_v19  ;;  %977 = vmatmul.mubr.bf16.vlgmr.msra.gmra.mrb[0].mxu1 %v2103_v20 }
  0x28   : > { %1996 = vmatpush3.bf16.msra.mxu1 %v2106_v18  ;;  %888 = vmatprep.mubr.bf16.mxu0 %v2108_v21 }
  0x29   : > { %1997 = vmatprep.subr.bf16.mxu1 %v2107_v22  ;;  %984 = vmatprep.mubr.bf16.mxu1 %v2110_v23 }
  0x2c   : > { %1998 = vmatpush3.bf16.msra.mxu1 %v2107_v22 }
  0x2d   : > { %1999 = vmatprep.subr.bf16.mxu1 %v2114_v25 }
  0x2f   : > { %889 = vmatmul.mubr.bf16.gmra.mrb[4].mxu0 %v2112_v24  ;;  %985 = vmatmul.mubr.bf16.gmra.mrb[4].mxu1 %v2113_v26 }
  0x30   : > { %2000 = vmatpush3.bf16.msra.mxu1 %v2114_v25  ;;  %896 = vmatprep.mubr.bf16.mxu0 %v2116_v28 }
  0x31   : > { %2001 = vmatprep.subr.bf16.mxu1 %v2115_v27  ;;  %992 = vmatprep.mubr.bf16.mxu1 %v2118_v29 }
  0x34   : > { %2002 = vmatpush3.bf16.msra.mxu1 %v2115_v27 }
  0x35   : > { %2003 = vmatprep.subr.bf16.mxu1 %v2122_v30 }
  0x37   : > { %897 = vmatmul.mubr.bf16.gmra.mrb[8].mxu0 %v2120_v31  ;;  %993 = vmatmul.mubr.bf16.gmra.mrb[8].mxu1 %v2121_v32 }
  0x38   : > { %2004 = vmatpush3.bf16.msra.mxu1 %v2122_v30  ;;  %904 = vmatprep.mubr.bf16.mxu0 %v2124_v34 }
  0x39   : > { %2005 = vmatprep.subr.bf16.mxu1 %v2123_v33  ;;  %1000 = vmatprep.mubr.bf16.mxu1 %v2126_v35 }
  0x3c   : > { %2006 = vmatpush3.bf16.msra.mxu1 %v2123_v33 }
  0x3d   : > { %2007 = vmatprep.subr.bf16.mxu1 %v2130_v36 }
  0x3f   : > { %905 = vmatmul.mubr.bf16.gmra.mrb[12].mxu0 %v2128_v37  ;;  %1001 = vmatmul.mubr.bf16.gmra.mrb[12].mxu1 %v2129_v38 }
  0x40   : > { %2008 = vmatpush3.bf16.msra.mxu1 %v2130_v36  ;;  %912 = vmatprep.mubr.bf16.mxu0 %v2132_v39 }
  0x41   : > { %2009 = vmatprep.subr.bf16.mxu1 %v2131_v40  ;;  %2011 = vmatprep.mubr.bf16.mxu1 %v2134_v41 }
  0x44   : > { %2010 = vmatpush3.bf16.msra.mxu1 %v2131_v40 }
  0x47   : > { %913 = vmatmul.mubr.bf16.gmra.mrb[16].mxu0 %v2135_v42  ;;  %2012 = vmatmul.mubr.bf16.vlgmr.msra.gmra.mrb[16].mxu1 %v2136_v43 }
  0x48   : > { %920 = vmatprep.mubr.bf16.mxu0 %v2137_v44  ;;  %2015 = vmatprep.mubr.bf16.mxu1 %v2139_v45 }
  0x4f   : > { %921 = vmatmul.mubr.bf16.gmra.mrb[20].mxu0 %v2140_v46  ;;  %2016 = vmatmul.mubr.bf16.gmra.mrb[20].mxu1 %v2141_v47 }
  0x50   : > { %928 = vmatprep.mubr.bf16.mxu0 %v2142_v48  ;;  %2019 = vmatprep.mubr.bf16.mxu1 %v2144_v49 }
  0x57   : > { %929 = vmatmul.mubr.bf16.gmra.mrb[24].mxu0 %v2145_v50  ;;  %2020 = vmatmul.mubr.bf16.gmra.mrb[24].mxu1 %v2146_v51 }
  0x58   : > { %936 = vmatprep.mubr.bf16.mxu0 %v2147_v52  ;;  %2023 = vmatprep.mubr.bf16.mxu1 %v2149_v53 }
  0x5f   : > { %937 = vmatmul.mubr.bf16.gmra.mrb[28].mxu0 %v2150_v54  ;;  %2024 = vmatmul.mubr.bf16.gmra.mrb[28].mxu1 %v2151_v55 }
  0x60   : > { %944 = vmatprep.mubr.bf16.mxu0 %v2152_v56  ;;  %2027 = vmatprep.mubr.bf16.mxu1 %v2154_v57 }
  0x67   : > { %945 = vmatmul.mubr.bf16.gmra.mrb[32].mxu0 %v2155_v58  ;;  %2028 = vmatmul.mubr.bf16.gmra.mrb[32].mxu1 %v2156_v59  ;;  %v2381_v58 = vld [vmem:[%s2462_s2] ss:$0 sm:$0xff] }
  0x68   : > { %952 = vmatprep.mubr.bf16.mxu0 %v2157_v60  ;;  %2031 = vmatprep.mubr.bf16.mxu1 %v2159_v61 }
  0x6f   : > { %953 = vmatmul.mubr.bf16.gmra.mrb[36].mxu0 %v2160_v62  ;;  %2032 = vmatmul.mubr.bf16.gmra.mrb[36].mxu1 %v2161_v63 }
  0x70   : > { %960 = vmatprep.mubr.bf16.mxu0 %v2162_v0  ;;  %2035 = vmatprep.mubr.bf16.mxu1 %v2164_v1 }
  0x77   : > { %961 = vmatmul.mubr.bf16.gmra.mrb[40].mxu0 %v2165_v2  ;;  %2036 = vmatmul.mubr.bf16.gmra.mrb[40].mxu1 %v2166_v3 }
  0x78   : > { %968 = vmatprep.mubr.bf16.mxu0 %v2167_v4  ;;  %2039 = vmatprep.mubr.bf16.mxu1 %v2169_v5 }
  0x7f   : > { %969 = vmatmul.mubr.bf16.gmra.mrb[44].mxu0 %v2170_v6  ;;  %2040 = vmatmul.mubr.bf16.gmra.mrb[44].mxu1 %v2171_v7 }
  0xfa   : > { %v1875_v8 = vpop.f32.mrb[0].mxu0  ;;  %v1947_v9 = vpop.f32.mrb[0].mxu1 }
  0xfb   : > { %v1876_v10 = vpop.f32.mrb[1].mxu0  ;;  %v1948_v11 = vpop.f32.mrb[1].mxu1 }
  0xfc   : > { %v1877_v12 = vadd.f32 %v1876_v10, %v1875_v8  ;;  %v2362_v13 = vadd.f32 %v1948_v11, %v1947_v9  ;;  %v1878_v14 = vpop.f32.mrb[2].mxu0  ;;  %v1950_v15 = vpop.f32.mrb[2].mxu1 }
  0xfd   : > { %v1879_v16 = vpop.f32.mrb[3].mxu0  ;;  %v1951_v17 = vpop.f32.mrb[3].mxu1 }
  0xfe   : > { %v1880_v18 = vadd.f32 %v1879_v16, %v1878_v14  ;;  %v2364_v19 = vadd.f32 %v1951_v17, %v1950_v15 }
 0x102   : > { %v1881_v20 = vpop.f32.mrb[4].mxu0  ;;  %v1953_v21 = vpop.f32.mrb[4].mxu1 }
 0x103   : > { %v1882_v22 = vpop.f32.mrb[5].mxu0  ;;  %v1954_v23 = vpop.f32.mrb[5].mxu1 }
 0x104   : > { %v1883_v24 = vadd.f32 %v1882_v22, %v1881_v20  ;;  %v2366_v25 = vadd.f32 %v1954_v23, %v1953_v21  ;;  %v1884_v26 = vpop.f32.mrb[6].mxu0  ;;  %v1956_v27 = vpop.f32.mrb[6].mxu1 }
 0x105   : > { %v1885_v28 = vpop.f32.mrb[7].mxu0  ;;  %v1957_v29 = vpop.f32.mrb[7].mxu1 }
 0x106   : > { %v1886_v30 = vadd.f32 %v1885_v28, %v1884_v26  ;;  %v2368_v31 = vadd.f32 %v1957_v29, %v1956_v27 }
 0x10a   : > { %v1887_v32 = vpop.f32.mrb[8].mxu0  ;;  %v1959_v33 = vpop.f32.mrb[8].mxu1 }
 0x10b   : > { %v1888_v34 = vpop.f32.mrb[9].mxu0  ;;  %v1960_v35 = vpop.f32.mrb[9].mxu1 }
 0x10c   : > { %v1889_v36 = vadd.f32 %v1888_v34, %v1887_v32  ;;  %v2370_v37 = vadd.f32 %v1960_v35, %v1959_v33  ;;  %v1890_v38 = vpop.f32.mrb[10].mxu0  ;;  %v1962_v39 = vpop.f32.mrb[10].mxu1 }
 0x10d   : > { %v1891_v40 = vpop.f32.mrb[11].mxu0  ;;  %v1963_v41 = vpop.f32.mrb[11].mxu1 }
 0x10e   : > { %v1892_v42 = vadd.f32 %v1891_v40, %v1890_v38  ;;  %v2372_v43 = vadd.f32 %v1963_v41, %v1962_v39 }
 0x112   : > { %v1893_v44 = vpop.f32.mrb[12].mxu0  ;;  %v1965_v45 = vpop.f32.mrb[12].mxu1 }
 0x113   : > { %v1894_v46 = vpop.f32.mrb[13].mxu0  ;;  %v1966_v47 = vpop.f32.mrb[13].mxu1 }
 0x114   : > { %v1895_v48 = vadd.f32 %v1894_v46, %v1893_v44  ;;  %v2374_v49 = vadd.f32 %v1966_v47, %v1965_v45  ;;  %v1896_v50 = vpop.f32.mrb[14].mxu0  ;;  %v1968_v51 = vpop.f32.mrb[14].mxu1 }
 0x115   : > { %v1897_v52 = vpop.f32.mrb[15].mxu0  ;;  %v1969_v53 = vpop.f32.mrb[15].mxu1 }
 0x116   : > { %v1898_v54 = vadd.f32 %v1897_v52, %v1896_v50  ;;  %v2376_v55 = vadd.f32 %v1969_v53, %v1968_v51 }
 0x11a   : > { %v1899_v56 = vpop.f32.mrb[16].mxu0  ;;  %v2013_v57 = vpop.f32.mrb[16].mxu1 }
 0x11b   : > { %v1052_v59 = vadd.f32 %v2013_v57, %v1883_v24  ;;  %v1900_v60 = vpop.f32.mrb[17].mxu0  ;;  %v1043_v61 = vpop.f32.mrb[17].mxu1 }
 0x11c   : > { %v1901_v62 = vadd.f32 %v1900_v60, %v1899_v56  ;;  %v1044_v63 = vadd.f32 %v1877_v12, %v1043_v61  ;;  %v1902_v0 = vpop.f32.mrb[18].mxu0  ;;  %v2014_v1 = vpop.f32.mrb[18].mxu1 }
 0x11d   : > { %v1278_v2 = vadd.f32 %v2381_v58, %v1052_v59  ;;  %v1055_v3 = vadd.f32 %v2014_v1, %v1886_v30  ;;  %v1903_v4 = vpop.f32.mrb[19].mxu0  ;;  %v1046_v5 = vpop.f32.mrb[19].mxu1 }
 0x11e   : > { %v1276_v6 = vadd.f32 %v2381_v58, %v1044_v63  ;;  %v1904_v7 = vadd.f32 %v1903_v4, %v1902_v0  ;;  %v1047_v8 = vadd.f32 %v1880_v18, %v1046_v5 }
 0x11f   : > { %v1279_v9 = vadd.f32 %v2381_v58, %v1055_v3  ;;  %v1310_v11 = vmax.f32 %v1278_v2, 0.0 }
 0x120   : > { %v1277_v10 = vadd.f32 %v2381_v58, %v1047_v8  ;;  %v1308_v15 = vmax.f32 %v1276_v6, 0.0 }
 0x121   : > { %v1311_v14 = vmax.f32 %v1279_v9, 0.0 }
 0x122   : > { %v1309_v12 = vmax.f32 %v1277_v10, 0.0  ;;  %v1905_v16 = vpop.f32.mrb[20].mxu0  ;;  %v2017_v17 = vpop.f32.mrb[20].mxu1 }
 0x123   : > { %v1772_v20 = vpack.c.bf16 %v1311_v14, %v1310_v11  ;;  %v1068_v18 = vadd.f32 %v2017_v17, %v1895_v48  ;;  %v1906_v21 = vpop.f32.mrb[21].mxu0  ;;  %v1059_v22 = vpop.f32.mrb[21].mxu1 }
 0x124   : > { %v1767_v23 = vpack.c.bf16 %v1309_v12, %v1308_v15  ;;  %v1907_v24 = vadd.f32 %v1906_v21, %v1905_v16  ;;  %v1060_v26 = vadd.f32 %v1889_v36, %v1059_v22  ;;  %v1908_v27 = vpop.f32.mrb[22].mxu0  ;;  %v2018_v28 = vpop.f32.mrb[22].mxu1 }
 0x125   : > { %1844 = vst [vmem:[%s2391_s28 + $0x8] sm:$0xff] %v1772_v20   ;;  %v1282_v29 = vadd.f32 %v2381_v58, %v1068_v18  ;;  %v1071_v30 = vadd.f32 %v2018_v28, %v1898_v54  ;;  %v1909_v32 = vpop.f32.mrb[23].mxu0  ;;  %v1062_v33 = vpop.f32.mrb[23].mxu1 }
 0x126   : > { %1768 = vst [vmem:[%s2391_s28] sm:$0xff] %v1767_v23   ;;  %v1280_v34 = vadd.f32 %v2381_v58, %v1060_v26  ;;  %v1910_v35 = vadd.f32 %v1909_v32, %v1908_v27  ;;  %v1063_v38 = vadd.f32 %v1892_v42, %v1062_v33 }
 0x127   : > { %v1283_v39 = vadd.f32 %v2381_v58, %v1071_v30  ;;  %v1314_v41 = vmax.f32 %v1282_v29, 0.0 }
 0x128   : > { %v1281_v40 = vadd.f32 %v2381_v58, %v1063_v38  ;;  %v1312_v44 = vmax.f32 %v1280_v34, 0.0 }
 0x129   : > { %v1315_v36 = vmax.f32 %v1283_v39, 0.0 }
 0x12a   : > { %v1313_v45 = vmax.f32 %v1281_v40, 0.0  ;;  %v1911_v46 = vpop.f32.mrb[24].mxu0  ;;  %v2021_v47 = vpop.f32.mrb[24].mxu1 }
 0x12b   : > { %v1782_v48 = vpack.c.bf16 %v1315_v36, %v1314_v41  ;;  %v1084_v50 = vadd.f32 %v2021_v47, %v1907_v24  ;;  %v1912_v51 = vpop.f32.mrb[25].mxu0  ;;  %v1075_v52 = vpop.f32.mrb[25].mxu1 }
 0x12c   : > { %v1777_v53 = vpack.c.bf16 %v1313_v45, %v1312_v44  ;;  %v1913_v54 = vadd.f32 %v1912_v51, %v1911_v46  ;;  %v1076_v56 = vadd.f32 %v1901_v62, %v1075_v52  ;;  %v1914_v42 = vpop.f32.mrb[26].mxu0  ;;  %v2022_v57 = vpop.f32.mrb[26].mxu1 }
 0x12d   : > { %1846 = vst [vmem:[%s2391_s28 + $0x18] sm:$0xff] %v1782_v48   ;;  %v1286_v59 = vadd.f32 %v2381_v58, %v1084_v50  ;;  %v1087_v60 = vadd.f32 %v2022_v57, %v1910_v35  ;;  %v1915_v61 = vpop.f32.mrb[27].mxu0  ;;  %v1078_v63 = vpop.f32.mrb[27].mxu1 }
 0x12e   : > { %1845 = vst [vmem:[%s2391_s28 + $0x10] sm:$0xff] %v1777_v53   ;;  %v1284_v0 = vadd.f32 %v2381_v58, %v1076_v56  ;;  %v1916_v1 = vadd.f32 %v1915_v61, %v1914_v42  ;;  %v1079_v2 = vadd.f32 %v1904_v7, %v1078_v63 }
 0x12f   : > { %v1287_v3 = vadd.f32 %v2381_v58, %v1087_v60  ;;  %v1318_v5 = vmax.f32 %v1286_v59, 0.0 }
 0x130   : > { %v1285_v4 = vadd.f32 %v2381_v58, %v1079_v2  ;;  %v1316_v6 = vmax.f32 %v1284_v0, 0.0 }
 0x131   : > { %v1319_v62 = vmax.f32 %v1287_v3, 0.0 }
 0x132   : > { %v1317_v8 = vmax.f32 %v1285_v4, 0.0  ;;  %v1917_v9 = vpop.f32.mrb[28].mxu0  ;;  %v2025_v10 = vpop.f32.mrb[28].mxu1 }
 0x133   : > { %v1792_v11 = vpack.c.bf16 %v1319_v62, %v1318_v5  ;;  %v1918_v14 = vpop.f32.mrb[29].mxu0  ;;  %v1091_v15 = vpop.f32.mrb[29].mxu1 }
 0x134   : > { %v1787_v12 = vpack.c.bf16 %v1317_v8, %v1316_v6  ;;  %v1919_v16 = vadd.f32 %v1918_v14, %v1917_v9  ;;  %v1092_v17 = vadd.f32 %v1913_v54, %v1091_v15  ;;  %v1920_v20 = vpop.f32.mrb[30].mxu0  ;;  %v2026_v7 = vpop.f32.mrb[30].mxu1 }
 0x135   : > { %1848 = vst [vmem:[%s2391_s28 + $0x28] sm:$0xff] %v1792_v11   ;;  %v1921_v18 = vpop.f32.mrb[31].mxu0  ;;  %v1094_v21 = vpop.f32.mrb[31].mxu1 }
 0x136   : > { %1847 = vst [vmem:[%s2391_s28 + $0x20] sm:$0xff] %v1787_v12   ;;  %v1100_v22 = vadd.f32 %v2025_v10, %v1919_v16  ;;  %v1288_v23 = vadd.f32 %v2381_v58, %v1092_v17  ;;  %v1922_v24 = vadd.f32 %v1921_v18, %v1920_v20  ;;  %v1095_v26 = vadd.f32 %v1916_v1, %v1094_v21 }
 0x138   : > { %v1290_v27 = vadd.f32 %v2381_v58, %v1100_v22  ;;  %v1103_v28 = vadd.f32 %v2026_v7, %v1922_v24  ;;  %v1289_v29 = vadd.f32 %v2381_v58, %v1095_v26  ;;  %v1320_v30 = vmax.f32 %v1288_v23, 0.0 }
 0x13a   : > { %v1291_v32 = vadd.f32 %v2381_v58, %v1103_v28  ;;  %v1321_v33 = vmax.f32 %v1289_v29, 0.0  ;;  %v1923_v34 = vpop.f32.mrb[32].mxu0  ;;  %v2029_v35 = vpop.f32.mrb[32].mxu1  ;;  %v1322_v40 = vmax.f32 %v1290_v27, 0.0 }
 0x13b   : > { %v1924_v38 = vpop.f32.mrb[33].mxu0  ;;  %v1107_v39 = vpop.f32.mrb[33].mxu1 }
 0x13c   : > { %v1323_v41 = vmax.f32 %v1291_v32, 0.0  ;;  %v1797_v36 = vpack.c.bf16 %v1321_v33, %v1320_v30  ;;  %v1925_v44 = vadd.f32 %v1924_v38, %v1923_v34  ;;  %v1926_v45 = vpop.f32.mrb[34].mxu0  ;;  %v2030_v46 = vpop.f32.mrb[34].mxu1 }
 0x13d   : > { %v1927_v47 = vpop.f32.mrb[35].mxu0  ;;  %v1110_v48 = vpop.f32.mrb[35].mxu1 }
 0x13e   : > { %v1802_v50 = vpack.c.bf16 %v1323_v41, %v1322_v40  ;;  %1849 = vst [vmem:[%s2391_s28 + $0x30] sm:$0xff] %v1797_v36   ;;  %v1108_v51 = vadd.f32 %v1925_v44, %v1107_v39  ;;  %v1928_v52 = vadd.f32 %v1927_v47, %v1926_v45 }
 0x140   : > { %1850 = vst [vmem:[%s2391_s28 + $0x38] sm:$0xff] %v1802_v50   ;;  %v1292_v53 = vadd.f32 %v2381_v58, %v1108_v51  ;;  %v1111_v54 = vadd.f32 %v1928_v52, %v1110_v48 }
 0x142   : > { %v1293_v56 = vadd.f32 %v2381_v58, %v1111_v54  ;;  %v1929_v42 = vpop.f32.mrb[36].mxu0  ;;  %v2415_v57 = vpop.f32.mrb[36].mxu1  ;;  %v1324_v61 = vmax.f32 %v1292_v53, 0.0 }
 0x143   : > { %v1930_v59 = vpop.f32.mrb[37].mxu0  ;;  %v1123_v60 = vpop.f32.mrb[37].mxu1 }
 0x144   : > { %v1325_v63 = vmax.f32 %v1293_v56, 0.0  ;;  %v1931_v0 = vadd.f32 %v1930_v59, %v1929_v42  ;;  %v1932_v1 = vpop.f32.mrb[38].mxu0  ;;  %v2417_v2 = vpop.f32.mrb[38].mxu1 }
 0x145   : > { %v1933_v3 = vpop.f32.mrb[39].mxu0  ;;  %v1126_v4 = vpop.f32.mrb[39].mxu1 }
 0x146   : > { %v1807_v5 = vpack.c.bf16 %v1325_v63, %v1324_v61  ;;  %v1116_v62 = vadd.f32 %v2029_v35, %v1931_v0  ;;  %v1934_v6 = vadd.f32 %v1933_v3, %v1932_v1 }
 0x148   : > { %1851 = vst [vmem:[%s2391_s28 + $0x40] sm:$0xff] %v1807_v5   ;;  %v1294_v8 = vadd.f32 %v2381_v58, %v1116_v62  ;;  %v1119_v9 = vadd.f32 %v2030_v46, %v1934_v6 }
 0x14a   : > { %v1295_v10 = vadd.f32 %v2381_v58, %v1119_v9  ;;  %v1935_v11 = vpop.f32.mrb[40].mxu0  ;;  %v2037_v14 = vpop.f32.mrb[40].mxu1  ;;  %v1326_v17 = vmax.f32 %v1294_v8, 0.0 }
 0x14b   : > { %v1148_v15 = vadd.f32 %v2037_v14, %v2366_v25  ;;  %v1936_v12 = vpop.f32.mrb[41].mxu0  ;;  %v1139_v16 = vpop.f32.mrb[41].mxu1 }
 0x14c   : > { %v1327_v20 = vmax.f32 %v1295_v10, 0.0  ;;  %v1937_v7 = vadd.f32 %v1936_v12, %v1935_v11  ;;  %v1140_v18 = vadd.f32 %v2362_v13, %v1139_v16  ;;  %v1938_v21 = vpop.f32.mrb[42].mxu0  ;;  %v2038_v22 = vpop.f32.mrb[42].mxu1 }
 0x14d   : > { %v1302_v23 = vadd.f32 %v2381_v58, %v1148_v15  ;;  %v1151_v24 = vadd.f32 %v2038_v22, %v2368_v31  ;;  %v1939_v26 = vpop.f32.mrb[43].mxu0  ;;  %v1142_v27 = vpop.f32.mrb[43].mxu1 }
 0x14e   : > { %v1812_v28 = vpack.c.bf16 %v1327_v20, %v1326_v17  ;;  %v1124_v29 = vadd.f32 %v1937_v7, %v1123_v60  ;;  %v1940_v30 = vadd.f32 %v1939_v26, %v1938_v21  ;;  %v1300_v25 = vadd.f32 %v2381_v58, %v1140_v18 }
 0x14f   : > { %v1303_v32 = vadd.f32 %v2381_v58, %v1151_v24  ;;  %v1143_v33 = vadd.f32 %v2364_v19, %v1142_v27  ;;  %v1334_v35 = vmax.f32 %v1302_v23, 0.0 }
 0x150   : > { %1852 = vst [vmem:[%s2391_s28 + $0x48] sm:$0xff] %v1812_v28   ;;  %v1296_v13 = vadd.f32 %v2381_v58, %v1124_v29  ;;  %v1127_v34 = vadd.f32 %v1940_v30, %v1126_v4  ;;  %v1332_v36 = vmax.f32 %v1300_v25, 0.0 }
 0x151   : > { %v1335_v38 = vmax.f32 %v1303_v32, 0.0  ;;  %v1301_v39 = vadd.f32 %v2381_v58, %v1143_v33 }
 0x152   : > { %v1297_v31 = vadd.f32 %v2381_v58, %v1127_v34  ;;  %v1941_v40 = vpop.f32.mrb[44].mxu0  ;;  %v2041_v41 = vpop.f32.mrb[44].mxu1  ;;  %v1328_v48 = vmax.f32 %v1296_v13, 0.0 }
 0x153   : > { %v1832_v44 = vpack.c.bf16 %v1335_v38, %v1334_v35  ;;  %v1333_v45 = vmax.f32 %v1301_v39, 0.0  ;;  %v1164_v46 = vadd.f32 %v2041_v41, %v2374_v49  ;;  %v1942_v47 = vpop.f32.mrb[45].mxu0  ;;  %v1155_v19 = vpop.f32.mrb[45].mxu1 }
 0x154   : > { %v1329_v50 = vmax.f32 %v1297_v31, 0.0  ;;  %v1943_v51 = vadd.f32 %v1942_v47, %v1941_v40  ;;  %v1156_v52 = vadd.f32 %v2370_v37, %v1155_v19  ;;  %v1944_v53 = vpop.f32.mrb[46].mxu0  ;;  %v2042_v54 = vpop.f32.mrb[46].mxu1 }
 0x155   : > { %1856 = vst [vmem:[%s2391_s28 + $0x68] sm:$0xff] %v1832_v44   ;;  %v1827_v56 = vpack.c.bf16 %v1333_v45, %v1332_v36  ;;  %v1306_v42 = vadd.f32 %v2381_v58, %v1164_v46  ;;  %v1167_v59 = vadd.f32 %v2042_v54, %v2376_v55  ;;  %v1945_v60 = vpop.f32.mrb[47].mxu0  ;;  %v1158_v61 = vpop.f32.mrb[47].mxu1 }
 0x156   : > { %v1817_v49 = vpack.c.bf16 %v1329_v50, %v1328_v48  ;;  %v1132_v63 = vadd.f32 %v2415_v57, %v1943_v51  ;;  %v1946_v0 = vadd.f32 %v1945_v60, %v1944_v53  ;;  %v1304_v1 = vadd.f32 %v2381_v58, %v1156_v52 }
 0x157   : > { %1855 = vst [vmem:[%s2391_s28 + $0x60] sm:$0xff] %v1827_v56   ;;  %v1307_v37 = vadd.f32 %v2381_v58, %v1167_v59  ;;  %v1159_v3 = vadd.f32 %v2372_v43, %v1158_v61  ;;  %v1338_v5 = vmax.f32 %v1306_v42, 0.0 }
 0x158   : > { %1853 = vst [vmem:[%s2391_s28 + $0x50] sm:$0xff] %v1817_v49   ;;  %v1298_v4 = vadd.f32 %v2381_v58, %v1132_v63  ;;  %v1135_v55 = vadd.f32 %v2417_v2, %v1946_v0  ;;  %v1336_v8 = vmax.f32 %v1304_v1, 0.0 }
 0x159   : > { %v1339_v62 = vmax.f32 %v1307_v37, 0.0  ;;  %v1305_v57 = vadd.f32 %v2381_v58, %v1159_v3 }
 0x15a   : > { %v1299_v6 = vadd.f32 %v2381_v58, %v1135_v55  ;;  %v1330_v11 = vmax.f32 %v1298_v4, 0.0 }
 0x15b   : > { %v1842_v9 = vpack.c.bf16 %v1339_v62, %v1338_v5  ;;  %v1337_v10 = vmax.f32 %v1305_v57, 0.0 }
 0x15c   : > { %v1331_v14 = vmax.f32 %v1299_v6, 0.0 }
 0x15d   : > { %1858 = vst [vmem:[%s2391_s28 + $0x78] sm:$0xff] %v1842_v9   ;;  %v1837_v43 = vpack.c.bf16 %v1337_v10, %v1336_v8 }
 0x15e   : > { %v1822_v15 = vpack.c.bf16 %v1331_v14, %v1330_v11 }
 0x15f   : > { %1857 = vst [vmem:[%s2391_s28 + $0x70] sm:$0xff] %v1837_v43  }
 0x160   : > { %1854 = vst [vmem:[%s2391_s28 + $0x58] sm:$0xff] %v1822_v15  }
 0x161 PF: > { %s13_s14 = sadd.s32 1, %s2194_s14   ;;  %s2464_s12 = smov %s2190_s13 }
 0x162   : > { %p10_p5 = scmp.ge.s32.totalorder %s13_s14, 4   ;;  %s2465_s13 = smov %s2467_s15 }
 0x164   :  { %12 = sbr.rel (!%p10_p5) target bundleno = 2 (0x2), region = 76 }

// kernel: _lambda_.18
= control target key start
LH: loop header
LB: loop body
LE: loop exit
PB: predicated region body
PF: predicated region fallthrough
CT: control target
= control target key end

     0   :  { %s1190_s12 = smov 0   ;;  %s1192_s13 = smov 0   ;;  %s1322_s0 = inlined_call_operand.vmem [shape: bf16[128,640], index: 0, kind: input, shape index: {}]   ;;  %s1323_s1 = inlined_call_operand.vmem [shape: bf16[640,128], index: 1, kind: input, shape index: {}]   ;;  %s1324_s2 = inlined_call_operand.vmem [shape: f32[1,128], index: 2, kind: input, shape index: {}]   ;;  %s1325_s3 = inlined_call_operand.vmem [shape: bf16[128,128], index: 3, kind: output, shape index: {}]  }
   0x1   :  { %s1194_s14 = smov 0   ;;  %s1196_s15 = smov 0  }
   0x2   :  { %s1198_s16 = smov 0  }
   0x3 LB: > { %s25_s17 = sadd.s32 1, %s1163_s15  ;;  %p48_p1 = scmp.ne.s32.totalorder %s1155_s13, %s1151_s12  ;;  %s1167_s16 = sphi %s1198_s16, %s13_s16   ;;  %s1163_s15 = sphi %s1196_s15, %s1329_s15   ;;  %s1159_s14 = sphi %s1194_s14, %s1328_s14   ;;  %s1155_s13 = sphi %s1192_s13, %s1327_s13   ;;  %s1151_s12 = sphi %s1190_s12, %s1326_s12  }
   0x4   : > { %p26_p0 = scmp.ge.s32.totalorder %s25_s17, 5  ;;  %p49_p2 = scmp.eq.s32.totalorder %s1167_s16, 0 }
   0x5   : > { %s41_s19 = sadd.s32 1, %s1155_s13  ;;  %p899_p5 = scmp.ge.s32.totalorder %s1167_s16, 5 }
   0x6   : > { %s1331_s17 = smov (%p26_p0, %s25_s17), 0  ;;  %p50_p3 = por %p49_p2, %p48_p1 }
   0x7   : > { %s37_s18 = ssub.s32 %s1163_s15, %s1331_s17  ;;  %162 = sbr.rel (%p899_p5) target bundleno = 28 (0x1c), region = 20 }
   0x8   : > { %p39_p4 = scmp.eq.s32.totalorder %s37_s18, 0 }
   0xa   : > { %s1225_s20 = scalar_select %p39_p4, %s1155_s13, %s41_s19  }
   0xe   : > { %165 = sbr.rel (!%p50_p3) target bundleno = 28 (0x1c), region = 24  ;;  %s167_s21 = sand.u32 (%p50_p3), 1, %s1155_s13  }
   0xf   : > { %s901_s22 = sshll.u32 (%p50_p3), %s1163_s15, 2  ;;  %s900_s23 = sshll.u32 (%p50_p3), %s167_s21, 6 }
  0x10   : > { %s1233_s26 = scalar_lea.vmem (%p50_p3), %s1322_s0, %s901_s22  ;;  %s169_s27 = scalar_lea.vmem (%p50_p3), [#allocation3], %s900_s23 }
  0x11   : > { %v190_v0 = vld [vmem:[%s1233_s26] sm:$0xf] (%p50_p3)  ;;  %v192_v1 = vld [vmem:[%s1233_s26 + $0x14] sm:$0xf] (%p50_p3)  ;;  %v194_v2 = vld [vmem:[%s1233_s26 + $0x28] sm:$0xf] (%p50_p3) }
  0x12   : > { %191 = vst [vmem:[%s169_s27] sm:$0xf] (%p50_p3), %v190_v0  ;;  %193 = vst [vmem:[%s169_s27 + $0x4] sm:$0xf] (%p50_p3), %v192_v1  ;;  %v196_v3 = vld [vmem:[%s1233_s26 + $0x3c] sm:$0xf] (%p50_p3) }
  0x13   : > { %v198_v4 = vld [vmem:[%s1233_s26 + $0x50] sm:$0xf] (%p50_p3)  ;;  %195 = vst [vmem:[%s169_s27 + $0x8] sm:$0xf] (%p50_p3), %v194_v2  ;;  %197 = vst [vmem:[%s169_s27 + $0xc] sm:$0xf] (%p50_p3), %v196_v3 }
  0x14   : > { %199 = vst [vmem:[%s169_s27 + $0x10] sm:$0xf] (%p50_p3), %v198_v4  ;;  %v200_v5 = vld [vmem:[%s1233_s26 + $0x64] sm:$0xf] (%p50_p3)  ;;  %v202_v6 = vld [vmem:[%s1233_s26 + $0x78] sm:$0xf] (%p50_p3) }
  0x15   : > { %v204_v7 = vld [vmem:[%s1233_s26 + $0x8c] sm:$0xf]  ;;  %201 = vst [vmem:[%s169_s27 + $0x14] sm:$0xf] %v200_v5  ;;  %203 = vst [vmem:[%s169_s27 + $0x18] sm:$0xf] %v202_v6 }
  0x16   : > { %205 = vst [vmem:[%s169_s27 + $0x1c] sm:$0xf] %v204_v7  ;;  %v206_v8 = vld [vmem:[%s1233_s26 + $0xa0] sm:$0xf]  ;;  %v208_v9 = vld [vmem:[%s1233_s26 + $0xb4] sm:$0xf] }
  0x17   : > { %v210_v10 = vld [vmem:[%s1233_s26 + $0xc8] sm:$0xf]  ;;  %207 = vst [vmem:[%s169_s27 + $0x20] sm:$0xf] %v206_v8  ;;  %209 = vst [vmem:[%s169_s27 + $0x24] sm:$0xf] %v208_v9 }
  0x18   : > { %211 = vst [vmem:[%s169_s27 + $0x28] sm:$0xf] %v210_v10  ;;  %v212_v11 = vld [vmem:[%s1233_s26 + $0xdc] sm:$0xf]  ;;  %v214_v12 = vld [vmem:[%s1233_s26 + $0xf0] sm:$0xf] }
  0x19   : > { %v216_v13 = vld [vmem:[%s1233_s26 + $0x104] sm:$0xf]  ;;  %213 = vst [vmem:[%s169_s27 + $0x2c] sm:$0xf] %v212_v11  ;;  %215 = vst [vmem:[%s169_s27 + $0x30] sm:$0xf] %v214_v12 }
  0x1a   : > { %217 = vst [vmem:[%s169_s27 + $0x34] sm:$0xf] %v216_v13  ;;  %v218_v14 = vld [vmem:[%s1233_s26 + $0x118] sm:$0xf]  ;;  %v220_v15 = vld [vmem:[%s1233_s26 + $0x12c] sm:$0xf] }
  0x1b   : > { %219 = vst [vmem:[%s169_s27 + $0x38] sm:$0xf] %v218_v14  ;;  %221 = vst [vmem:[%s169_s27 + $0x3c] sm:$0xf] %v220_v15 }
  0x1c PF: > { %p902_p6 = scmp.ge.s32.totalorder %s1167_s16, 1  ;;  %p287_p7 = scmp.lt.s32.totalorder %s1167_s16, 6 }
  0x1e   : > { %p288_p8 = pnand %p902_p6, %p287_p7 }
  0x1f   : > { %s294_s28 = sand.u32 (!%p288_p8), 1, %s1151_s12   ;;  %s904_s29 = sshll.u32 (!%p288_p8), %s1159_s14, 4 }
  0x20   : > { %291 = sbr.rel (%p288_p8) target bundleno = 323 (0x143), region = 69  ;;  %s903_s30 = sshll.u32 (!%p288_p8), %s294_s28, 6 }
  0x21   : > { %p333_p9 = scmp.lt.s32.totalorder (!%p288_p8), %s904_s29, 79  ;;  %s1260_s8 = scalar_lea.vmem (!%p288_p8), [#allocation3], %s903_s30 }
  0x22   : > { %p906_p10 = scmp.ne.s32.totalorder (!%p288_p8), %s1159_s14, 0 }
  0x27   : > { %s1333_s29 = smov (!%p333_p9, %s904_s29), 79  ;;  %357 = sbr.rel (%p906_p10) target bundleno = 49 (0x31), region = 77 }
  0x28   : > { %s905_s4 = sshll.u32 %s1333_s29, 2  ;;  %v1169_v16 = vmov (!%p906_p10), 0.0  }
  0x29   : > { %s1258_s7 = scalar_lea.vmem %s1323_s1, %s905_s4  ;;  %358 = vst [vmem:[#allocation2] sm:$0xff] (!%p906_p10), %v1169_v16  ;;  %359 = vst [vmem:[#allocation2 + $0x8] sm:$0xff] (!%p906_p10), %v1169_v16 }
  0x2a   : > { %360 = vst [vmem:[#allocation2 + $0x10] sm:$0xff] (!%p906_p10), %v1169_v16  ;;  %361 = vst [vmem:[#allocation2 + $0x18] sm:$0xff] (!%p906_p10), %v1169_v16 }
  0x2b   : > { %362 = vst [vmem:[#allocation2 + $0x20] sm:$0xff] (!%p906_p10), %v1169_v16  ;;  %363 = vst [vmem:[#allocation2 + $0x28] sm:$0xff] (!%p906_p10), %v1169_v16 }
  0x2c   : > { %364 = vst [vmem:[#allocation2 + $0x30] sm:$0xff] (!%p906_p10), %v1169_v16  ;;  %365 = vst [vmem:[#allocation2 + $0x38] sm:$0xff] (!%p906_p10), %v1169_v16 }
  0x2d   : > { %366 = vst [vmem:[#allocation2 + $0x40] sm:$0xff] (!%p906_p10), %v1169_v16  ;;  %367 = vst [vmem:[#allocation2 + $0x48] sm:$0xff] (!%p906_p10), %v1169_v16 }
  0x2e   : > { %368 = vst [vmem:[#allocation2 + $0x50] sm:$0xff] %v1169_v16  ;;  %369 = vst [vmem:[#allocation2 + $0x58] sm:$0xff] %v1169_v16 }
  0x2f   : > { %370 = vst [vmem:[#allocation2 + $0x60] sm:$0xff] %v1169_v16  ;;  %371 = vst [vmem:[#allocation2 + $0x68] sm:$0xff] %v1169_v16 }
  0x30   : > { %372 = vst [vmem:[#allocation2 + $0x70] sm:$0xff] %v1169_v16  ;;  %373 = vst [vmem:[#allocation2 + $0x78] sm:$0xff] %v1169_v16 }
  0x31 PF: > { %v1113_v17 = vld [vmem:[%s1258_s7] sm:$0xff]   ;;  %v1114_v18 = vld [vmem:[%s1258_s7 + $0x8] sm:$0xff]   ;;  %v1115_v19 = vld [vmem:[%s1258_s7 + $0x10] sm:$0xff]   ;;  %p923_p11 = scmp.ne.s32.totalorder %s1159_s14, 4 }
  0x32   : > { %1024 = vmatprep.subr.bf16.mxu0 %v1113_v17  ;;  %1056 = vmatprep.subr.bf16.mxu1 %v1113_v17  ;;  %v1116_v20 = vld [vmem:[%s1258_s7 + $0x18] sm:$0xff]   ;;  %v1121_v21 = vld [vmem:[%s1260_s8] sm:$0xff]   ;;  %v1118_v24 = vld [vmem:[%s1258_s7 + $0x28] sm:$0xff]  }
  0x33   : > { %1025 = vmatpush3.bf16.msra.mxu0 %v1113_v17  ;;  %1064 = vmatpush3.bf16.msra.mxu1 %v1113_v17  ;;  %v1122_v22 = vld [vmem:[%s1260_s8 + $0x20] sm:$0xff]   ;;  %v1119_v25 = vld [vmem:[%s1258_s7 + $0x30] sm:$0xff]   ;;  %v1120_v26 = vld [vmem:[%s1258_s7 + $0x38] sm:$0xff]  }
  0x34   : > { %1026 = vmatprep.subr.bf16.mxu0 %v1114_v18  ;;  %1057 = vmatprep.subr.bf16.mxu1 %v1114_v18  ;;  %v1117_v23 = vld [vmem:[%s1258_s7 + $0x20] sm:$0xff]   ;;  %v1123_v27 = vld [vmem:[%s1260_s8 + $0x8] sm:$0xff]   ;;  %v1125_v29 = vld [vmem:[%s1260_s8 + $0x10] sm:$0xff]  }
  0x35   : > { %1040 = vmatprep.mubr.bf16.mxu0 %v1121_v21  ;;  %1048 = vmatprep.mubr.bf16.mxu1 %v1122_v22  ;;  %v1124_v28 = vld [vmem:[%s1260_s8 + $0x28] sm:$0xff]   ;;  %v1126_v30 = vld [vmem:[%s1260_s8 + $0x30] sm:$0xff]   ;;  %v1127_v31 = vld [vmem:[%s1260_s8 + $0x18] sm:$0xff]  }
  0x36   : > { %v1128_v32 = vld [vmem:[%s1260_s8 + $0x38] sm:$0xff]   ;;  %v376_v33 = vld [vmem:[#allocation2 + $0x10] sm:$0xff]  ;;  %v374_v35 = vld [vmem:[#allocation2] sm:$0xff] }
  0x37   : > { %1027 = vmatpush3.bf16.msra.mxu0 %v1114_v18  ;;  %1065 = vmatpush3.bf16.msra.mxu1 %v1114_v18  ;;  %v384_v34 = vld [vmem:[#allocation2 + $0x50] sm:$0xff]  ;;  %v382_v36 = vld [vmem:[#allocation2 + $0x40] sm:$0xff]  ;;  %v377_v39 = vld [vmem:[#allocation2 + $0x18] sm:$0xff] }
  0x38   : > { %1028 = vmatprep.subr.bf16.mxu0 %v1115_v19  ;;  %1058 = vmatprep.subr.bf16.mxu1 %v1115_v19  ;;  %v385_v40 = vld [vmem:[#allocation2 + $0x58] sm:$0xff]  ;;  %v375_v45 = vld [vmem:[#allocation2 + $0x8] sm:$0xff]  ;;  %v380_v57 = vld [vmem:[#allocation2 + $0x30] sm:$0xff] }
  0x39   : > { %v383_v46 = vld [vmem:[#allocation2 + $0x48] sm:$0xff]  ;;  %v388_v58 = vld [vmem:[#allocation2 + $0x70] sm:$0xff]  ;;  %v378_v59 = vld [vmem:[#allocation2 + $0x20] sm:$0xff] }
  0x3a   : > { %v386_v60 = vld [vmem:[#allocation2 + $0x60] sm:$0xff]  ;;  %v381_v63 = vld [vmem:[#allocation2 + $0x38] sm:$0xff]  ;;  %v379_v5 = vld [vmem:[#allocation2 + $0x28] sm:$0xff] }
  0x3b   : > { %1029 = vmatpush3.bf16.msra.mxu0 %v1115_v19  ;;  %1066 = vmatpush3.bf16.msra.mxu1 %v1115_v19  ;;  %v389_v0 = vld [vmem:[#allocation2 + $0x78] sm:$0xff]  ;;  %v387_v6 = vld [vmem:[#allocation2 + $0x68] sm:$0xff]  ;;  %v924_v19 = vld [vmem:[%s1324_s2] ss:$0 sm:$0xff] (!%p923_p11) }
  0x3c   : > { %1030 = vmatprep.subr.bf16.mxu0 %v1116_v20  ;;  %1059 = vmatprep.subr.bf16.mxu1 %v1116_v20 }
  0x3f   : > { %1031 = vmatpush3.bf16.msra.mxu0 %v1116_v20  ;;  %1067 = vmatpush3.bf16.msra.mxu1 %v1116_v20 }
  0x40   : > { %1032 = vmatprep.subr.bf16.mxu0 %v1117_v23  ;;  %1060 = vmatprep.subr.bf16.mxu1 %v1117_v23 }
  0x43   : > { %1033 = vmatpush3.bf16.msra.mxu0 %v1117_v23  ;;  %1068 = vmatpush3.bf16.msra.mxu1 %v1117_v23 }
  0x44   : > { %1034 = vmatprep.subr.bf16.mxu0 %v1118_v24  ;;  %1061 = vmatprep.subr.bf16.mxu1 %v1118_v24 }
  0x47   : > { %1035 = vmatpush3.bf16.msra.mxu0 %v1118_v24  ;;  %1069 = vmatpush3.bf16.msra.mxu1 %v1118_v24 }
  0x48   : > { %1036 = vmatprep.subr.bf16.mxu0 %v1119_v25  ;;  %1062 = vmatprep.subr.bf16.mxu1 %v1119_v25 }
  0x4b   : > { %1037 = vmatpush3.bf16.msra.mxu0 %v1119_v25  ;;  %1070 = vmatpush3.bf16.msra.mxu1 %v1119_v25 }
  0x4c   : > { %1038 = vmatprep.subr.bf16.mxu0 %v1120_v26  ;;  %1063 = vmatprep.subr.bf16.mxu1 %v1120_v26 }
  0x4f   : > { %1039 = vmatpush3.bf16.msra.mxu0 %v1120_v26  ;;  %1071 = vmatpush3.bf16.msra.mxu1 %v1120_v26 }
  0x52   : > { %1041 = vmatmul.mubr.bf16.vlgmr.msra.gmra.mrb[0].mxu0 %v1123_v27  ;;  %1049 = vmatmul.mubr.bf16.vlgmr.msra.gmra.mrb[0].mxu1 %v1124_v28 }
  0x53   : > { %1044 = vmatprep.mubr.bf16.mxu0 %v1125_v29  ;;  %1052 = vmatprep.mubr.bf16.mxu1 %v1126_v30 }
  0x5a   : > { %1045 = vmatmul.mubr.bf16.gmra.mrb[4].mxu0 %v1127_v31  ;;  %1053 = vmatmul.mubr.bf16.gmra.mrb[4].mxu1 %v1128_v32 }
 0x125   : > { %v1042_v37 = vpop.f32.mrb[0].mxu0  ;;  %v1050_v38 = vpop.f32.mrb[0].mxu1 }
 0x126   : > { %v617_v41 = vadd.f32 %v1042_v37, %v376_v33  ;;  %v625_v42 = vadd.f32 %v1050_v38, %v384_v34  ;;  %v552_v43 = vpop.f32.mrb[1].mxu0  ;;  %v584_v44 = vpop.f32.mrb[1].mxu1 }
 0x127   : > { %v615_v47 = vadd.f32 %v552_v43, %v374_v35  ;;  %v623_v48 = vadd.f32 %v584_v44, %v382_v36  ;;  %v1043_v49 = vpop.f32.mrb[2].mxu0  ;;  %v1051_v50 = vpop.f32.mrb[2].mxu1 }
 0x128   : > { %633 = vst [vmem:[#allocation2 + $0x10] sm:$0xff] %v617_v41  ;;  %641 = vst [vmem:[#allocation2 + $0x50] sm:$0xff] %v625_v42  ;;  %v618_v51 = vadd.f32 %v1043_v49, %v377_v39  ;;  %v626_v52 = vadd.f32 %v1051_v50, %v385_v40  ;;  %v555_v53 = vpop.f32.mrb[3].mxu0  ;;  %v587_v54 = vpop.f32.mrb[3].mxu1 }
 0x129   : > { %631 = vst [vmem:[#allocation2] sm:$0xff] %v615_v47  ;;  %639 = vst [vmem:[#allocation2 + $0x40] sm:$0xff] %v623_v48  ;;  %v616_v55 = vadd.f32 %v555_v53, %v375_v45  ;;  %v624_v56 = vadd.f32 %v587_v54, %v383_v46 }
 0x12a   : > { %634 = vst [vmem:[#allocation2 + $0x18] sm:$0xff] %v618_v51  ;;  %642 = vst [vmem:[#allocation2 + $0x58] sm:$0xff] %v626_v52 }
 0x12b   : > { %632 = vst [vmem:[#allocation2 + $0x8] sm:$0xff] %v616_v55  ;;  %640 = vst [vmem:[#allocation2 + $0x48] sm:$0xff] %v624_v56 }
 0x12d   : > { %v1046_v61 = vpop.f32.mrb[4].mxu0  ;;  %v1054_v62 = vpop.f32.mrb[4].mxu1  ;;  %650 = sbr.rel (%p923_p11) target bundleno = 323 (0x143), region = 81 }
 0x12e   : > { %v621_v1 = vadd.f32 %v1046_v61, %v380_v57  ;;  %v629_v2 = vadd.f32 %v1054_v62, %v388_v58  ;;  %v568_v3 = vpop.f32.mrb[5].mxu0  ;;  %v600_v4 = vpop.f32.mrb[5].mxu1 }
 0x12f   : > { %v619_v7 = vadd.f32 %v568_v3, %v378_v59  ;;  %v627_v8 = vadd.f32 %v600_v4, %v386_v60  ;;  %v1047_v9 = vpop.f32.mrb[6].mxu0  ;;  %v1055_v10 = vpop.f32.mrb[6].mxu1  ;;  %v653_v22 = vld [vmem:[#allocation2 + $0x10] sm:$0xff] (!%p923_p11) }
 0x130   : > { %637 = vst [vmem:[#allocation2 + $0x30] sm:$0xff] %v621_v1  ;;  %645 = vst [vmem:[#allocation2 + $0x70] sm:$0xff] %v629_v2  ;;  %v622_v11 = vadd.f32 %v1047_v9, %v381_v63  ;;  %v630_v12 = vadd.f32 %v1055_v10, %v389_v0  ;;  %v571_v13 = vpop.f32.mrb[7].mxu0  ;;  %v603_v14 = vpop.f32.mrb[7].mxu1  ;;  %v651_v17 = vld [vmem:[#allocation2] sm:$0xff] (!%p923_p11)  ;;  %v676_v25 = vadd.f32 (!%p923_p11), %v924_v19, %v653_v22  ;;  %v661_v37 = vld [vmem:[#allocation2 + $0x50] sm:$0xff] (!%p923_p11) }
 0x131   : > { %635 = vst [vmem:[#allocation2 + $0x20] sm:$0xff] %v619_v7  ;;  %643 = vst [vmem:[#allocation2 + $0x60] sm:$0xff] %v627_v8  ;;  %v620_v15 = vadd.f32 %v571_v13, %v379_v5  ;;  %v628_v16 = vadd.f32 %v603_v14, %v387_v6  ;;  %v674_v20 = vadd.f32 (!%p923_p11), %v924_v19, %v651_v17  ;;  %v654_v23 = vld [vmem:[#allocation2 + $0x18] sm:$0xff] (!%p923_p11)  ;;  %v659_v35 = vld [vmem:[#allocation2 + $0x40] sm:$0xff] (!%p923_p11) }
 0x132   : > { %638 = vst [vmem:[#allocation2 + $0x38] sm:$0xff] %v622_v11  ;;  %646 = vst [vmem:[#allocation2 + $0x78] sm:$0xff] %v630_v12  ;;  %v652_v18 = vld [vmem:[#allocation2 + $0x8] sm:$0xff] (!%p923_p11)  ;;  %v677_v26 = vadd.f32 (!%p923_p11), %v924_v19, %v654_v23  ;;  %v692_v38 = vmax.f32 (!%p923_p11), %v676_v25, 0.0  ;;  %v662_v42 = vld [vmem:[#allocation2 + $0x58] sm:$0xff] (!%p923_p11)  ;;  %v682_v47 = vadd.f32 (!%p923_p11), %v924_v19, %v659_v35  ;;  %v684_v52 = vadd.f32 (!%p923_p11), %v924_v19, %v661_v37 }
 0x133   : > { %636 = vst [vmem:[#allocation2 + $0x28] sm:$0xff] %v620_v15  ;;  %644 = vst [vmem:[#allocation2 + $0x68] sm:$0xff] %v628_v16  ;;  %v675_v21 = vadd.f32 (!%p923_p11), %v924_v19, %v652_v18  ;;  %v690_v31 = vmax.f32 (!%p923_p11), %v674_v20, 0.0  ;;  %v660_v36 = vld [vmem:[#allocation2 + $0x48] sm:$0xff] (!%p923_p11)  ;;  %v685_v57 = vadd.f32 (!%p923_p11), %v924_v19, %v662_v42 }
 0x134   : > { %v693_v39 = vmax.f32 %v677_v26, 0.0  ;;  %v683_v51 = vadd.f32 %v924_v19, %v660_v36  ;;  %v698_v56 = vmax.f32 %v682_v47, 0.0  ;;  %v700_v61 = vmax.f32 %v684_v52, 0.0 }
 0x135   : > { %v691_v32 = vmax.f32 %v675_v21, 0.0  ;;  %v701_v63 = vmax.f32 %v685_v57, 0.0 }
 0x136   : > { %v969_v49 = vpack.c.bf16 %v693_v39, %v692_v38  ;;  %v699_v60 = vmax.f32 %v683_v51, 0.0 }
 0x137   : > { %v657_v29 = vld [vmem:[#allocation2 + $0x30] sm:$0xff]  ;;  %v964_v44 = vpack.c.bf16 %v691_v32, %v690_v31  ;;  %v989_v5 = vpack.c.bf16 %v701_v63, %v700_v61 }
 0x138   : > { %v655_v24 = vld [vmem:[#allocation2 + $0x20] sm:$0xff]  ;;  %v680_v34 = vadd.f32 %v924_v19, %v657_v29  ;;  %v665_v53 = vld [vmem:[#allocation2 + $0x70] sm:$0xff]  ;;  %1001 = vst [vmem:[%s1325_s3 + $0x8] sm:$0xff] %v969_v49   ;;  %v984_v3 = vpack.c.bf16 %v699_v60, %v698_v56 }
 0x139   : > { %v678_v28 = vadd.f32 %v924_v19, %v655_v24  ;;  %v658_v30 = vld [vmem:[#allocation2 + $0x38] sm:$0xff]  ;;  %v663_v43 = vld [vmem:[#allocation2 + $0x60] sm:$0xff]  ;;  %965 = vst [vmem:[%s1325_s3] sm:$0xff] %v964_v44   ;;  %v688_v1 = vadd.f32 %v924_v19, %v665_v53  ;;  %1005 = vst [vmem:[%s1325_s3 + $0x28] sm:$0xff] %v989_v5  }
 0x13a   : > { %v656_v27 = vld [vmem:[#allocation2 + $0x28] sm:$0xff]  ;;  %v681_v41 = vadd.f32 %v924_v19, %v658_v30  ;;  %v696_v46 = vmax.f32 %v680_v34, 0.0  ;;  %v666_v54 = vld [vmem:[#allocation2 + $0x78] sm:$0xff]  ;;  %v686_v58 = vadd.f32 %v924_v19, %v663_v43  ;;  %1004 = vst [vmem:[%s1325_s3 + $0x20] sm:$0xff] %v984_v3  }
 0x13b   : > { %v679_v33 = vadd.f32 %v924_v19, %v656_v27  ;;  %v694_v40 = vmax.f32 %v678_v28, 0.0  ;;  %v664_v48 = vld [vmem:[#allocation2 + $0x68] sm:$0xff]  ;;  %v689_v2 = vadd.f32 %v924_v19, %v666_v54  ;;  %v704_v6 = vmax.f32 %v688_v1, 0.0 }
 0x13c   : > { %v697_v50 = vmax.f32 %v681_v41, 0.0  ;;  %v687_v62 = vadd.f32 %v924_v19, %v664_v48  ;;  %v702_v0 = vmax.f32 %v686_v58, 0.0 }
 0x13d   : > { %v695_v45 = vmax.f32 %v679_v33, 0.0  ;;  %v705_v7 = vmax.f32 %v689_v2, 0.0 }
 0x13e   : > { %v979_v59 = vpack.c.bf16 %v697_v50, %v696_v46  ;;  %v703_v4 = vmax.f32 %v687_v62, 0.0 }
 0x13f   : > { %v974_v55 = vpack.c.bf16 %v695_v45, %v694_v40  ;;  %v999_v9 = vpack.c.bf16 %v705_v7, %v704_v6 }
 0x140   : > { %1003 = vst [vmem:[%s1325_s3 + $0x18] sm:$0xff] %v979_v59   ;;  %v994_v8 = vpack.c.bf16 %v703_v4, %v702_v0 }
 0x141   : > { %1002 = vst [vmem:[%s1325_s3 + $0x10] sm:$0xff] %v974_v55   ;;  %1007 = vst [vmem:[%s1325_s3 + $0x38] sm:$0xff] %v999_v9  }
 0x142   : > { %1006 = vst [vmem:[%s1325_s3 + $0x30] sm:$0xff] %v994_v8  }
 0x143 PF: > { %s13_s16 = sadd.s32 1, %s1167_s16   ;;  %s1326_s12 = smov %s1155_s13 }
 0x144   : > { %p10_p12 = scmp.ge.s32.totalorder %s13_s16, 7   ;;  %s1327_s13 = smov %s1225_s20 }
 0x145   : > { %s1328_s14 = smov %s1163_s15  ;;  %s1329_s15 = smov %s1331_s17 }
 0x146   :  { %12 = sbr.rel (!%p10_p12) target bundleno = 3 (0x3), region = 122 }

// kernel: _lambda_.19
= control target key start
LH: loop header
LB: loop body
LE: loop exit
PB: predicated region body
PF: predicated region fallthrough
CT: control target
= control target key end

     0   :  { %s1754_s0 = inlined_call_operand.vmem [shape: bf16[32,1152], index: 0, kind: input, shape index: {}]   ;;  %s1755_s1 = inlined_call_operand.vmem [shape: bf16[1152,256], index: 1, kind: input, shape index: {}]   ;;  %s1756_s2 = inlined_call_operand.vmem [shape: f32[1,256], index: 2, kind: input, shape index: {}]   ;;  %s1757_s3 = inlined_call_operand.vmem [shape: bf16[32,256], index: 3, kind: output, shape index: {}]  }
   0x1   :  { %1759 = sst [smem:[#allocation7_spill]] %s1754_s0 }
   0x2   :  { %1760 = sst [smem:[#allocation8_spill]] %s1755_s1 }
   0x3   :  { %s1439_s12 = smov 0   ;;  %s1441_s13 = smov 0  }
   0x4   :  { %s1443_s14 = smov 0   ;;  %s1445_s15 = smov 0  }
   0x5   :  { %s1447_s16 = smov 0   ;;  %s1449_s17 = smov 0  }
   0x6   :  { %s1451_s18 = smov 0   ;;  %s1453_s19 = smov 0  }
   0x7   :  { %s1455_s20 = smov 0   ;;  %s1457_s21 = smov 0  }
   0x8   :  { %s1459_s22 = smov 0  }
   0x9 LB: > { %s1072_s23 = sadd.s32 4294967295, %s1416_s22   ;;  %s25_s24 = sadd.s32 1, %s1408_s20  ;;  %s1416_s22 = sphi %s1459_s22, %s13_s22   ;;  %s1412_s21 = sphi %s1457_s21, %s1777_s21   ;;  %s1408_s20 = sphi %s1455_s20, %s1776_s20   ;;  %s1404_s19 = sphi %s1453_s19, %s1775_s19   ;;  %s1400_s18 = sphi %s1451_s18, %s1774_s18   ;;  %s1396_s17 = sphi %s1449_s17, %s1773_s17   ;;  %s1392_s16 = sphi %s1447_s16, %s1772_s16   ;;  %s1388_s15 = sphi %s1445_s15, %s1771_s15   ;;  %s1384_s14 = sphi %s1443_s14, %s1770_s14   ;;  %s1380_s13 = sphi %s1441_s13, %s1769_s13   ;;  %s1376_s12 = sphi %s1439_s12, %s1768_s12  }
   0xa   : > { %p26_p0 = scmp.ge.s32.totalorder %s25_s24, 3  ;;  %s28_s25 = sadd.s32 1, %s1412_s21 }
   0xb   : > { %s41_s26 = sadd.s32 1, %s1396_s17  ;;  %p48_p1 = scmp.ne.s32.totalorder %s1396_s17, %s1392_s16 }
   0xc   : > { %s1779_s24 = smov (%p26_p0, %s25_s24), 0  ;;  %s1781_s25 = smov (!%p26_p0, %s28_s25), %s1412_s21 }
   0xd   : > { %s37_s27 = ssub.s32 %s1408_s20, %s1779_s24  ;;  %p49_p2 = scmp.eq.s32.totalorder %s1416_s22, 0 }
   0xe   : > { %p30_p3 = scmp.ge.s32.totalorder %s1781_s25, 2  ;;  %p39_p4 = scmp.eq.s32.totalorder %s37_s27, 0 }
   0xf   : > { %p1506_p5 = por %p49_p2, %p48_p1  ;;  %s69_s29 = sadd.s32 1, %s1388_s15 }
  0x10   : > { %s1783_s25 = smov (%p30_p3, %s1781_s25), 0  ;;  %p76_p6 = scmp.ne.s32.totalorder %s1388_s15, %s1384_s14 }
  0x11   : > { %1762 = sst [smem:[#allocation6_spill]] %s1783_s25  ;;  %s65_s4 = ssub.s32 %s1412_s21, %s1783_s25 }
  0x12   : > { %s1514_s30 = scalar_select %p39_p4, %s1396_s17, %s41_s26  }
  0x13   : > { %s66_s5 = sor.u32 %s65_s4, %s37_s27  ;;  %p121_p7 = scmp.eq.s32.totalorder %s65_s4, 0 }
  0x14   : > { %p67_p8 = scmp.eq.s32.totalorder %s66_s5, 0  ;;  %p1520_p9 = por %p76_p6, %p49_p2 }
  0x15   : > { %s123_s7 = sadd.s32 1, %s1380_s13  ;;  %p133_p10 = scmp.ne.s32.totalorder %s1380_s13, %s1376_s12 }
  0x16   : > { %s1528_s8 = scalar_select %p67_p8, %s1388_s15, %s69_s29  }
  0x17   : > { %s1531_s9 = scalar_select %p121_p7, %s1380_s13, %s123_s7  }
  0x18   : > { %p134_p11 = scmp.eq.s32.totalorder %s1072_s23, 5  ;;  %p1075_p13 = scmp.ge.s32.totalorder %s1416_s22, 6 }
  0x1a   : > { %p1533_p12 = por %p134_p11, %p133_p10  ;;  %156 = sbr.rel (%p1075_p13) target bundleno = 87 (0x57), region = 16 }
  0x21   : > { %159 = sbr.rel (!%p1506_p5) target bundleno = 46 (0x2e), region = 20  ;;  %s161_s11 = sand.u32 (%p1506_p5), 1, %s1396_s17  }
  0x22   : > { %s1130_s26 = smul.u32 (%p1506_p5), 12, %s1408_s20  ;;  %s1765_s0 = sld [smem:[#allocation7_spill]] (%p1506_p5) }
  0x23   : > { %s1205_s27 = smul.u32 (%p1506_p5), 48, %s161_s11 }
  0x25   : > { %s163_s23 = scalar_lea.vmem (%p1506_p5), [#allocation3], %s1205_s27 }
  0x28   : > { %s169_s5 = scalar_lea.vmem %s1765_s0, %s1130_s26 }
  0x29   : > { %v184_v0 = vld [vmem:[%s169_s5] sm:$0xff]  ;;  %v188_v2 = vld [vmem:[%s169_s5 + $0x48] sm:$0xff]  ;;  %v1081_v6 = vld [vmem:[%s169_s5 + $0x50] sm:$0xf] }
  0x2a   : > { %v186_v1 = vld [vmem:[%s169_s5 + $0x24] sm:$0xff]  ;;  %185 = vst [vmem:[%s163_s23] sm:$0xff] %v184_v0  ;;  %189 = vst [vmem:[%s163_s23 + $0x18] sm:$0xff] %v188_v2  ;;  %v190_v3 = vld [vmem:[%s169_s5 + $0x6c] sm:$0xff] }
  0x2b   : > { %187 = vst [vmem:[%s163_s23 + $0xc] sm:$0xff] %v186_v1  ;;  %v1077_v4 = vld [vmem:[%s169_s5 + $0x8] sm:$0xf]  ;;  %v1079_v5 = vld [vmem:[%s169_s5 + $0x2c] sm:$0xf]  ;;  %191 = vst [vmem:[%s163_s23 + $0x24] sm:$0xff] %v190_v3 }
  0x2c   : > { %1078 = vst [vmem:[%s163_s23 + $0x8] sm:$0xf] %v1077_v4  ;;  %1080 = vst [vmem:[%s163_s23 + $0x14] sm:$0xf] %v1079_v5  ;;  %v1083_v7 = vld [vmem:[%s169_s5 + $0x74] sm:$0xf] }
  0x2d   : > { %1082 = vst [vmem:[%s163_s23 + $0x20] sm:$0xf] %v1081_v6  ;;  %1084 = vst [vmem:[%s163_s23 + $0x2c] sm:$0xf] %v1083_v7 }
  0x2e PF: > { %212 = sbr.rel (!%p1520_p9) target bundleno = 87 (0x57), region = 46  ;;  %s214_s28 = sand.u32 (%p1520_p9), 1, %s1388_s15  }
  0x2f   : > { %s1131_s7 = smul.u32 (%p1520_p9), 96, %s1408_s20  ;;  %s1766_s1 = sld [smem:[#allocation8_spill]] (%p1520_p9) }
  0x30   : > { %s1206_s11 = smul.u32 (%p1520_p9), 192, %s214_s28 }
  0x31   : > { %s219_s26 = sadd.s32 (%p1520_p9), %s1412_s21, %s1131_s7 }
  0x32   : > { %s1086_s27 = sshll.u32 (%p1520_p9), %s219_s26, 2  ;;  %s1558_s6 = scalar_lea.vmem (%p1520_p9), [#allocation4], %s1206_s11 }
  0x35   : > { %s1553_s0 = scalar_lea.vmem %s1766_s1, %s1086_s27 }
  0x36   : > { %v237_v8 = vld [vmem:[%s1553_s0] sm:$0xf]  ;;  %v239_v9 = vld [vmem:[%s1553_s0 + $0x8] sm:$0xf]  ;;  %v241_v10 = vld [vmem:[%s1553_s0 + $0x10] sm:$0xf] }
  0x37   : > { %238 = vst [vmem:[%s1558_s6] sm:$0xf] %v237_v8  ;;  %240 = vst [vmem:[%s1558_s6 + $0x4] sm:$0xf] %v239_v9  ;;  %v243_v11 = vld [vmem:[%s1553_s0 + $0x18] sm:$0xf] }
  0x38   : > { %242 = vst [vmem:[%s1558_s6 + $0x8] sm:$0xf] %v241_v10  ;;  %v245_v12 = vld [vmem:[%s1553_s0 + $0x20] sm:$0xf]  ;;  %v247_v13 = vld [vmem:[%s1553_s0 + $0x28] sm:$0xf] }
  0x39   : > { %244 = vst [vmem:[%s1558_s6 + $0xc] sm:$0xf] %v243_v11  ;;  %246 = vst [vmem:[%s1558_s6 + $0x10] sm:$0xf] %v245_v12  ;;  %v249_v14 = vld [vmem:[%s1553_s0 + $0x30] sm:$0xf] }
  0x3a   : > { %248 = vst [vmem:[%s1558_s6 + $0x14] sm:$0xf] %v247_v13  ;;  %v251_v15 = vld [vmem:[%s1553_s0 + $0x38] sm:$0xf]  ;;  %v253_v16 = vld [vmem:[%s1553_s0 + $0x40] sm:$0xf] }
  0x3b   : > { %250 = vst [vmem:[%s1558_s6 + $0x18] sm:$0xf] %v249_v14  ;;  %252 = vst [vmem:[%s1558_s6 + $0x1c] sm:$0xf] %v251_v15  ;;  %v255_v17 = vld [vmem:[%s1553_s0 + $0x48] sm:$0xf] }
  0x3c   : > { %254 = vst [vmem:[%s1558_s6 + $0x20] sm:$0xf] %v253_v16  ;;  %v257_v18 = vld [vmem:[%s1553_s0 + $0x50] sm:$0xf]  ;;  %v259_v19 = vld [vmem:[%s1553_s0 + $0x58] sm:$0xf] }
  0x3d   : > { %256 = vst [vmem:[%s1558_s6 + $0x24] sm:$0xf] %v255_v17  ;;  %258 = vst [vmem:[%s1558_s6 + $0x28] sm:$0xf] %v257_v18  ;;  %v261_v20 = vld [vmem:[%s1553_s0 + $0x60] sm:$0xf] }
  0x3e   : > { %260 = vst [vmem:[%s1558_s6 + $0x2c] sm:$0xf] %v259_v19  ;;  %v263_v21 = vld [vmem:[%s1553_s0 + $0x68] sm:$0xf]  ;;  %v265_v22 = vld [vmem:[%s1553_s0 + $0x70] sm:$0xf] }
  0x3f   : > { %262 = vst [vmem:[%s1558_s6 + $0x30] sm:$0xf] %v261_v20  ;;  %264 = vst [vmem:[%s1558_s6 + $0x34] sm:$0xf] %v263_v21  ;;  %v267_v23 = vld [vmem:[%s1553_s0 + $0x78] sm:$0xf] }
  0x40   : > { %266 = vst [vmem:[%s1558_s6 + $0x38] sm:$0xf] %v265_v22  ;;  %v269_v24 = vld [vmem:[%s1553_s0 + $0x80] sm:$0xf]  ;;  %v271_v25 = vld [vmem:[%s1553_s0 + $0x88] sm:$0xf] }
  0x41   : > { %268 = vst [vmem:[%s1558_s6 + $0x3c] sm:$0xf] %v267_v23  ;;  %270 = vst [vmem:[%s1558_s6 + $0x40] sm:$0xf] %v269_v24  ;;  %v273_v26 = vld [vmem:[%s1553_s0 + $0x90] sm:$0xf] }
  0x42   : > { %272 = vst [vmem:[%s1558_s6 + $0x44] sm:$0xf] %v271_v25  ;;  %v275_v27 = vld [vmem:[%s1553_s0 + $0x98] sm:$0xf]  ;;  %v277_v28 = vld [vmem:[%s1553_s0 + $0xa0] sm:$0xf] }
  0x43   : > { %274 = vst [vmem:[%s1558_s6 + $0x48] sm:$0xf] %v273_v26  ;;  %276 = vst [vmem:[%s1558_s6 + $0x4c] sm:$0xf] %v275_v27  ;;  %v279_v29 = vld [vmem:[%s1553_s0 + $0xa8] sm:$0xf] }
  0x44   : > { %278 = vst [vmem:[%s1558_s6 + $0x50] sm:$0xf] %v277_v28  ;;  %v281_v30 = vld [vmem:[%s1553_s0 + $0xb0] sm:$0xf]  ;;  %v283_v31 = vld [vmem:[%s1553_s0 + $0xb8] sm:$0xf] }
  0x45   : > { %280 = vst [vmem:[%s1558_s6 + $0x54] sm:$0xf] %v279_v29  ;;  %282 = vst [vmem:[%s1558_s6 + $0x58] sm:$0xf] %v281_v30  ;;  %v285_v32 = vld [vmem:[%s1553_s0 + $0xc0] sm:$0xf] }
  0x46   : > { %284 = vst [vmem:[%s1558_s6 + $0x5c] sm:$0xf] %v283_v31  ;;  %v287_v33 = vld [vmem:[%s1553_s0 + $0xc8] sm:$0xf]  ;;  %v289_v34 = vld [vmem:[%s1553_s0 + $0xd0] sm:$0xf] }
  0x47   : > { %286 = vst [vmem:[%s1558_s6 + $0x60] sm:$0xf] %v285_v32  ;;  %288 = vst [vmem:[%s1558_s6 + $0x64] sm:$0xf] %v287_v33  ;;  %v291_v35 = vld [vmem:[%s1553_s0 + $0xd8] sm:$0xf] }
  0x48   : > { %290 = vst [vmem:[%s1558_s6 + $0x68] sm:$0xf] %v289_v34  ;;  %v293_v36 = vld [vmem:[%s1553_s0 + $0xe0] sm:$0xf]  ;;  %v295_v37 = vld [vmem:[%s1553_s0 + $0xe8] sm:$0xf] }
  0x49   : > { %292 = vst [vmem:[%s1558_s6 + $0x6c] sm:$0xf] %v291_v35  ;;  %294 = vst [vmem:[%s1558_s6 + $0x70] sm:$0xf] %v293_v36  ;;  %v297_v38 = vld [vmem:[%s1553_s0 + $0xf0] sm:$0xf] }
  0x4a   : > { %296 = vst [vmem:[%s1558_s6 + $0x74] sm:$0xf] %v295_v37  ;;  %v299_v39 = vld [vmem:[%s1553_s0 + $0xf8] sm:$0xf]  ;;  %v301_v40 = vld [vmem:[%s1553_s0 + $0x100] sm:$0xf] }
  0x4b   : > { %298 = vst [vmem:[%s1558_s6 + $0x78] sm:$0xf] %v297_v38  ;;  %300 = vst [vmem:[%s1558_s6 + $0x7c] sm:$0xf] %v299_v39  ;;  %v303_v41 = vld [vmem:[%s1553_s0 + $0x108] sm:$0xf] }
  0x4c   : > { %302 = vst [vmem:[%s1558_s6 + $0x80] sm:$0xf] %v301_v40  ;;  %v305_v42 = vld [vmem:[%s1553_s0 + $0x110] sm:$0xf]  ;;  %v307_v43 = vld [vmem:[%s1553_s0 + $0x118] sm:$0xf] }
  0x4d   : > { %304 = vst [vmem:[%s1558_s6 + $0x84] sm:$0xf] %v303_v41  ;;  %306 = vst [vmem:[%s1558_s6 + $0x88] sm:$0xf] %v305_v42  ;;  %v309_v44 = vld [vmem:[%s1553_s0 + $0x120] sm:$0xf] }
  0x4e   : > { %308 = vst [vmem:[%s1558_s6 + $0x8c] sm:$0xf] %v307_v43  ;;  %v311_v45 = vld [vmem:[%s1553_s0 + $0x128] sm:$0xf]  ;;  %v313_v46 = vld [vmem:[%s1553_s0 + $0x130] sm:$0xf] }
  0x4f   : > { %310 = vst [vmem:[%s1558_s6 + $0x90] sm:$0xf] %v309_v44  ;;  %312 = vst [vmem:[%s1558_s6 + $0x94] sm:$0xf] %v311_v45  ;;  %v315_v47 = vld [vmem:[%s1553_s0 + $0x138] sm:$0xf] }
  0x50   : > { %314 = vst [vmem:[%s1558_s6 + $0x98] sm:$0xf] %v313_v46  ;;  %v317_v48 = vld [vmem:[%s1553_s0 + $0x140] sm:$0xf]  ;;  %v319_v49 = vld [vmem:[%s1553_s0 + $0x148] sm:$0xf] }
  0x51   : > { %316 = vst [vmem:[%s1558_s6 + $0x9c] sm:$0xf] %v315_v47  ;;  %318 = vst [vmem:[%s1558_s6 + $0xa0] sm:$0xf] %v317_v48  ;;  %v321_v50 = vld [vmem:[%s1553_s0 + $0x150] sm:$0xf] }
  0x52   : > { %320 = vst [vmem:[%s1558_s6 + $0xa4] sm:$0xf] %v319_v49  ;;  %v323_v51 = vld [vmem:[%s1553_s0 + $0x158] sm:$0xf]  ;;  %v325_v52 = vld [vmem:[%s1553_s0 + $0x160] sm:$0xf] }
  0x53   : > { %322 = vst [vmem:[%s1558_s6 + $0xa8] sm:$0xf] %v321_v50  ;;  %324 = vst [vmem:[%s1558_s6 + $0xac] sm:$0xf] %v323_v51  ;;  %v327_v53 = vld [vmem:[%s1553_s0 + $0x168] sm:$0xf] }
  0x54   : > { %326 = vst [vmem:[%s1558_s6 + $0xb0] sm:$0xf] %v325_v52  ;;  %v329_v54 = vld [vmem:[%s1553_s0 + $0x170] sm:$0xf]  ;;  %v331_v55 = vld [vmem:[%s1553_s0 + $0x178] sm:$0xf] }
  0x55   : > { %328 = vst [vmem:[%s1558_s6 + $0xb4] sm:$0xf] %v327_v53  ;;  %330 = vst [vmem:[%s1558_s6 + $0xb8] sm:$0xf] %v329_v54 }
  0x56   : > { %332 = vst [vmem:[%s1558_s6 + $0xbc] sm:$0xf] %v331_v55 }
  0x57 PF: > { %p1087_p0 = scmp.ge.s32.totalorder %s1416_s22, 1  ;;  %p456_p1 = scmp.lt.s32.totalorder %s1416_s22, 7 }
  0x59   : > { %p457_p2 = pnand %p1087_p0, %p456_p1 }
  0x5a   : > { %s463_s5 = sand.u32 (!%p457_p2), 1, %s1392_s16   ;;  %s470_s23 = sand.u32 (!%p457_p2), 1, %s1384_s14  }
  0x5b   : > { %460 = sbr.rel (%p457_p2) target bundleno = 391 (0x187), region = 91  ;;  %s496_s0 = sand.u32 (!%p457_p2), 1, %s1376_s12  }
  0x5c   : > { %s1207_s28 = smul.u32 (!%p457_p2), 48, %s463_s5  ;;  %s1088_s11 = sshll.u32 (!%p457_p2), %s496_s0, 4 }
  0x5d   : > { %s1208_s7 = smul.u32 (!%p457_p2), 192, %s470_s23  ;;  %p502_p3 = scmp.lt.s32.totalorder (!%p457_p2), %s1404_s19, 1 }
  0x5e   : > { %s1666_s6 = scalar_lea.vmem (!%p457_p2), [#allocation3], %s1207_s28  ;;  %s1670_s25 = scalar_lea.vmem (!%p457_p2), [#allocation5], %s1088_s11 }
  0x5f   : > { %s1668_s1 = scalar_lea.vmem (!%p457_p2), [#allocation4], %s1208_s7  ;;  %p1089_p4 = scmp.ne.s32.totalorder (!%p457_p2), %s1400_s18, 0 }
  0x62   : > { %s1660_s26 = scalar_select %p502_p3, %s1404_s19, 1 }
  0x63   : > { %510 = sbr.rel (%p1089_p4) target bundleno = 106 (0x6a), region = 103  ;;  %v1418_v56 = vmov (!%p1089_p4), 0.0  }
  0x64   : > { %s504_s4 = scalar_lea.vmem %s1756_s2, %s1660_s26  ;;  %511 = vst [vmem:[#allocation2] sm:$0xff] (!%p1089_p4), %v1418_v56  ;;  %512 = vst [vmem:[#allocation2 + $0x8] sm:$0xff] (!%p1089_p4), %v1418_v56 }
  0x65   : > { %513 = vst [vmem:[#allocation2 + $0x10] sm:$0xff] (!%p1089_p4), %v1418_v56  ;;  %514 = vst [vmem:[#allocation2 + $0x18] sm:$0xff] (!%p1089_p4), %v1418_v56 }
  0x6a PF: > { %v1298_v57 = vld [vmem:[%s1668_s1 + $0x40] sm:$0xff]   ;;  %v1301_v60 = vld [vmem:[%s1668_s1 + $0x48] sm:$0xff]   ;;  %v1304_v63 = vld [vmem:[%s1668_s1 + $0x50] sm:$0xff]   ;;  %p1120_p5 = scmp.ne.s32.totalorder %s1400_s18, 2 }
  0x6b   : > { %v1299_v58 = vld [vmem:[%s1668_s1] sm:$0xff]   ;;  %1147 = vmatprep.subr.bf16.mxu0 %v1298_v57  ;;  %v1302_v61 = vld [vmem:[%s1668_s1 + $0x8] sm:$0xff]   ;;  %v1305_v0 = vld [vmem:[%s1668_s1 + $0x10] sm:$0xff]  }
  0x6c   : > { %v1300_v59 = vld [vmem:[%s1668_s1 + $0x80] sm:$0xff]   ;;  %1148 = vmatpush3.bf16.msra.mxu0 %v1299_v58  ;;  %v1303_v62 = vld [vmem:[%s1668_s1 + $0x88] sm:$0xff]   ;;  %v1306_v1 = vld [vmem:[%s1668_s1 + $0x90] sm:$0xff]  }
  0x6d   : > { %1185 = vmatprep.subr.bf16.mxu1 %v1300_v59  ;;  %1149 = vmatprep.subr.bf16.mxu0 %v1301_v60  ;;  %v1307_v2 = vld [vmem:[%s1668_s1 + $0x58] sm:$0xff]   ;;  %v1310_v5 = vld [vmem:[%s1668_s1 + $0x60] sm:$0xff]   ;;  %v1313_v8 = vld [vmem:[%s1668_s1 + $0x68] sm:$0xff]  }
  0x6e   : > { %1186 = vmatpush3.bf16.msra.mxu1 %v1300_v59  ;;  %v1308_v3 = vld [vmem:[%s1668_s1 + $0x18] sm:$0xff]   ;;  %v1312_v6 = vld [vmem:[%s1668_s1 + $0xa0] sm:$0xff]   ;;  %v1315_v9 = vld [vmem:[%s1668_s1 + $0xa8] sm:$0xff]  }
  0x6f   : > { %1187 = vmatprep.subr.bf16.mxu1 %v1303_v62  ;;  %v1309_v4 = vld [vmem:[%s1668_s1 + $0x98] sm:$0xff]   ;;  %v1311_v7 = vld [vmem:[%s1668_s1 + $0x20] sm:$0xff]   ;;  %v1314_v10 = vld [vmem:[%s1668_s1 + $0x28] sm:$0xff]  }
  0x70   : > { %1150 = vmatpush3.bf16.msra.mxu0 %v1302_v61  ;;  %v1316_v11 = vld [vmem:[%s1668_s1 + $0x70] sm:$0xff]   ;;  %v1319_v14 = vld [vmem:[%s1668_s1 + $0x78] sm:$0xff]   ;;  %v515_v29 = vld [vmem:[#allocation2] sm:$0xff] }
  0x71   : > { %1151 = vmatprep.subr.bf16.mxu0 %v1304_v63  ;;  %v1317_v12 = vld [vmem:[%s1668_s1 + $0x30] sm:$0xff]   ;;  %v1321_v15 = vld [vmem:[%s1668_s1 + $0xb8] sm:$0xff]   ;;  %v516_v34 = vld [vmem:[#allocation2 + $0x8] sm:$0xff] }
  0x72   : > { %1188 = vmatpush3.bf16.msra.mxu1 %v1303_v62  ;;  %v1318_v13 = vld [vmem:[%s1668_s1 + $0xb0] sm:$0xff]   ;;  %v1320_v18 = vld [vmem:[%s1668_s1 + $0x38] sm:$0xff]   ;;  %v1121_v53 = vld [vmem:[%s504_s4] ss:$0 sm:$0xff] (!%p1120_p5) }
  0x73   : > { %1189 = vmatprep.subr.bf16.mxu1 %v1306_v1  ;;  %v1324_v16 = vld [vmem:[%s1666_s6 + $0x4] ss:$12 sps:$4 sm:$0xff]   ;;  %v1325_v17 = vld [vmem:[%s1666_s6 + $0x8] ss:$12 sps:$4 sm:$0xff]   ;;  %v1322_v19 = vld [vmem:[%s1666_s6] ss:$12 sps:$4 sm:$0xff]  }
  0x74   : > { %1152 = vmatpush3.bf16.msra.mxu0 %v1305_v0  ;;  %783 = vmatprep.mubr.bf16.mxu0 %v1324_v16  ;;  %v1327_v20 = vld [vmem:[%s1666_s6 + $0x1c] ss:$12 sps:$4 sm:$0xff]   ;;  %v1326_v21 = vld [vmem:[%s1666_s6 + $0x20] ss:$12 sps:$4 sm:$0xff]   ;;  %v1329_v22 = vld [vmem:[%s1666_s6 + $0x18] ss:$12 sps:$4 sm:$0xff]  }
  0x75   : > { %1153 = vmatprep.subr.bf16.mxu0 %v1307_v2  ;;  %1201 = vmatprep.mubr.bf16.mxu1 %v1325_v17  ;;  %v517_v43 = vld [vmem:[#allocation2 + $0x10] sm:$0xff]  ;;  %v518_v47 = vld [vmem:[#allocation2 + $0x18] sm:$0xff] }
  0x76   : > { %1190 = vmatpush3.bf16.msra.mxu1 %v1306_v1 }
  0x77   : > { %1191 = vmatprep.subr.bf16.mxu1 %v1309_v4 }
  0x78   : > { %1154 = vmatpush3.bf16.msra.mxu0 %v1308_v3 }
  0x79   : > { %1155 = vmatprep.subr.bf16.mxu0 %v1310_v5 }
  0x7a   : > { %1192 = vmatpush3.bf16.msra.mxu1 %v1309_v4 }
  0x7b   : > { %1193 = vmatprep.subr.bf16.mxu1 %v1312_v6 }
  0x7c   : > { %1156 = vmatpush3.bf16.msra.mxu0 %v1311_v7 }
  0x7d   : > { %1157 = vmatprep.subr.bf16.mxu0 %v1313_v8 }
  0x7e   : > { %1194 = vmatpush3.bf16.msra.mxu1 %v1312_v6 }
  0x7f   : > { %1195 = vmatprep.subr.bf16.mxu1 %v1315_v9 }
  0x80   : > { %1158 = vmatpush3.bf16.msra.mxu0 %v1314_v10 }
  0x81   : > { %1159 = vmatprep.subr.bf16.mxu0 %v1316_v11 }
  0x82   : > { %1196 = vmatpush3.bf16.msra.mxu1 %v1315_v9 }
  0x83   : > { %1197 = vmatprep.subr.bf16.mxu1 %v1318_v13 }
  0x84   : > { %1160 = vmatpush3.bf16.msra.mxu0 %v1317_v12 }
  0x85   : > { %1161 = vmatprep.subr.bf16.mxu0 %v1319_v14 }
  0x86   : > { %1198 = vmatpush3.bf16.msra.mxu1 %v1318_v13 }
  0x87   : > { %1199 = vmatprep.subr.bf16.mxu1 %v1321_v15 }
  0x88   : > { %1162 = vmatpush3.bf16.msra.mxu0 %v1320_v18 }
  0x8a   : > { %1200 = vmatpush3.bf16.msra.mxu1 %v1321_v15 }
  0x8b   : > { %784 = vmatmul.mubr.bf16.vlgmr.msra.gmra.mrb[0].mxu0 %v1322_v19 }
  0x8c   : > { %791 = vmatprep.mubr.bf16.mxu0 %v1327_v20 }
  0x8d   : > { %1202 = vmatmul.mubr.bf16.vlgmr.msra.gmra.mrb[0].mxu1 %v1326_v21 }
  0x93   : > { %792 = vmatmul.mubr.bf16.gmra.mrb[4].mxu0 %v1329_v22 }
 0x15e   : > { %v1163_v23 = vpop.f32.mrb[0].mxu0 }
 0x15f   : > { %v1164_v24 = vpop.f32.mrb[1].mxu0 }
 0x160   : > { %v1165_v25 = vadd.f32 %v1164_v24, %v1163_v23  ;;  %v1166_v26 = vpop.f32.mrb[2].mxu0  ;;  %v1203_v27 = vpop.f32.mrb[0].mxu1 }
 0x161   : > { %v1167_v28 = vpop.f32.mrb[3].mxu0  ;;  %v834_v30 = vpop.f32.mrb[1].mxu1 }
 0x162   : > { %v1168_v31 = vadd.f32 %v1167_v28, %v1166_v26  ;;  %v835_v32 = vadd.f32 %v1165_v25, %v834_v30  ;;  %v1204_v33 = vpop.f32.mrb[2].mxu1 }
 0x163   : > { %v837_v35 = vpop.f32.mrb[3].mxu1 }
 0x164   : > { %v849_v36 = vadd.f32 %v835_v32, %v515_v29  ;;  %v838_v37 = vadd.f32 %v1168_v31, %v837_v35 }
 0x166   : > { %853 = vst [vmem:[#allocation2] sm:$0xff] %v849_v36  ;;  %v850_v38 = vadd.f32 %v838_v37, %v516_v34  ;;  %v1169_v39 = vpop.f32.mrb[4].mxu0 }
 0x167   : > { %v1170_v40 = vpop.f32.mrb[5].mxu0 }
 0x168   : > { %854 = vst [vmem:[#allocation2 + $0x8] sm:$0xff] %v850_v38  ;;  %v1171_v41 = vadd.f32 %v1170_v40, %v1169_v39  ;;  %v1172_v42 = vpop.f32.mrb[6].mxu0 }
 0x169   : > { %v1173_v44 = vpop.f32.mrb[7].mxu0 }
 0x16a   : > { %v843_v45 = vadd.f32 %v1203_v27, %v1171_v41  ;;  %v1174_v46 = vadd.f32 %v1173_v44, %v1172_v42  ;;  %860 = sbr.rel (%p1120_p5) target bundleno = 383 (0x17f), region = 107 }
 0x16c   : > { %v851_v48 = vadd.f32 %v843_v45, %v517_v43  ;;  %v846_v49 = vadd.f32 %v1204_v33, %v1174_v46 }
 0x16d   : > { %v861_v51 = vld [vmem:[#allocation2] sm:$0xff] (!%p1120_p5) }
 0x16e   : > { %855 = vst [vmem:[#allocation2 + $0x10] sm:$0xff] %v851_v48  ;;  %v852_v50 = vadd.f32 %v846_v49, %v518_v47  ;;  %v872_v54 = vadd.f32 (!%p1120_p5), %v1121_v53, %v861_v51 }
 0x16f   : > { %v862_v52 = vld [vmem:[#allocation2 + $0x8] sm:$0xff] (!%p1120_p5) }
 0x170   : > { %856 = vst [vmem:[#allocation2 + $0x18] sm:$0xff] %v852_v50  ;;  %v873_v55 = vadd.f32 (!%p1120_p5), %v1121_v53, %v862_v52  ;;  %v876_v60 = vmax.f32 (!%p1120_p5), %v872_v54, 0.0 }
 0x172   : > { %v877_v61 = vmax.f32 %v873_v55, 0.0 }
 0x174   : > { %v1139_v0 = vpack.c.bf16 %v877_v61, %v876_v60 }
 0x175   : > { %v863_v56 = vld [vmem:[#allocation2 + $0x10] sm:$0xff] }
 0x176   : > { %v874_v58 = vadd.f32 %v1121_v53, %v863_v56  ;;  %1140 = vst [vmem:[%s1670_s25] sm:$0xff] %v1139_v0  }
 0x177   : > { %v864_v57 = vld [vmem:[#allocation2 + $0x18] sm:$0xff] }
 0x178   : > { %v875_v59 = vadd.f32 %v1121_v53, %v864_v57  ;;  %v878_v62 = vmax.f32 %v874_v58, 0.0 }
 0x17a   : > { %v879_v63 = vmax.f32 %v875_v59, 0.0 }
 0x17c   : > { %v1144_v1 = vpack.c.bf16 %v879_v63, %v878_v62 }
 0x17e   : > { %1146 = vst [vmem:[%s1670_s25 + $0x8] sm:$0xff] %v1144_v1  }
 0x17f PF: > { %906 = sbr.rel (!%p1533_p12) target bundleno = 391 (0x187), region = 111  ;;  %s1127_s14 = sshll.u32 (%p1533_p12), %s1404_s19, 2  ;;  %v927_v2 = vld [vmem:[%s1670_s25] sm:$0xf] (%p1533_p12)  ;;  %v929_v3 = vld [vmem:[%s1670_s25 + $0x4] sm:$0xf] (%p1533_p12) }
 0x180   : > { %s911_s5 = scalar_lea.vmem (%p1533_p12), %s1757_s3, %s1127_s14 }
 0x181   : > { %928 = vst [vmem:[%s911_s5] sm:$0xf] (%p1533_p12), %v927_v2  ;;  %930 = vst [vmem:[%s911_s5 + $0x8] sm:$0xf] (%p1533_p12), %v929_v3 }
 0x185   : > { %v931_v4 = vld [vmem:[%s1670_s25 + $0x8] sm:$0xf] (%p1533_p12)  ;;  %v933_v5 = vld [vmem:[%s1670_s25 + $0xc] sm:$0xf] (%p1533_p12) }
 0x186   : > { %932 = vst [vmem:[%s911_s5 + $0x10] sm:$0xf] %v931_v4  ;;  %934 = vst [vmem:[%s911_s5 + $0x18] sm:$0xf] %v933_v5 }
 0x187 PF: > { %s13_s22 = sadd.s32 1, %s1416_s22   ;;  %s1767_s10 = sld [smem:[#allocation6_spill]] }
 0x188   : > { %p10_p6 = scmp.ge.s32.totalorder %s13_s22, 8   ;;  %s1768_s12 = smov %s1380_s13 }
 0x189   : > { %s1769_s13 = smov %s1531_s9  ;;  %s1770_s14 = smov %s1388_s15 }
 0x18a   : > { %s1771_s15 = smov %s1528_s8  ;;  %s1772_s16 = smov %s1396_s17 }
 0x18b   : > { %s1773_s17 = smov %s1514_s30  ;;  %s1774_s18 = smov %s1408_s20 }
 0x18c   : > { %s1775_s19 = smov %s1412_s21  ;;  %s1776_s20 = smov %s1779_s24 }
 0x18d   : > { %s1777_s21 = smov %s1767_s10  ;;  %12 = sbr.rel (!%p10_p6) target bundleno = 9 (0x9), region = 200 }

// kernel: _lambda_.20
= control target key start
LH: loop header
LB: loop body
LE: loop exit
PB: predicated region body
PF: predicated region fallthrough
CT: control target
= control target key end

     0   :  { %s1813_s0 = inlined_call_operand.vmem [shape: bf16[16,2304], index: 0, kind: input, shape index: {}]   ;;  %s1814_s1 = inlined_call_operand.vmem [shape: bf16[2304,512], index: 1, kind: input, shape index: {}]   ;;  %s1815_s2 = inlined_call_operand.vmem [shape: f32[1,512], index: 2, kind: input, shape index: {}]   ;;  %s1816_s3 = inlined_call_operand.vmem [shape: bf16[16,512], index: 3, kind: output, shape index: {}]  }
   0x1   :  { %1818 = sst [smem:[#allocation7_spill]] %s1813_s0 }
   0x2   :  { %1819 = sst [smem:[#allocation8_spill]] %s1814_s1 }
   0x3   :  { %s1480_s12 = smov 0   ;;  %s1482_s13 = smov 0  }
   0x4   :  { %s1484_s14 = smov 0   ;;  %s1486_s15 = smov 0  }
   0x5   :  { %s1488_s16 = smov 0   ;;  %s1490_s17 = smov 0  }
   0x6   :  { %s1492_s18 = smov 0   ;;  %s1494_s19 = smov 0  }
   0x7   :  { %s1496_s20 = smov 0   ;;  %s1498_s21 = smov 0  }
   0x8   :  { %s1500_s22 = smov 0  }
   0x9 LB: > { %s1116_s23 = sadd.s32 4294967295, %s1456_s22   ;;  %s25_s24 = sadd.s32 1, %s1448_s20  ;;  %s1456_s22 = sphi %s1500_s22, %s13_s22   ;;  %s1452_s21 = sphi %s1498_s21, %s1836_s21   ;;  %s1448_s20 = sphi %s1496_s20, %s1835_s20   ;;  %s1444_s19 = sphi %s1494_s19, %s1834_s19   ;;  %s1440_s18 = sphi %s1492_s18, %s1833_s18   ;;  %s1436_s17 = sphi %s1490_s17, %s1832_s17   ;;  %s1432_s16 = sphi %s1488_s16, %s1831_s16   ;;  %s1428_s15 = sphi %s1486_s15, %s1830_s15   ;;  %s1424_s14 = sphi %s1484_s14, %s1829_s14   ;;  %s1420_s13 = sphi %s1482_s13, %s1828_s13   ;;  %s1416_s12 = sphi %s1480_s12, %s1827_s12  }
   0xa   : > { %p26_p0 = scmp.ge.s32.totalorder %s25_s24, 6  ;;  %s28_s25 = sadd.s32 1, %s1452_s21 }
   0xb   : > { %s41_s26 = sadd.s32 1, %s1436_s17  ;;  %p48_p1 = scmp.ne.s32.totalorder %s1436_s17, %s1432_s16 }
   0xc   : > { %s1838_s24 = smov (%p26_p0, %s25_s24), 0  ;;  %s1840_s25 = smov (!%p26_p0, %s28_s25), %s1452_s21 }
   0xd   : > { %s37_s27 = ssub.s32 %s1448_s20, %s1838_s24  ;;  %p49_p2 = scmp.eq.s32.totalorder %s1456_s22, 0 }
   0xe   : > { %p30_p3 = scmp.ge.s32.totalorder %s1840_s25, 2  ;;  %p39_p4 = scmp.eq.s32.totalorder %s37_s27, 0 }
   0xf   : > { %p1547_p5 = por %p49_p2, %p48_p1  ;;  %s69_s29 = sadd.s32 1, %s1428_s15 }
  0x10   : > { %s1842_s25 = smov (%p30_p3, %s1840_s25), 0  ;;  %p76_p6 = scmp.ne.s32.totalorder %s1428_s15, %s1424_s14 }
  0x11   : > { %1821 = sst [smem:[#allocation6_spill]] %s1842_s25  ;;  %s65_s4 = ssub.s32 %s1452_s21, %s1842_s25 }
  0x12   : > { %s1555_s30 = scalar_select %p39_p4, %s1436_s17, %s41_s26  }
  0x13   : > { %s66_s5 = sor.u32 %s65_s4, %s37_s27  ;;  %p121_p7 = scmp.eq.s32.totalorder %s65_s4, 0 }
  0x14   : > { %p67_p8 = scmp.eq.s32.totalorder %s66_s5, 0  ;;  %p1561_p9 = por %p76_p6, %p49_p2 }
  0x15   : > { %s123_s7 = sadd.s32 1, %s1420_s13  ;;  %p133_p10 = scmp.ne.s32.totalorder %s1420_s13, %s1416_s12 }
  0x16   : > { %s1569_s8 = scalar_select %p67_p8, %s1428_s15, %s69_s29  }
  0x17   : > { %s1572_s9 = scalar_select %p121_p7, %s1420_s13, %s123_s7  }
  0x18   : > { %p134_p11 = scmp.eq.s32.totalorder %s1116_s23, 11  ;;  %p1119_p13 = scmp.ge.s32.totalorder %s1456_s22, 12 }
  0x1a   : > { %p1574_p12 = por %p134_p11, %p133_p10  ;;  %156 = sbr.rel (%p1119_p13) target bundleno = 78 (0x4e), region = 16 }
  0x21   : > { %159 = sbr.rel (!%p1547_p5) target bundleno = 44 (0x2c), region = 20  ;;  %s161_s11 = sand.u32 (%p1547_p5), 1, %s1436_s17  }
  0x22   : > { %s1191_s26 = smul.u32 (%p1547_p5), 12, %s1448_s20  ;;  %s1824_s0 = sld [smem:[#allocation7_spill]] (%p1547_p5) }
  0x23   : > { %s1200_s27 = smul.u32 (%p1547_p5), 24, %s161_s11 }
  0x25   : > { %s163_s23 = scalar_lea.vmem (%p1547_p5), [#allocation3], %s1200_s27 }
  0x28   : > { %s169_s5 = scalar_lea.vmem %s1824_s0, %s1191_s26 }
  0x29   : > { %v184_v0 = vld [vmem:[%s169_s5] sm:$0xff]  ;;  %v186_v1 = vld [vmem:[%s169_s5 + $0x48] sm:$0xff]  ;;  %v1123_v3 = vld [vmem:[%s169_s5 + $0x50] sm:$0xf] }
  0x2a   : > { %v1121_v2 = vld [vmem:[%s169_s5 + $0x8] sm:$0xf]  ;;  %185 = vst [vmem:[%s163_s23] sm:$0xff] %v184_v0  ;;  %187 = vst [vmem:[%s163_s23 + $0xc] sm:$0xff] %v186_v1 }
  0x2b   : > { %1122 = vst [vmem:[%s163_s23 + $0x8] sm:$0xf] %v1121_v2  ;;  %1124 = vst [vmem:[%s163_s23 + $0x14] sm:$0xf] %v1123_v3 }
  0x2c PF: > { %204 = sbr.rel (!%p1561_p9) target bundleno = 78 (0x4e), region = 46  ;;  %s206_s28 = sand.u32 (%p1561_p9), 1, %s1428_s15  }
  0x2d   : > { %s1201_s7 = smul.u32 (%p1561_p9), 384, %s206_s28  ;;  %s1125_s11 = sshll.u32 (%p1561_p9), %s1452_s21, 1 }
  0x2e   : > { %s1192_s26 = smul.u32 (%p1561_p9), 192, %s1448_s20  ;;  %s1825_s1 = sld [smem:[#allocation8_spill]] (%p1561_p9) }
  0x2f   : > { %s1599_s6 = scalar_lea.vmem (%p1561_p9), [#allocation4], %s1201_s7 }
  0x30   : > { %s212_s29 = sadd.s32 (%p1561_p9), %s1192_s26, %s1125_s11 }
  0x31   : > { %s1127_s4 = sshll.u32 (%p1561_p9), %s212_s29, 2 }
  0x34   : > { %s1594_s25 = scalar_lea.vmem %s1825_s1, %s1127_s4 }
  0x35   : > { %v336_v4 = vld [vmem:[%s1594_s25] sm:$0xff]  ;;  %v338_v5 = vld [vmem:[%s1594_s25 + $0x10] sm:$0xff] }
  0x36   : > { %v340_v6 = vld [vmem:[%s1594_s25 + $0x20] sm:$0xff]  ;;  %337 = vst [vmem:[%s1599_s6] sm:$0xff] %v336_v4  ;;  %339 = vst [vmem:[%s1599_s6 + $0x8] sm:$0xff] %v338_v5  ;;  %v342_v7 = vld [vmem:[%s1594_s25 + $0x30] sm:$0xff] }
  0x37   : > { %341 = vst [vmem:[%s1599_s6 + $0x10] sm:$0xff] %v340_v6  ;;  %v344_v8 = vld [vmem:[%s1594_s25 + $0x40] sm:$0xff]  ;;  %v346_v9 = vld [vmem:[%s1594_s25 + $0x50] sm:$0xff]  ;;  %343 = vst [vmem:[%s1599_s6 + $0x18] sm:$0xff] %v342_v7 }
  0x38   : > { %345 = vst [vmem:[%s1599_s6 + $0x20] sm:$0xff] %v344_v8  ;;  %347 = vst [vmem:[%s1599_s6 + $0x28] sm:$0xff] %v346_v9  ;;  %v348_v10 = vld [vmem:[%s1594_s25 + $0x60] sm:$0xff]  ;;  %v350_v11 = vld [vmem:[%s1594_s25 + $0x70] sm:$0xff] }
  0x39   : > { %v352_v12 = vld [vmem:[%s1594_s25 + $0x80] sm:$0xff]  ;;  %349 = vst [vmem:[%s1599_s6 + $0x30] sm:$0xff] %v348_v10  ;;  %351 = vst [vmem:[%s1599_s6 + $0x38] sm:$0xff] %v350_v11  ;;  %v354_v13 = vld [vmem:[%s1594_s25 + $0x90] sm:$0xff] }
  0x3a   : > { %353 = vst [vmem:[%s1599_s6 + $0x40] sm:$0xff] %v352_v12  ;;  %v356_v14 = vld [vmem:[%s1594_s25 + $0xa0] sm:$0xff]  ;;  %v358_v15 = vld [vmem:[%s1594_s25 + $0xb0] sm:$0xff]  ;;  %355 = vst [vmem:[%s1599_s6 + $0x48] sm:$0xff] %v354_v13 }
  0x3b   : > { %357 = vst [vmem:[%s1599_s6 + $0x50] sm:$0xff] %v356_v14  ;;  %359 = vst [vmem:[%s1599_s6 + $0x58] sm:$0xff] %v358_v15  ;;  %v360_v16 = vld [vmem:[%s1594_s25 + $0xc0] sm:$0xff]  ;;  %v362_v17 = vld [vmem:[%s1594_s25 + $0xd0] sm:$0xff] }
  0x3c   : > { %v364_v18 = vld [vmem:[%s1594_s25 + $0xe0] sm:$0xff]  ;;  %361 = vst [vmem:[%s1599_s6 + $0x60] sm:$0xff] %v360_v16  ;;  %363 = vst [vmem:[%s1599_s6 + $0x68] sm:$0xff] %v362_v17  ;;  %v366_v19 = vld [vmem:[%s1594_s25 + $0xf0] sm:$0xff] }
  0x3d   : > { %365 = vst [vmem:[%s1599_s6 + $0x70] sm:$0xff] %v364_v18  ;;  %v368_v20 = vld [vmem:[%s1594_s25 + $0x100] sm:$0xff]  ;;  %v370_v21 = vld [vmem:[%s1594_s25 + $0x110] sm:$0xff]  ;;  %367 = vst [vmem:[%s1599_s6 + $0x78] sm:$0xff] %v366_v19 }
  0x3e   : > { %369 = vst [vmem:[%s1599_s6 + $0x80] sm:$0xff] %v368_v20  ;;  %371 = vst [vmem:[%s1599_s6 + $0x88] sm:$0xff] %v370_v21  ;;  %v372_v22 = vld [vmem:[%s1594_s25 + $0x120] sm:$0xff]  ;;  %v374_v23 = vld [vmem:[%s1594_s25 + $0x130] sm:$0xff] }
  0x3f   : > { %v376_v24 = vld [vmem:[%s1594_s25 + $0x140] sm:$0xff]  ;;  %373 = vst [vmem:[%s1599_s6 + $0x90] sm:$0xff] %v372_v22  ;;  %375 = vst [vmem:[%s1599_s6 + $0x98] sm:$0xff] %v374_v23  ;;  %v378_v25 = vld [vmem:[%s1594_s25 + $0x150] sm:$0xff] }
  0x40   : > { %377 = vst [vmem:[%s1599_s6 + $0xa0] sm:$0xff] %v376_v24  ;;  %v380_v26 = vld [vmem:[%s1594_s25 + $0x160] sm:$0xff]  ;;  %v382_v27 = vld [vmem:[%s1594_s25 + $0x170] sm:$0xff]  ;;  %379 = vst [vmem:[%s1599_s6 + $0xa8] sm:$0xff] %v378_v25 }
  0x41   : > { %381 = vst [vmem:[%s1599_s6 + $0xb0] sm:$0xff] %v380_v26  ;;  %383 = vst [vmem:[%s1599_s6 + $0xb8] sm:$0xff] %v382_v27  ;;  %v384_v28 = vld [vmem:[%s1594_s25 + $0x180] sm:$0xff]  ;;  %v386_v29 = vld [vmem:[%s1594_s25 + $0x190] sm:$0xff] }
  0x42   : > { %v388_v30 = vld [vmem:[%s1594_s25 + $0x1a0] sm:$0xff]  ;;  %385 = vst [vmem:[%s1599_s6 + $0xc0] sm:$0xff] %v384_v28  ;;  %387 = vst [vmem:[%s1599_s6 + $0xc8] sm:$0xff] %v386_v29  ;;  %v390_v31 = vld [vmem:[%s1594_s25 + $0x1b0] sm:$0xff] }
  0x43   : > { %389 = vst [vmem:[%s1599_s6 + $0xd0] sm:$0xff] %v388_v30  ;;  %v392_v32 = vld [vmem:[%s1594_s25 + $0x1c0] sm:$0xff]  ;;  %v394_v33 = vld [vmem:[%s1594_s25 + $0x1d0] sm:$0xff]  ;;  %391 = vst [vmem:[%s1599_s6 + $0xd8] sm:$0xff] %v390_v31 }
  0x44   : > { %393 = vst [vmem:[%s1599_s6 + $0xe0] sm:$0xff] %v392_v32  ;;  %395 = vst [vmem:[%s1599_s6 + $0xe8] sm:$0xff] %v394_v33  ;;  %v396_v34 = vld [vmem:[%s1594_s25 + $0x1e0] sm:$0xff]  ;;  %v398_v35 = vld [vmem:[%s1594_s25 + $0x1f0] sm:$0xff] }
  0x45   : > { %v400_v36 = vld [vmem:[%s1594_s25 + $0x200] sm:$0xff]  ;;  %397 = vst [vmem:[%s1599_s6 + $0xf0] sm:$0xff] %v396_v34  ;;  %399 = vst [vmem:[%s1599_s6 + $0xf8] sm:$0xff] %v398_v35  ;;  %v402_v37 = vld [vmem:[%s1594_s25 + $0x210] sm:$0xff] }
  0x46   : > { %401 = vst [vmem:[%s1599_s6 + $0x100] sm:$0xff] %v400_v36  ;;  %v404_v38 = vld [vmem:[%s1594_s25 + $0x220] sm:$0xff]  ;;  %v406_v39 = vld [vmem:[%s1594_s25 + $0x230] sm:$0xff]  ;;  %403 = vst [vmem:[%s1599_s6 + $0x108] sm:$0xff] %v402_v37 }
  0x47   : > { %405 = vst [vmem:[%s1599_s6 + $0x110] sm:$0xff] %v404_v38  ;;  %407 = vst [vmem:[%s1599_s6 + $0x118] sm:$0xff] %v406_v39  ;;  %v408_v40 = vld [vmem:[%s1594_s25 + $0x240] sm:$0xff]  ;;  %v410_v41 = vld [vmem:[%s1594_s25 + $0x250] sm:$0xff] }
  0x48   : > { %v412_v42 = vld [vmem:[%s1594_s25 + $0x260] sm:$0xff]  ;;  %409 = vst [vmem:[%s1599_s6 + $0x120] sm:$0xff] %v408_v40  ;;  %411 = vst [vmem:[%s1599_s6 + $0x128] sm:$0xff] %v410_v41  ;;  %v414_v43 = vld [vmem:[%s1594_s25 + $0x270] sm:$0xff] }
  0x49   : > { %413 = vst [vmem:[%s1599_s6 + $0x130] sm:$0xff] %v412_v42  ;;  %v416_v44 = vld [vmem:[%s1594_s25 + $0x280] sm:$0xff]  ;;  %v418_v45 = vld [vmem:[%s1594_s25 + $0x290] sm:$0xff]  ;;  %415 = vst [vmem:[%s1599_s6 + $0x138] sm:$0xff] %v414_v43 }
  0x4a   : > { %417 = vst [vmem:[%s1599_s6 + $0x140] sm:$0xff] %v416_v44  ;;  %419 = vst [vmem:[%s1599_s6 + $0x148] sm:$0xff] %v418_v45  ;;  %v420_v46 = vld [vmem:[%s1594_s25 + $0x2a0] sm:$0xff]  ;;  %v422_v47 = vld [vmem:[%s1594_s25 + $0x2b0] sm:$0xff] }
  0x4b   : > { %v424_v48 = vld [vmem:[%s1594_s25 + $0x2c0] sm:$0xff]  ;;  %421 = vst [vmem:[%s1599_s6 + $0x150] sm:$0xff] %v420_v46  ;;  %423 = vst [vmem:[%s1599_s6 + $0x158] sm:$0xff] %v422_v47  ;;  %v426_v49 = vld [vmem:[%s1594_s25 + $0x2d0] sm:$0xff] }
  0x4c   : > { %425 = vst [vmem:[%s1599_s6 + $0x160] sm:$0xff] %v424_v48  ;;  %v428_v50 = vld [vmem:[%s1594_s25 + $0x2e0] sm:$0xff]  ;;  %v430_v51 = vld [vmem:[%s1594_s25 + $0x2f0] sm:$0xff]  ;;  %427 = vst [vmem:[%s1599_s6 + $0x168] sm:$0xff] %v426_v49 }
  0x4d   : > { %429 = vst [vmem:[%s1599_s6 + $0x170] sm:$0xff] %v428_v50  ;;  %431 = vst [vmem:[%s1599_s6 + $0x178] sm:$0xff] %v430_v51 }
  0x4e PF: > { %p1128_p0 = scmp.ge.s32.totalorder %s1456_s22, 1  ;;  %p444_p1 = scmp.lt.s32.totalorder %s1456_s22, 13 }
  0x50   : > { %p445_p2 = pnand %p1128_p0, %p444_p1 }
  0x51   : > { %s451_s0 = sand.u32 (!%p445_p2), 1, %s1432_s16   ;;  %s458_s5 = sand.u32 (!%p445_p2), 1, %s1424_s14  }
  0x52   : > { %448 = sbr.rel (%p445_p2) target bundleno = 403 (0x193), region = 88  ;;  %s485_s28 = sand.u32 (!%p445_p2), 1, %s1416_s12  }
  0x53   : > { %s1202_s23 = smul.u32 (!%p445_p2), 24, %s451_s0  ;;  %s1129_s7 = sshll.u32 (!%p445_p2), %s485_s28, 4 }
  0x54   : > { %s1203_s25 = smul.u32 (!%p445_p2), 384, %s458_s5  ;;  %s1130_s11 = sshll.u32 (!%p445_p2), %s1444_s19, 1 }
  0x55   : > { %p493_p3 = scmp.lt.s32.totalorder (!%p445_p2), %s1130_s11, 3  ;;  %s1706_s27 = scalar_lea.vmem (!%p445_p2), [#allocation3], %s1202_s23 }
  0x56   : > { %s1708_s6 = scalar_lea.vmem (!%p445_p2), [#allocation4], %s1203_s25  ;;  %s1710_s1 = scalar_lea.vmem (!%p445_p2), [#allocation5], %s1129_s7 }
  0x57   : > { %p1131_p4 = scmp.ne.s32.totalorder (!%p445_p2), %s1440_s18, 0 }
  0x59   : > { %s1844_s11 = smov (!%p493_p3, %s1130_s11), 3  ;;  %503 = sbr.rel (%p1131_p4) target bundleno = 96 (0x60), region = 100 }
  0x5a   : > { %s495_s4 = scalar_lea.vmem %s1815_s2, %s1844_s11  ;;  %v1458_v52 = vmov (!%p1131_p4), 0.0  }
  0x5b   : > { %504 = vst [vmem:[#allocation2] sm:$0xff] (!%p1131_p4), %v1458_v52  ;;  %505 = vst [vmem:[#allocation2 + $0x8] sm:$0xff] (!%p1131_p4), %v1458_v52 }
  0x5c   : > { %506 = vst [vmem:[#allocation2 + $0x10] sm:$0xff] (!%p1131_p4), %v1458_v52  ;;  %507 = vst [vmem:[#allocation2 + $0x18] sm:$0xff] (!%p1131_p4), %v1458_v52 }
  0x60 PF: > { %v1294_v53 = vld [vmem:[%s1708_s6 + $0x4] ss:$8 sps:$4 sm:$0xff]   ;;  %v1296_v54 = vld [vmem:[%s1708_s6] ss:$8 sps:$4 sm:$0xff]   ;;  %v1459_v55 = vmov 0   ;;  %p1183_p5 = scmp.ne.s32.totalorder %s1440_s18, 5 }
  0x61   : > { %895 = vmatprep.mubr.bf16.mxu0 %v1459_v55  ;;  %820 = vmatprep.subr.bf16.mxu1 %v1294_v53  ;;  %v1297_v56 = vld [vmem:[%s1708_s6 + $0x14] ss:$8 sps:$4 sm:$0xff]   ;;  %v1299_v57 = vld [vmem:[%s1708_s6 + $0x10] ss:$8 sps:$4 sm:$0xff]   ;;  %v1300_v58 = vld [vmem:[%s1708_s6 + $0x24] ss:$8 sps:$4 sm:$0xff]  }
  0x62   : > { %821 = vmatpush1.bf16.msra.mxu1 %v1296_v54  ;;  %v1302_v59 = vld [vmem:[%s1708_s6 + $0x20] ss:$8 sps:$4 sm:$0xff]   ;;  %v1303_v60 = vld [vmem:[%s1708_s6 + $0x34] ss:$8 sps:$4 sm:$0xff]   ;;  %v1305_v61 = vld [vmem:[%s1708_s6 + $0x30] ss:$8 sps:$4 sm:$0xff]  }
  0x63   : > { %822 = vmatprep.subr.bf16.mxu1 %v1297_v56  ;;  %v1318_v62 = vld [vmem:[%s1708_s6 + $0x104] ss:$8 sps:$4 sm:$0xff]   ;;  %v1320_v63 = vld [vmem:[%s1708_s6 + $0x100] ss:$8 sps:$4 sm:$0xff]   ;;  %v1324_v1 = vld [vmem:[%s1708_s6 + $0x114] ss:$8 sps:$4 sm:$0xff]  }
  0x64   : > { %v1306_v0 = vld [vmem:[%s1708_s6 + $0x44] ss:$8 sps:$4 sm:$0xff]   ;;  %863 = vmatprep.subr.bf16.mxu0 %v1318_v62  ;;  %v1326_v2 = vld [vmem:[%s1708_s6 + $0x110] ss:$8 sps:$4 sm:$0xff]   ;;  %v1308_v3 = vld [vmem:[%s1708_s6 + $0x40] ss:$8 sps:$4 sm:$0xff]  }
  0x65   : > { %864 = vmatpush1.bf16.msra.mxu0 %v1320_v63  ;;  %v1309_v4 = vld [vmem:[%s1708_s6 + $0x54] ss:$8 sps:$4 sm:$0xff]   ;;  %v1330_v5 = vld [vmem:[%s1708_s6 + $0x124] ss:$8 sps:$4 sm:$0xff]   ;;  %v1332_v6 = vld [vmem:[%s1708_s6 + $0x120] ss:$8 sps:$4 sm:$0xff]  }
  0x66   : > { %823 = vmatpush1.bf16.msra.mxu1 %v1299_v57  ;;  %865 = vmatprep.subr.bf16.mxu0 %v1324_v1  ;;  %v1311_v7 = vld [vmem:[%s1708_s6 + $0x50] ss:$8 sps:$4 sm:$0xff]   ;;  %v1336_v8 = vld [vmem:[%s1708_s6 + $0x134] ss:$8 sps:$4 sm:$0xff]   ;;  %v1312_v9 = vld [vmem:[%s1708_s6 + $0x64] ss:$8 sps:$4 sm:$0xff]  }
  0x67   : > { %824 = vmatprep.subr.bf16.mxu1 %v1300_v58  ;;  %v1338_v10 = vld [vmem:[%s1708_s6 + $0x130] ss:$8 sps:$4 sm:$0xff]   ;;  %v1314_v11 = vld [vmem:[%s1708_s6 + $0x60] ss:$8 sps:$4 sm:$0xff]   ;;  %v1342_v12 = vld [vmem:[%s1708_s6 + $0x144] ss:$8 sps:$4 sm:$0xff]  }
  0x68   : > { %v1315_v13 = vld [vmem:[%s1708_s6 + $0x74] ss:$8 sps:$4 sm:$0xff]   ;;  %v1344_v14 = vld [vmem:[%s1708_s6 + $0x140] ss:$8 sps:$4 sm:$0xff]   ;;  %v1317_v15 = vld [vmem:[%s1708_s6 + $0x70] ss:$8 sps:$4 sm:$0xff]  }
  0x69   : > { %866 = vmatpush1.bf16.msra.mxu0 %v1326_v2  ;;  %v1348_v16 = vld [vmem:[%s1708_s6 + $0x154] ss:$8 sps:$4 sm:$0xff]   ;;  %v1321_v17 = vld [vmem:[%s1708_s6 + $0x84] ss:$8 sps:$4 sm:$0xff]   ;;  %v1350_v18 = vld [vmem:[%s1708_s6 + $0x150] ss:$8 sps:$4 sm:$0xff]  }
  0x6a   : > { %825 = vmatpush1.bf16.msra.mxu1 %v1302_v59  ;;  %867 = vmatprep.subr.bf16.mxu0 %v1330_v5  ;;  %v1323_v19 = vld [vmem:[%s1708_s6 + $0x80] ss:$8 sps:$4 sm:$0xff]   ;;  %v1354_v20 = vld [vmem:[%s1708_s6 + $0x164] ss:$8 sps:$4 sm:$0xff]   ;;  %v1327_v21 = vld [vmem:[%s1708_s6 + $0x94] ss:$8 sps:$4 sm:$0xff]  }
  0x6b   : > { %826 = vmatprep.subr.bf16.mxu1 %v1303_v60  ;;  %v1356_v22 = vld [vmem:[%s1708_s6 + $0x160] ss:$8 sps:$4 sm:$0xff]   ;;  %v1329_v24 = vld [vmem:[%s1708_s6 + $0x90] ss:$8 sps:$4 sm:$0xff]   ;;  %v1360_v25 = vld [vmem:[%s1708_s6 + $0x174] ss:$8 sps:$4 sm:$0xff]  }
  0x6c   : > { %v1369_v23 = vld [vmem:[%s1706_s27 + $0x4] ss:$12 sps:$4 sm:$0xff]   ;;  %v1366_v30 = vld [vmem:[%s1706_s27 + $0x8] ss:$12 sps:$4 sm:$0xff]   ;;  %v1367_v40 = vld [vmem:[%s1706_s27] ss:$12 sps:$4 sm:$0xff]  }
  0x6d   : > { %868 = vmatpush1.bf16.msra.mxu0 %v1332_v6  ;;  %v1333_v26 = vld [vmem:[%s1708_s6 + $0xa4] ss:$8 sps:$4 sm:$0xff]   ;;  %852 = vmatprep.mubr.bf16.mxu1 %v1369_v23  ;;  %v1362_v27 = vld [vmem:[%s1708_s6 + $0x170] ss:$8 sps:$4 sm:$0xff]   ;;  %v1335_v28 = vld [vmem:[%s1708_s6 + $0xa0] ss:$8 sps:$4 sm:$0xff]  }
  0x6e   : > { %827 = vmatpush1.bf16.msra.mxu1 %v1305_v61  ;;  %869 = vmatprep.subr.bf16.mxu0 %v1336_v8  ;;  %v1339_v29 = vld [vmem:[%s1708_s6 + $0xb4] ss:$8 sps:$4 sm:$0xff]   ;;  %v1341_v31 = vld [vmem:[%s1708_s6 + $0xb0] ss:$8 sps:$4 sm:$0xff]   ;;  %v1345_v32 = vld [vmem:[%s1708_s6 + $0xc4] ss:$8 sps:$4 sm:$0xff]   ;;  %v924_v61 = vlaneseq (!%p1183_p5) }
  0x6f   : > { %828 = vmatprep.subr.bf16.mxu1 %v1306_v0  ;;  %v1347_v33 = vld [vmem:[%s1708_s6 + $0xc0] ss:$8 sps:$4 sm:$0xff]   ;;  %v1351_v34 = vld [vmem:[%s1708_s6 + $0xd4] ss:$8 sps:$4 sm:$0xff]   ;;  %v1353_v35 = vld [vmem:[%s1708_s6 + $0xd0] ss:$8 sps:$4 sm:$0xff]  }
  0x70   : > { %v1357_v36 = vld [vmem:[%s1708_s6 + $0xe4] ss:$8 sps:$4 sm:$0xff]   ;;  %v1359_v37 = vld [vmem:[%s1708_s6 + $0xe0] ss:$8 sps:$4 sm:$0xff]   ;;  %v1363_v38 = vld [vmem:[%s1708_s6 + $0xf4] ss:$8 sps:$4 sm:$0xff]  }
  0x71   : > { %870 = vmatpush1.bf16.msra.mxu0 %v1338_v10  ;;  %v1365_v39 = vld [vmem:[%s1708_s6 + $0xf0] ss:$8 sps:$4 sm:$0xff]   ;;  %v510_v51 = vld [vmem:[#allocation2 + $0x10] sm:$0xff]  ;;  %v511_v55 = vld [vmem:[#allocation2 + $0x18] sm:$0xff]  ;;  %v925_v62 = vshrl.u32 (!%p1183_p5), %v924_v61, 7 }
  0x72   : > { %829 = vmatpush1.bf16.msra.mxu1 %v1308_v3  ;;  %871 = vmatprep.subr.bf16.mxu0 %v1342_v12  ;;  %v508_v45 = vld [vmem:[#allocation2] sm:$0xff]  ;;  %v509_v48 = vld [vmem:[#allocation2 + $0x8] sm:$0xff] }
  0x73   : > { %830 = vmatprep.subr.bf16.mxu1 %v1309_v4  ;;  %v922_v63 = vld [vmem:[%s495_s4] sm:$0x3] (!%p1183_p5)  ;;  %v926_v1 = vsub.s32 (!%p1183_p5), 0, %v925_v62  ;;  %v930_v2 = vsub.s32 (!%p1183_p5), 1, %v925_v62 }
  0x75   : > { %872 = vmatpush1.bf16.msra.mxu0 %v1344_v14  ;;  %v927_v6 = vrot.slane (!%p1183_p5), %v922_v63, %v926_v1 }
  0x76   : > { %831 = vmatpush1.bf16.msra.mxu1 %v1311_v7  ;;  %873 = vmatprep.subr.bf16.mxu0 %v1348_v16  ;;  %v931_v7 = vrot.slane (!%p1183_p5), %v922_v63, %v930_v2 }
  0x77   : > { %832 = vmatprep.subr.bf16.mxu1 %v1312_v9 }
  0x79   : > { %874 = vmatpush1.bf16.msra.mxu0 %v1350_v18 }
  0x7a   : > { %833 = vmatpush1.bf16.msra.mxu1 %v1314_v11  ;;  %875 = vmatprep.subr.bf16.mxu0 %v1354_v20 }
  0x7b   : > { %834 = vmatprep.subr.bf16.mxu1 %v1315_v13 }
  0x7d   : > { %876 = vmatpush1.bf16.msra.mxu0 %v1356_v22 }
  0x7e   : > { %835 = vmatpush1.bf16.msra.mxu1 %v1317_v15  ;;  %877 = vmatprep.subr.bf16.mxu0 %v1360_v25 }
  0x7f   : > { %836 = vmatprep.subr.bf16.mxu1 %v1321_v17 }
  0x81   : > { %878 = vmatpush1.bf16.msra.mxu0 %v1362_v27 }
  0x82   : > { %837 = vmatpush1.bf16.msra.mxu1 %v1323_v19 }
  0x83   : > { %838 = vmatprep.subr.bf16.mxu1 %v1327_v21 }
  0x84   : > { %896 = vmatmul.mubr.bf16.vlgmr.msra.gmra.mrb[0].mxu0 %v1366_v30 }
  0x86   : > { %839 = vmatpush1.bf16.msra.mxu1 %v1329_v24 }
  0x87   : > { %840 = vmatprep.subr.bf16.mxu1 %v1333_v26 }
  0x8a   : > { %841 = vmatpush1.bf16.msra.mxu1 %v1335_v28 }
  0x8b   : > { %842 = vmatprep.subr.bf16.mxu1 %v1339_v29 }
  0x8e   : > { %843 = vmatpush1.bf16.msra.mxu1 %v1341_v31 }
  0x8f   : > { %844 = vmatprep.subr.bf16.mxu1 %v1345_v32 }
  0x92   : > { %845 = vmatpush1.bf16.msra.mxu1 %v1347_v33 }
  0x93   : > { %846 = vmatprep.subr.bf16.mxu1 %v1351_v34 }
  0x96   : > { %847 = vmatpush1.bf16.msra.mxu1 %v1353_v35 }
  0x97   : > { %848 = vmatprep.subr.bf16.mxu1 %v1357_v36 }
  0x9a   : > { %849 = vmatpush1.bf16.msra.mxu1 %v1359_v37 }
  0x9b   : > { %850 = vmatprep.subr.bf16.mxu1 %v1363_v38 }
  0x9e   : > { %851 = vmatpush1.bf16.msra.mxu1 %v1365_v39 }
  0xa1   : > { %853 = vmatmul.mubr.bf16.vlgmr.msra.gmra.mrb[0].mxu1 %v1367_v40 }
 0x157   : > { %v897_v41 = vpop.f32.mrb[0].mxu0 }
 0x158   : > { %v899_v42 = vpop.f32.mrb[1].mxu0 }
 0x159   : > { %v901_v43 = vpop.f32.mrb[2].mxu0 }
 0x15a   : > { %v903_v44 = vpop.f32.mrb[3].mxu0 }
 0x174   : > { %v854_v46 = vpop.f32.mrb[0].mxu1 }
 0x175   : > { %v898_v47 = vadd.f32 %v897_v41, %v854_v46  ;;  %v856_v49 = vpop.f32.mrb[1].mxu1 }
 0x176   : > { %v900_v50 = vadd.f32 %v899_v42, %v856_v49  ;;  %v858_v52 = vpop.f32.mrb[2].mxu1  ;;  %917 = sbr.rel (%p1183_p5) target bundleno = 395 (0x18b), region = 104 }
 0x177   : > { %v906_v53 = vadd.f32 %v898_v47, %v508_v45  ;;  %v902_v54 = vadd.f32 %v901_v43, %v858_v52  ;;  %v860_v56 = vpop.f32.mrb[3].mxu1 }
 0x178   : > { %v907_v57 = vadd.f32 %v900_v50, %v509_v48  ;;  %v904_v58 = vadd.f32 %v903_v44, %v860_v56 }
 0x179   : > { %910 = vst [vmem:[#allocation2] sm:$0xff] %v906_v53  ;;  %v908_v59 = vadd.f32 %v902_v54, %v510_v51 }
 0x17a   : > { %911 = vst [vmem:[#allocation2 + $0x8] sm:$0xff] %v907_v57  ;;  %v909_v60 = vadd.f32 %v904_v58, %v511_v55 }
 0x17b   : > { %912 = vst [vmem:[#allocation2 + $0x10] sm:$0xff] %v908_v59 }
 0x17c   : > { %913 = vst [vmem:[#allocation2 + $0x18] sm:$0xff] %v909_v60 }
 0x180   : > { %v918_v0 = vld [vmem:[#allocation2] sm:$0xff] }
 0x181   : > { %v919_v3 = vld [vmem:[#allocation2 + $0x8] sm:$0xff]  ;;  %v934_v8 = vadd.f32 %v927_v6, %v918_v0 }
 0x182   : > { %v920_v4 = vld [vmem:[#allocation2 + $0x10] sm:$0xff]  ;;  %v935_v9 = vadd.f32 %v931_v7, %v919_v3 }
 0x183   : > { %v921_v5 = vld [vmem:[#allocation2 + $0x18] sm:$0xff]  ;;  %v936_v10 = vadd.f32 %v927_v6, %v920_v4  ;;  %v938_v12 = vmax.f32 %v934_v8, 0.0 }
 0x184   : > { %v937_v11 = vadd.f32 %v931_v7, %v921_v5  ;;  %v939_v13 = vmax.f32 %v935_v9, 0.0 }
 0x185   : > { %v940_v14 = vmax.f32 %v936_v10, 0.0 }
 0x186   : > { %v941_v15 = vmax.f32 %v937_v11, 0.0  ;;  %v1193_v16 = vpack.c.bf16 %v939_v13, %v938_v12 }
 0x188   : > { %v1194_v17 = vpack.c.bf16 %v941_v15, %v940_v14  ;;  %954 = vst [vmem:[%s1710_s1] sm:$0xff] %v1193_v16 }
 0x18a   : > { %955 = vst [vmem:[%s1710_s1 + $0x8] sm:$0xff] %v1194_v17 }
 0x18b PF: > { %962 = sbr.rel (!%p1574_p12) target bundleno = 403 (0x193), region = 108  ;;  %s1195_s16 = sshll.u32 (%p1574_p12), %s1444_s19, 3 }
 0x18c   : > { %s968_s5 = scalar_lea.vmem (%p1574_p12), %s1816_s3, %s1195_s16 }
 0x18f   : > { %v998_v18 = vld [vmem:[%s1710_s1] sm:$0xff] (%p1574_p12) }
 0x190   : > { %999 = vst [vmem:[%s968_s5] sm:$0xff] (%p1574_p12), %v998_v18 }
 0x191   : > { %v1000_v19 = vld [vmem:[%s1710_s1 + $0x8] sm:$0xff] (%p1574_p12) }
 0x192   : > { %1001 = vst [vmem:[%s968_s5 + $0x10] sm:$0xff] %v1000_v19 }
 0x193 PF: > { %s13_s22 = sadd.s32 1, %s1456_s22   ;;  %s1826_s1 = sld [smem:[#allocation6_spill]] }
 0x194   : > { %p10_p6 = scmp.ge.s32.totalorder %s13_s22, 14   ;;  %s1827_s12 = smov %s1420_s13 }
 0x195   : > { %s1828_s13 = smov %s1572_s9  ;;  %s1829_s14 = smov %s1428_s15 }
 0x196   : > { %s1830_s15 = smov %s1569_s8  ;;  %s1831_s16 = smov %s1436_s17 }
 0x197   : > { %s1832_s17 = smov %s1555_s30  ;;  %s1833_s18 = smov %s1448_s20 }
 0x198   : > { %s1834_s19 = smov %s1452_s21  ;;  %s1835_s20 = smov %s1838_s24 }
 0x199   : > { %s1836_s21 = smov %s1826_s1  ;;  %12 = sbr.rel (!%p10_p6) target bundleno = 9 (0x9), region = 194 }

// kernel: _lambda_.21
= control target key start
LH: loop header
LB: loop body
LE: loop exit
PB: predicated region body
PF: predicated region fallthrough
CT: control target
= control target key end

     0   :  { %s1547_s12 = smov 0   ;;  %s1549_s13 = smov 0   ;;  %s1837_s0 = inlined_call_operand.vmem [shape: bf16[16,512], index: 0, kind: input, shape index: {}]   ;;  %s1838_s1 = inlined_call_operand.vmem [shape: bf16[512,2048], index: 1, kind: input, shape index: {}]   ;;  %s1839_s2 = inlined_call_operand.vmem [shape: f32[1,2048], index: 2, kind: input, shape index: {}]   ;;  %s1840_s3 = inlined_call_operand.vmem [shape: bf16[16,2048], index: 3, kind: output, shape index: {}]  }
   0x1   :  { %s1551_s14 = smov 0   ;;  %s1553_s15 = smov 0  }
   0x2   :  { %s1555_s16 = smov 0  }
   0x3 LB: > { %s28_s17 = sadd.s32 1, %s1521_s15  ;;  %s1250_s18 = sadd.s32 4294967295, %s1525_s16   ;;  %s1525_s16 = sphi %s1555_s16, %s13_s16   ;;  %s1521_s15 = sphi %s1553_s15, %s1845_s15   ;;  %s1517_s14 = sphi %s1551_s14, %s1844_s14   ;;  %s1513_s13 = sphi %s1549_s13, %s1843_s13   ;;  %s1509_s12 = sphi %s1547_s12, %s1842_s12  }
   0x4   : > { %p30_p0 = scmp.ge.s32.totalorder %s28_s17, 8  ;;  %p76_p1 = scmp.ne.s32.totalorder %s1513_s13, %s1509_s12 }
   0x5   : > { %p77_p2 = scmp.eq.s32.totalorder %s1525_s16, 0  ;;  %p134_p4 = scmp.eq.s32.totalorder %s1250_s18, 7 }
   0x6   : > { %s1847_s17 = smov (%p30_p0, %s28_s17), 0  ;;  %s69_s20 = sadd.s32 1, %s1513_s13 }
   0x7   : > { %p78_p3 = por %p77_p2, %p76_p1  ;;  %s65_s19 = ssub.s32 %s1521_s15, %s1847_s17 }
   0x8   : > { %p67_p5 = scmp.eq.s32.totalorder %s65_s19, 0  ;;  %p1582_p6 = por %p134_p4, %p76_p1 }
   0x9   : > { %p1254_p7 = scmp.ge.s32.totalorder %s1525_s16, 8 }
   0xa   : > { %s1587_s22 = scalar_select %p67_p5, %s1513_s13, %s69_s20  }
   0xb   : > { %171 = sbr.rel (%p1254_p7) target bundleno = 86 (0x56), region = 20 }
  0x12   : > { %174 = sbr.rel (!%p78_p3) target bundleno = 86 (0x56), region = 24  ;;  %s176_s23 = sand.u32 (%p78_p3), 1, %s1513_s13  }
  0x13   : > { %s1337_s24 = sshll.u32 (%p78_p3), %s1521_s15, 3  ;;  %s1255_s25 = sshll.u32 (%p78_p3), %s176_s23, 9 }
  0x14   : > { %s1595_s28 = scalar_lea.vmem (%p78_p3), %s1838_s1, %s1337_s24  ;;  %s1600_s29 = scalar_lea.vmem (%p78_p3), [#allocation3], %s1255_s25 }
  0x15   : > { %v338_v0 = vld [vmem:[%s1595_s28] sm:$0xff] (%p78_p3) }
  0x16   : > { %v340_v1 = vld [vmem:[%s1595_s28 + $0x40] sm:$0xff] (%p78_p3)  ;;  %339 = vst [vmem:[%s1600_s29] sm:$0xff] (%p78_p3), %v338_v0 }
  0x17   : > { %v342_v2 = vld [vmem:[%s1595_s28 + $0x80] sm:$0xff] (%p78_p3)  ;;  %341 = vst [vmem:[%s1600_s29 + $0x8] sm:$0xff] (%p78_p3), %v340_v1 }
  0x18   : > { %343 = vst [vmem:[%s1600_s29 + $0x10] sm:$0xff] (%p78_p3), %v342_v2  ;;  %v344_v3 = vld [vmem:[%s1595_s28 + $0xc0] sm:$0xff] (%p78_p3) }
  0x19   : > { %v346_v4 = vld [vmem:[%s1595_s28 + $0x100] sm:$0xff]  ;;  %345 = vst [vmem:[%s1600_s29 + $0x18] sm:$0xff] %v344_v3 }
  0x1a   : > { %v348_v5 = vld [vmem:[%s1595_s28 + $0x140] sm:$0xff]  ;;  %347 = vst [vmem:[%s1600_s29 + $0x20] sm:$0xff] %v346_v4 }
  0x1b   : > { %349 = vst [vmem:[%s1600_s29 + $0x28] sm:$0xff] %v348_v5  ;;  %v350_v6 = vld [vmem:[%s1595_s28 + $0x180] sm:$0xff] }
  0x1c   : > { %v352_v7 = vld [vmem:[%s1595_s28 + $0x1c0] sm:$0xff]  ;;  %351 = vst [vmem:[%s1600_s29 + $0x30] sm:$0xff] %v350_v6 }
  0x1d   : > { %v354_v8 = vld [vmem:[%s1595_s28 + $0x200] sm:$0xff]  ;;  %353 = vst [vmem:[%s1600_s29 + $0x38] sm:$0xff] %v352_v7 }
  0x1e   : > { %355 = vst [vmem:[%s1600_s29 + $0x40] sm:$0xff] %v354_v8  ;;  %v356_v9 = vld [vmem:[%s1595_s28 + $0x240] sm:$0xff] }
  0x1f   : > { %v358_v10 = vld [vmem:[%s1595_s28 + $0x280] sm:$0xff]  ;;  %357 = vst [vmem:[%s1600_s29 + $0x48] sm:$0xff] %v356_v9 }
  0x20   : > { %v360_v11 = vld [vmem:[%s1595_s28 + $0x2c0] sm:$0xff]  ;;  %359 = vst [vmem:[%s1600_s29 + $0x50] sm:$0xff] %v358_v10 }
  0x21   : > { %361 = vst [vmem:[%s1600_s29 + $0x58] sm:$0xff] %v360_v11  ;;  %v362_v12 = vld [vmem:[%s1595_s28 + $0x300] sm:$0xff] }
  0x22   : > { %v364_v13 = vld [vmem:[%s1595_s28 + $0x340] sm:$0xff]  ;;  %363 = vst [vmem:[%s1600_s29 + $0x60] sm:$0xff] %v362_v12 }
  0x23   : > { %v366_v14 = vld [vmem:[%s1595_s28 + $0x380] sm:$0xff]  ;;  %365 = vst [vmem:[%s1600_s29 + $0x68] sm:$0xff] %v364_v13 }
  0x24   : > { %367 = vst [vmem:[%s1600_s29 + $0x70] sm:$0xff] %v366_v14  ;;  %v368_v15 = vld [vmem:[%s1595_s28 + $0x3c0] sm:$0xff] }
  0x25   : > { %v370_v16 = vld [vmem:[%s1595_s28 + $0x400] sm:$0xff]  ;;  %369 = vst [vmem:[%s1600_s29 + $0x78] sm:$0xff] %v368_v15 }
  0x26   : > { %v372_v17 = vld [vmem:[%s1595_s28 + $0x440] sm:$0xff]  ;;  %371 = vst [vmem:[%s1600_s29 + $0x80] sm:$0xff] %v370_v16 }
  0x27   : > { %373 = vst [vmem:[%s1600_s29 + $0x88] sm:$0xff] %v372_v17  ;;  %v374_v18 = vld [vmem:[%s1595_s28 + $0x480] sm:$0xff] }
  0x28   : > { %v376_v19 = vld [vmem:[%s1595_s28 + $0x4c0] sm:$0xff]  ;;  %375 = vst [vmem:[%s1600_s29 + $0x90] sm:$0xff] %v374_v18 }
  0x29   : > { %v378_v20 = vld [vmem:[%s1595_s28 + $0x500] sm:$0xff]  ;;  %377 = vst [vmem:[%s1600_s29 + $0x98] sm:$0xff] %v376_v19 }
  0x2a   : > { %379 = vst [vmem:[%s1600_s29 + $0xa0] sm:$0xff] %v378_v20  ;;  %v380_v21 = vld [vmem:[%s1595_s28 + $0x540] sm:$0xff] }
  0x2b   : > { %v382_v22 = vld [vmem:[%s1595_s28 + $0x580] sm:$0xff]  ;;  %381 = vst [vmem:[%s1600_s29 + $0xa8] sm:$0xff] %v380_v21 }
  0x2c   : > { %v384_v23 = vld [vmem:[%s1595_s28 + $0x5c0] sm:$0xff]  ;;  %383 = vst [vmem:[%s1600_s29 + $0xb0] sm:$0xff] %v382_v22 }
  0x2d   : > { %385 = vst [vmem:[%s1600_s29 + $0xb8] sm:$0xff] %v384_v23  ;;  %v386_v24 = vld [vmem:[%s1595_s28 + $0x600] sm:$0xff] }
  0x2e   : > { %v388_v25 = vld [vmem:[%s1595_s28 + $0x640] sm:$0xff]  ;;  %387 = vst [vmem:[%s1600_s29 + $0xc0] sm:$0xff] %v386_v24 }
  0x2f   : > { %v390_v26 = vld [vmem:[%s1595_s28 + $0x680] sm:$0xff]  ;;  %389 = vst [vmem:[%s1600_s29 + $0xc8] sm:$0xff] %v388_v25 }
  0x30   : > { %391 = vst [vmem:[%s1600_s29 + $0xd0] sm:$0xff] %v390_v26  ;;  %v392_v27 = vld [vmem:[%s1595_s28 + $0x6c0] sm:$0xff] }
  0x31   : > { %v394_v28 = vld [vmem:[%s1595_s28 + $0x700] sm:$0xff]  ;;  %393 = vst [vmem:[%s1600_s29 + $0xd8] sm:$0xff] %v392_v27 }
  0x32   : > { %v396_v29 = vld [vmem:[%s1595_s28 + $0x740] sm:$0xff]  ;;  %395 = vst [vmem:[%s1600_s29 + $0xe0] sm:$0xff] %v394_v28 }
  0x33   : > { %397 = vst [vmem:[%s1600_s29 + $0xe8] sm:$0xff] %v396_v29  ;;  %v398_v30 = vld [vmem:[%s1595_s28 + $0x780] sm:$0xff] }
  0x34   : > { %v400_v31 = vld [vmem:[%s1595_s28 + $0x7c0] sm:$0xff]  ;;  %399 = vst [vmem:[%s1600_s29 + $0xf0] sm:$0xff] %v398_v30 }
  0x35   : > { %v402_v32 = vld [vmem:[%s1595_s28 + $0x800] sm:$0xff]  ;;  %401 = vst [vmem:[%s1600_s29 + $0xf8] sm:$0xff] %v400_v31 }
  0x36   : > { %403 = vst [vmem:[%s1600_s29 + $0x100] sm:$0xff] %v402_v32  ;;  %v404_v33 = vld [vmem:[%s1595_s28 + $0x840] sm:$0xff] }
  0x37   : > { %v406_v34 = vld [vmem:[%s1595_s28 + $0x880] sm:$0xff]  ;;  %405 = vst [vmem:[%s1600_s29 + $0x108] sm:$0xff] %v404_v33 }
  0x38   : > { %v408_v35 = vld [vmem:[%s1595_s28 + $0x8c0] sm:$0xff]  ;;  %407 = vst [vmem:[%s1600_s29 + $0x110] sm:$0xff] %v406_v34 }
  0x39   : > { %409 = vst [vmem:[%s1600_s29 + $0x118] sm:$0xff] %v408_v35  ;;  %v410_v36 = vld [vmem:[%s1595_s28 + $0x900] sm:$0xff] }
  0x3a   : > { %v412_v37 = vld [vmem:[%s1595_s28 + $0x940] sm:$0xff]  ;;  %411 = vst [vmem:[%s1600_s29 + $0x120] sm:$0xff] %v410_v36 }
  0x3b   : > { %v414_v38 = vld [vmem:[%s1595_s28 + $0x980] sm:$0xff]  ;;  %413 = vst [vmem:[%s1600_s29 + $0x128] sm:$0xff] %v412_v37 }
  0x3c   : > { %415 = vst [vmem:[%s1600_s29 + $0x130] sm:$0xff] %v414_v38  ;;  %v416_v39 = vld [vmem:[%s1595_s28 + $0x9c0] sm:$0xff] }
  0x3d   : > { %v418_v40 = vld [vmem:[%s1595_s28 + $0xa00] sm:$0xff]  ;;  %417 = vst [vmem:[%s1600_s29 + $0x138] sm:$0xff] %v416_v39 }
  0x3e   : > { %v420_v41 = vld [vmem:[%s1595_s28 + $0xa40] sm:$0xff]  ;;  %419 = vst [vmem:[%s1600_s29 + $0x140] sm:$0xff] %v418_v40 }
  0x3f   : > { %421 = vst [vmem:[%s1600_s29 + $0x148] sm:$0xff] %v420_v41  ;;  %v422_v42 = vld [vmem:[%s1595_s28 + $0xa80] sm:$0xff] }
  0x40   : > { %v424_v43 = vld [vmem:[%s1595_s28 + $0xac0] sm:$0xff]  ;;  %423 = vst [vmem:[%s1600_s29 + $0x150] sm:$0xff] %v422_v42 }
  0x41   : > { %v426_v44 = vld [vmem:[%s1595_s28 + $0xb00] sm:$0xff]  ;;  %425 = vst [vmem:[%s1600_s29 + $0x158] sm:$0xff] %v424_v43 }
  0x42   : > { %427 = vst [vmem:[%s1600_s29 + $0x160] sm:$0xff] %v426_v44  ;;  %v428_v45 = vld [vmem:[%s1595_s28 + $0xb40] sm:$0xff] }
  0x43   : > { %v430_v46 = vld [vmem:[%s1595_s28 + $0xb80] sm:$0xff]  ;;  %429 = vst [vmem:[%s1600_s29 + $0x168] sm:$0xff] %v428_v45 }
  0x44   : > { %v432_v47 = vld [vmem:[%s1595_s28 + $0xbc0] sm:$0xff]  ;;  %431 = vst [vmem:[%s1600_s29 + $0x170] sm:$0xff] %v430_v46 }
  0x45   : > { %433 = vst [vmem:[%s1600_s29 + $0x178] sm:$0xff] %v432_v47  ;;  %v434_v48 = vld [vmem:[%s1595_s28 + $0xc00] sm:$0xff] }
  0x46   : > { %v436_v49 = vld [vmem:[%s1595_s28 + $0xc40] sm:$0xff]  ;;  %435 = vst [vmem:[%s1600_s29 + $0x180] sm:$0xff] %v434_v48 }
  0x47   : > { %v438_v50 = vld [vmem:[%s1595_s28 + $0xc80] sm:$0xff]  ;;  %437 = vst [vmem:[%s1600_s29 + $0x188] sm:$0xff] %v436_v49 }
  0x48   : > { %439 = vst [vmem:[%s1600_s29 + $0x190] sm:$0xff] %v438_v50  ;;  %v440_v51 = vld [vmem:[%s1595_s28 + $0xcc0] sm:$0xff] }
  0x49   : > { %v442_v52 = vld [vmem:[%s1595_s28 + $0xd00] sm:$0xff]  ;;  %441 = vst [vmem:[%s1600_s29 + $0x198] sm:$0xff] %v440_v51 }
  0x4a   : > { %v444_v53 = vld [vmem:[%s1595_s28 + $0xd40] sm:$0xff]  ;;  %443 = vst [vmem:[%s1600_s29 + $0x1a0] sm:$0xff] %v442_v52 }
  0x4b   : > { %445 = vst [vmem:[%s1600_s29 + $0x1a8] sm:$0xff] %v444_v53  ;;  %v446_v54 = vld [vmem:[%s1595_s28 + $0xd80] sm:$0xff] }
  0x4c   : > { %v448_v55 = vld [vmem:[%s1595_s28 + $0xdc0] sm:$0xff]  ;;  %447 = vst [vmem:[%s1600_s29 + $0x1b0] sm:$0xff] %v446_v54 }
  0x4d   : > { %v450_v56 = vld [vmem:[%s1595_s28 + $0xe00] sm:$0xff]  ;;  %449 = vst [vmem:[%s1600_s29 + $0x1b8] sm:$0xff] %v448_v55 }
  0x4e   : > { %451 = vst [vmem:[%s1600_s29 + $0x1c0] sm:$0xff] %v450_v56  ;;  %v452_v57 = vld [vmem:[%s1595_s28 + $0xe40] sm:$0xff] }
  0x4f   : > { %v454_v58 = vld [vmem:[%s1595_s28 + $0xe80] sm:$0xff]  ;;  %453 = vst [vmem:[%s1600_s29 + $0x1c8] sm:$0xff] %v452_v57 }
  0x50   : > { %v456_v59 = vld [vmem:[%s1595_s28 + $0xec0] sm:$0xff]  ;;  %455 = vst [vmem:[%s1600_s29 + $0x1d0] sm:$0xff] %v454_v58 }
  0x51   : > { %457 = vst [vmem:[%s1600_s29 + $0x1d8] sm:$0xff] %v456_v59  ;;  %v458_v60 = vld [vmem:[%s1595_s28 + $0xf00] sm:$0xff] }
  0x52   : > { %v460_v61 = vld [vmem:[%s1595_s28 + $0xf40] sm:$0xff]  ;;  %459 = vst [vmem:[%s1600_s29 + $0x1e0] sm:$0xff] %v458_v60 }
  0x53   : > { %v462_v62 = vld [vmem:[%s1595_s28 + $0xf80] sm:$0xff]  ;;  %461 = vst [vmem:[%s1600_s29 + $0x1e8] sm:$0xff] %v460_v61 }
  0x54   : > { %463 = vst [vmem:[%s1600_s29 + $0x1f0] sm:$0xff] %v462_v62  ;;  %v464_v63 = vld [vmem:[%s1595_s28 + $0xfc0] sm:$0xff] }
  0x55   : > { %465 = vst [vmem:[%s1600_s29 + $0x1f8] sm:$0xff] %v464_v63 }
  0x56 PF: > { %p1258_p8 = scmp.ge.s32.totalorder %s1525_s16, 1  ;;  %p478_p9 = scmp.lt.s32.totalorder %s1525_s16, 9 }
  0x58   : > { %p479_p10 = pnand %p1258_p8, %p478_p9 }
  0x59   : > { %s485_s30 = sand.u32 (!%p479_p10), 1, %s1509_s12   ;;  %v1483_v0 = vld [vmem:[%s1837_s0 + $0x4] ss:$16 sps:$4 sm:$0xff] (!%p479_p10)   ;;  %v1486_v1 = vld [vmem:[%s1837_s0 + $0xc] ss:$16 sps:$4 sm:$0xff] (!%p479_p10)   ;;  %s1261_s20 = sshll.u32 (!%p479_p10), %s1517_s14, 1 }
  0x5a   : > { %482 = sbr.rel (%p479_p10) target bundleno = 390 (0x186), region = 66  ;;  %s1259_s4 = sshll.u32 (!%p479_p10), %s485_s30, 9  ;;  %994 = vmatprep.mubr.bf16.mxu1 (!%p479_p10), %v1483_v0  ;;  %1037 = vmatprep.mubr.bf16.mxu0 (!%p479_p10), %v1486_v1 }
  0x5b   : > { %s1738_s9 = scalar_lea.vmem (!%p479_p10), [#allocation3], %s1259_s4  ;;  %p536_p11 = scmp.lt.s32.totalorder (!%p479_p10), %s1261_s20, 15 }
  0x5c   : > { %v1385_v2 = vld [vmem:[%s1738_s9 + $0x4] ss:$8 sps:$4 sm:$0xff] (!%p479_p10)   ;;  %v1389_v4 = vld [vmem:[%s1738_s9] ss:$8 sps:$4 sm:$0xff] (!%p479_p10)   ;;  %v1391_v6 = vld [vmem:[%s1738_s9 + $0x14] ss:$8 sps:$4 sm:$0xff] (!%p479_p10)  }
  0x5d   : > { %v1387_v3 = vld [vmem:[%s1738_s9 + $0x104] ss:$8 sps:$4 sm:$0xff] (!%p479_p10)   ;;  %962 = vmatprep.subr.bf16.mxu1 (!%p479_p10), %v1385_v2  ;;  %v1390_v5 = vld [vmem:[%s1738_s9 + $0x100] ss:$8 sps:$4 sm:$0xff] (!%p479_p10)   ;;  %v1393_v7 = vld [vmem:[%s1738_s9 + $0x114] ss:$8 sps:$4 sm:$0xff] (!%p479_p10)  }
  0x5e   : > { %1005 = vmatprep.subr.bf16.mxu0 (!%p479_p10), %v1387_v3  ;;  %963 = vmatpush1.bf16.msra.mxu1 (!%p479_p10), %v1389_v4  ;;  %v1395_v8 = vld [vmem:[%s1738_s9 + $0x10] ss:$8 sps:$4 sm:$0xff] (!%p479_p10)   ;;  %v1397_v10 = vld [vmem:[%s1738_s9 + $0x24] ss:$8 sps:$4 sm:$0xff] (!%p479_p10)   ;;  %v1401_v12 = vld [vmem:[%s1738_s9 + $0x20] ss:$8 sps:$4 sm:$0xff] (!%p479_p10)   ;;  %v1065_v4 = vlaneseq (!%p479_p10) }
  0x5f   : > { %1006 = vmatpush1.bf16.msra.mxu0 (!%p479_p10), %v1390_v5  ;;  %964 = vmatprep.subr.bf16.mxu1 (!%p479_p10), %v1391_v6  ;;  %v1396_v9 = vld [vmem:[%s1738_s9 + $0x110] ss:$8 sps:$4 sm:$0xff] (!%p479_p10)   ;;  %v1399_v11 = vld [vmem:[%s1738_s9 + $0x124] ss:$8 sps:$4 sm:$0xff] (!%p479_p10)   ;;  %v1402_v13 = vld [vmem:[%s1738_s9 + $0x120] ss:$8 sps:$4 sm:$0xff] (!%p479_p10)  }
  0x60   : > { %1007 = vmatprep.subr.bf16.mxu0 (!%p479_p10), %v1393_v7  ;;  %v1403_v14 = vld [vmem:[%s1738_s9 + $0x34] ss:$8 sps:$4 sm:$0xff] (!%p479_p10)   ;;  %v1407_v16 = vld [vmem:[%s1738_s9 + $0x30] ss:$8 sps:$4 sm:$0xff] (!%p479_p10)   ;;  %v1409_v18 = vld [vmem:[%s1738_s9 + $0x44] ss:$8 sps:$4 sm:$0xff] (!%p479_p10)  }
  0x61   : > { %v1405_v15 = vld [vmem:[%s1738_s9 + $0x134] ss:$8 sps:$4 sm:$0xff]   ;;  %v1408_v17 = vld [vmem:[%s1738_s9 + $0x130] ss:$8 sps:$4 sm:$0xff]   ;;  %v1411_v19 = vld [vmem:[%s1738_s9 + $0x144] ss:$8 sps:$4 sm:$0xff]  }
  0x62   : > { %965 = vmatpush1.bf16.msra.mxu1 %v1395_v8  ;;  %v1413_v20 = vld [vmem:[%s1738_s9 + $0x40] ss:$8 sps:$4 sm:$0xff]   ;;  %v1415_v22 = vld [vmem:[%s1738_s9 + $0x54] ss:$8 sps:$4 sm:$0xff]   ;;  %v1419_v24 = vld [vmem:[%s1738_s9 + $0x50] ss:$8 sps:$4 sm:$0xff]  }
  0x63   : > { %1008 = vmatpush1.bf16.msra.mxu0 %v1396_v9  ;;  %966 = vmatprep.subr.bf16.mxu1 %v1397_v10  ;;  %v1414_v21 = vld [vmem:[%s1738_s9 + $0x140] ss:$8 sps:$4 sm:$0xff]   ;;  %v1417_v23 = vld [vmem:[%s1738_s9 + $0x154] ss:$8 sps:$4 sm:$0xff]   ;;  %v1420_v25 = vld [vmem:[%s1738_s9 + $0x150] ss:$8 sps:$4 sm:$0xff]  }
  0x64   : > { %1009 = vmatprep.subr.bf16.mxu0 %v1399_v11  ;;  %v1421_v26 = vld [vmem:[%s1738_s9 + $0x64] ss:$8 sps:$4 sm:$0xff]   ;;  %v1425_v28 = vld [vmem:[%s1738_s9 + $0x60] ss:$8 sps:$4 sm:$0xff]   ;;  %v1427_v30 = vld [vmem:[%s1738_s9 + $0x74] ss:$8 sps:$4 sm:$0xff]  }
  0x65   : > { %v1423_v27 = vld [vmem:[%s1738_s9 + $0x164] ss:$8 sps:$4 sm:$0xff]   ;;  %v1426_v29 = vld [vmem:[%s1738_s9 + $0x160] ss:$8 sps:$4 sm:$0xff]   ;;  %v1429_v31 = vld [vmem:[%s1738_s9 + $0x174] ss:$8 sps:$4 sm:$0xff]  }
  0x66   : > { %967 = vmatpush1.bf16.msra.mxu1 %v1401_v12  ;;  %v1431_v32 = vld [vmem:[%s1738_s9 + $0x70] ss:$8 sps:$4 sm:$0xff]   ;;  %v1433_v34 = vld [vmem:[%s1738_s9 + $0x84] ss:$8 sps:$4 sm:$0xff]   ;;  %v1437_v36 = vld [vmem:[%s1738_s9 + $0x80] ss:$8 sps:$4 sm:$0xff]  }
  0x67   : > { %1010 = vmatpush1.bf16.msra.mxu0 %v1402_v13  ;;  %968 = vmatprep.subr.bf16.mxu1 %v1403_v14  ;;  %v1432_v33 = vld [vmem:[%s1738_s9 + $0x170] ss:$8 sps:$4 sm:$0xff]   ;;  %v1435_v35 = vld [vmem:[%s1738_s9 + $0x184] ss:$8 sps:$4 sm:$0xff]   ;;  %v1438_v37 = vld [vmem:[%s1738_s9 + $0x180] ss:$8 sps:$4 sm:$0xff]  }
  0x68   : > { %1011 = vmatprep.subr.bf16.mxu0 %v1405_v15  ;;  %v1439_v38 = vld [vmem:[%s1738_s9 + $0x94] ss:$8 sps:$4 sm:$0xff]   ;;  %v1443_v40 = vld [vmem:[%s1738_s9 + $0x90] ss:$8 sps:$4 sm:$0xff]   ;;  %v1445_v42 = vld [vmem:[%s1738_s9 + $0xa4] ss:$8 sps:$4 sm:$0xff]  }
  0x69   : > { %v1441_v39 = vld [vmem:[%s1738_s9 + $0x194] ss:$8 sps:$4 sm:$0xff]   ;;  %v1444_v41 = vld [vmem:[%s1738_s9 + $0x190] ss:$8 sps:$4 sm:$0xff]   ;;  %v1447_v43 = vld [vmem:[%s1738_s9 + $0x1a4] ss:$8 sps:$4 sm:$0xff]  }
  0x6a   : > { %969 = vmatpush1.bf16.msra.mxu1 %v1407_v16  ;;  %v1449_v44 = vld [vmem:[%s1738_s9 + $0xa0] ss:$8 sps:$4 sm:$0xff]   ;;  %v1451_v46 = vld [vmem:[%s1738_s9 + $0xb4] ss:$8 sps:$4 sm:$0xff]   ;;  %v1455_v48 = vld [vmem:[%s1738_s9 + $0xb0] ss:$8 sps:$4 sm:$0xff]  }
  0x6b   : > { %1012 = vmatpush1.bf16.msra.mxu0 %v1408_v17  ;;  %970 = vmatprep.subr.bf16.mxu1 %v1409_v18  ;;  %v1450_v45 = vld [vmem:[%s1738_s9 + $0x1a0] ss:$8 sps:$4 sm:$0xff]   ;;  %v1453_v47 = vld [vmem:[%s1738_s9 + $0x1b4] ss:$8 sps:$4 sm:$0xff]   ;;  %v1456_v49 = vld [vmem:[%s1738_s9 + $0x1b0] ss:$8 sps:$4 sm:$0xff]  }
  0x6c   : > { %1013 = vmatprep.subr.bf16.mxu0 %v1411_v19  ;;  %v1457_v50 = vld [vmem:[%s1738_s9 + $0xc4] ss:$8 sps:$4 sm:$0xff]   ;;  %v1461_v52 = vld [vmem:[%s1738_s9 + $0xc0] ss:$8 sps:$4 sm:$0xff]   ;;  %v1463_v54 = vld [vmem:[%s1738_s9 + $0xd4] ss:$8 sps:$4 sm:$0xff]  }
  0x6d   : > { %v1459_v51 = vld [vmem:[%s1738_s9 + $0x1c4] ss:$8 sps:$4 sm:$0xff]   ;;  %v1462_v53 = vld [vmem:[%s1738_s9 + $0x1c0] ss:$8 sps:$4 sm:$0xff]   ;;  %v1465_v55 = vld [vmem:[%s1738_s9 + $0x1d4] ss:$8 sps:$4 sm:$0xff]  }
  0x6e   : > { %971 = vmatpush1.bf16.msra.mxu1 %v1413_v20  ;;  %v1467_v56 = vld [vmem:[%s1738_s9 + $0xd0] ss:$8 sps:$4 sm:$0xff]   ;;  %v1469_v58 = vld [vmem:[%s1738_s9 + $0xe4] ss:$8 sps:$4 sm:$0xff]   ;;  %v1473_v60 = vld [vmem:[%s1738_s9 + $0xe0] ss:$8 sps:$4 sm:$0xff]  }
  0x6f   : > { %1014 = vmatpush1.bf16.msra.mxu0 %v1414_v21  ;;  %972 = vmatprep.subr.bf16.mxu1 %v1415_v22  ;;  %v1468_v57 = vld [vmem:[%s1738_s9 + $0x1d0] ss:$8 sps:$4 sm:$0xff]   ;;  %v1471_v59 = vld [vmem:[%s1738_s9 + $0x1e4] ss:$8 sps:$4 sm:$0xff]   ;;  %v1474_v61 = vld [vmem:[%s1738_s9 + $0x1e0] ss:$8 sps:$4 sm:$0xff]  }
  0x70   : > { %1015 = vmatprep.subr.bf16.mxu0 %v1417_v23  ;;  %v1475_v62 = vld [vmem:[%s1738_s9 + $0xf4] ss:$8 sps:$4 sm:$0xff]   ;;  %v1479_v0 = vld [vmem:[%s1738_s9 + $0xf0] ss:$8 sps:$4 sm:$0xff]   ;;  %s1849_s20 = smov (!%p536_p11, %s1261_s20), 15  ;;  %v1066_v5 = vshrl.u32 %v1065_v4, 7 }
  0x71   : > { %v1477_v63 = vld [vmem:[%s1738_s9 + $0x1f4] ss:$8 sps:$4 sm:$0xff]   ;;  %v1480_v1 = vld [vmem:[%s1738_s9 + $0x1f0] ss:$8 sps:$4 sm:$0xff]   ;;  %s538_s25 = scalar_lea.vmem %s1839_s2, %s1849_s20  ;;  %s1260_s26 = sshll.u32 %s485_s30, 4 }
  0x72   : > { %973 = vmatpush1.bf16.msra.mxu1 %v1419_v24  ;;  %v1481_v2 = vld [vmem:[%s1837_s0] ss:$16 sps:$4 sm:$0xff]   ;;  %v1484_v3 = vld [vmem:[%s1837_s0 + $0x8] ss:$16 sps:$4 sm:$0xff]   ;;  %v1067_v6 = vsub.s32 0, %v1066_v5  ;;  %v1071_v8 = vsub.s32 1, %v1066_v5 }
  0x73   : > { %1016 = vmatpush1.bf16.msra.mxu0 %v1420_v25  ;;  %974 = vmatprep.subr.bf16.mxu1 %v1421_v26  ;;  %v1063_v7 = vld [vmem:[%s538_s25] sm:$0x3]  ;;  %s520_s27 = scalar_lea.vmem [#allocation4], %s1260_s26  ;;  %s1340_s28 = sshll.u32 (%p1582_p6), %s1517_s14, 3 }
  0x74   : > { %1017 = vmatprep.subr.bf16.mxu0 %v1423_v27  ;;  %v1068_v9 = vrot.slane %v1063_v7, %v1067_v6  ;;  %v1072_v12 = vrot.slane %v1063_v7, %v1071_v8  ;;  %s1109_s30 = scalar_lea.vmem (%p1582_p6), %s1840_s3, %s1340_s28 }
  0x76   : > { %975 = vmatpush1.bf16.msra.mxu1 %v1425_v28 }
  0x77   : > { %1018 = vmatpush1.bf16.msra.mxu0 %v1426_v29  ;;  %976 = vmatprep.subr.bf16.mxu1 %v1427_v30 }
  0x78   : > { %1019 = vmatprep.subr.bf16.mxu0 %v1429_v31 }
  0x7a   : > { %977 = vmatpush1.bf16.msra.mxu1 %v1431_v32 }
  0x7b   : > { %1020 = vmatpush1.bf16.msra.mxu0 %v1432_v33  ;;  %978 = vmatprep.subr.bf16.mxu1 %v1433_v34 }
  0x7c   : > { %1021 = vmatprep.subr.bf16.mxu0 %v1435_v35 }
  0x7e   : > { %979 = vmatpush1.bf16.msra.mxu1 %v1437_v36 }
  0x7f   : > { %1022 = vmatpush1.bf16.msra.mxu0 %v1438_v37  ;;  %980 = vmatprep.subr.bf16.mxu1 %v1439_v38 }
  0x80   : > { %1023 = vmatprep.subr.bf16.mxu0 %v1441_v39 }
  0x82   : > { %981 = vmatpush1.bf16.msra.mxu1 %v1443_v40 }
  0x83   : > { %1024 = vmatpush1.bf16.msra.mxu0 %v1444_v41  ;;  %982 = vmatprep.subr.bf16.mxu1 %v1445_v42 }
  0x84   : > { %1025 = vmatprep.subr.bf16.mxu0 %v1447_v43 }
  0x86   : > { %983 = vmatpush1.bf16.msra.mxu1 %v1449_v44 }
  0x87   : > { %1026 = vmatpush1.bf16.msra.mxu0 %v1450_v45  ;;  %984 = vmatprep.subr.bf16.mxu1 %v1451_v46 }
  0x88   : > { %1027 = vmatprep.subr.bf16.mxu0 %v1453_v47 }
  0x8a   : > { %985 = vmatpush1.bf16.msra.mxu1 %v1455_v48 }
  0x8b   : > { %1028 = vmatpush1.bf16.msra.mxu0 %v1456_v49  ;;  %986 = vmatprep.subr.bf16.mxu1 %v1457_v50 }
  0x8c   : > { %1029 = vmatprep.subr.bf16.mxu0 %v1459_v51 }
  0x8e   : > { %987 = vmatpush1.bf16.msra.mxu1 %v1461_v52 }
  0x8f   : > { %1030 = vmatpush1.bf16.msra.mxu0 %v1462_v53  ;;  %988 = vmatprep.subr.bf16.mxu1 %v1463_v54 }
  0x90   : > { %1031 = vmatprep.subr.bf16.mxu0 %v1465_v55 }
  0x92   : > { %989 = vmatpush1.bf16.msra.mxu1 %v1467_v56 }
  0x93   : > { %1032 = vmatpush1.bf16.msra.mxu0 %v1468_v57  ;;  %990 = vmatprep.subr.bf16.mxu1 %v1469_v58 }
  0x94   : > { %1033 = vmatprep.subr.bf16.mxu0 %v1471_v59 }
  0x96   : > { %991 = vmatpush1.bf16.msra.mxu1 %v1473_v60 }
  0x97   : > { %1034 = vmatpush1.bf16.msra.mxu0 %v1474_v61  ;;  %992 = vmatprep.subr.bf16.mxu1 %v1475_v62 }
  0x98   : > { %1035 = vmatprep.subr.bf16.mxu0 %v1477_v63 }
  0x9a   : > { %993 = vmatpush1.bf16.msra.mxu1 %v1479_v0 }
  0x9b   : > { %1036 = vmatpush1.bf16.msra.mxu0 %v1480_v1 }
  0x9d   : > { %995 = vmatmul.mubr.bf16.vlgmr.msra.gmra.mrb[0].mxu1 %v1481_v2 }
  0x9e   : > { %1038 = vmatmul.mubr.bf16.vlgmr.msra.gmra.mrb[0].mxu0 %v1484_v3 }
 0x170   : > { %v996_v10 = vpop.f32.mrb[0].mxu1 }
 0x171   : > { %v1039_v11 = vpop.f32.mrb[0].mxu0  ;;  %v998_v14 = vpop.f32.mrb[1].mxu1 }
 0x172   : > { %v1040_v13 = vadd.f32 %v1039_v11, %v996_v10  ;;  %v1041_v15 = vpop.f32.mrb[1].mxu0  ;;  %v1000_v17 = vpop.f32.mrb[2].mxu1 }
 0x173   : > { %v1042_v16 = vadd.f32 %v1041_v15, %v998_v14  ;;  %v1043_v18 = vpop.f32.mrb[2].mxu0  ;;  %v1002_v21 = vpop.f32.mrb[3].mxu1 }
 0x174   : > { %v1075_v19 = vadd.f32 %v1068_v9, %v1040_v13  ;;  %v1044_v20 = vadd.f32 %v1043_v18, %v1000_v17  ;;  %v1045_v22 = vpop.f32.mrb[3].mxu0 }
 0x175   : > { %v1076_v23 = vadd.f32 %v1072_v12, %v1042_v16  ;;  %v1046_v24 = vadd.f32 %v1045_v22, %v1002_v21 }
 0x176   : > { %v1079_v25 = vmax.f32 %v1075_v19, 0.0  ;;  %v1077_v26 = vadd.f32 %v1068_v9, %v1044_v20 }
 0x177   : > { %v1080_v27 = vmax.f32 %v1076_v23, 0.0  ;;  %v1078_v28 = vadd.f32 %v1072_v12, %v1046_v24  ;;  %1103 = sbr.rel (!%p1582_p6) target bundleno = 390 (0x186), region = 82 }
 0x178   : > { %v1081_v29 = vmax.f32 %v1077_v26, 0.0 }
 0x179   : > { %v1338_v30 = vpack.c.bf16 %v1080_v27, %v1079_v25  ;;  %v1082_v31 = vmax.f32 %v1078_v28, 0.0 }
 0x17b   : > { %1095 = vst [vmem:[%s520_s27] sm:$0xff] %v1338_v30  ;;  %v1339_v32 = vpack.c.bf16 %v1082_v31, %v1081_v29 }
 0x17d   : > { %1096 = vst [vmem:[%s520_s27 + $0x8] sm:$0xff] %v1339_v32 }
 0x182   : > { %v1139_v33 = vld [vmem:[%s520_s27] sm:$0xff] }
 0x183   : > { %1140 = vst [vmem:[%s1109_s30] sm:$0xff] %v1139_v33 }
 0x184   : > { %v1141_v34 = vld [vmem:[%s520_s27 + $0x8] sm:$0xff] }
 0x185   : > { %1142 = vst [vmem:[%s1109_s30 + $0x40] sm:$0xff] %v1141_v34 }
 0x186 PF: > { %s13_s16 = sadd.s32 1, %s1525_s16   ;;  %s1842_s12 = smov %s1513_s13 }
 0x187   : > { %p10_p12 = scmp.ge.s32.totalorder %s13_s16, 10   ;;  %s1843_s13 = smov %s1587_s22 }
 0x188   : > { %s1844_s14 = smov %s1521_s15  ;;  %s1845_s15 = smov %s1847_s17 }
 0x189   :  { %12 = sbr.rel (!%p10_p12) target bundleno = 3 (0x3), region = 157 }

// kernel: _lambda_.22
= control target key start
LH: loop header
LB: loop body
LE: loop exit
PB: predicated region body
PF: predicated region fallthrough
CT: control target
= control target key end

     0   :  { %s1814_s0 = inlined_call_operand.vmem [shape: bf16[16,2048], index: 0, kind: input, shape index: {}]   ;;  %s1815_s1 = inlined_call_operand.vmem [shape: bf16[2048,256], index: 1, kind: input, shape index: {}]   ;;  %s1816_s2 = inlined_call_operand.vmem [shape: f32[1,256], index: 2, kind: input, shape index: {}]   ;;  %s1817_s3 = inlined_call_operand.vmem [shape: bf16[16,256], index: 3, kind: output, shape index: {}]  }
   0x1   :  { %1819 = sst [smem:[#allocation7_spill]] %s1814_s0 }
   0x2   :  { %1820 = sst [smem:[#allocation8_spill]] %s1815_s1 }
   0x3   :  { %s1464_s12 = smov 0   ;;  %s1466_s13 = smov 0  }
   0x4   :  { %s1468_s14 = smov 0   ;;  %s1470_s15 = smov 0  }
   0x5   :  { %s1472_s16 = smov 0   ;;  %s1474_s17 = smov 0  }
   0x6   :  { %s1476_s18 = smov 0   ;;  %s1478_s19 = smov 0  }
   0x7   :  { %s1480_s20 = smov 0   ;;  %s1482_s21 = smov 0  }
   0x8   :  { %s1484_s22 = smov 0  }
   0x9 LB: > { %s1115_s23 = sadd.s32 4294967295, %s1441_s22   ;;  %s25_s24 = sadd.s32 1, %s1433_s20  ;;  %s1441_s22 = sphi %s1484_s22, %s13_s22   ;;  %s1437_s21 = sphi %s1482_s21, %s1837_s21   ;;  %s1433_s20 = sphi %s1480_s20, %s1836_s20   ;;  %s1429_s19 = sphi %s1478_s19, %s1835_s19   ;;  %s1425_s18 = sphi %s1476_s18, %s1834_s18   ;;  %s1421_s17 = sphi %s1474_s17, %s1833_s17   ;;  %s1417_s16 = sphi %s1472_s16, %s1832_s16   ;;  %s1413_s15 = sphi %s1470_s15, %s1831_s15   ;;  %s1409_s14 = sphi %s1468_s14, %s1830_s14   ;;  %s1405_s13 = sphi %s1466_s13, %s1829_s13   ;;  %s1401_s12 = sphi %s1464_s12, %s1828_s12  }
   0xa   : > { %p26_p0 = scmp.ge.s32.totalorder %s25_s24, 4  ;;  %s28_s25 = sadd.s32 1, %s1437_s21 }
   0xb   : > { %s41_s26 = sadd.s32 1, %s1421_s17  ;;  %p48_p1 = scmp.ne.s32.totalorder %s1421_s17, %s1417_s16 }
   0xc   : > { %s1839_s24 = smov (%p26_p0, %s25_s24), 0  ;;  %s1841_s25 = smov (!%p26_p0, %s28_s25), %s1437_s21 }
   0xd   : > { %s37_s27 = ssub.s32 %s1433_s20, %s1839_s24  ;;  %p49_p2 = scmp.eq.s32.totalorder %s1441_s22, 0 }
   0xe   : > { %p30_p3 = scmp.ge.s32.totalorder %s1841_s25, 2  ;;  %p39_p4 = scmp.eq.s32.totalorder %s37_s27, 0 }
   0xf   : > { %p1531_p5 = por %p49_p2, %p48_p1  ;;  %s69_s29 = sadd.s32 1, %s1413_s15 }
  0x10   : > { %s1843_s25 = smov (%p30_p3, %s1841_s25), 0  ;;  %p76_p6 = scmp.ne.s32.totalorder %s1413_s15, %s1409_s14 }
  0x11   : > { %1822 = sst [smem:[#allocation6_spill]] %s1843_s25  ;;  %s65_s4 = ssub.s32 %s1437_s21, %s1843_s25 }
  0x12   : > { %s1539_s30 = scalar_select %p39_p4, %s1421_s17, %s41_s26  }
  0x13   : > { %s66_s5 = sor.u32 %s65_s4, %s37_s27  ;;  %p121_p7 = scmp.eq.s32.totalorder %s65_s4, 0 }
  0x14   : > { %p67_p8 = scmp.eq.s32.totalorder %s66_s5, 0  ;;  %p1545_p9 = por %p76_p6, %p49_p2 }
  0x15   : > { %s123_s7 = sadd.s32 1, %s1405_s13  ;;  %p133_p10 = scmp.ne.s32.totalorder %s1405_s13, %s1401_s12 }
  0x16   : > { %s1553_s8 = scalar_select %p67_p8, %s1413_s15, %s69_s29  }
  0x17   : > { %s1556_s9 = scalar_select %p121_p7, %s1405_s13, %s123_s7  }
  0x18   : > { %p134_p11 = scmp.eq.s32.totalorder %s1115_s23, 7  ;;  %p1118_p13 = scmp.ge.s32.totalorder %s1441_s22, 8 }
  0x1a   : > { %p1558_p12 = por %p134_p11, %p133_p10  ;;  %156 = sbr.rel (%p1118_p13) target bundleno = 97 (0x61), region = 16 }
  0x21   : > { %159 = sbr.rel (!%p1531_p5) target bundleno = 45 (0x2d), region = 20  ;;  %s161_s11 = sand.u32 (%p1531_p5), 1, %s1421_s17  }
  0x22   : > { %s1175_s26 = sshll.u32 (%p1531_p5), %s1433_s20, 4  ;;  %s1119_s27 = sshll.u32 (%p1531_p5), %s161_s11, 5 }
  0x23   : > { %s1825_s0 = sld [smem:[#allocation7_spill]] (%p1531_p5)  ;;  %s163_s23 = scalar_lea.vmem (%p1531_p5), [#allocation3], %s1119_s27 }
  0x29   : > { %s169_s5 = scalar_lea.vmem %s1825_s0, %s1175_s26 }
  0x2a   : > { %v182_v0 = vld [vmem:[%s169_s5] sm:$0xff]  ;;  %v184_v1 = vld [vmem:[%s169_s5 + $0x8] sm:$0xff] }
  0x2b   : > { %v186_v2 = vld [vmem:[%s169_s5 + $0x40] sm:$0xff]  ;;  %183 = vst [vmem:[%s163_s23] sm:$0xff] %v182_v0  ;;  %185 = vst [vmem:[%s163_s23 + $0x8] sm:$0xff] %v184_v1  ;;  %v188_v3 = vld [vmem:[%s169_s5 + $0x48] sm:$0xff] }
  0x2c   : > { %187 = vst [vmem:[%s163_s23 + $0x10] sm:$0xff] %v186_v2  ;;  %189 = vst [vmem:[%s163_s23 + $0x18] sm:$0xff] %v188_v3 }
  0x2d PF: > { %195 = sbr.rel (!%p1545_p9) target bundleno = 97 (0x61), region = 43  ;;  %s197_s28 = sand.u32 (%p1545_p9), 1, %s1413_s15  }
  0x2e   : > { %s1176_s7 = sshll.u32 (%p1545_p9), %s1433_s20, 7  ;;  %s1122_s11 = sshll.u32 (%p1545_p9), %s197_s28, 8 }
  0x2f   : > { %s202_s26 = sadd.s32 (%p1545_p9), %s1437_s21, %s1176_s7  ;;  %s1826_s1 = sld [smem:[#allocation8_spill]] (%p1545_p9) }
  0x30   : > { %s1125_s29 = sshll.u32 (%p1545_p9), %s202_s26, 2  ;;  %s1583_s6 = scalar_lea.vmem (%p1545_p9), [#allocation4], %s1122_s11 }
  0x35   : > { %s1578_s27 = scalar_lea.vmem %s1826_s1, %s1125_s29 }
  0x36   : > { %v220_v4 = vld [vmem:[%s1578_s27] sm:$0xf]  ;;  %v222_v5 = vld [vmem:[%s1578_s27 + $0x8] sm:$0xf]  ;;  %v224_v6 = vld [vmem:[%s1578_s27 + $0x10] sm:$0xf] }
  0x37   : > { %221 = vst [vmem:[%s1583_s6] sm:$0xf] %v220_v4  ;;  %223 = vst [vmem:[%s1583_s6 + $0x4] sm:$0xf] %v222_v5  ;;  %v226_v7 = vld [vmem:[%s1578_s27 + $0x18] sm:$0xf] }
  0x38   : > { %225 = vst [vmem:[%s1583_s6 + $0x8] sm:$0xf] %v224_v6  ;;  %v228_v8 = vld [vmem:[%s1578_s27 + $0x20] sm:$0xf]  ;;  %v230_v9 = vld [vmem:[%s1578_s27 + $0x28] sm:$0xf] }
  0x39   : > { %227 = vst [vmem:[%s1583_s6 + $0xc] sm:$0xf] %v226_v7  ;;  %229 = vst [vmem:[%s1583_s6 + $0x10] sm:$0xf] %v228_v8  ;;  %v232_v10 = vld [vmem:[%s1578_s27 + $0x30] sm:$0xf] }
  0x3a   : > { %231 = vst [vmem:[%s1583_s6 + $0x14] sm:$0xf] %v230_v9  ;;  %v234_v11 = vld [vmem:[%s1578_s27 + $0x38] sm:$0xf]  ;;  %v236_v12 = vld [vmem:[%s1578_s27 + $0x40] sm:$0xf] }
  0x3b   : > { %233 = vst [vmem:[%s1583_s6 + $0x18] sm:$0xf] %v232_v10  ;;  %235 = vst [vmem:[%s1583_s6 + $0x1c] sm:$0xf] %v234_v11  ;;  %v238_v13 = vld [vmem:[%s1578_s27 + $0x48] sm:$0xf] }
  0x3c   : > { %237 = vst [vmem:[%s1583_s6 + $0x20] sm:$0xf] %v236_v12  ;;  %v240_v14 = vld [vmem:[%s1578_s27 + $0x50] sm:$0xf]  ;;  %v242_v15 = vld [vmem:[%s1578_s27 + $0x58] sm:$0xf] }
  0x3d   : > { %239 = vst [vmem:[%s1583_s6 + $0x24] sm:$0xf] %v238_v13  ;;  %241 = vst [vmem:[%s1583_s6 + $0x28] sm:$0xf] %v240_v14  ;;  %v244_v16 = vld [vmem:[%s1578_s27 + $0x60] sm:$0xf] }
  0x3e   : > { %243 = vst [vmem:[%s1583_s6 + $0x2c] sm:$0xf] %v242_v15  ;;  %v246_v17 = vld [vmem:[%s1578_s27 + $0x68] sm:$0xf]  ;;  %v248_v18 = vld [vmem:[%s1578_s27 + $0x70] sm:$0xf] }
  0x3f   : > { %245 = vst [vmem:[%s1583_s6 + $0x30] sm:$0xf] %v244_v16  ;;  %247 = vst [vmem:[%s1583_s6 + $0x34] sm:$0xf] %v246_v17  ;;  %v250_v19 = vld [vmem:[%s1578_s27 + $0x78] sm:$0xf] }
  0x40   : > { %249 = vst [vmem:[%s1583_s6 + $0x38] sm:$0xf] %v248_v18  ;;  %v252_v20 = vld [vmem:[%s1578_s27 + $0x80] sm:$0xf]  ;;  %v254_v21 = vld [vmem:[%s1578_s27 + $0x88] sm:$0xf] }
  0x41   : > { %251 = vst [vmem:[%s1583_s6 + $0x3c] sm:$0xf] %v250_v19  ;;  %253 = vst [vmem:[%s1583_s6 + $0x40] sm:$0xf] %v252_v20  ;;  %v256_v22 = vld [vmem:[%s1578_s27 + $0x90] sm:$0xf] }
  0x42   : > { %255 = vst [vmem:[%s1583_s6 + $0x44] sm:$0xf] %v254_v21  ;;  %v258_v23 = vld [vmem:[%s1578_s27 + $0x98] sm:$0xf]  ;;  %v260_v24 = vld [vmem:[%s1578_s27 + $0xa0] sm:$0xf] }
  0x43   : > { %257 = vst [vmem:[%s1583_s6 + $0x48] sm:$0xf] %v256_v22  ;;  %259 = vst [vmem:[%s1583_s6 + $0x4c] sm:$0xf] %v258_v23  ;;  %v262_v25 = vld [vmem:[%s1578_s27 + $0xa8] sm:$0xf] }
  0x44   : > { %261 = vst [vmem:[%s1583_s6 + $0x50] sm:$0xf] %v260_v24  ;;  %v264_v26 = vld [vmem:[%s1578_s27 + $0xb0] sm:$0xf]  ;;  %v266_v27 = vld [vmem:[%s1578_s27 + $0xb8] sm:$0xf] }
  0x45   : > { %263 = vst [vmem:[%s1583_s6 + $0x54] sm:$0xf] %v262_v25  ;;  %265 = vst [vmem:[%s1583_s6 + $0x58] sm:$0xf] %v264_v26  ;;  %v268_v28 = vld [vmem:[%s1578_s27 + $0xc0] sm:$0xf] }
  0x46   : > { %267 = vst [vmem:[%s1583_s6 + $0x5c] sm:$0xf] %v266_v27  ;;  %v270_v29 = vld [vmem:[%s1578_s27 + $0xc8] sm:$0xf]  ;;  %v272_v30 = vld [vmem:[%s1578_s27 + $0xd0] sm:$0xf] }
  0x47   : > { %269 = vst [vmem:[%s1583_s6 + $0x60] sm:$0xf] %v268_v28  ;;  %271 = vst [vmem:[%s1583_s6 + $0x64] sm:$0xf] %v270_v29  ;;  %v274_v31 = vld [vmem:[%s1578_s27 + $0xd8] sm:$0xf] }
  0x48   : > { %273 = vst [vmem:[%s1583_s6 + $0x68] sm:$0xf] %v272_v30  ;;  %v276_v32 = vld [vmem:[%s1578_s27 + $0xe0] sm:$0xf]  ;;  %v278_v33 = vld [vmem:[%s1578_s27 + $0xe8] sm:$0xf] }
  0x49   : > { %275 = vst [vmem:[%s1583_s6 + $0x6c] sm:$0xf] %v274_v31  ;;  %277 = vst [vmem:[%s1583_s6 + $0x70] sm:$0xf] %v276_v32  ;;  %v280_v34 = vld [vmem:[%s1578_s27 + $0xf0] sm:$0xf] }
  0x4a   : > { %279 = vst [vmem:[%s1583_s6 + $0x74] sm:$0xf] %v278_v33  ;;  %v282_v35 = vld [vmem:[%s1578_s27 + $0xf8] sm:$0xf]  ;;  %v284_v36 = vld [vmem:[%s1578_s27 + $0x100] sm:$0xf] }
  0x4b   : > { %281 = vst [vmem:[%s1583_s6 + $0x78] sm:$0xf] %v280_v34  ;;  %283 = vst [vmem:[%s1583_s6 + $0x7c] sm:$0xf] %v282_v35  ;;  %v286_v37 = vld [vmem:[%s1578_s27 + $0x108] sm:$0xf] }
  0x4c   : > { %285 = vst [vmem:[%s1583_s6 + $0x80] sm:$0xf] %v284_v36  ;;  %v288_v38 = vld [vmem:[%s1578_s27 + $0x110] sm:$0xf]  ;;  %v290_v39 = vld [vmem:[%s1578_s27 + $0x118] sm:$0xf] }
  0x4d   : > { %287 = vst [vmem:[%s1583_s6 + $0x84] sm:$0xf] %v286_v37  ;;  %289 = vst [vmem:[%s1583_s6 + $0x88] sm:$0xf] %v288_v38  ;;  %v292_v40 = vld [vmem:[%s1578_s27 + $0x120] sm:$0xf] }
  0x4e   : > { %291 = vst [vmem:[%s1583_s6 + $0x8c] sm:$0xf] %v290_v39  ;;  %v294_v41 = vld [vmem:[%s1578_s27 + $0x128] sm:$0xf]  ;;  %v296_v42 = vld [vmem:[%s1578_s27 + $0x130] sm:$0xf] }
  0x4f   : > { %293 = vst [vmem:[%s1583_s6 + $0x90] sm:$0xf] %v292_v40  ;;  %295 = vst [vmem:[%s1583_s6 + $0x94] sm:$0xf] %v294_v41  ;;  %v298_v43 = vld [vmem:[%s1578_s27 + $0x138] sm:$0xf] }
  0x50   : > { %297 = vst [vmem:[%s1583_s6 + $0x98] sm:$0xf] %v296_v42  ;;  %v300_v44 = vld [vmem:[%s1578_s27 + $0x140] sm:$0xf]  ;;  %v302_v45 = vld [vmem:[%s1578_s27 + $0x148] sm:$0xf] }
  0x51   : > { %299 = vst [vmem:[%s1583_s6 + $0x9c] sm:$0xf] %v298_v43  ;;  %301 = vst [vmem:[%s1583_s6 + $0xa0] sm:$0xf] %v300_v44  ;;  %v304_v46 = vld [vmem:[%s1578_s27 + $0x150] sm:$0xf] }
  0x52   : > { %303 = vst [vmem:[%s1583_s6 + $0xa4] sm:$0xf] %v302_v45  ;;  %v306_v47 = vld [vmem:[%s1578_s27 + $0x158] sm:$0xf]  ;;  %v308_v48 = vld [vmem:[%s1578_s27 + $0x160] sm:$0xf] }
  0x53   : > { %305 = vst [vmem:[%s1583_s6 + $0xa8] sm:$0xf] %v304_v46  ;;  %307 = vst [vmem:[%s1583_s6 + $0xac] sm:$0xf] %v306_v47  ;;  %v310_v49 = vld [vmem:[%s1578_s27 + $0x168] sm:$0xf] }
  0x54   : > { %309 = vst [vmem:[%s1583_s6 + $0xb0] sm:$0xf] %v308_v48  ;;  %v312_v50 = vld [vmem:[%s1578_s27 + $0x170] sm:$0xf]  ;;  %v314_v51 = vld [vmem:[%s1578_s27 + $0x178] sm:$0xf] }
  0x55   : > { %311 = vst [vmem:[%s1583_s6 + $0xb4] sm:$0xf] %v310_v49  ;;  %313 = vst [vmem:[%s1583_s6 + $0xb8] sm:$0xf] %v312_v50  ;;  %v316_v52 = vld [vmem:[%s1578_s27 + $0x180] sm:$0xf] }
  0x56   : > { %315 = vst [vmem:[%s1583_s6 + $0xbc] sm:$0xf] %v314_v51  ;;  %v318_v53 = vld [vmem:[%s1578_s27 + $0x188] sm:$0xf]  ;;  %v320_v54 = vld [vmem:[%s1578_s27 + $0x190] sm:$0xf] }
  0x57   : > { %317 = vst [vmem:[%s1583_s6 + $0xc0] sm:$0xf] %v316_v52  ;;  %319 = vst [vmem:[%s1583_s6 + $0xc4] sm:$0xf] %v318_v53  ;;  %v322_v55 = vld [vmem:[%s1578_s27 + $0x198] sm:$0xf] }
  0x58   : > { %321 = vst [vmem:[%s1583_s6 + $0xc8] sm:$0xf] %v320_v54  ;;  %v324_v56 = vld [vmem:[%s1578_s27 + $0x1a0] sm:$0xf]  ;;  %v326_v57 = vld [vmem:[%s1578_s27 + $0x1a8] sm:$0xf] }
  0x59   : > { %323 = vst [vmem:[%s1583_s6 + $0xcc] sm:$0xf] %v322_v55  ;;  %325 = vst [vmem:[%s1583_s6 + $0xd0] sm:$0xf] %v324_v56  ;;  %v328_v58 = vld [vmem:[%s1578_s27 + $0x1b0] sm:$0xf] }
  0x5a   : > { %327 = vst [vmem:[%s1583_s6 + $0xd4] sm:$0xf] %v326_v57  ;;  %v330_v59 = vld [vmem:[%s1578_s27 + $0x1b8] sm:$0xf]  ;;  %v332_v60 = vld [vmem:[%s1578_s27 + $0x1c0] sm:$0xf] }
  0x5b   : > { %329 = vst [vmem:[%s1583_s6 + $0xd8] sm:$0xf] %v328_v58  ;;  %331 = vst [vmem:[%s1583_s6 + $0xdc] sm:$0xf] %v330_v59  ;;  %v334_v61 = vld [vmem:[%s1578_s27 + $0x1c8] sm:$0xf] }
  0x5c   : > { %333 = vst [vmem:[%s1583_s6 + $0xe0] sm:$0xf] %v332_v60  ;;  %v336_v62 = vld [vmem:[%s1578_s27 + $0x1d0] sm:$0xf]  ;;  %v338_v63 = vld [vmem:[%s1578_s27 + $0x1d8] sm:$0xf] }
  0x5d   : > { %335 = vst [vmem:[%s1583_s6 + $0xe4] sm:$0xf] %v334_v61  ;;  %337 = vst [vmem:[%s1583_s6 + $0xe8] sm:$0xf] %v336_v62  ;;  %v340_v0 = vld [vmem:[%s1578_s27 + $0x1e0] sm:$0xf] }
  0x5e   : > { %339 = vst [vmem:[%s1583_s6 + $0xec] sm:$0xf] %v338_v63  ;;  %v342_v1 = vld [vmem:[%s1578_s27 + $0x1e8] sm:$0xf]  ;;  %v344_v2 = vld [vmem:[%s1578_s27 + $0x1f0] sm:$0xf] }
  0x5f   : > { %341 = vst [vmem:[%s1583_s6 + $0xf0] sm:$0xf] %v340_v0  ;;  %343 = vst [vmem:[%s1583_s6 + $0xf4] sm:$0xf] %v342_v1  ;;  %v346_v3 = vld [vmem:[%s1578_s27 + $0x1f8] sm:$0xf] }
  0x60   : > { %345 = vst [vmem:[%s1583_s6 + $0xf8] sm:$0xf] %v344_v2  ;;  %347 = vst [vmem:[%s1583_s6 + $0xfc] sm:$0xf] %v346_v3 }
  0x61 PF: > { %p1126_p0 = scmp.ge.s32.totalorder %s1441_s22, 1  ;;  %p503_p1 = scmp.lt.s32.totalorder %s1441_s22, 9 }
  0x63   : > { %p504_p2 = pnand %p1126_p0, %p503_p1 }
  0x64   : > { %s510_s0 = sand.u32 (!%p504_p2), 1, %s1417_s16   ;;  %s517_s5 = sand.u32 (!%p504_p2), 1, %s1409_s14  }
  0x65   : > { %507 = sbr.rel (%p504_p2) target bundleno = 395 (0x18b), region = 88  ;;  %s1127_s23 = sshll.u32 (!%p504_p2), %s510_s0, 5 }
  0x66   : > { %s1128_s28 = sshll.u32 (!%p504_p2), %s517_s5, 8  ;;  %s543_s7 = sand.u32 (!%p504_p2), 1, %s1401_s12  }
  0x67   : > { %p549_p3 = scmp.lt.s32.totalorder (!%p504_p2), %s1429_s19, 1  ;;  %s1129_s11 = sshll.u32 (!%p504_p2), %s543_s7, 3 }
  0x68   : > { %s1723_s6 = scalar_lea.vmem (!%p504_p2), [#allocation3], %s1127_s23  ;;  %s1725_s1 = scalar_lea.vmem (!%p504_p2), [#allocation4], %s1128_s28 }
  0x69   : > { %s1727_s25 = scalar_lea.vmem (!%p504_p2), [#allocation5], %s1129_s11  ;;  %p1130_p4 = scmp.ne.s32.totalorder (!%p504_p2), %s1425_s18, 0 }
  0x6c   : > { %s1717_s26 = scalar_select %p549_p3, %s1429_s19, 1 }
  0x6d   : > { %557 = sbr.rel (%p1130_p4) target bundleno = 116 (0x74), region = 100  ;;  %v1443_v4 = vmov (!%p1130_p4), 0.0  }
  0x6e   : > { %s551_s27 = scalar_lea.vmem %s1816_s2, %s1717_s26  ;;  %558 = vst [vmem:[#allocation2] sm:$0xff] (!%p1130_p4), %v1443_v4  ;;  %559 = vst [vmem:[#allocation2 + $0x8] sm:$0xff] (!%p1130_p4), %v1443_v4 }
  0x74 PF: > { %v1317_v5 = vld [vmem:[%s1725_s1 + $0x40] sm:$0xff]   ;;  %v1321_v9 = vld [vmem:[%s1725_s1 + $0x48] sm:$0xff]   ;;  %v1325_v13 = vld [vmem:[%s1725_s1 + $0x50] sm:$0xff]   ;;  %p1167_p5 = scmp.ne.s32.totalorder %s1425_s18, 3 }
  0x75   : > { %v1318_v6 = vld [vmem:[%s1725_s1 + $0xc0] sm:$0xff]   ;;  %1184 = vmatprep.subr.bf16.mxu0 %v1317_v5  ;;  %v1322_v10 = vld [vmem:[%s1725_s1 + $0xc8] sm:$0xff]   ;;  %v1326_v14 = vld [vmem:[%s1725_s1 + $0xd0] sm:$0xff]  }
  0x76   : > { %v1319_v7 = vld [vmem:[%s1725_s1] sm:$0xff]   ;;  %1206 = vmatprep.subr.bf16.mxu1 %v1318_v6  ;;  %v1323_v11 = vld [vmem:[%s1725_s1 + $0x8] sm:$0xff]   ;;  %v1327_v15 = vld [vmem:[%s1725_s1 + $0x10] sm:$0xff]  }
  0x77   : > { %v1320_v8 = vld [vmem:[%s1725_s1 + $0x80] sm:$0xff]   ;;  %1185 = vmatpush3.bf16.msra.mxu0 %v1319_v7  ;;  %v1324_v12 = vld [vmem:[%s1725_s1 + $0x88] sm:$0xff]   ;;  %v1328_v16 = vld [vmem:[%s1725_s1 + $0x90] sm:$0xff]  }
  0x78   : > { %1207 = vmatpush3.bf16.msra.mxu1 %v1320_v8  ;;  %1186 = vmatprep.subr.bf16.mxu0 %v1321_v9  ;;  %v1329_v17 = vld [vmem:[%s1725_s1 + $0x58] sm:$0xff]   ;;  %v1333_v21 = vld [vmem:[%s1725_s1 + $0x60] sm:$0xff]   ;;  %v1337_v25 = vld [vmem:[%s1725_s1 + $0x68] sm:$0xff]  }
  0x79   : > { %1208 = vmatprep.subr.bf16.mxu1 %v1322_v10  ;;  %v1330_v18 = vld [vmem:[%s1725_s1 + $0xd8] sm:$0xff]   ;;  %v1334_v22 = vld [vmem:[%s1725_s1 + $0xe0] sm:$0xff]   ;;  %v1338_v26 = vld [vmem:[%s1725_s1 + $0xe8] sm:$0xff]  }
  0x7a   : > { %v1331_v19 = vld [vmem:[%s1725_s1 + $0x18] sm:$0xff]   ;;  %v1335_v23 = vld [vmem:[%s1725_s1 + $0x20] sm:$0xff]   ;;  %v1339_v27 = vld [vmem:[%s1725_s1 + $0x28] sm:$0xff]  }
  0x7b   : > { %1187 = vmatpush3.bf16.msra.mxu0 %v1323_v11  ;;  %v1332_v20 = vld [vmem:[%s1725_s1 + $0x98] sm:$0xff]   ;;  %v1336_v24 = vld [vmem:[%s1725_s1 + $0xa0] sm:$0xff]   ;;  %v1340_v28 = vld [vmem:[%s1725_s1 + $0xa8] sm:$0xff]  }
  0x7c   : > { %1209 = vmatpush3.bf16.msra.mxu1 %v1324_v12  ;;  %1188 = vmatprep.subr.bf16.mxu0 %v1325_v13  ;;  %v1341_v29 = vld [vmem:[%s1725_s1 + $0x70] sm:$0xff]   ;;  %v1345_v33 = vld [vmem:[%s1725_s1 + $0x78] sm:$0xff]  }
  0x7d   : > { %1210 = vmatprep.subr.bf16.mxu1 %v1326_v14  ;;  %v1342_v30 = vld [vmem:[%s1725_s1 + $0xf0] sm:$0xff]   ;;  %v1346_v34 = vld [vmem:[%s1725_s1 + $0xf8] sm:$0xff]  }
  0x7e   : > { %v1343_v31 = vld [vmem:[%s1725_s1 + $0x30] sm:$0xff]   ;;  %v1347_v35 = vld [vmem:[%s1725_s1 + $0x38] sm:$0xff]  }
  0x7f   : > { %1189 = vmatpush3.bf16.msra.mxu0 %v1327_v15  ;;  %v1344_v32 = vld [vmem:[%s1725_s1 + $0xb0] sm:$0xff]   ;;  %v1348_v36 = vld [vmem:[%s1725_s1 + $0xb8] sm:$0xff]  }
  0x80   : > { %1211 = vmatpush3.bf16.msra.mxu1 %v1328_v16  ;;  %1190 = vmatprep.subr.bf16.mxu0 %v1329_v17  ;;  %v1349_v37 = vld [vmem:[%s1723_s6] ss:$16 sps:$4 sm:$0xff]   ;;  %v1351_v38 = vld [vmem:[%s1723_s6 + $0x4] ss:$16 sps:$4 sm:$0xff]   ;;  %v1352_v39 = vld [vmem:[%s1723_s6 + $0x8] ss:$16 sps:$4 sm:$0xff]  }
  0x81   : > { %1212 = vmatprep.subr.bf16.mxu1 %v1330_v18  ;;  %v1354_v40 = vld [vmem:[%s1723_s6 + $0xc] ss:$16 sps:$4 sm:$0xff]   ;;  %874 = vmatprep.mubr.bf16.mxu0 %v1351_v38  ;;  %v560_v50 = vld [vmem:[#allocation2] sm:$0xff] }
  0x82   : > { %915 = vmatprep.mubr.bf16.mxu1 %v1354_v40  ;;  %v561_v55 = vld [vmem:[#allocation2 + $0x8] sm:$0xff]  ;;  %v1168_v61 = vld [vmem:[%s551_s27] ss:$0 sm:$0xff] (!%p1167_p5) }
  0x83   : > { %1191 = vmatpush3.bf16.msra.mxu0 %v1331_v19 }
  0x84   : > { %1213 = vmatpush3.bf16.msra.mxu1 %v1332_v20  ;;  %1192 = vmatprep.subr.bf16.mxu0 %v1333_v21 }
  0x85   : > { %1214 = vmatprep.subr.bf16.mxu1 %v1334_v22 }
  0x87   : > { %1193 = vmatpush3.bf16.msra.mxu0 %v1335_v23 }
  0x88   : > { %1215 = vmatpush3.bf16.msra.mxu1 %v1336_v24  ;;  %1194 = vmatprep.subr.bf16.mxu0 %v1337_v25 }
  0x89   : > { %1216 = vmatprep.subr.bf16.mxu1 %v1338_v26 }
  0x8b   : > { %1195 = vmatpush3.bf16.msra.mxu0 %v1339_v27 }
  0x8c   : > { %1217 = vmatpush3.bf16.msra.mxu1 %v1340_v28  ;;  %1196 = vmatprep.subr.bf16.mxu0 %v1341_v29 }
  0x8d   : > { %1218 = vmatprep.subr.bf16.mxu1 %v1342_v30 }
  0x8f   : > { %1197 = vmatpush3.bf16.msra.mxu0 %v1343_v31 }
  0x90   : > { %1219 = vmatpush3.bf16.msra.mxu1 %v1344_v32  ;;  %1198 = vmatprep.subr.bf16.mxu0 %v1345_v33 }
  0x91   : > { %1220 = vmatprep.subr.bf16.mxu1 %v1346_v34 }
  0x93   : > { %1199 = vmatpush3.bf16.msra.mxu0 %v1347_v35 }
  0x94   : > { %1221 = vmatpush3.bf16.msra.mxu1 %v1348_v36 }
  0x96   : > { %875 = vmatmul.mubr.bf16.vlgmr.msra.gmra.mrb[0].mxu0 %v1349_v37 }
  0x97   : > { %916 = vmatmul.mubr.bf16.vlgmr.msra.gmra.mrb[0].mxu1 %v1352_v39 }
 0x169   : > { %v1200_v41 = vpop.f32.mrb[0].mxu0 }
 0x16a   : > { %v1222_v42 = vpop.f32.mrb[0].mxu1  ;;  %v1201_v43 = vpop.f32.mrb[1].mxu0 }
 0x16b   : > { %v1202_v44 = vadd.f32 %v1201_v43, %v1200_v41  ;;  %v1223_v45 = vpop.f32.mrb[1].mxu1  ;;  %v1203_v46 = vpop.f32.mrb[2].mxu0 }
 0x16c   : > { %v1224_v47 = vadd.f32 %v1223_v45, %v1222_v42  ;;  %v1225_v48 = vpop.f32.mrb[2].mxu1  ;;  %v1204_v49 = vpop.f32.mrb[3].mxu0 }
 0x16d   : > { %v1205_v51 = vadd.f32 %v1204_v49, %v1203_v46  ;;  %v1226_v52 = vpop.f32.mrb[3].mxu1 }
 0x16e   : > { %v918_v53 = vadd.f32 %v1224_v47, %v1202_v44  ;;  %v1227_v54 = vadd.f32 %v1226_v52, %v1225_v48  ;;  %931 = sbr.rel (%p1167_p5) target bundleno = 387 (0x183), region = 104 }
 0x170   : > { %v924_v56 = vadd.f32 %v918_v53, %v560_v50  ;;  %v921_v57 = vadd.f32 %v1227_v54, %v1205_v51 }
 0x172   : > { %926 = vst [vmem:[#allocation2] sm:$0xff] %v924_v56  ;;  %v925_v58 = vadd.f32 %v921_v57, %v561_v55 }
 0x174   : > { %927 = vst [vmem:[#allocation2 + $0x8] sm:$0xff] %v925_v58 }
 0x179   : > { %v932_v59 = vld [vmem:[#allocation2] sm:$0xff] }
 0x17a   : > { %v941_v62 = vadd.f32 %v1168_v61, %v932_v59 }
 0x17b   : > { %v933_v60 = vld [vmem:[#allocation2 + $0x8] sm:$0xff] }
 0x17c   : > { %v942_v63 = vadd.f32 %v1168_v61, %v933_v60  ;;  %v943_v0 = vmax.f32 %v941_v62, 0.0 }
 0x17e   : > { %v944_v1 = vmax.f32 %v942_v63, 0.0 }
 0x180   : > { %v1182_v2 = vpack.c.bf16 %v944_v1, %v943_v0 }
 0x182   : > { %1183 = vst [vmem:[%s1727_s25] sm:$0xff] %v1182_v2  }
 0x183 PF: > { %961 = sbr.rel (!%p1558_p12) target bundleno = 395 (0x18b), region = 108  ;;  %s1172_s14 = sshll.u32 (%p1558_p12), %s1429_s19, 2 }
 0x184   : > { %s966_s0 = scalar_lea.vmem (%p1558_p12), %s1817_s3, %s1172_s14 }
 0x189   : > { %v982_v3 = vld [vmem:[%s1727_s25] sm:$0xf] (%p1558_p12)  ;;  %v984_v4 = vld [vmem:[%s1727_s25 + $0x4] sm:$0xf] (%p1558_p12) }
 0x18a   : > { %983 = vst [vmem:[%s966_s0] sm:$0xf] %v982_v3  ;;  %985 = vst [vmem:[%s966_s0 + $0x8] sm:$0xf] %v984_v4 }
 0x18b PF: > { %s13_s22 = sadd.s32 1, %s1441_s22   ;;  %s1827_s25 = sld [smem:[#allocation6_spill]] }
 0x18c   : > { %p10_p6 = scmp.ge.s32.totalorder %s13_s22, 10   ;;  %s1828_s12 = smov %s1405_s13 }
 0x18d   : > { %s1829_s13 = smov %s1556_s9  ;;  %s1830_s14 = smov %s1413_s15 }
 0x18e   : > { %s1831_s15 = smov %s1553_s8  ;;  %s1832_s16 = smov %s1421_s17 }
 0x18f   : > { %s1833_s17 = smov %s1539_s30  ;;  %s1834_s18 = smov %s1433_s20 }
 0x190   : > { %s1835_s19 = smov %s1437_s21  ;;  %s1836_s20 = smov %s1839_s24 }
 0x191   : > { %s1837_s21 = smov %s1827_s25  ;;  %12 = sbr.rel (!%p10_p6) target bundleno = 9 (0x9), region = 191 }

// kernel: _lambda_.27
= control target key start
LH: loop header
LB: loop body
LE: loop exit
PB: predicated region body
PF: predicated region fallthrough
CT: control target
= control target key end

     0   :  { %s1109_s12 = smov 0   ;;  %s1111_s13 = smov 0   ;;  %s1380_s0 = inlined_call_operand.vmem [shape: bf16[16,1280], index: 0, kind: input, shape index: {}]   ;;  %s1381_s1 = inlined_call_operand.vmem [shape: bf16[1280,256], index: 1, kind: input, shape index: {}]   ;;  %s1382_s2 = inlined_call_operand.vmem [shape: f32[1,256], index: 2, kind: input, shape index: {}]   ;;  %s1383_s3 = inlined_call_operand.vmem [shape: bf16[16,256], index: 3, kind: output, shape index: {}]  }
   0x1   :  { %s1113_s14 = smov 0   ;;  %s1115_s15 = smov 0  }
   0x2   :  { %s1117_s16 = smov 0   ;;  %s1119_s17 = smov 0  }
   0x3   :  { %s1121_s18 = smov 0   ;;  %s1123_s19 = smov 0  }
   0x4   :  { %s1125_s20 = smov 0   ;;  %s1127_s21 = smov 0  }
   0x5   :  { %s1129_s22 = smov 0  }
   0x6 LB: > { %s819_s23 = sadd.s32 4294967295, %s1086_s22   ;;  %s25_s24 = sadd.s32 1, %s1078_s20  ;;  %s1086_s22 = sphi %s1129_s22, %s13_s22   ;;  %s1082_s21 = sphi %s1127_s21, %s1404_s21   ;;  %s1078_s20 = sphi %s1125_s20, %s1403_s20   ;;  %s1074_s19 = sphi %s1123_s19, %s1402_s19   ;;  %s1070_s18 = sphi %s1121_s18, %s1401_s18   ;;  %s1066_s17 = sphi %s1119_s17, %s1400_s17   ;;  %s1062_s16 = sphi %s1117_s16, %s1399_s16   ;;  %s1058_s15 = sphi %s1115_s15, %s1398_s15   ;;  %s1054_s14 = sphi %s1113_s14, %s1397_s14   ;;  %s1050_s13 = sphi %s1111_s13, %s1396_s13   ;;  %s1046_s12 = sphi %s1109_s12, %s1395_s12  }
   0x7   : > { %p26_p0 = scmp.ge.s32.totalorder %s25_s24, 5  ;;  %s28_s25 = sadd.s32 1, %s1082_s21 }
   0x8   : > { %s41_s26 = sadd.s32 1, %s1066_s17  ;;  %p48_p1 = scmp.ne.s32.totalorder %s1066_s17, %s1062_s16 }
   0x9   : > { %s1406_s24 = smov (%p26_p0, %s25_s24), 0  ;;  %s1408_s25 = smov (!%p26_p0, %s28_s25), %s1082_s21 }
   0xa   : > { %1386 = sst [smem:[#allocation6_spill]] %s1406_s24  ;;  %s37_s27 = ssub.s32 %s1078_s20, %s1406_s24 }
   0xb   : > { %p49_p2 = scmp.eq.s32.totalorder %s1086_s22, 0  ;;  %p30_p3 = scmp.ge.s32.totalorder %s1408_s25, 2 }
   0xc   : > { %p39_p4 = scmp.eq.s32.totalorder %s37_s27, 0  ;;  %s69_s29 = sadd.s32 1, %s1058_s15 }
   0xd   : > { %p1176_p5 = por %p49_p2, %p48_p1  ;;  %s1410_s25 = smov (%p30_p3, %s1408_s25), 0 }
   0xe   : > { %1388 = sst [smem:[#allocation7_spill]] %s1410_s25  ;;  %s65_s4 = ssub.s32 %s1082_s21, %s1410_s25 }
   0xf   : > { %s1184_s30 = scalar_select %p39_p4, %s1066_s17, %s41_s26  }
  0x10   : > { %p76_p6 = scmp.ne.s32.totalorder %s1058_s15, %s1054_s14  ;;  %s66_s5 = sor.u32 %s65_s4, %s37_s27 }
  0x11   : > { %1389 = sst [smem:[#allocation8_spill]] %s1184_s30  ;;  %p121_p7 = scmp.eq.s32.totalorder %s65_s4, 0 }
  0x12   : > { %p67_p8 = scmp.eq.s32.totalorder %s66_s5, 0  ;;  %p1190_p9 = por %p76_p6, %p49_p2 }
  0x13   : > { %s123_s7 = sadd.s32 1, %s1050_s13  ;;  %p133_p10 = scmp.ne.s32.totalorder %s1050_s13, %s1046_s12 }
  0x14   : > { %s1198_s8 = scalar_select %p67_p8, %s1058_s15, %s69_s29  }
  0x15   : > { %s1201_s9 = scalar_select %p121_p7, %s1050_s13, %s123_s7  }
  0x16   : > { %p134_p11 = scmp.eq.s32.totalorder %s819_s23, 9  ;;  %p822_p13 = scmp.ge.s32.totalorder %s1086_s22, 10 }
  0x18   : > { %p1203_p12 = por %p134_p11, %p133_p10  ;;  %156 = sbr.rel (%p822_p13) target bundleno = 65 (0x41), region = 16 }
  0x1f   : > { %159 = sbr.rel (!%p1176_p5) target bundleno = 38 (0x26), region = 20  ;;  %s161_s11 = sand.u32 (%p1176_p5), 1, %s1066_s17  }
  0x20   : > { %s861_s26 = sshll.u32 (%p1176_p5), %s1078_s20, 3  ;;  %s823_s27 = sshll.u32 (%p1176_p5), %s161_s11, 4 }
  0x21   : > { %s169_s5 = scalar_lea.vmem (%p1176_p5), %s1380_s0, %s861_s26  ;;  %s163_s23 = scalar_lea.vmem (%p1176_p5), [#allocation3], %s823_s27 }
  0x22   : > { %v199_v0 = vld [vmem:[%s169_s5] sm:$0xff] (%p1176_p5)  ;;  %v201_v1 = vld [vmem:[%s169_s5 + $0x28] sm:$0xff] (%p1176_p5) }
  0x23   : > { %200 = vst [vmem:[%s163_s23] sm:$0xff] (%p1176_p5), %v199_v0  ;;  %202 = vst [vmem:[%s163_s23 + $0x8] sm:$0xff] (%p1176_p5), %v201_v1 }
  0x26 PF: > { %208 = sbr.rel (!%p1190_p9) target bundleno = 65 (0x41), region = 58  ;;  %s210_s28 = sand.u32 (%p1190_p9), 1, %s1058_s15  }
  0x27   : > { %s862_s7 = sshll.u32 (%p1190_p9), %s1078_s20, 6  ;;  %s826_s25 = sshll.u32 (%p1190_p9), %s210_s28, 7 }
  0x28   : > { %s215_s11 = sadd.s32 (%p1190_p9), %s1082_s21, %s862_s7  ;;  %s1228_s6 = scalar_lea.vmem (%p1190_p9), [#allocation4], %s826_s25 }
  0x29   : > { %s829_s24 = sshll.u32 (%p1190_p9), %s215_s11, 2 }
  0x2a   : > { %s1223_s26 = scalar_lea.vmem (%p1190_p9), %s1381_s1, %s829_s24 }
  0x2b   : > { %v233_v2 = vld [vmem:[%s1223_s26] sm:$0xf] (%p1190_p9)  ;;  %v235_v3 = vld [vmem:[%s1223_s26 + $0x8] sm:$0xf] (%p1190_p9)  ;;  %v237_v4 = vld [vmem:[%s1223_s26 + $0x10] sm:$0xf] (%p1190_p9) }
  0x2c   : > { %234 = vst [vmem:[%s1228_s6] sm:$0xf] (%p1190_p9), %v233_v2  ;;  %236 = vst [vmem:[%s1228_s6 + $0x4] sm:$0xf] (%p1190_p9), %v235_v3  ;;  %v239_v5 = vld [vmem:[%s1223_s26 + $0x18] sm:$0xf] (%p1190_p9) }
  0x2d   : > { %238 = vst [vmem:[%s1228_s6 + $0x8] sm:$0xf] %v237_v4  ;;  %v241_v6 = vld [vmem:[%s1223_s26 + $0x20] sm:$0xf]  ;;  %v243_v7 = vld [vmem:[%s1223_s26 + $0x28] sm:$0xf] }
  0x2e   : > { %240 = vst [vmem:[%s1228_s6 + $0xc] sm:$0xf] %v239_v5  ;;  %242 = vst [vmem:[%s1228_s6 + $0x10] sm:$0xf] %v241_v6  ;;  %v245_v8 = vld [vmem:[%s1223_s26 + $0x30] sm:$0xf] }
  0x2f   : > { %244 = vst [vmem:[%s1228_s6 + $0x14] sm:$0xf] %v243_v7  ;;  %v247_v9 = vld [vmem:[%s1223_s26 + $0x38] sm:$0xf]  ;;  %v249_v10 = vld [vmem:[%s1223_s26 + $0x40] sm:$0xf] }
  0x30   : > { %246 = vst [vmem:[%s1228_s6 + $0x18] sm:$0xf] %v245_v8  ;;  %248 = vst [vmem:[%s1228_s6 + $0x1c] sm:$0xf] %v247_v9  ;;  %v251_v11 = vld [vmem:[%s1223_s26 + $0x48] sm:$0xf] }
  0x31   : > { %250 = vst [vmem:[%s1228_s6 + $0x20] sm:$0xf] %v249_v10  ;;  %v253_v12 = vld [vmem:[%s1223_s26 + $0x50] sm:$0xf]  ;;  %v255_v13 = vld [vmem:[%s1223_s26 + $0x58] sm:$0xf] }
  0x32   : > { %252 = vst [vmem:[%s1228_s6 + $0x24] sm:$0xf] %v251_v11  ;;  %254 = vst [vmem:[%s1228_s6 + $0x28] sm:$0xf] %v253_v12  ;;  %v257_v14 = vld [vmem:[%s1223_s26 + $0x60] sm:$0xf] }
  0x33   : > { %256 = vst [vmem:[%s1228_s6 + $0x2c] sm:$0xf] %v255_v13  ;;  %v259_v15 = vld [vmem:[%s1223_s26 + $0x68] sm:$0xf]  ;;  %v261_v16 = vld [vmem:[%s1223_s26 + $0x70] sm:$0xf] }
  0x34   : > { %258 = vst [vmem:[%s1228_s6 + $0x30] sm:$0xf] %v257_v14  ;;  %260 = vst [vmem:[%s1228_s6 + $0x34] sm:$0xf] %v259_v15  ;;  %v263_v17 = vld [vmem:[%s1223_s26 + $0x78] sm:$0xf] }
  0x35   : > { %262 = vst [vmem:[%s1228_s6 + $0x38] sm:$0xf] %v261_v16  ;;  %v265_v18 = vld [vmem:[%s1223_s26 + $0x80] sm:$0xf]  ;;  %v267_v19 = vld [vmem:[%s1223_s26 + $0x88] sm:$0xf] }
  0x36   : > { %264 = vst [vmem:[%s1228_s6 + $0x3c] sm:$0xf] %v263_v17  ;;  %266 = vst [vmem:[%s1228_s6 + $0x40] sm:$0xf] %v265_v18  ;;  %v269_v20 = vld [vmem:[%s1223_s26 + $0x90] sm:$0xf] }
  0x37   : > { %268 = vst [vmem:[%s1228_s6 + $0x44] sm:$0xf] %v267_v19  ;;  %v271_v21 = vld [vmem:[%s1223_s26 + $0x98] sm:$0xf]  ;;  %v273_v22 = vld [vmem:[%s1223_s26 + $0xa0] sm:$0xf] }
  0x38   : > { %270 = vst [vmem:[%s1228_s6 + $0x48] sm:$0xf] %v269_v20  ;;  %272 = vst [vmem:[%s1228_s6 + $0x4c] sm:$0xf] %v271_v21  ;;  %v275_v23 = vld [vmem:[%s1223_s26 + $0xa8] sm:$0xf] }
  0x39   : > { %274 = vst [vmem:[%s1228_s6 + $0x50] sm:$0xf] %v273_v22  ;;  %v277_v24 = vld [vmem:[%s1223_s26 + $0xb0] sm:$0xf]  ;;  %v279_v25 = vld [vmem:[%s1223_s26 + $0xb8] sm:$0xf] }
  0x3a   : > { %276 = vst [vmem:[%s1228_s6 + $0x54] sm:$0xf] %v275_v23  ;;  %278 = vst [vmem:[%s1228_s6 + $0x58] sm:$0xf] %v277_v24  ;;  %v281_v26 = vld [vmem:[%s1223_s26 + $0xc0] sm:$0xf] }
  0x3b   : > { %280 = vst [vmem:[%s1228_s6 + $0x5c] sm:$0xf] %v279_v25  ;;  %v283_v27 = vld [vmem:[%s1223_s26 + $0xc8] sm:$0xf]  ;;  %v285_v28 = vld [vmem:[%s1223_s26 + $0xd0] sm:$0xf] }
  0x3c   : > { %282 = vst [vmem:[%s1228_s6 + $0x60] sm:$0xf] %v281_v26  ;;  %284 = vst [vmem:[%s1228_s6 + $0x64] sm:$0xf] %v283_v27  ;;  %v287_v29 = vld [vmem:[%s1223_s26 + $0xd8] sm:$0xf] }
  0x3d   : > { %286 = vst [vmem:[%s1228_s6 + $0x68] sm:$0xf] %v285_v28  ;;  %v289_v30 = vld [vmem:[%s1223_s26 + $0xe0] sm:$0xf]  ;;  %v291_v31 = vld [vmem:[%s1223_s26 + $0xe8] sm:$0xf] }
  0x3e   : > { %288 = vst [vmem:[%s1228_s6 + $0x6c] sm:$0xf] %v287_v29  ;;  %290 = vst [vmem:[%s1228_s6 + $0x70] sm:$0xf] %v289_v30  ;;  %v293_v32 = vld [vmem:[%s1223_s26 + $0xf0] sm:$0xf] }
  0x3f   : > { %292 = vst [vmem:[%s1228_s6 + $0x74] sm:$0xf] %v291_v31  ;;  %v295_v33 = vld [vmem:[%s1223_s26 + $0xf8] sm:$0xf]  ;;  %294 = vst [vmem:[%s1228_s6 + $0x78] sm:$0xf] %v293_v32 }
  0x40   : > { %296 = vst [vmem:[%s1228_s6 + $0x7c] sm:$0xf] %v295_v33 }
  0x41 PF: > { %p830_p0 = scmp.ge.s32.totalorder %s1086_s22, 1  ;;  %p388_p1 = scmp.lt.s32.totalorder %s1086_s22, 11 }
  0x43   : > { %p389_p2 = pnand %p830_p0, %p388_p1 }
  0x44   : > { %s395_s24 = sand.u32 (!%p389_p2), 1, %s1062_s16   ;;  %s402_s25 = sand.u32 (!%p389_p2), 1, %s1054_s14  }
  0x45   : > { %392 = sbr.rel (%p389_p2) target bundleno = 359 (0x167), region = 103  ;;  %s1295_s30 = sshll.u32 (!%p389_p2), %s395_s24, 4 }
  0x46   : > { %s832_s27 = sshll.u32 (!%p389_p2), %s402_s25, 7  ;;  %s428_s4 = sand.u32 (!%p389_p2), 1, %s1046_s12  }
  0x47   : > { %p434_p3 = scmp.lt.s32.totalorder (!%p389_p2), %s1074_s19, 1  ;;  %s833_s5 = sshll.u32 (!%p389_p2), %s428_s4, 3 }
  0x48   : > { %s397_s29 = scalar_lea.vmem (!%p389_p2), [#allocation3], %s1295_s30  ;;  %s1307_s26 = scalar_lea.vmem (!%p389_p2), [#allocation4], %s832_s27 }
  0x49   : > { %s1309_s6 = scalar_lea.vmem (!%p389_p2), [#allocation5], %s833_s5  ;;  %p834_p4 = scmp.ne.s32.totalorder (!%p389_p2), %s1070_s18, 0 }
  0x4c   : > { %s1300_s23 = scalar_select %p434_p3, %s1074_s19, 1 }
  0x4d   : > { %442 = sbr.rel (%p834_p4) target bundleno = 84 (0x54), region = 115  ;;  %v1088_v34 = vmov (!%p834_p4), 0.0  }
  0x4e   : > { %s436_s11 = scalar_lea.vmem %s1382_s2, %s1300_s23  ;;  %443 = vst [vmem:[#allocation2] sm:$0xff] (!%p834_p4), %v1088_v34  ;;  %444 = vst [vmem:[#allocation2 + $0x8] sm:$0xff] (!%p834_p4), %v1088_v34 }
  0x54 PF: > { %v981_v35 = vld [vmem:[%s1307_s26 + $0x40] sm:$0xff]   ;;  %v983_v37 = vld [vmem:[%s1307_s26 + $0x48] sm:$0xff]   ;;  %v985_v39 = vld [vmem:[%s1307_s26 + $0x50] sm:$0xff]   ;;  %p853_p5 = scmp.ne.s32.totalorder %s1070_s18, 4 }
  0x55   : > { %v982_v36 = vld [vmem:[%s1307_s26] sm:$0xff]   ;;  %870 = vmatprep.subr.bf16.mxu0 %v981_v35  ;;  %v984_v38 = vld [vmem:[%s1307_s26 + $0x8] sm:$0xff]   ;;  %v986_v40 = vld [vmem:[%s1307_s26 + $0x10] sm:$0xff]  }
  0x56   : > { %871 = vmatpush3.bf16.msra.mxu0 %v982_v36  ;;  %v987_v41 = vld [vmem:[%s1307_s26 + $0x58] sm:$0xff]   ;;  %v989_v43 = vld [vmem:[%s1307_s26 + $0x60] sm:$0xff]   ;;  %v991_v45 = vld [vmem:[%s1307_s26 + $0x68] sm:$0xff]  }
  0x57   : > { %872 = vmatprep.subr.bf16.mxu0 %v983_v37  ;;  %v988_v42 = vld [vmem:[%s1307_s26 + $0x18] sm:$0xff]   ;;  %v990_v44 = vld [vmem:[%s1307_s26 + $0x20] sm:$0xff]   ;;  %v992_v47 = vld [vmem:[%s1307_s26 + $0x28] sm:$0xff]  }
  0x58   : > { %v999_v46 = vld [vmem:[%s397_s29 + $0x4] ss:$8 sps:$4 sm:$0xff]   ;;  %v997_v52 = vld [vmem:[%s397_s29] ss:$8 sps:$4 sm:$0xff]  }
  0x59   : > { %619 = vmatprep.mubr.bf16.mxu0 %v999_v46  ;;  %v993_v48 = vld [vmem:[%s1307_s26 + $0x70] sm:$0xff]   ;;  %v995_v50 = vld [vmem:[%s1307_s26 + $0x78] sm:$0xff]  }
  0x5a   : > { %873 = vmatpush3.bf16.msra.mxu0 %v984_v38  ;;  %v994_v49 = vld [vmem:[%s1307_s26 + $0x30] sm:$0xff]   ;;  %v996_v51 = vld [vmem:[%s1307_s26 + $0x38] sm:$0xff]  }
  0x5b   : > { %874 = vmatprep.subr.bf16.mxu0 %v985_v39  ;;  %v445_v54 = vld [vmem:[#allocation2] sm:$0xff]  ;;  %v446_v58 = vld [vmem:[#allocation2 + $0x8] sm:$0xff] }
  0x5c   : > { %v854_v1 = vld [vmem:[%s436_s11] ss:$0 sm:$0xff] (!%p853_p5) }
  0x5e   : > { %875 = vmatpush3.bf16.msra.mxu0 %v986_v40 }
  0x5f   : > { %876 = vmatprep.subr.bf16.mxu0 %v987_v41 }
  0x62   : > { %877 = vmatpush3.bf16.msra.mxu0 %v988_v42 }
  0x63   : > { %878 = vmatprep.subr.bf16.mxu0 %v989_v43 }
  0x66   : > { %879 = vmatpush3.bf16.msra.mxu0 %v990_v44 }
  0x67   : > { %880 = vmatprep.subr.bf16.mxu0 %v991_v45 }
  0x6a   : > { %881 = vmatpush3.bf16.msra.mxu0 %v992_v47 }
  0x6b   : > { %882 = vmatprep.subr.bf16.mxu0 %v993_v48 }
  0x6e   : > { %883 = vmatpush3.bf16.msra.mxu0 %v994_v49 }
  0x6f   : > { %884 = vmatprep.subr.bf16.mxu0 %v995_v50 }
  0x72   : > { %885 = vmatpush3.bf16.msra.mxu0 %v996_v51 }
  0x75   : > { %620 = vmatmul.mubr.bf16.vlgmr.msra.gmra.mrb[0].mxu0 %v997_v52 }
 0x148   : > { %v886_v53 = vpop.f32.mrb[0].mxu0 }
 0x149   : > { %v887_v55 = vpop.f32.mrb[1].mxu0 }
 0x14a   : > { %v888_v56 = vadd.f32 %v887_v55, %v886_v53  ;;  %v889_v57 = vpop.f32.mrb[2].mxu0  ;;  %635 = sbr.rel (%p853_p5) target bundleno = 351 (0x15f), region = 119 }
 0x14b   : > { %v890_v59 = vpop.f32.mrb[3].mxu0 }
 0x14c   : > { %v628_v60 = vadd.f32 %v888_v56, %v445_v54  ;;  %v891_v61 = vadd.f32 %v890_v59, %v889_v57 }
 0x14e   : > { %630 = vst [vmem:[#allocation2] sm:$0xff] %v628_v60  ;;  %v629_v62 = vadd.f32 %v891_v61, %v446_v58 }
 0x150   : > { %631 = vst [vmem:[#allocation2 + $0x8] sm:$0xff] %v629_v62 }
 0x155   : > { %v636_v63 = vld [vmem:[#allocation2] sm:$0xff] }
 0x156   : > { %v645_v2 = vadd.f32 %v854_v1, %v636_v63 }
 0x157   : > { %v637_v0 = vld [vmem:[#allocation2 + $0x8] sm:$0xff] }
 0x158   : > { %v646_v3 = vadd.f32 %v854_v1, %v637_v0  ;;  %v647_v4 = vmax.f32 %v645_v2, 0.0 }
 0x15a   : > { %v648_v5 = vmax.f32 %v646_v3, 0.0 }
 0x15c   : > { %v868_v6 = vpack.c.bf16 %v648_v5, %v647_v4 }
 0x15e   : > { %869 = vst [vmem:[%s1309_s6] sm:$0xff] %v868_v6  }
 0x15f PF: > { %665 = sbr.rel (!%p1203_p12) target bundleno = 359 (0x167), region = 123  ;;  %s858_s16 = sshll.u32 (%p1203_p12), %s1074_s19, 2 }
 0x160   : > { %s670_s25 = scalar_lea.vmem (%p1203_p12), %s1383_s3, %s858_s16 }
 0x165   : > { %v686_v7 = vld [vmem:[%s1309_s6] sm:$0xf] (%p1203_p12)  ;;  %v688_v8 = vld [vmem:[%s1309_s6 + $0x4] sm:$0xf] (%p1203_p12) }
 0x166   : > { %687 = vst [vmem:[%s670_s25] sm:$0xf] %v686_v7  ;;  %689 = vst [vmem:[%s670_s25 + $0x8] sm:$0xf] %v688_v8 }
 0x167 PF: > { %s13_s22 = sadd.s32 1, %s1086_s22   ;;  %s1392_s10 = sld [smem:[#allocation8_spill]] }
 0x168   : > { %p10_p6 = scmp.ge.s32.totalorder %s13_s22, 12   ;;  %s1393_s30 = sld [smem:[#allocation6_spill]] }
 0x169   : > { %s1394_s27 = sld [smem:[#allocation7_spill]]  ;;  %s1395_s12 = smov %s1050_s13 }
 0x16a   : > { %s1396_s13 = smov %s1201_s9  ;;  %s1397_s14 = smov %s1058_s15 }
 0x16b   : > { %s1398_s15 = smov %s1198_s8  ;;  %s1399_s16 = smov %s1066_s17 }
 0x16c   : > { %s1401_s18 = smov %s1078_s20  ;;  %s1402_s19 = smov %s1082_s21 }
 0x16d   : > { %s1400_s17 = smov %s1392_s10  ;;  %12 = sbr.rel (!%p10_p6) target bundleno = 6 (0x6), region = 206 }
 0x16e   : > { %s1403_s20 = smov %s1393_s30 }
 0x16f   : > { %s1404_s21 = smov %s1394_s27 }

// kernel: _lambda_.28
= control target key start
LH: loop header
LB: loop body
LE: loop exit
PB: predicated region body
PF: predicated region fallthrough
CT: control target
= control target key end

     0   :  { %s721_s1 = inlined_call_operand.vmem [shape: bf16[128,128], index: 1, kind: input, shape index: {}]   ;;  %s722_s0 = inlined_call_operand.vmem [shape: bf16[128,128], index: 0, kind: input, shape index: {}]   ;;  %s723_s2 = inlined_call_operand.vmem [shape: f32[1,128], index: 2, kind: input, shape index: {}]   ;;  %s724_s3 = inlined_call_operand.vmem [shape: bf16[128,128], index: 3, kind: output, shape index: {}]  }
   0x1   :  { %v610_v0 = vld [vmem:[%s721_s1] sm:$0xff]   ;;  %v611_v1 = vld [vmem:[%s721_s1 + $0x8] sm:$0xff]   ;;  %v612_v2 = vld [vmem:[%s721_s1 + $0x10] sm:$0xff]  }
   0x2   :  { %562 = vmatprep.subr.bf16.mxu0 %v610_v0  ;;  %594 = vmatprep.subr.bf16.mxu1 %v610_v0  ;;  %v613_v3 = vld [vmem:[%s721_s1 + $0x18] sm:$0xff]   ;;  %v618_v4 = vld [vmem:[%s722_s0] sm:$0xff]   ;;  %v615_v7 = vld [vmem:[%s721_s1 + $0x28] sm:$0xff]  }
   0x3   :  { %563 = vmatpush3.bf16.msra.mxu0 %v610_v0  ;;  %602 = vmatpush3.bf16.msra.mxu1 %v610_v0  ;;  %v619_v5 = vld [vmem:[%s722_s0 + $0x20] sm:$0xff]   ;;  %v616_v8 = vld [vmem:[%s721_s1 + $0x30] sm:$0xff]   ;;  %v617_v9 = vld [vmem:[%s721_s1 + $0x38] sm:$0xff]  }
   0x4   :  { %564 = vmatprep.subr.bf16.mxu0 %v611_v1  ;;  %595 = vmatprep.subr.bf16.mxu1 %v611_v1  ;;  %v614_v6 = vld [vmem:[%s721_s1 + $0x20] sm:$0xff]   ;;  %v620_v10 = vld [vmem:[%s722_s0 + $0x8] sm:$0xff]   ;;  %v622_v12 = vld [vmem:[%s722_s0 + $0x10] sm:$0xff]  }
   0x5   :  { %578 = vmatprep.mubr.bf16.mxu0 %v618_v4  ;;  %586 = vmatprep.mubr.bf16.mxu1 %v619_v5  ;;  %v621_v11 = vld [vmem:[%s722_s0 + $0x28] sm:$0xff]   ;;  %v623_v13 = vld [vmem:[%s722_s0 + $0x30] sm:$0xff]   ;;  %v624_v14 = vld [vmem:[%s722_s0 + $0x18] sm:$0xff]  }
   0x6   :  { %v625_v15 = vld [vmem:[%s722_s0 + $0x38] sm:$0xff]   ;;  %v466_v16 = vld [vmem:[%s723_s2] ss:$0 sm:$0xff] }
   0x7   :  { %565 = vmatpush3.bf16.msra.mxu0 %v611_v1  ;;  %603 = vmatpush3.bf16.msra.mxu1 %v611_v1 }
   0x8   :  { %566 = vmatprep.subr.bf16.mxu0 %v612_v2  ;;  %596 = vmatprep.subr.bf16.mxu1 %v612_v2 }
   0xb   :  { %567 = vmatpush3.bf16.msra.mxu0 %v612_v2  ;;  %604 = vmatpush3.bf16.msra.mxu1 %v612_v2 }
   0xc   :  { %568 = vmatprep.subr.bf16.mxu0 %v613_v3  ;;  %597 = vmatprep.subr.bf16.mxu1 %v613_v3 }
   0xf   :  { %569 = vmatpush3.bf16.msra.mxu0 %v613_v3  ;;  %605 = vmatpush3.bf16.msra.mxu1 %v613_v3 }
  0x10   :  { %570 = vmatprep.subr.bf16.mxu0 %v614_v6  ;;  %598 = vmatprep.subr.bf16.mxu1 %v614_v6 }
  0x13   :  { %571 = vmatpush3.bf16.msra.mxu0 %v614_v6  ;;  %606 = vmatpush3.bf16.msra.mxu1 %v614_v6 }
  0x14   :  { %572 = vmatprep.subr.bf16.mxu0 %v615_v7  ;;  %599 = vmatprep.subr.bf16.mxu1 %v615_v7 }
  0x17   :  { %573 = vmatpush3.bf16.msra.mxu0 %v615_v7  ;;  %607 = vmatpush3.bf16.msra.mxu1 %v615_v7 }
  0x18   :  { %574 = vmatprep.subr.bf16.mxu0 %v616_v8  ;;  %600 = vmatprep.subr.bf16.mxu1 %v616_v8 }
  0x1b   :  { %575 = vmatpush3.bf16.msra.mxu0 %v616_v8  ;;  %608 = vmatpush3.bf16.msra.mxu1 %v616_v8 }
  0x1c   :  { %576 = vmatprep.subr.bf16.mxu0 %v617_v9  ;;  %601 = vmatprep.subr.bf16.mxu1 %v617_v9 }
  0x1f   :  { %577 = vmatpush3.bf16.msra.mxu0 %v617_v9  ;;  %609 = vmatpush3.bf16.msra.mxu1 %v617_v9 }
  0x22   :  { %579 = vmatmul.mubr.bf16.vlgmr.msra.gmra.mrb[0].mxu0 %v620_v10  ;;  %587 = vmatmul.mubr.bf16.vlgmr.msra.gmra.mrb[0].mxu1 %v621_v11 }
  0x23   :  { %582 = vmatprep.mubr.bf16.mxu0 %v622_v12  ;;  %590 = vmatprep.mubr.bf16.mxu1 %v623_v13 }
  0x2a   :  { %583 = vmatmul.mubr.bf16.gmra.mrb[4].mxu0 %v624_v14  ;;  %591 = vmatmul.mubr.bf16.gmra.mrb[4].mxu1 %v625_v15 }
  0xf5   :  { %v580_v17 = vpop.f32.mrb[0].mxu0  ;;  %v588_v18 = vpop.f32.mrb[0].mxu1 }
  0xf6   :  { %v336_v19 = vadd.f32 %v580_v17, %v466_v16  ;;  %v344_v20 = vadd.f32 %v588_v18, %v466_v16  ;;  %v213_v21 = vpop.f32.mrb[1].mxu0  ;;  %v245_v22 = vpop.f32.mrb[1].mxu1 }
  0xf7   :  { %v334_v23 = vadd.f32 %v466_v16, %v213_v21  ;;  %v342_v24 = vadd.f32 %v466_v16, %v245_v22  ;;  %v581_v25 = vpop.f32.mrb[2].mxu0  ;;  %v589_v26 = vpop.f32.mrb[2].mxu1 }
  0xf8   :  { %v337_v27 = vadd.f32 %v581_v25, %v466_v16  ;;  %v345_v28 = vadd.f32 %v589_v26, %v466_v16  ;;  %v216_v29 = vpop.f32.mrb[3].mxu0  ;;  %v248_v30 = vpop.f32.mrb[3].mxu1  ;;  %v352_v33 = vmax.f32 %v336_v19, 0.0  ;;  %v360_v34 = vmax.f32 %v344_v20, 0.0 }
  0xf9   :  { %v335_v31 = vadd.f32 %v466_v16, %v216_v29  ;;  %v343_v32 = vadd.f32 %v466_v16, %v248_v30  ;;  %v350_v37 = vmax.f32 %v334_v23, 0.0  ;;  %v358_v38 = vmax.f32 %v342_v24, 0.0 }
  0xfa   :  { %v353_v35 = vmax.f32 %v337_v27, 0.0  ;;  %v361_v36 = vmax.f32 %v345_v28, 0.0 }
  0xfb   :  { %v351_v39 = vmax.f32 %v335_v31, 0.0  ;;  %v359_v40 = vmax.f32 %v343_v32, 0.0 }
  0xfc   :  { %v507_v41 = vpack.c.bf16 %v353_v35, %v352_v33  ;;  %v527_v42 = vpack.c.bf16 %v361_v36, %v360_v34 }
  0xfd   :  { %v502_v43 = vpack.c.bf16 %v351_v39, %v350_v37  ;;  %v522_v44 = vpack.c.bf16 %v359_v40, %v358_v38  ;;  %v584_v45 = vpop.f32.mrb[4].mxu0  ;;  %v592_v46 = vpop.f32.mrb[4].mxu1 }
  0xfe   :  { %539 = vst [vmem:[%s724_s3 + $0x8] sm:$0xff] %v507_v41   ;;  %543 = vst [vmem:[%s724_s3 + $0x28] sm:$0xff] %v527_v42   ;;  %v340_v47 = vadd.f32 %v584_v45, %v466_v16  ;;  %v348_v48 = vadd.f32 %v592_v46, %v466_v16  ;;  %v229_v49 = vpop.f32.mrb[5].mxu0  ;;  %v261_v50 = vpop.f32.mrb[5].mxu1 }
  0xff   :  { %503 = vst [vmem:[%s724_s3] sm:$0xff] %v502_v43   ;;  %542 = vst [vmem:[%s724_s3 + $0x20] sm:$0xff] %v522_v44   ;;  %v338_v51 = vadd.f32 %v466_v16, %v229_v49  ;;  %v346_v52 = vadd.f32 %v466_v16, %v261_v50  ;;  %v585_v53 = vpop.f32.mrb[6].mxu0  ;;  %v593_v54 = vpop.f32.mrb[6].mxu1 }
 0x100   :  { %v341_v55 = vadd.f32 %v585_v53, %v466_v16  ;;  %v349_v56 = vadd.f32 %v593_v54, %v466_v16  ;;  %v232_v57 = vpop.f32.mrb[7].mxu0  ;;  %v264_v58 = vpop.f32.mrb[7].mxu1  ;;  %v356_v61 = vmax.f32 %v340_v47, 0.0  ;;  %v364_v62 = vmax.f32 %v348_v48, 0.0 }
 0x101   :  { %v339_v59 = vadd.f32 %v466_v16, %v232_v57  ;;  %v347_v60 = vadd.f32 %v466_v16, %v264_v58  ;;  %v354_v1 = vmax.f32 %v338_v51, 0.0  ;;  %v362_v2 = vmax.f32 %v346_v52, 0.0 }
 0x102   :  { %v357_v63 = vmax.f32 %v341_v55, 0.0  ;;  %v365_v0 = vmax.f32 %v349_v56, 0.0 }
 0x103   :  { %v355_v3 = vmax.f32 %v339_v59, 0.0  ;;  %v363_v4 = vmax.f32 %v347_v60, 0.0 }
 0x104   :  { %v517_v5 = vpack.c.bf16 %v357_v63, %v356_v61  ;;  %v537_v6 = vpack.c.bf16 %v365_v0, %v364_v62 }
 0x105   :  { %v512_v7 = vpack.c.bf16 %v355_v3, %v354_v1  ;;  %v532_v8 = vpack.c.bf16 %v363_v4, %v362_v2 }
 0x106   :  { %541 = vst [vmem:[%s724_s3 + $0x18] sm:$0xff] %v517_v5   ;;  %545 = vst [vmem:[%s724_s3 + $0x38] sm:$0xff] %v537_v6  }
 0x107   :  { %540 = vst [vmem:[%s724_s3 + $0x10] sm:$0xff] %v512_v7   ;;  %544 = vst [vmem:[%s724_s3 + $0x30] sm:$0xff] %v532_v8  }

// kernel: _lambda_.29
= control target key start
LH: loop header
LB: loop body
LE: loop exit
PB: predicated region body
PF: predicated region fallthrough
CT: control target
= control target key end

     0   :  { %s2013_s0 = inlined_call_operand.vmem [shape: bf16[128,2816], index: 0, kind: input, shape index: {}]   ;;  %s2014_s1 = inlined_call_operand.vmem [shape: bf16[2816,256], index: 1, kind: input, shape index: {}]   ;;  %s2015_s2 = inlined_call_operand.vmem [shape: f32[1,256], index: 2, kind: input, shape index: {}]   ;;  %s2016_s3 = inlined_call_operand.vmem [shape: bf16[128,256], index: 3, kind: output, shape index: {}]  }
   0x1   :  { %2018 = sst [smem:[#allocation7_spill]] %s2013_s0 }
   0x2   :  { %2019 = sst [smem:[#allocation8_spill]] %s2014_s1 }
   0x3   :  { %s1692_s12 = smov 0   ;;  %s1694_s13 = smov 0  }
   0x4   :  { %s1696_s14 = smov 0   ;;  %s1698_s15 = smov 0  }
   0x5   :  { %s1700_s16 = smov 0   ;;  %s1702_s17 = smov 0  }
   0x6   :  { %s1704_s18 = smov 0   ;;  %s1706_s19 = smov 0  }
   0x7   :  { %s1708_s20 = smov 0   ;;  %s1710_s21 = smov 0  }
   0x8   :  { %s1712_s22 = smov 0  }
   0x9 LB: > { %s1239_s23 = sadd.s32 4294967295, %s1669_s22   ;;  %s25_s24 = sadd.s32 1, %s1661_s20  ;;  %s1669_s22 = sphi %s1712_s22, %s13_s22   ;;  %s1665_s21 = sphi %s1710_s21, %s2036_s21   ;;  %s1661_s20 = sphi %s1708_s20, %s2035_s20   ;;  %s1657_s19 = sphi %s1706_s19, %s2034_s19   ;;  %s1653_s18 = sphi %s1704_s18, %s2033_s18   ;;  %s1649_s17 = sphi %s1702_s17, %s2032_s17   ;;  %s1645_s16 = sphi %s1700_s16, %s2031_s16   ;;  %s1641_s15 = sphi %s1698_s15, %s2030_s15   ;;  %s1637_s14 = sphi %s1696_s14, %s2029_s14   ;;  %s1633_s13 = sphi %s1694_s13, %s2028_s13   ;;  %s1629_s12 = sphi %s1692_s12, %s2027_s12  }
   0xa   : > { %p26_p0 = scmp.ge.s32.totalorder %s25_s24, 11  ;;  %s28_s25 = sadd.s32 1, %s1665_s21 }
   0xb   : > { %s41_s26 = sadd.s32 1, %s1649_s17  ;;  %p48_p1 = scmp.ne.s32.totalorder %s1649_s17, %s1645_s16 }
   0xc   : > { %s2038_s24 = smov (%p26_p0, %s25_s24), 0  ;;  %s2040_s25 = smov (!%p26_p0, %s28_s25), %s1665_s21 }
   0xd   : > { %s37_s27 = ssub.s32 %s1661_s20, %s2038_s24  ;;  %p49_p2 = scmp.eq.s32.totalorder %s1669_s22, 0 }
   0xe   : > { %p30_p3 = scmp.ge.s32.totalorder %s2040_s25, 2  ;;  %p39_p4 = scmp.eq.s32.totalorder %s37_s27, 0 }
   0xf   : > { %p1759_p5 = por %p49_p2, %p48_p1  ;;  %s69_s29 = sadd.s32 1, %s1641_s15 }
  0x10   : > { %s2042_s25 = smov (%p30_p3, %s2040_s25), 0  ;;  %p76_p6 = scmp.ne.s32.totalorder %s1641_s15, %s1637_s14 }
  0x11   : > { %2021 = sst [smem:[#allocation6_spill]] %s2042_s25  ;;  %s65_s4 = ssub.s32 %s1665_s21, %s2042_s25 }
  0x12   : > { %s1767_s30 = scalar_select %p39_p4, %s1649_s17, %s41_s26  }
  0x13   : > { %s66_s5 = sor.u32 %s65_s4, %s37_s27  ;;  %p121_p7 = scmp.eq.s32.totalorder %s65_s4, 0 }
  0x14   : > { %p67_p8 = scmp.eq.s32.totalorder %s66_s5, 0  ;;  %p1773_p9 = por %p76_p6, %p49_p2 }
  0x15   : > { %s123_s7 = sadd.s32 1, %s1633_s13  ;;  %p133_p10 = scmp.ne.s32.totalorder %s1633_s13, %s1629_s12 }
  0x16   : > { %s1781_s8 = scalar_select %p67_p8, %s1641_s15, %s69_s29  }
  0x17   : > { %s1784_s9 = scalar_select %p121_p7, %s1633_s13, %s123_s7  }
  0x18   : > { %p134_p11 = scmp.eq.s32.totalorder %s1239_s23, 21  ;;  %p1242_p13 = scmp.ge.s32.totalorder %s1669_s22, 22 }
  0x1a   : > { %p1786_p12 = por %p134_p11, %p133_p10  ;;  %156 = sbr.rel (%p1242_p13) target bundleno = 82 (0x52), region = 16 }
  0x21   : > { %159 = sbr.rel (!%p1759_p5) target bundleno = 51 (0x33), region = 20  ;;  %s161_s11 = sand.u32 (%p1759_p5), 1, %s1649_s17  }
  0x22   : > { %s1309_s26 = sshll.u32 (%p1759_p5), %s1661_s20, 3  ;;  %s1243_s27 = sshll.u32 (%p1759_p5), %s161_s11, 7 }
  0x23   : > { %s2024_s0 = sld [smem:[#allocation7_spill]] (%p1759_p5)  ;;  %s163_s23 = scalar_lea.vmem (%p1759_p5), [#allocation3], %s1243_s27 }
  0x29   : > { %s1798_s5 = scalar_lea.vmem %s2024_s0, %s1309_s26 }
  0x2a   : > { %v227_v0 = vld [vmem:[%s1798_s5] sm:$0xff]  ;;  %v229_v1 = vld [vmem:[%s1798_s5 + $0x58] sm:$0xff]  ;;  %v231_v2 = vld [vmem:[%s1798_s5 + $0xb0] sm:$0xff] }
  0x2b   : > { %228 = vst [vmem:[%s163_s23] sm:$0xff] %v227_v0  ;;  %230 = vst [vmem:[%s163_s23 + $0x8] sm:$0xff] %v229_v1  ;;  %v233_v3 = vld [vmem:[%s1798_s5 + $0x108] sm:$0xff]  ;;  %v235_v4 = vld [vmem:[%s1798_s5 + $0x160] sm:$0xff] }
  0x2c   : > { %232 = vst [vmem:[%s163_s23 + $0x10] sm:$0xff] %v231_v2  ;;  %v237_v5 = vld [vmem:[%s1798_s5 + $0x1b8] sm:$0xff]  ;;  %234 = vst [vmem:[%s163_s23 + $0x18] sm:$0xff] %v233_v3  ;;  %v239_v6 = vld [vmem:[%s1798_s5 + $0x210] sm:$0xff] }
  0x2d   : > { %236 = vst [vmem:[%s163_s23 + $0x20] sm:$0xff] %v235_v4  ;;  %238 = vst [vmem:[%s163_s23 + $0x28] sm:$0xff] %v237_v5  ;;  %v241_v7 = vld [vmem:[%s1798_s5 + $0x268] sm:$0xff]  ;;  %v243_v8 = vld [vmem:[%s1798_s5 + $0x2c0] sm:$0xff] }
  0x2e   : > { %240 = vst [vmem:[%s163_s23 + $0x30] sm:$0xff] %v239_v6  ;;  %242 = vst [vmem:[%s163_s23 + $0x38] sm:$0xff] %v241_v7  ;;  %v245_v9 = vld [vmem:[%s1798_s5 + $0x318] sm:$0xff]  ;;  %v247_v10 = vld [vmem:[%s1798_s5 + $0x370] sm:$0xff] }
  0x2f   : > { %244 = vst [vmem:[%s163_s23 + $0x40] sm:$0xff] %v243_v8  ;;  %v249_v11 = vld [vmem:[%s1798_s5 + $0x3c8] sm:$0xff]  ;;  %246 = vst [vmem:[%s163_s23 + $0x48] sm:$0xff] %v245_v9  ;;  %v251_v12 = vld [vmem:[%s1798_s5 + $0x420] sm:$0xff] }
  0x30   : > { %248 = vst [vmem:[%s163_s23 + $0x50] sm:$0xff] %v247_v10  ;;  %250 = vst [vmem:[%s163_s23 + $0x58] sm:$0xff] %v249_v11  ;;  %v253_v13 = vld [vmem:[%s1798_s5 + $0x478] sm:$0xff]  ;;  %v255_v14 = vld [vmem:[%s1798_s5 + $0x4d0] sm:$0xff] }
  0x31   : > { %252 = vst [vmem:[%s163_s23 + $0x60] sm:$0xff] %v251_v12  ;;  %254 = vst [vmem:[%s163_s23 + $0x68] sm:$0xff] %v253_v13  ;;  %v257_v15 = vld [vmem:[%s1798_s5 + $0x528] sm:$0xff] }
  0x32   : > { %256 = vst [vmem:[%s163_s23 + $0x70] sm:$0xff] %v255_v14  ;;  %258 = vst [vmem:[%s163_s23 + $0x78] sm:$0xff] %v257_v15 }
  0x33 PF: > { %264 = sbr.rel (!%p1773_p9) target bundleno = 82 (0x52), region = 58  ;;  %s266_s28 = sand.u32 (%p1773_p9), 1, %s1641_s15  }
  0x34   : > { %s1310_s7 = sshll.u32 (%p1773_p9), %s1661_s20, 6  ;;  %s1246_s11 = sshll.u32 (%p1773_p9), %s266_s28, 7 }
  0x35   : > { %s271_s26 = sadd.s32 (%p1773_p9), %s1665_s21, %s1310_s7  ;;  %s2025_s1 = sld [smem:[#allocation8_spill]] (%p1773_p9) }
  0x36   : > { %s1249_s27 = sshll.u32 (%p1773_p9), %s271_s26, 2  ;;  %s1829_s6 = scalar_lea.vmem (%p1773_p9), [#allocation4], %s1246_s11 }
  0x3b   : > { %s1824_s0 = scalar_lea.vmem %s2025_s1, %s1249_s27 }
  0x3c   : > { %v289_v16 = vld [vmem:[%s1824_s0] sm:$0xf]  ;;  %v291_v17 = vld [vmem:[%s1824_s0 + $0x8] sm:$0xf]  ;;  %v293_v18 = vld [vmem:[%s1824_s0 + $0x10] sm:$0xf] }
  0x3d   : > { %290 = vst [vmem:[%s1829_s6] sm:$0xf] %v289_v16  ;;  %292 = vst [vmem:[%s1829_s6 + $0x4] sm:$0xf] %v291_v17  ;;  %v295_v19 = vld [vmem:[%s1824_s0 + $0x18] sm:$0xf] }
  0x3e   : > { %294 = vst [vmem:[%s1829_s6 + $0x8] sm:$0xf] %v293_v18  ;;  %v297_v20 = vld [vmem:[%s1824_s0 + $0x20] sm:$0xf]  ;;  %v299_v21 = vld [vmem:[%s1824_s0 + $0x28] sm:$0xf] }
  0x3f   : > { %296 = vst [vmem:[%s1829_s6 + $0xc] sm:$0xf] %v295_v19  ;;  %298 = vst [vmem:[%s1829_s6 + $0x10] sm:$0xf] %v297_v20  ;;  %v301_v22 = vld [vmem:[%s1824_s0 + $0x30] sm:$0xf] }
  0x40   : > { %300 = vst [vmem:[%s1829_s6 + $0x14] sm:$0xf] %v299_v21  ;;  %v303_v23 = vld [vmem:[%s1824_s0 + $0x38] sm:$0xf]  ;;  %v305_v24 = vld [vmem:[%s1824_s0 + $0x40] sm:$0xf] }
  0x41   : > { %302 = vst [vmem:[%s1829_s6 + $0x18] sm:$0xf] %v301_v22  ;;  %304 = vst [vmem:[%s1829_s6 + $0x1c] sm:$0xf] %v303_v23  ;;  %v307_v25 = vld [vmem:[%s1824_s0 + $0x48] sm:$0xf] }
  0x42   : > { %306 = vst [vmem:[%s1829_s6 + $0x20] sm:$0xf] %v305_v24  ;;  %v309_v26 = vld [vmem:[%s1824_s0 + $0x50] sm:$0xf]  ;;  %v311_v27 = vld [vmem:[%s1824_s0 + $0x58] sm:$0xf] }
  0x43   : > { %308 = vst [vmem:[%s1829_s6 + $0x24] sm:$0xf] %v307_v25  ;;  %310 = vst [vmem:[%s1829_s6 + $0x28] sm:$0xf] %v309_v26  ;;  %v313_v28 = vld [vmem:[%s1824_s0 + $0x60] sm:$0xf] }
  0x44   : > { %312 = vst [vmem:[%s1829_s6 + $0x2c] sm:$0xf] %v311_v27  ;;  %v315_v29 = vld [vmem:[%s1824_s0 + $0x68] sm:$0xf]  ;;  %v317_v30 = vld [vmem:[%s1824_s0 + $0x70] sm:$0xf] }
  0x45   : > { %314 = vst [vmem:[%s1829_s6 + $0x30] sm:$0xf] %v313_v28  ;;  %316 = vst [vmem:[%s1829_s6 + $0x34] sm:$0xf] %v315_v29  ;;  %v319_v31 = vld [vmem:[%s1824_s0 + $0x78] sm:$0xf] }
  0x46   : > { %318 = vst [vmem:[%s1829_s6 + $0x38] sm:$0xf] %v317_v30  ;;  %v321_v32 = vld [vmem:[%s1824_s0 + $0x80] sm:$0xf]  ;;  %v323_v33 = vld [vmem:[%s1824_s0 + $0x88] sm:$0xf] }
  0x47   : > { %320 = vst [vmem:[%s1829_s6 + $0x3c] sm:$0xf] %v319_v31  ;;  %322 = vst [vmem:[%s1829_s6 + $0x40] sm:$0xf] %v321_v32  ;;  %v325_v34 = vld [vmem:[%s1824_s0 + $0x90] sm:$0xf] }
  0x48   : > { %324 = vst [vmem:[%s1829_s6 + $0x44] sm:$0xf] %v323_v33  ;;  %v327_v35 = vld [vmem:[%s1824_s0 + $0x98] sm:$0xf]  ;;  %v329_v36 = vld [vmem:[%s1824_s0 + $0xa0] sm:$0xf] }
  0x49   : > { %326 = vst [vmem:[%s1829_s6 + $0x48] sm:$0xf] %v325_v34  ;;  %328 = vst [vmem:[%s1829_s6 + $0x4c] sm:$0xf] %v327_v35  ;;  %v331_v37 = vld [vmem:[%s1824_s0 + $0xa8] sm:$0xf] }
  0x4a   : > { %330 = vst [vmem:[%s1829_s6 + $0x50] sm:$0xf] %v329_v36  ;;  %v333_v38 = vld [vmem:[%s1824_s0 + $0xb0] sm:$0xf]  ;;  %v335_v39 = vld [vmem:[%s1824_s0 + $0xb8] sm:$0xf] }
  0x4b   : > { %332 = vst [vmem:[%s1829_s6 + $0x54] sm:$0xf] %v331_v37  ;;  %334 = vst [vmem:[%s1829_s6 + $0x58] sm:$0xf] %v333_v38  ;;  %v337_v40 = vld [vmem:[%s1824_s0 + $0xc0] sm:$0xf] }
  0x4c   : > { %336 = vst [vmem:[%s1829_s6 + $0x5c] sm:$0xf] %v335_v39  ;;  %v339_v41 = vld [vmem:[%s1824_s0 + $0xc8] sm:$0xf]  ;;  %v341_v42 = vld [vmem:[%s1824_s0 + $0xd0] sm:$0xf] }
  0x4d   : > { %338 = vst [vmem:[%s1829_s6 + $0x60] sm:$0xf] %v337_v40  ;;  %340 = vst [vmem:[%s1829_s6 + $0x64] sm:$0xf] %v339_v41  ;;  %v343_v43 = vld [vmem:[%s1824_s0 + $0xd8] sm:$0xf] }
  0x4e   : > { %342 = vst [vmem:[%s1829_s6 + $0x68] sm:$0xf] %v341_v42  ;;  %v345_v44 = vld [vmem:[%s1824_s0 + $0xe0] sm:$0xf]  ;;  %v347_v45 = vld [vmem:[%s1824_s0 + $0xe8] sm:$0xf] }
  0x4f   : > { %344 = vst [vmem:[%s1829_s6 + $0x6c] sm:$0xf] %v343_v43  ;;  %346 = vst [vmem:[%s1829_s6 + $0x70] sm:$0xf] %v345_v44  ;;  %v349_v46 = vld [vmem:[%s1824_s0 + $0xf0] sm:$0xf] }
  0x50   : > { %348 = vst [vmem:[%s1829_s6 + $0x74] sm:$0xf] %v347_v45  ;;  %v351_v47 = vld [vmem:[%s1824_s0 + $0xf8] sm:$0xf]  ;;  %350 = vst [vmem:[%s1829_s6 + $0x78] sm:$0xf] %v349_v46 }
  0x51   : > { %352 = vst [vmem:[%s1829_s6 + $0x7c] sm:$0xf] %v351_v47 }
  0x52 PF: > { %p1250_p0 = scmp.ge.s32.totalorder %s1669_s22, 1  ;;  %p444_p1 = scmp.lt.s32.totalorder %s1669_s22, 23 }
  0x54   : > { %p445_p2 = pnand %p1250_p0, %p444_p1 }
  0x55   : > { %s451_s5 = sand.u32 (!%p445_p2), 1, %s1645_s16   ;;  %s458_s23 = sand.u32 (!%p445_p2), 1, %s1637_s14  }
  0x56   : > { %448 = sbr.rel (%p445_p2) target bundleno = 407 (0x197), region = 103  ;;  %s1251_s28 = sshll.u32 (!%p445_p2), %s451_s5, 7 }
  0x57   : > { %s1252_s7 = sshll.u32 (!%p445_p2), %s458_s23, 7  ;;  %s484_s0 = sand.u32 (!%p445_p2), 1, %s1629_s12  }
  0x58   : > { %p490_p3 = scmp.lt.s32.totalorder (!%p445_p2), %s1657_s19, 1  ;;  %s1253_s11 = sshll.u32 (!%p445_p2), %s484_s0, 6 }
  0x59   : > { %s1905_s6 = scalar_lea.vmem (!%p445_p2), [#allocation3], %s1251_s28  ;;  %s1907_s1 = scalar_lea.vmem (!%p445_p2), [#allocation4], %s1252_s7 }
  0x5a   : > { %s1909_s25 = scalar_lea.vmem (!%p445_p2), [#allocation5], %s1253_s11  ;;  %p1254_p4 = scmp.ne.s32.totalorder (!%p445_p2), %s1653_s18, 0 }
  0x5d   : > { %s1899_s26 = scalar_select %p490_p3, %s1657_s19, 1 }
  0x5e   : > { %498 = sbr.rel (%p1254_p4) target bundleno = 103 (0x67), region = 115  ;;  %v1671_v48 = vmov (!%p1254_p4), 0.0  }
  0x5f   : > { %s492_s4 = scalar_lea.vmem %s2015_s2, %s1899_s26  ;;  %499 = vst [vmem:[#allocation2] sm:$0xff] (!%p1254_p4), %v1671_v48  ;;  %500 = vst [vmem:[#allocation2 + $0x8] sm:$0xff] (!%p1254_p4), %v1671_v48 }
  0x60   : > { %501 = vst [vmem:[#allocation2 + $0x10] sm:$0xff] (!%p1254_p4), %v1671_v48  ;;  %502 = vst [vmem:[#allocation2 + $0x18] sm:$0xff] (!%p1254_p4), %v1671_v48 }
  0x61   : > { %503 = vst [vmem:[#allocation2 + $0x20] sm:$0xff] (!%p1254_p4), %v1671_v48  ;;  %504 = vst [vmem:[#allocation2 + $0x28] sm:$0xff] (!%p1254_p4), %v1671_v48 }
  0x62   : > { %505 = vst [vmem:[#allocation2 + $0x30] sm:$0xff] (!%p1254_p4), %v1671_v48  ;;  %506 = vst [vmem:[#allocation2 + $0x38] sm:$0xff] (!%p1254_p4), %v1671_v48 }
  0x63   : > { %507 = vst [vmem:[#allocation2 + $0x40] sm:$0xff] (!%p1254_p4), %v1671_v48  ;;  %508 = vst [vmem:[#allocation2 + $0x48] sm:$0xff] (!%p1254_p4), %v1671_v48 }
  0x64   : > { %509 = vst [vmem:[#allocation2 + $0x50] sm:$0xff] (!%p1254_p4), %v1671_v48  ;;  %510 = vst [vmem:[#allocation2 + $0x58] sm:$0xff] (!%p1254_p4), %v1671_v48 }
  0x65   : > { %511 = vst [vmem:[#allocation2 + $0x60] sm:$0xff] %v1671_v48  ;;  %512 = vst [vmem:[#allocation2 + $0x68] sm:$0xff] %v1671_v48 }
  0x66   : > { %513 = vst [vmem:[#allocation2 + $0x70] sm:$0xff] %v1671_v48  ;;  %514 = vst [vmem:[#allocation2 + $0x78] sm:$0xff] %v1671_v48 }
  0x67 PF: > { %v1543_v49 = vld [vmem:[%s1907_s1 + $0x40] sm:$0xff]   ;;  %v1545_v51 = vld [vmem:[%s1907_s1 + $0x48] sm:$0xff]   ;;  %v1547_v53 = vld [vmem:[%s1907_s1 + $0x50] sm:$0xff]   ;;  %p1287_p5 = scmp.ne.s32.totalorder %s1653_s18, 10 }
  0x68   : > { %v1544_v50 = vld [vmem:[%s1907_s1] sm:$0xff]   ;;  %1374 = vmatprep.subr.bf16.mxu0 %v1543_v49  ;;  %1438 = vmatprep.subr.bf16.mxu1 %v1543_v49  ;;  %v1546_v52 = vld [vmem:[%s1907_s1 + $0x8] sm:$0xff]   ;;  %v1548_v54 = vld [vmem:[%s1907_s1 + $0x10] sm:$0xff]  }
  0x69   : > { %1375 = vmatpush3.bf16.msra.mxu0 %v1544_v50  ;;  %1446 = vmatpush3.bf16.msra.mxu1 %v1544_v50  ;;  %v1549_v55 = vld [vmem:[%s1907_s1 + $0x58] sm:$0xff]   ;;  %v1551_v57 = vld [vmem:[%s1907_s1 + $0x60] sm:$0xff]   ;;  %v1553_v59 = vld [vmem:[%s1907_s1 + $0x68] sm:$0xff]  }
  0x6a   : > { %1376 = vmatprep.subr.bf16.mxu0 %v1545_v51  ;;  %1439 = vmatprep.subr.bf16.mxu1 %v1545_v51  ;;  %v1550_v56 = vld [vmem:[%s1907_s1 + $0x18] sm:$0xff]   ;;  %v1552_v58 = vld [vmem:[%s1907_s1 + $0x20] sm:$0xff]   ;;  %v1554_v62 = vld [vmem:[%s1907_s1 + $0x28] sm:$0xff]  }
  0x6b   : > { %v1561_v60 = vld [vmem:[%s1905_s6 + $0x4] ss:$8 sps:$4 sm:$0xff]   ;;  %v1555_v63 = vld [vmem:[%s1907_s1 + $0x70] sm:$0xff]   ;;  %v1557_v1 = vld [vmem:[%s1907_s1 + $0x78] sm:$0xff]  }
  0x6c   : > { %v1564_v61 = vld [vmem:[%s1905_s6 + $0x44] ss:$8 sps:$4 sm:$0xff]   ;;  %787 = vmatprep.mubr.bf16.mxu0 %v1561_v60  ;;  %v1556_v0 = vld [vmem:[%s1907_s1 + $0x30] sm:$0xff]   ;;  %v1558_v2 = vld [vmem:[%s1907_s1 + $0x38] sm:$0xff]  }
  0x6d   : > { %1377 = vmatpush3.bf16.msra.mxu0 %v1546_v52  ;;  %1447 = vmatpush3.bf16.msra.mxu1 %v1546_v52  ;;  %v1559_v3 = vld [vmem:[%s1905_s6] ss:$8 sps:$4 sm:$0xff]   ;;  %v1565_v5 = vld [vmem:[%s1905_s6 + $0x14] ss:$8 sps:$4 sm:$0xff]   ;;  %v1569_v7 = vld [vmem:[%s1905_s6 + $0x10] ss:$8 sps:$4 sm:$0xff]  }
  0x6e   : > { %1378 = vmatprep.subr.bf16.mxu0 %v1547_v53  ;;  %1440 = vmatprep.subr.bf16.mxu1 %v1547_v53  ;;  %v1562_v4 = vld [vmem:[%s1905_s6 + $0x40] ss:$8 sps:$4 sm:$0xff]   ;;  %v1567_v6 = vld [vmem:[%s1905_s6 + $0x54] ss:$8 sps:$4 sm:$0xff]   ;;  %v1570_v8 = vld [vmem:[%s1905_s6 + $0x50] ss:$8 sps:$4 sm:$0xff]  }
  0x6f   : > { %819 = vmatprep.mubr.bf16.mxu1 %v1564_v61  ;;  %v1571_v9 = vld [vmem:[%s1905_s6 + $0x24] ss:$8 sps:$4 sm:$0xff]   ;;  %v1575_v11 = vld [vmem:[%s1905_s6 + $0x20] ss:$8 sps:$4 sm:$0xff]   ;;  %v1577_v13 = vld [vmem:[%s1905_s6 + $0x34] ss:$8 sps:$4 sm:$0xff]  }
  0x70   : > { %v1573_v10 = vld [vmem:[%s1905_s6 + $0x64] ss:$8 sps:$4 sm:$0xff]   ;;  %v1576_v12 = vld [vmem:[%s1905_s6 + $0x60] ss:$8 sps:$4 sm:$0xff]   ;;  %v1579_v14 = vld [vmem:[%s1905_s6 + $0x74] ss:$8 sps:$4 sm:$0xff]  }
  0x71   : > { %1379 = vmatpush3.bf16.msra.mxu0 %v1548_v54  ;;  %1448 = vmatpush3.bf16.msra.mxu1 %v1548_v54  ;;  %v1581_v15 = vld [vmem:[%s1905_s6 + $0x30] ss:$8 sps:$4 sm:$0xff]   ;;  %v515_v19 = vld [vmem:[#allocation2] sm:$0xff]  ;;  %v516_v27 = vld [vmem:[#allocation2 + $0x8] sm:$0xff] }
  0x72   : > { %1380 = vmatprep.subr.bf16.mxu0 %v1549_v55  ;;  %1441 = vmatprep.subr.bf16.mxu1 %v1549_v55  ;;  %v1582_v16 = vld [vmem:[%s1905_s6 + $0x70] ss:$8 sps:$4 sm:$0xff]   ;;  %v523_v21 = vld [vmem:[#allocation2 + $0x40] sm:$0xff]  ;;  %v524_v29 = vld [vmem:[#allocation2 + $0x48] sm:$0xff] }
  0x73   : > { %v517_v39 = vld [vmem:[#allocation2 + $0x10] sm:$0xff]  ;;  %v518_v47 = vld [vmem:[#allocation2 + $0x18] sm:$0xff]  ;;  %v527_v61 = vld [vmem:[#allocation2 + $0x60] sm:$0xff] }
  0x74   : > { %v525_v41 = vld [vmem:[#allocation2 + $0x50] sm:$0xff]  ;;  %v526_v49 = vld [vmem:[#allocation2 + $0x58] sm:$0xff] }
  0x75   : > { %1381 = vmatpush3.bf16.msra.mxu0 %v1550_v56  ;;  %1449 = vmatpush3.bf16.msra.mxu1 %v1550_v56 }
  0x76   : > { %1382 = vmatprep.subr.bf16.mxu0 %v1551_v57  ;;  %1442 = vmatprep.subr.bf16.mxu1 %v1551_v57 }
  0x79   : > { %1383 = vmatpush3.bf16.msra.mxu0 %v1552_v58  ;;  %1450 = vmatpush3.bf16.msra.mxu1 %v1552_v58 }
  0x7a   : > { %1384 = vmatprep.subr.bf16.mxu0 %v1553_v59  ;;  %1443 = vmatprep.subr.bf16.mxu1 %v1553_v59  ;;  %v519_v59 = vld [vmem:[#allocation2 + $0x20] sm:$0xff] }
  0x7d   : > { %1385 = vmatpush3.bf16.msra.mxu0 %v1554_v62  ;;  %1451 = vmatpush3.bf16.msra.mxu1 %v1554_v62 }
  0x7e   : > { %1386 = vmatprep.subr.bf16.mxu0 %v1555_v63  ;;  %1444 = vmatprep.subr.bf16.mxu1 %v1555_v63 }
  0x81   : > { %1387 = vmatpush3.bf16.msra.mxu0 %v1556_v0  ;;  %1452 = vmatpush3.bf16.msra.mxu1 %v1556_v0 }
  0x82   : > { %1388 = vmatprep.subr.bf16.mxu0 %v1557_v1  ;;  %1445 = vmatprep.subr.bf16.mxu1 %v1557_v1 }
  0x85   : > { %1389 = vmatpush3.bf16.msra.mxu0 %v1558_v2  ;;  %1453 = vmatpush3.bf16.msra.mxu1 %v1558_v2 }
  0x88   : > { %788 = vmatmul.mubr.bf16.vlgmr.msra.gmra.mrb[0].mxu0 %v1559_v3  ;;  %820 = vmatmul.mubr.bf16.vlgmr.msra.gmra.mrb[0].mxu1 %v1562_v4  ;;  %v520_v3 = vld [vmem:[#allocation2 + $0x28] sm:$0xff] }
  0x89   : > { %795 = vmatprep.mubr.bf16.mxu0 %v1565_v5  ;;  %827 = vmatprep.mubr.bf16.mxu1 %v1567_v6  ;;  %v528_v5 = vld [vmem:[#allocation2 + $0x68] sm:$0xff] }
  0x90   : > { %796 = vmatmul.mubr.bf16.gmra.mrb[4].mxu0 %v1569_v7  ;;  %828 = vmatmul.mubr.bf16.gmra.mrb[4].mxu1 %v1570_v8 }
  0x91   : > { %803 = vmatprep.mubr.bf16.mxu0 %v1571_v9  ;;  %835 = vmatprep.mubr.bf16.mxu1 %v1573_v10 }
  0x98   : > { %804 = vmatmul.mubr.bf16.gmra.mrb[8].mxu0 %v1575_v11  ;;  %836 = vmatmul.mubr.bf16.gmra.mrb[8].mxu1 %v1576_v12 }
  0x99   : > { %811 = vmatprep.mubr.bf16.mxu0 %v1577_v13  ;;  %843 = vmatprep.mubr.bf16.mxu1 %v1579_v14 }
  0xa0   : > { %812 = vmatmul.mubr.bf16.gmra.mrb[12].mxu0 %v1581_v15  ;;  %844 = vmatmul.mubr.bf16.gmra.mrb[12].mxu1 %v1582_v16  ;;  %v521_v15 = vld [vmem:[#allocation2 + $0x30] sm:$0xff] }
 0x15b   : > { %v1390_v17 = vpop.f32.mrb[0].mxu0  ;;  %v1414_v18 = vpop.f32.mrb[0].mxu1 }
 0x15c   : > { %v1391_v20 = vpop.f32.mrb[1].mxu0  ;;  %v1415_v22 = vpop.f32.mrb[1].mxu1 }
 0x15d   : > { %v1392_v23 = vadd.f32 %v1391_v20, %v1390_v17  ;;  %v1416_v24 = vadd.f32 %v1415_v22, %v1414_v18  ;;  %v1393_v25 = vpop.f32.mrb[2].mxu0  ;;  %v1417_v26 = vpop.f32.mrb[2].mxu1  ;;  %v529_v17 = vld [vmem:[#allocation2 + $0x70] sm:$0xff] }
 0x15e   : > { %v1394_v28 = vpop.f32.mrb[3].mxu0  ;;  %v1418_v30 = vpop.f32.mrb[3].mxu1 }
 0x15f   : > { %v852_v31 = vadd.f32 %v1392_v23, %v515_v19  ;;  %v860_v32 = vadd.f32 %v1416_v24, %v523_v21  ;;  %v1395_v33 = vadd.f32 %v1394_v28, %v1393_v25  ;;  %v1419_v34 = vadd.f32 %v1418_v30, %v1417_v26  ;;  %v522_v23 = vld [vmem:[#allocation2 + $0x38] sm:$0xff] }
 0x160   : > { %v530_v25 = vld [vmem:[#allocation2 + $0x78] sm:$0xff] }
 0x161   : > { %868 = vst [vmem:[#allocation2] sm:$0xff] %v852_v31  ;;  %876 = vst [vmem:[#allocation2 + $0x40] sm:$0xff] %v860_v32  ;;  %v853_v35 = vadd.f32 %v1395_v33, %v516_v27  ;;  %v861_v36 = vadd.f32 %v1419_v34, %v524_v29 }
 0x163   : > { %869 = vst [vmem:[#allocation2 + $0x8] sm:$0xff] %v853_v35  ;;  %877 = vst [vmem:[#allocation2 + $0x48] sm:$0xff] %v861_v36  ;;  %v1396_v37 = vpop.f32.mrb[4].mxu0  ;;  %v1420_v38 = vpop.f32.mrb[4].mxu1  ;;  %v1288_v35 = vld [vmem:[%s492_s4] ss:$0 sm:$0xff] (!%p1287_p5) }
 0x164   : > { %v1397_v40 = vpop.f32.mrb[5].mxu0  ;;  %v1421_v42 = vpop.f32.mrb[5].mxu1 }
 0x165   : > { %v1398_v43 = vadd.f32 %v1397_v40, %v1396_v37  ;;  %v1422_v44 = vadd.f32 %v1421_v42, %v1420_v38  ;;  %v1399_v45 = vpop.f32.mrb[6].mxu0  ;;  %v1423_v46 = vpop.f32.mrb[6].mxu1 }
 0x166   : > { %v1400_v48 = vpop.f32.mrb[7].mxu0  ;;  %v1424_v50 = vpop.f32.mrb[7].mxu1 }
 0x167   : > { %v854_v51 = vadd.f32 %v1398_v43, %v517_v39  ;;  %v862_v52 = vadd.f32 %v1422_v44, %v525_v41  ;;  %v1401_v53 = vadd.f32 %v1400_v48, %v1399_v45  ;;  %v1425_v54 = vadd.f32 %v1424_v50, %v1423_v46 }
 0x168   : > { %v888_v33 = vld [vmem:[#allocation2] sm:$0xff] (!%p1287_p5) }
 0x169   : > { %870 = vst [vmem:[#allocation2 + $0x10] sm:$0xff] %v854_v51  ;;  %878 = vst [vmem:[#allocation2 + $0x50] sm:$0xff] %v862_v52  ;;  %v855_v55 = vadd.f32 %v1401_v53, %v518_v47  ;;  %v863_v56 = vadd.f32 %v1425_v54, %v526_v49  ;;  %v911_v36 = vadd.f32 (!%p1287_p5), %v1288_v35, %v888_v33  ;;  %v896_v51 = vld [vmem:[#allocation2 + $0x40] sm:$0xff] (!%p1287_p5) }
 0x16a   : > { %v889_v34 = vld [vmem:[#allocation2 + $0x8] sm:$0xff] (!%p1287_p5) }
 0x16b   : > { %871 = vst [vmem:[#allocation2 + $0x18] sm:$0xff] %v855_v55  ;;  %879 = vst [vmem:[#allocation2 + $0x58] sm:$0xff] %v863_v56  ;;  %v1402_v57 = vpop.f32.mrb[8].mxu0  ;;  %v1426_v58 = vpop.f32.mrb[8].mxu1  ;;  %v912_v37 = vadd.f32 (!%p1287_p5), %v1288_v35, %v889_v34  ;;  %v927_v47 = vmax.f32 (!%p1287_p5), %v911_v36, 0.0  ;;  %v897_v52 = vld [vmem:[#allocation2 + $0x48] sm:$0xff] (!%p1287_p5) }
 0x16c   : > { %v1403_v60 = vpop.f32.mrb[9].mxu0  ;;  %v1427_v62 = vpop.f32.mrb[9].mxu1 }
 0x16d   : > { %v1404_v63 = vadd.f32 %v1403_v60, %v1402_v57  ;;  %v1428_v0 = vadd.f32 %v1427_v62, %v1426_v58  ;;  %v1405_v1 = vpop.f32.mrb[10].mxu0  ;;  %v1429_v2 = vpop.f32.mrb[10].mxu1  ;;  %v928_v48 = vmax.f32 (!%p1287_p5), %v912_v37, 0.0 }
 0x16e   : > { %v1406_v4 = vpop.f32.mrb[11].mxu0  ;;  %v1430_v6 = vpop.f32.mrb[11].mxu1 }
 0x16f   : > { %v856_v7 = vadd.f32 %v1404_v63, %v519_v59  ;;  %v864_v8 = vadd.f32 %v1428_v0, %v527_v61  ;;  %v1407_v9 = vadd.f32 %v1406_v4, %v1405_v1  ;;  %v1431_v10 = vadd.f32 %v1430_v6, %v1429_v2 }
 0x170   : > { %v890_v38 = vld [vmem:[#allocation2 + $0x10] sm:$0xff] (!%p1287_p5)  ;;  %v1330_v60 = vpack.c.bf16 (!%p1287_p5), %v928_v48, %v927_v47  ;;  %v919_v63 = vadd.f32 (!%p1287_p5), %v1288_v35, %v896_v51 }
 0x171   : > { %872 = vst [vmem:[#allocation2 + $0x20] sm:$0xff] %v856_v7  ;;  %880 = vst [vmem:[#allocation2 + $0x60] sm:$0xff] %v864_v8  ;;  %v857_v11 = vadd.f32 %v1407_v9, %v520_v3  ;;  %v865_v12 = vadd.f32 %v1431_v10, %v528_v5  ;;  %v913_v41 = vadd.f32 (!%p1287_p5), %v1288_v35, %v890_v38  ;;  %v898_v53 = vld [vmem:[#allocation2 + $0x50] sm:$0xff] (!%p1287_p5) }
 0x172   : > { %v891_v39 = vld [vmem:[#allocation2 + $0x18] sm:$0xff] (!%p1287_p5)  ;;  %v920_v3 = vadd.f32 (!%p1287_p5), %v1288_v35, %v897_v52  ;;  %v921_v4 = vadd.f32 (!%p1287_p5), %v1288_v35, %v898_v53  ;;  %1331 = vst [vmem:[%s1909_s25] sm:$0xff] (!%p1287_p5), %v1330_v60   ;;  %v935_v8 = vmax.f32 (!%p1287_p5), %v919_v63, 0.0 }
 0x173   : > { %873 = vst [vmem:[#allocation2 + $0x28] sm:$0xff] %v857_v11  ;;  %881 = vst [vmem:[#allocation2 + $0x68] sm:$0xff] %v865_v12  ;;  %v1408_v13 = vpop.f32.mrb[12].mxu0  ;;  %v1432_v14 = vpop.f32.mrb[12].mxu1  ;;  %v914_v42 = vadd.f32 (!%p1287_p5), %v1288_v35, %v891_v39  ;;  %v929_v54 = vmax.f32 (!%p1287_p5), %v913_v41, 0.0  ;;  %v899_v58 = vld [vmem:[#allocation2 + $0x58] sm:$0xff] (!%p1287_p5) }
 0x174   : > { %v1409_v16 = vpop.f32.mrb[13].mxu0  ;;  %v1433_v18 = vpop.f32.mrb[13].mxu1  ;;  %v922_v9 = vadd.f32 (!%p1287_p5), %v1288_v35, %v899_v58  ;;  %v936_v12 = vmax.f32 (!%p1287_p5), %v920_v3, 0.0 }
 0x175   : > { %v1410_v19 = vadd.f32 %v1409_v16, %v1408_v13  ;;  %v1434_v20 = vadd.f32 %v1433_v18, %v1432_v14  ;;  %v1411_v21 = vpop.f32.mrb[14].mxu0  ;;  %v1435_v22 = vpop.f32.mrb[14].mxu1  ;;  %887 = sbr.rel (%p1287_p5) target bundleno = 395 (0x18b), region = 119  ;;  %v930_v55 = vmax.f32 (!%p1287_p5), %v914_v42, 0.0  ;;  %v937_v13 = vmax.f32 (!%p1287_p5), %v921_v4, 0.0 }
 0x176   : > { %v1412_v24 = vpop.f32.mrb[15].mxu0  ;;  %v1436_v26 = vpop.f32.mrb[15].mxu1 }
 0x177   : > { %v858_v27 = vadd.f32 %v1410_v19, %v521_v15  ;;  %v866_v28 = vadd.f32 %v1434_v20, %v529_v17  ;;  %v1413_v29 = vadd.f32 %v1412_v24, %v1411_v21  ;;  %v1437_v30 = vadd.f32 %v1436_v26, %v1435_v22 }
 0x178   : > { %v892_v40 = vld [vmem:[#allocation2 + $0x20] sm:$0xff] (!%p1287_p5)  ;;  %v1335_v1 = vpack.c.bf16 (!%p1287_p5), %v930_v55, %v929_v54  ;;  %v938_v15 = vmax.f32 (!%p1287_p5), %v922_v9, 0.0  ;;  %v1350_v19 = vpack.c.bf16 (!%p1287_p5), %v936_v12, %v935_v8 }
 0x179   : > { %874 = vst [vmem:[#allocation2 + $0x30] sm:$0xff] %v858_v27  ;;  %882 = vst [vmem:[#allocation2 + $0x70] sm:$0xff] %v866_v28  ;;  %v859_v31 = vadd.f32 %v1413_v29, %v522_v23  ;;  %v867_v32 = vadd.f32 %v1437_v30, %v530_v25  ;;  %v915_v44 = vadd.f32 (!%p1287_p5), %v1288_v35, %v892_v40  ;;  %v900_v59 = vld [vmem:[#allocation2 + $0x60] sm:$0xff] (!%p1287_p5) }
 0x17a   : > { %v893_v43 = vld [vmem:[#allocation2 + $0x28] sm:$0xff] (!%p1287_p5)  ;;  %v923_v10 = vadd.f32 (!%p1287_p5), %v1288_v35, %v900_v59  ;;  %1367 = vst [vmem:[%s1909_s25 + $0x8] sm:$0xff] (!%p1287_p5), %v1335_v1   ;;  %v1355_v21 = vpack.c.bf16 (!%p1287_p5), %v938_v15, %v937_v13  ;;  %1370 = vst [vmem:[%s1909_s25 + $0x20] sm:$0xff] (!%p1287_p5), %v1350_v19  }
 0x17b   : > { %875 = vst [vmem:[#allocation2 + $0x38] sm:$0xff] %v859_v31  ;;  %883 = vst [vmem:[#allocation2 + $0x78] sm:$0xff] %v867_v32  ;;  %v916_v49 = vadd.f32 (!%p1287_p5), %v1288_v35, %v893_v43  ;;  %v931_v56 = vmax.f32 (!%p1287_p5), %v915_v44, 0.0  ;;  %v901_v0 = vld [vmem:[#allocation2 + $0x68] sm:$0xff] (!%p1287_p5) }
 0x17c   : > { %v924_v14 = vadd.f32 %v1288_v35, %v901_v0  ;;  %v939_v16 = vmax.f32 %v923_v10, 0.0  ;;  %1371 = vst [vmem:[%s1909_s25 + $0x28] sm:$0xff] %v1355_v21  }
 0x17d   : > { %v932_v61 = vmax.f32 %v916_v49, 0.0 }
 0x17e   : > { %v940_v20 = vmax.f32 %v924_v14, 0.0 }
 0x17f   : > { %v1340_v7 = vpack.c.bf16 %v932_v61, %v931_v56 }
 0x180   : > { %v894_v45 = vld [vmem:[#allocation2 + $0x30] sm:$0xff]  ;;  %v1360_v24 = vpack.c.bf16 %v940_v20, %v939_v16 }
 0x181   : > { %v917_v50 = vadd.f32 %v1288_v35, %v894_v45  ;;  %v902_v5 = vld [vmem:[#allocation2 + $0x70] sm:$0xff]  ;;  %1368 = vst [vmem:[%s1909_s25 + $0x10] sm:$0xff] %v1340_v7  }
 0x182   : > { %v895_v46 = vld [vmem:[#allocation2 + $0x38] sm:$0xff]  ;;  %v925_v17 = vadd.f32 %v1288_v35, %v902_v5  ;;  %1372 = vst [vmem:[%s1909_s25 + $0x30] sm:$0xff] %v1360_v24  }
 0x183   : > { %v918_v57 = vadd.f32 %v1288_v35, %v895_v46  ;;  %v933_v62 = vmax.f32 %v917_v50, 0.0  ;;  %v903_v6 = vld [vmem:[#allocation2 + $0x78] sm:$0xff] }
 0x184   : > { %v926_v18 = vadd.f32 %v1288_v35, %v903_v6  ;;  %v941_v22 = vmax.f32 %v925_v17, 0.0 }
 0x185   : > { %v934_v2 = vmax.f32 %v918_v57, 0.0 }
 0x186   : > { %v942_v23 = vmax.f32 %v926_v18, 0.0 }
 0x187   : > { %v1345_v11 = vpack.c.bf16 %v934_v2, %v933_v62 }
 0x188   : > { %v1365_v25 = vpack.c.bf16 %v942_v23, %v941_v22 }
 0x189   : > { %1369 = vst [vmem:[%s1909_s25 + $0x18] sm:$0xff] %v1345_v11  }
 0x18a   : > { %1373 = vst [vmem:[%s1909_s25 + $0x38] sm:$0xff] %v1365_v25  }
 0x18b PF: > { %1029 = sbr.rel (!%p1786_p12) target bundleno = 407 (0x197), region = 123  ;;  %s1306_s14 = sshll.u32 (%p1786_p12), %s1657_s19, 2  ;;  %v1050_v26 = vld [vmem:[%s1909_s25] sm:$0xf] (%p1786_p12)  ;;  %v1052_v27 = vld [vmem:[%s1909_s25 + $0x4] sm:$0xf] (%p1786_p12) }
 0x18c   : > { %s1034_s5 = scalar_lea.vmem (%p1786_p12), %s2016_s3, %s1306_s14  ;;  %v1058_v30 = vld [vmem:[%s1909_s25 + $0x10] sm:$0xf] (%p1786_p12)  ;;  %v1060_v31 = vld [vmem:[%s1909_s25 + $0x14] sm:$0xf] (%p1786_p12) }
 0x18d   : > { %1051 = vst [vmem:[%s1034_s5] sm:$0xf] (%p1786_p12), %v1050_v26  ;;  %1053 = vst [vmem:[%s1034_s5 + $0x8] sm:$0xf] (%p1786_p12), %v1052_v27  ;;  %v1074_v38 = vld [vmem:[%s1909_s25 + $0x30] sm:$0xf] (%p1786_p12) }
 0x18e   : > { %1059 = vst [vmem:[%s1034_s5 + $0x20] sm:$0xf] (%p1786_p12), %v1058_v30  ;;  %1061 = vst [vmem:[%s1034_s5 + $0x28] sm:$0xf] (%p1786_p12), %v1060_v31  ;;  %v1076_v39 = vld [vmem:[%s1909_s25 + $0x34] sm:$0xf] (%p1786_p12) }
 0x18f   : > { %1075 = vst [vmem:[%s1034_s5 + $0x60] sm:$0xf] (%p1786_p12), %v1074_v38  ;;  %1077 = vst [vmem:[%s1034_s5 + $0x68] sm:$0xf] (%p1786_p12), %v1076_v39 }
 0x190   : > { %v1054_v28 = vld [vmem:[%s1909_s25 + $0x8] sm:$0xf] (%p1786_p12)  ;;  %v1056_v29 = vld [vmem:[%s1909_s25 + $0xc] sm:$0xf] (%p1786_p12)  ;;  %v1062_v32 = vld [vmem:[%s1909_s25 + $0x18] sm:$0xf] (%p1786_p12) }
 0x191   : > { %1055 = vst [vmem:[%s1034_s5 + $0x10] sm:$0xf] (%p1786_p12), %v1054_v28  ;;  %1057 = vst [vmem:[%s1034_s5 + $0x18] sm:$0xf] (%p1786_p12), %v1056_v29  ;;  %v1064_v33 = vld [vmem:[%s1909_s25 + $0x1c] sm:$0xf] (%p1786_p12) }
 0x192   : > { %1063 = vst [vmem:[%s1034_s5 + $0x30] sm:$0xf] %v1062_v32  ;;  %1065 = vst [vmem:[%s1034_s5 + $0x38] sm:$0xf] %v1064_v33  ;;  %v1066_v34 = vld [vmem:[%s1909_s25 + $0x20] sm:$0xf] }
 0x193   : > { %v1068_v35 = vld [vmem:[%s1909_s25 + $0x24] sm:$0xf]  ;;  %v1070_v36 = vld [vmem:[%s1909_s25 + $0x28] sm:$0xf]  ;;  %1067 = vst [vmem:[%s1034_s5 + $0x40] sm:$0xf] %v1066_v34 }
 0x194   : > { %1069 = vst [vmem:[%s1034_s5 + $0x48] sm:$0xf] %v1068_v35  ;;  %1071 = vst [vmem:[%s1034_s5 + $0x50] sm:$0xf] %v1070_v36  ;;  %v1072_v37 = vld [vmem:[%s1909_s25 + $0x2c] sm:$0xf] }
 0x195   : > { %1073 = vst [vmem:[%s1034_s5 + $0x58] sm:$0xf] %v1072_v37  ;;  %v1078_v40 = vld [vmem:[%s1909_s25 + $0x38] sm:$0xf]  ;;  %v1080_v41 = vld [vmem:[%s1909_s25 + $0x3c] sm:$0xf] }
 0x196   : > { %1079 = vst [vmem:[%s1034_s5 + $0x70] sm:$0xf] %v1078_v40  ;;  %1081 = vst [vmem:[%s1034_s5 + $0x78] sm:$0xf] %v1080_v41 }
 0x197 PF: > { %s13_s22 = sadd.s32 1, %s1669_s22   ;;  %s2026_s10 = sld [smem:[#allocation6_spill]] }
 0x198   : > { %p10_p6 = scmp.ge.s32.totalorder %s13_s22, 24   ;;  %s2027_s12 = smov %s1633_s13 }
 0x199   : > { %s2028_s13 = smov %s1784_s9  ;;  %s2029_s14 = smov %s1641_s15 }
 0x19a   : > { %s2030_s15 = smov %s1781_s8  ;;  %s2031_s16 = smov %s1649_s17 }
 0x19b   : > { %s2032_s17 = smov %s1767_s30  ;;  %s2033_s18 = smov %s1661_s20 }
 0x19c   : > { %s2034_s19 = smov %s1665_s21  ;;  %s2035_s20 = smov %s2038_s24 }
 0x19d   : > { %s2036_s21 = smov %s2026_s10  ;;  %12 = sbr.rel (!%p10_p6) target bundleno = 9 (0x9), region = 206 }

// kernel: _lambda_.30
= control target key start
LH: loop header
LB: loop body
LE: loop exit
PB: predicated region body
PF: predicated region fallthrough
CT: control target
= control target key end

     0   :  { %s2494_s0 = inlined_call_operand.vmem [shape: bf16[128,2304], index: 0, kind: input, shape index: {}]   ;;  %s2495_s1 = inlined_call_operand.vmem [shape: bf16[2304,256], index: 1, kind: input, shape index: {}]   ;;  %s2496_s2 = inlined_call_operand.vmem [shape: f32[1,256], index: 2, kind: input, shape index: {}]   ;;  %s2497_s3 = inlined_call_operand.vmem [shape: bf16[128,256], index: 3, kind: output, shape index: {}]  }
   0x1   :  { %2499 = sst [smem:[#allocation7_spill]] %s2494_s0 }
   0x2   :  { %2500 = sst [smem:[#allocation8_spill]] %s2495_s1 }
   0x3   :  { %s2075_s12 = smov 0   ;;  %s2077_s13 = smov 0  }
   0x4   :  { %s2079_s14 = smov 0   ;;  %s2081_s15 = smov 0  }
   0x5   :  { %s2083_s16 = smov 0   ;;  %s2085_s17 = smov 0  }
   0x6   :  { %s2087_s18 = smov 0   ;;  %s2089_s19 = smov 0  }
   0x7   :  { %s2091_s20 = smov 0   ;;  %s2093_s21 = smov 0  }
   0x8   :  { %s2095_s22 = smov 0  }
   0x9 LB: > { %s1528_s23 = sadd.s32 4294967295, %s2052_s22   ;;  %s25_s24 = sadd.s32 1, %s2044_s20  ;;  %s2052_s22 = sphi %s2095_s22, %s13_s22   ;;  %s2048_s21 = sphi %s2093_s21, %s2517_s21   ;;  %s2044_s20 = sphi %s2091_s20, %s2516_s20   ;;  %s2040_s19 = sphi %s2089_s19, %s2515_s19   ;;  %s2036_s18 = sphi %s2087_s18, %s2514_s18   ;;  %s2032_s17 = sphi %s2085_s17, %s2513_s17   ;;  %s2028_s16 = sphi %s2083_s16, %s2512_s16   ;;  %s2024_s15 = sphi %s2081_s15, %s2511_s15   ;;  %s2020_s14 = sphi %s2079_s14, %s2510_s14   ;;  %s2016_s13 = sphi %s2077_s13, %s2509_s13   ;;  %s2012_s12 = sphi %s2075_s12, %s2508_s12  }
   0xa   : > { %p26_p0 = scmp.ge.s32.totalorder %s25_s24, 6  ;;  %s28_s25 = sadd.s32 1, %s2048_s21 }
   0xb   : > { %s41_s26 = sadd.s32 1, %s2032_s17  ;;  %p48_p1 = scmp.ne.s32.totalorder %s2032_s17, %s2028_s16 }
   0xc   : > { %s2519_s24 = smov (%p26_p0, %s25_s24), 0  ;;  %s2521_s25 = smov (!%p26_p0, %s28_s25), %s2048_s21 }
   0xd   : > { %s37_s27 = ssub.s32 %s2044_s20, %s2519_s24  ;;  %p49_p2 = scmp.eq.s32.totalorder %s2052_s22, 0 }
   0xe   : > { %p30_p3 = scmp.ge.s32.totalorder %s2521_s25, 2  ;;  %p39_p4 = scmp.eq.s32.totalorder %s37_s27, 0 }
   0xf   : > { %p2142_p5 = por %p49_p2, %p48_p1  ;;  %s69_s29 = sadd.s32 1, %s2024_s15 }
  0x10   : > { %s2523_s25 = smov (%p30_p3, %s2521_s25), 0  ;;  %p76_p6 = scmp.ne.s32.totalorder %s2024_s15, %s2020_s14 }
  0x11   : > { %2502 = sst [smem:[#allocation6_spill]] %s2523_s25  ;;  %s65_s4 = ssub.s32 %s2048_s21, %s2523_s25 }
  0x12   : > { %s2150_s30 = scalar_select %p39_p4, %s2032_s17, %s41_s26  }
  0x13   : > { %s66_s5 = sor.u32 %s65_s4, %s37_s27  ;;  %p121_p7 = scmp.eq.s32.totalorder %s65_s4, 0 }
  0x14   : > { %p67_p8 = scmp.eq.s32.totalorder %s66_s5, 0  ;;  %p2156_p9 = por %p76_p6, %p49_p2 }
  0x15   : > { %s123_s7 = sadd.s32 1, %s2016_s13  ;;  %p133_p10 = scmp.ne.s32.totalorder %s2016_s13, %s2012_s12 }
  0x16   : > { %s2164_s8 = scalar_select %p67_p8, %s2024_s15, %s69_s29  }
  0x17   : > { %s2167_s9 = scalar_select %p121_p7, %s2016_s13, %s123_s7  }
  0x18   : > { %p134_p11 = scmp.eq.s32.totalorder %s1528_s23, 11  ;;  %p1531_p13 = scmp.ge.s32.totalorder %s2052_s22, 12 }
  0x1a   : > { %p2169_p12 = por %p134_p11, %p133_p10  ;;  %156 = sbr.rel (%p1531_p13) target bundleno = 101 (0x65), region = 16 }
  0x21   : > { %159 = sbr.rel (!%p2142_p5) target bundleno = 60 (0x3c), region = 20  ;;  %s161_s11 = sand.u32 (%p2142_p5), 1, %s2032_s17  }
  0x22   : > { %s1640_s26 = smul.u32 (%p2142_p5), 12, %s2044_s20  ;;  %s2505_s0 = sld [smem:[#allocation7_spill]] (%p2142_p5) }
  0x23   : > { %s1817_s27 = smul.u32 (%p2142_p5), 192, %s161_s11 }
  0x25   : > { %s2186_s23 = scalar_lea.vmem (%p2142_p5), [#allocation3], %s1817_s27 }
  0x28   : > { %s2181_s5 = scalar_lea.vmem %s2505_s0, %s1640_s26 }
  0x29   : > { %v184_v0 = vld [vmem:[%s2181_s5] sm:$0xff]  ;;  %v186_v1 = vld [vmem:[%s2181_s5 + $0x48] sm:$0xff]  ;;  %v188_v2 = vld [vmem:[%s2181_s5 + $0x90] sm:$0xff] }
  0x2a   : > { %185 = vst [vmem:[%s2186_s23] sm:$0xff] %v184_v0  ;;  %187 = vst [vmem:[%s2186_s23 + $0xc] sm:$0xff] %v186_v1  ;;  %v190_v3 = vld [vmem:[%s2181_s5 + $0xd8] sm:$0xff]  ;;  %v192_v4 = vld [vmem:[%s2181_s5 + $0x120] sm:$0xff] }
  0x2b   : > { %189 = vst [vmem:[%s2186_s23 + $0x18] sm:$0xff] %v188_v2  ;;  %v194_v5 = vld [vmem:[%s2181_s5 + $0x168] sm:$0xff]  ;;  %191 = vst [vmem:[%s2186_s23 + $0x24] sm:$0xff] %v190_v3  ;;  %v196_v6 = vld [vmem:[%s2181_s5 + $0x1b0] sm:$0xff] }
  0x2c   : > { %193 = vst [vmem:[%s2186_s23 + $0x30] sm:$0xff] %v192_v4  ;;  %195 = vst [vmem:[%s2186_s23 + $0x3c] sm:$0xff] %v194_v5  ;;  %v198_v7 = vld [vmem:[%s2181_s5 + $0x1f8] sm:$0xff]  ;;  %v200_v8 = vld [vmem:[%s2181_s5 + $0x240] sm:$0xff] }
  0x2d   : > { %197 = vst [vmem:[%s2186_s23 + $0x48] sm:$0xff] %v196_v6  ;;  %199 = vst [vmem:[%s2186_s23 + $0x54] sm:$0xff] %v198_v7  ;;  %v202_v9 = vld [vmem:[%s2181_s5 + $0x288] sm:$0xff]  ;;  %v204_v10 = vld [vmem:[%s2181_s5 + $0x2d0] sm:$0xff] }
  0x2e   : > { %201 = vst [vmem:[%s2186_s23 + $0x60] sm:$0xff] %v200_v8  ;;  %v206_v11 = vld [vmem:[%s2181_s5 + $0x318] sm:$0xff]  ;;  %203 = vst [vmem:[%s2186_s23 + $0x6c] sm:$0xff] %v202_v9  ;;  %v208_v12 = vld [vmem:[%s2181_s5 + $0x360] sm:$0xff] }
  0x2f   : > { %205 = vst [vmem:[%s2186_s23 + $0x78] sm:$0xff] %v204_v10  ;;  %207 = vst [vmem:[%s2186_s23 + $0x84] sm:$0xff] %v206_v11  ;;  %v210_v13 = vld [vmem:[%s2181_s5 + $0x3a8] sm:$0xff]  ;;  %v212_v14 = vld [vmem:[%s2181_s5 + $0x3f0] sm:$0xff] }
  0x30   : > { %209 = vst [vmem:[%s2186_s23 + $0x90] sm:$0xff] %v208_v12  ;;  %211 = vst [vmem:[%s2186_s23 + $0x9c] sm:$0xff] %v210_v13  ;;  %v214_v15 = vld [vmem:[%s2181_s5 + $0x438] sm:$0xff]  ;;  %v1533_v16 = vld [vmem:[%s2181_s5 + $0x8] sm:$0xf] }
  0x31   : > { %213 = vst [vmem:[%s2186_s23 + $0xa8] sm:$0xff] %v212_v14  ;;  %v1535_v17 = vld [vmem:[%s2181_s5 + $0x50] sm:$0xf]  ;;  %215 = vst [vmem:[%s2186_s23 + $0xb4] sm:$0xff] %v214_v15  ;;  %v1537_v18 = vld [vmem:[%s2181_s5 + $0x98] sm:$0xf] }
  0x32   : > { %1534 = vst [vmem:[%s2186_s23 + $0x8] sm:$0xf] %v1533_v16  ;;  %1536 = vst [vmem:[%s2186_s23 + $0x14] sm:$0xf] %v1535_v17  ;;  %v1539_v19 = vld [vmem:[%s2181_s5 + $0xe0] sm:$0xf] }
  0x33   : > { %v1541_v20 = vld [vmem:[%s2181_s5 + $0x128] sm:$0xf]  ;;  %1538 = vst [vmem:[%s2186_s23 + $0x20] sm:$0xf] %v1537_v18  ;;  %1540 = vst [vmem:[%s2186_s23 + $0x2c] sm:$0xf] %v1539_v19 }
  0x34   : > { %1542 = vst [vmem:[%s2186_s23 + $0x38] sm:$0xf] %v1541_v20  ;;  %v1543_v21 = vld [vmem:[%s2181_s5 + $0x170] sm:$0xf]  ;;  %v1545_v22 = vld [vmem:[%s2181_s5 + $0x1b8] sm:$0xf] }
  0x35   : > { %v1547_v23 = vld [vmem:[%s2181_s5 + $0x200] sm:$0xf]  ;;  %1544 = vst [vmem:[%s2186_s23 + $0x44] sm:$0xf] %v1543_v21  ;;  %1546 = vst [vmem:[%s2186_s23 + $0x50] sm:$0xf] %v1545_v22 }
  0x36   : > { %1548 = vst [vmem:[%s2186_s23 + $0x5c] sm:$0xf] %v1547_v23  ;;  %v1549_v24 = vld [vmem:[%s2181_s5 + $0x248] sm:$0xf]  ;;  %v1551_v25 = vld [vmem:[%s2181_s5 + $0x290] sm:$0xf] }
  0x37   : > { %v1553_v26 = vld [vmem:[%s2181_s5 + $0x2d8] sm:$0xf]  ;;  %1550 = vst [vmem:[%s2186_s23 + $0x68] sm:$0xf] %v1549_v24  ;;  %1552 = vst [vmem:[%s2186_s23 + $0x74] sm:$0xf] %v1551_v25 }
  0x38   : > { %1554 = vst [vmem:[%s2186_s23 + $0x80] sm:$0xf] %v1553_v26  ;;  %v1555_v27 = vld [vmem:[%s2181_s5 + $0x320] sm:$0xf]  ;;  %v1557_v28 = vld [vmem:[%s2181_s5 + $0x368] sm:$0xf] }
  0x39   : > { %v1559_v29 = vld [vmem:[%s2181_s5 + $0x3b0] sm:$0xf]  ;;  %1556 = vst [vmem:[%s2186_s23 + $0x8c] sm:$0xf] %v1555_v27  ;;  %1558 = vst [vmem:[%s2186_s23 + $0x98] sm:$0xf] %v1557_v28 }
  0x3a   : > { %1560 = vst [vmem:[%s2186_s23 + $0xa4] sm:$0xf] %v1559_v29  ;;  %v1561_v30 = vld [vmem:[%s2181_s5 + $0x3f8] sm:$0xf]  ;;  %v1563_v31 = vld [vmem:[%s2181_s5 + $0x440] sm:$0xf] }
  0x3b   : > { %1562 = vst [vmem:[%s2186_s23 + $0xb0] sm:$0xf] %v1561_v30  ;;  %1564 = vst [vmem:[%s2186_s23 + $0xbc] sm:$0xf] %v1563_v31 }
  0x3c PF: > { %260 = sbr.rel (!%p2156_p9) target bundleno = 101 (0x65), region = 46  ;;  %s262_s28 = sand.u32 (%p2156_p9), 1, %s2024_s15  }
  0x3d   : > { %s1641_s7 = smul.u32 (%p2156_p9), 96, %s2044_s20  ;;  %s2506_s1 = sld [smem:[#allocation8_spill]] (%p2156_p9) }
  0x3e   : > { %s1818_s11 = smul.u32 (%p2156_p9), 192, %s262_s28 }
  0x3f   : > { %s267_s26 = sadd.s32 (%p2156_p9), %s2048_s21, %s1641_s7 }
  0x40   : > { %s1566_s27 = sshll.u32 (%p2156_p9), %s267_s26, 2  ;;  %s2262_s6 = scalar_lea.vmem (%p2156_p9), [#allocation4], %s1818_s11 }
  0x43   : > { %s2257_s0 = scalar_lea.vmem %s2506_s1, %s1566_s27 }
  0x44   : > { %v285_v32 = vld [vmem:[%s2257_s0] sm:$0xf]  ;;  %v287_v33 = vld [vmem:[%s2257_s0 + $0x8] sm:$0xf]  ;;  %v289_v34 = vld [vmem:[%s2257_s0 + $0x10] sm:$0xf] }
  0x45   : > { %286 = vst [vmem:[%s2262_s6] sm:$0xf] %v285_v32  ;;  %288 = vst [vmem:[%s2262_s6 + $0x4] sm:$0xf] %v287_v33  ;;  %v291_v35 = vld [vmem:[%s2257_s0 + $0x18] sm:$0xf] }
  0x46   : > { %290 = vst [vmem:[%s2262_s6 + $0x8] sm:$0xf] %v289_v34  ;;  %v293_v36 = vld [vmem:[%s2257_s0 + $0x20] sm:$0xf]  ;;  %v295_v37 = vld [vmem:[%s2257_s0 + $0x28] sm:$0xf] }
  0x47   : > { %292 = vst [vmem:[%s2262_s6 + $0xc] sm:$0xf] %v291_v35  ;;  %294 = vst [vmem:[%s2262_s6 + $0x10] sm:$0xf] %v293_v36  ;;  %v297_v38 = vld [vmem:[%s2257_s0 + $0x30] sm:$0xf] }
  0x48   : > { %296 = vst [vmem:[%s2262_s6 + $0x14] sm:$0xf] %v295_v37  ;;  %v299_v39 = vld [vmem:[%s2257_s0 + $0x38] sm:$0xf]  ;;  %v301_v40 = vld [vmem:[%s2257_s0 + $0x40] sm:$0xf] }
  0x49   : > { %298 = vst [vmem:[%s2262_s6 + $0x18] sm:$0xf] %v297_v38  ;;  %300 = vst [vmem:[%s2262_s6 + $0x1c] sm:$0xf] %v299_v39  ;;  %v303_v41 = vld [vmem:[%s2257_s0 + $0x48] sm:$0xf] }
  0x4a   : > { %302 = vst [vmem:[%s2262_s6 + $0x20] sm:$0xf] %v301_v40  ;;  %v305_v42 = vld [vmem:[%s2257_s0 + $0x50] sm:$0xf]  ;;  %v307_v43 = vld [vmem:[%s2257_s0 + $0x58] sm:$0xf] }
  0x4b   : > { %304 = vst [vmem:[%s2262_s6 + $0x24] sm:$0xf] %v303_v41  ;;  %306 = vst [vmem:[%s2262_s6 + $0x28] sm:$0xf] %v305_v42  ;;  %v309_v44 = vld [vmem:[%s2257_s0 + $0x60] sm:$0xf] }
  0x4c   : > { %308 = vst [vmem:[%s2262_s6 + $0x2c] sm:$0xf] %v307_v43  ;;  %v311_v45 = vld [vmem:[%s2257_s0 + $0x68] sm:$0xf]  ;;  %v313_v46 = vld [vmem:[%s2257_s0 + $0x70] sm:$0xf] }
  0x4d   : > { %310 = vst [vmem:[%s2262_s6 + $0x30] sm:$0xf] %v309_v44  ;;  %312 = vst [vmem:[%s2262_s6 + $0x34] sm:$0xf] %v311_v45  ;;  %v315_v47 = vld [vmem:[%s2257_s0 + $0x78] sm:$0xf] }
  0x4e   : > { %314 = vst [vmem:[%s2262_s6 + $0x38] sm:$0xf] %v313_v46  ;;  %v317_v48 = vld [vmem:[%s2257_s0 + $0x80] sm:$0xf]  ;;  %v319_v49 = vld [vmem:[%s2257_s0 + $0x88] sm:$0xf] }
  0x4f   : > { %316 = vst [vmem:[%s2262_s6 + $0x3c] sm:$0xf] %v315_v47  ;;  %318 = vst [vmem:[%s2262_s6 + $0x40] sm:$0xf] %v317_v48  ;;  %v321_v50 = vld [vmem:[%s2257_s0 + $0x90] sm:$0xf] }
  0x50   : > { %320 = vst [vmem:[%s2262_s6 + $0x44] sm:$0xf] %v319_v49  ;;  %v323_v51 = vld [vmem:[%s2257_s0 + $0x98] sm:$0xf]  ;;  %v325_v52 = vld [vmem:[%s2257_s0 + $0xa0] sm:$0xf] }
  0x51   : > { %322 = vst [vmem:[%s2262_s6 + $0x48] sm:$0xf] %v321_v50  ;;  %324 = vst [vmem:[%s2262_s6 + $0x4c] sm:$0xf] %v323_v51  ;;  %v327_v53 = vld [vmem:[%s2257_s0 + $0xa8] sm:$0xf] }
  0x52   : > { %326 = vst [vmem:[%s2262_s6 + $0x50] sm:$0xf] %v325_v52  ;;  %v329_v54 = vld [vmem:[%s2257_s0 + $0xb0] sm:$0xf]  ;;  %v331_v55 = vld [vmem:[%s2257_s0 + $0xb8] sm:$0xf] }
  0x53   : > { %328 = vst [vmem:[%s2262_s6 + $0x54] sm:$0xf] %v327_v53  ;;  %330 = vst [vmem:[%s2262_s6 + $0x58] sm:$0xf] %v329_v54  ;;  %v333_v56 = vld [vmem:[%s2257_s0 + $0xc0] sm:$0xf] }
  0x54   : > { %332 = vst [vmem:[%s2262_s6 + $0x5c] sm:$0xf] %v331_v55  ;;  %v335_v57 = vld [vmem:[%s2257_s0 + $0xc8] sm:$0xf]  ;;  %v337_v58 = vld [vmem:[%s2257_s0 + $0xd0] sm:$0xf] }
  0x55   : > { %334 = vst [vmem:[%s2262_s6 + $0x60] sm:$0xf] %v333_v56  ;;  %336 = vst [vmem:[%s2262_s6 + $0x64] sm:$0xf] %v335_v57  ;;  %v339_v59 = vld [vmem:[%s2257_s0 + $0xd8] sm:$0xf] }
  0x56   : > { %338 = vst [vmem:[%s2262_s6 + $0x68] sm:$0xf] %v337_v58  ;;  %v341_v60 = vld [vmem:[%s2257_s0 + $0xe0] sm:$0xf]  ;;  %v343_v61 = vld [vmem:[%s2257_s0 + $0xe8] sm:$0xf] }
  0x57   : > { %340 = vst [vmem:[%s2262_s6 + $0x6c] sm:$0xf] %v339_v59  ;;  %342 = vst [vmem:[%s2262_s6 + $0x70] sm:$0xf] %v341_v60  ;;  %v345_v62 = vld [vmem:[%s2257_s0 + $0xf0] sm:$0xf] }
  0x58   : > { %344 = vst [vmem:[%s2262_s6 + $0x74] sm:$0xf] %v343_v61  ;;  %v347_v63 = vld [vmem:[%s2257_s0 + $0xf8] sm:$0xf]  ;;  %v349_v0 = vld [vmem:[%s2257_s0 + $0x100] sm:$0xf] }
  0x59   : > { %346 = vst [vmem:[%s2262_s6 + $0x78] sm:$0xf] %v345_v62  ;;  %348 = vst [vmem:[%s2262_s6 + $0x7c] sm:$0xf] %v347_v63  ;;  %v351_v1 = vld [vmem:[%s2257_s0 + $0x108] sm:$0xf] }
  0x5a   : > { %350 = vst [vmem:[%s2262_s6 + $0x80] sm:$0xf] %v349_v0  ;;  %v353_v2 = vld [vmem:[%s2257_s0 + $0x110] sm:$0xf]  ;;  %v355_v3 = vld [vmem:[%s2257_s0 + $0x118] sm:$0xf] }
  0x5b   : > { %352 = vst [vmem:[%s2262_s6 + $0x84] sm:$0xf] %v351_v1  ;;  %354 = vst [vmem:[%s2262_s6 + $0x88] sm:$0xf] %v353_v2  ;;  %v357_v4 = vld [vmem:[%s2257_s0 + $0x120] sm:$0xf] }
  0x5c   : > { %356 = vst [vmem:[%s2262_s6 + $0x8c] sm:$0xf] %v355_v3  ;;  %v359_v5 = vld [vmem:[%s2257_s0 + $0x128] sm:$0xf]  ;;  %v361_v6 = vld [vmem:[%s2257_s0 + $0x130] sm:$0xf] }
  0x5d   : > { %358 = vst [vmem:[%s2262_s6 + $0x90] sm:$0xf] %v357_v4  ;;  %360 = vst [vmem:[%s2262_s6 + $0x94] sm:$0xf] %v359_v5  ;;  %v363_v7 = vld [vmem:[%s2257_s0 + $0x138] sm:$0xf] }
  0x5e   : > { %362 = vst [vmem:[%s2262_s6 + $0x98] sm:$0xf] %v361_v6  ;;  %v365_v8 = vld [vmem:[%s2257_s0 + $0x140] sm:$0xf]  ;;  %v367_v9 = vld [vmem:[%s2257_s0 + $0x148] sm:$0xf] }
  0x5f   : > { %364 = vst [vmem:[%s2262_s6 + $0x9c] sm:$0xf] %v363_v7  ;;  %366 = vst [vmem:[%s2262_s6 + $0xa0] sm:$0xf] %v365_v8  ;;  %v369_v10 = vld [vmem:[%s2257_s0 + $0x150] sm:$0xf] }
  0x60   : > { %368 = vst [vmem:[%s2262_s6 + $0xa4] sm:$0xf] %v367_v9  ;;  %v371_v11 = vld [vmem:[%s2257_s0 + $0x158] sm:$0xf]  ;;  %v373_v12 = vld [vmem:[%s2257_s0 + $0x160] sm:$0xf] }
  0x61   : > { %370 = vst [vmem:[%s2262_s6 + $0xa8] sm:$0xf] %v369_v10  ;;  %372 = vst [vmem:[%s2262_s6 + $0xac] sm:$0xf] %v371_v11  ;;  %v375_v13 = vld [vmem:[%s2257_s0 + $0x168] sm:$0xf] }
  0x62   : > { %374 = vst [vmem:[%s2262_s6 + $0xb0] sm:$0xf] %v373_v12  ;;  %v377_v14 = vld [vmem:[%s2257_s0 + $0x170] sm:$0xf]  ;;  %v379_v15 = vld [vmem:[%s2257_s0 + $0x178] sm:$0xf] }
  0x63   : > { %376 = vst [vmem:[%s2262_s6 + $0xb4] sm:$0xf] %v375_v13  ;;  %378 = vst [vmem:[%s2262_s6 + $0xb8] sm:$0xf] %v377_v14 }
  0x64   : > { %380 = vst [vmem:[%s2262_s6 + $0xbc] sm:$0xf] %v379_v15 }
  0x65 PF: > { %p1567_p0 = scmp.ge.s32.totalorder %s2052_s22, 1  ;;  %p504_p1 = scmp.lt.s32.totalorder %s2052_s22, 13 }
  0x67   : > { %p505_p2 = pnand %p1567_p0, %p504_p1 }
  0x68   : > { %s511_s5 = sand.u32 (!%p505_p2), 1, %s2028_s16   ;;  %s518_s23 = sand.u32 (!%p505_p2), 1, %s2020_s14  }
  0x69   : > { %508 = sbr.rel (%p505_p2) target bundleno = 459 (0x1cb), region = 91  ;;  %s544_s0 = sand.u32 (!%p505_p2), 1, %s2012_s12  }
  0x6a   : > { %s1819_s28 = smul.u32 (!%p505_p2), 192, %s511_s5  ;;  %s1568_s11 = sshll.u32 (!%p505_p2), %s544_s0, 6 }
  0x6b   : > { %s1820_s7 = smul.u32 (!%p505_p2), 192, %s518_s23  ;;  %p550_p3 = scmp.lt.s32.totalorder (!%p505_p2), %s2040_s19, 1 }
  0x6c   : > { %s2370_s6 = scalar_lea.vmem (!%p505_p2), [#allocation3], %s1819_s28  ;;  %s2374_s25 = scalar_lea.vmem (!%p505_p2), [#allocation5], %s1568_s11 }
  0x6d   : > { %s2372_s1 = scalar_lea.vmem (!%p505_p2), [#allocation4], %s1820_s7  ;;  %p1569_p4 = scmp.ne.s32.totalorder (!%p505_p2), %s2036_s18, 0 }
  0x70   : > { %s2364_s26 = scalar_select %p550_p3, %s2040_s19, 1 }
  0x71   : > { %558 = sbr.rel (%p1569_p4) target bundleno = 122 (0x7a), region = 103  ;;  %v2054_v16 = vmov (!%p1569_p4), 0.0  }
  0x72   : > { %s552_s4 = scalar_lea.vmem %s2496_s2, %s2364_s26  ;;  %559 = vst [vmem:[#allocation2] sm:$0xff] (!%p1569_p4), %v2054_v16  ;;  %560 = vst [vmem:[#allocation2 + $0x8] sm:$0xff] (!%p1569_p4), %v2054_v16 }
  0x73   : > { %561 = vst [vmem:[#allocation2 + $0x10] sm:$0xff] (!%p1569_p4), %v2054_v16  ;;  %562 = vst [vmem:[#allocation2 + $0x18] sm:$0xff] (!%p1569_p4), %v2054_v16 }
  0x74   : > { %563 = vst [vmem:[#allocation2 + $0x20] sm:$0xff] (!%p1569_p4), %v2054_v16  ;;  %564 = vst [vmem:[#allocation2 + $0x28] sm:$0xff] (!%p1569_p4), %v2054_v16 }
  0x75   : > { %565 = vst [vmem:[#allocation2 + $0x30] sm:$0xff] (!%p1569_p4), %v2054_v16  ;;  %566 = vst [vmem:[#allocation2 + $0x38] sm:$0xff] (!%p1569_p4), %v2054_v16 }
  0x76   : > { %567 = vst [vmem:[#allocation2 + $0x40] sm:$0xff] (!%p1569_p4), %v2054_v16  ;;  %568 = vst [vmem:[#allocation2 + $0x48] sm:$0xff] (!%p1569_p4), %v2054_v16 }
  0x77   : > { %569 = vst [vmem:[#allocation2 + $0x50] sm:$0xff] (!%p1569_p4), %v2054_v16  ;;  %570 = vst [vmem:[#allocation2 + $0x58] sm:$0xff] (!%p1569_p4), %v2054_v16 }
  0x78   : > { %571 = vst [vmem:[#allocation2 + $0x60] sm:$0xff] %v2054_v16  ;;  %572 = vst [vmem:[#allocation2 + $0x68] sm:$0xff] %v2054_v16 }
  0x79   : > { %573 = vst [vmem:[#allocation2 + $0x70] sm:$0xff] %v2054_v16  ;;  %574 = vst [vmem:[#allocation2 + $0x78] sm:$0xff] %v2054_v16 }
  0x7a PF: > { %v1910_v17 = vld [vmem:[%s2372_s1 + $0x40] sm:$0xff]   ;;  %v1913_v20 = vld [vmem:[%s2372_s1 + $0x48] sm:$0xff]   ;;  %v1916_v23 = vld [vmem:[%s2372_s1 + $0x50] sm:$0xff]   ;;  %p1618_p5 = scmp.ne.s32.totalorder %s2036_s18, 5 }
  0x7b   : > { %v1911_v18 = vld [vmem:[%s2372_s1] sm:$0xff]   ;;  %1705 = vmatprep.subr.bf16.mxu0 %v1910_v17  ;;  %v1914_v21 = vld [vmem:[%s2372_s1 + $0x8] sm:$0xff]   ;;  %v1917_v24 = vld [vmem:[%s2372_s1 + $0x10] sm:$0xff]  }
  0x7c   : > { %v1912_v19 = vld [vmem:[%s2372_s1 + $0x80] sm:$0xff]   ;;  %1706 = vmatpush3.bf16.msra.mxu0 %v1911_v18  ;;  %v1915_v22 = vld [vmem:[%s2372_s1 + $0x88] sm:$0xff]   ;;  %v1918_v25 = vld [vmem:[%s2372_s1 + $0x90] sm:$0xff]  }
  0x7d   : > { %1785 = vmatprep.subr.bf16.mxu1 %v1912_v19  ;;  %1707 = vmatprep.subr.bf16.mxu0 %v1913_v20  ;;  %v1919_v26 = vld [vmem:[%s2372_s1 + $0x58] sm:$0xff]   ;;  %v1922_v29 = vld [vmem:[%s2372_s1 + $0x60] sm:$0xff]   ;;  %v1925_v32 = vld [vmem:[%s2372_s1 + $0x68] sm:$0xff]  }
  0x7e   : > { %1786 = vmatpush3.bf16.msra.mxu1 %v1912_v19  ;;  %v1920_v27 = vld [vmem:[%s2372_s1 + $0x18] sm:$0xff]   ;;  %v1924_v30 = vld [vmem:[%s2372_s1 + $0xa0] sm:$0xff]   ;;  %v1927_v33 = vld [vmem:[%s2372_s1 + $0xa8] sm:$0xff]  }
  0x7f   : > { %1787 = vmatprep.subr.bf16.mxu1 %v1915_v22  ;;  %v1921_v28 = vld [vmem:[%s2372_s1 + $0x98] sm:$0xff]   ;;  %v1923_v31 = vld [vmem:[%s2372_s1 + $0x20] sm:$0xff]   ;;  %v1926_v34 = vld [vmem:[%s2372_s1 + $0x28] sm:$0xff]  }
  0x80   : > { %1708 = vmatpush3.bf16.msra.mxu0 %v1914_v21  ;;  %v1928_v35 = vld [vmem:[%s2372_s1 + $0x70] sm:$0xff]   ;;  %v1931_v38 = vld [vmem:[%s2372_s1 + $0x78] sm:$0xff]   ;;  %v1934_v43 = vld [vmem:[%s2370_s6] ss:$12 sps:$4 sm:$0xff]  }
  0x81   : > { %1709 = vmatprep.subr.bf16.mxu0 %v1916_v23  ;;  %v1929_v36 = vld [vmem:[%s2372_s1 + $0x30] sm:$0xff]   ;;  %v1933_v39 = vld [vmem:[%s2372_s1 + $0xb8] sm:$0xff]   ;;  %v1938_v45 = vld [vmem:[%s2370_s6 + $0x20] ss:$12 sps:$4 sm:$0xff]  }
  0x82   : > { %1788 = vmatpush3.bf16.msra.mxu1 %v1915_v22  ;;  %v1930_v37 = vld [vmem:[%s2372_s1 + $0xb0] sm:$0xff]   ;;  %v1932_v42 = vld [vmem:[%s2372_s1 + $0x38] sm:$0xff]   ;;  %v1954_v53 = vld [vmem:[%s2370_s6 + $0x80] ss:$12 sps:$4 sm:$0xff]  }
  0x83   : > { %1789 = vmatprep.subr.bf16.mxu1 %v1918_v25  ;;  %v1936_v40 = vld [vmem:[%s2370_s6 + $0x4] ss:$12 sps:$4 sm:$0xff]   ;;  %v1937_v41 = vld [vmem:[%s2370_s6 + $0x8] ss:$12 sps:$4 sm:$0xff]   ;;  %v1947_v52 = vld [vmem:[%s2370_s6 + $0x4c] ss:$12 sps:$4 sm:$0xff]  }
  0x84   : > { %1710 = vmatpush3.bf16.msra.mxu0 %v1917_v24  ;;  %975 = vmatprep.mubr.bf16.mxu0 %v1936_v40  ;;  %v1939_v44 = vld [vmem:[%s2370_s6 + $0x1c] ss:$12 sps:$4 sm:$0xff]   ;;  %v1945_v46 = vld [vmem:[%s2370_s6 + $0x38] ss:$12 sps:$4 sm:$0xff]   ;;  %v1942_v48 = vld [vmem:[%s2370_s6 + $0x34] ss:$12 sps:$4 sm:$0xff]  }
  0x85   : > { %1711 = vmatprep.subr.bf16.mxu0 %v1919_v26  ;;  %1801 = vmatprep.mubr.bf16.mxu1 %v1937_v41  ;;  %v1941_v47 = vld [vmem:[%s2370_s6 + $0x18] ss:$12 sps:$4 sm:$0xff]   ;;  %v1946_v49 = vld [vmem:[%s2370_s6 + $0x50] ss:$12 sps:$4 sm:$0xff]   ;;  %v1953_v50 = vld [vmem:[%s2370_s6 + $0x68] ss:$12 sps:$4 sm:$0xff]  }
  0x86   : > { %1790 = vmatpush3.bf16.msra.mxu1 %v1918_v25  ;;  %v1944_v51 = vld [vmem:[%s2370_s6 + $0x30] ss:$12 sps:$4 sm:$0xff]   ;;  %v1961_v54 = vld [vmem:[%s2370_s6 + $0x98] ss:$12 sps:$4 sm:$0xff]   ;;  %v1949_v55 = vld [vmem:[%s2370_s6 + $0x48] ss:$12 sps:$4 sm:$0xff]  }
  0x87   : > { %1791 = vmatprep.subr.bf16.mxu1 %v1921_v28  ;;  %v1950_v56 = vld [vmem:[%s2370_s6 + $0x64] ss:$12 sps:$4 sm:$0xff]   ;;  %v1952_v58 = vld [vmem:[%s2370_s6 + $0x60] ss:$12 sps:$4 sm:$0xff]   ;;  %v1955_v59 = vld [vmem:[%s2370_s6 + $0x7c] ss:$12 sps:$4 sm:$0xff]  }
  0x88   : > { %1712 = vmatpush3.bf16.msra.mxu0 %v1920_v27  ;;  %v1962_v57 = vld [vmem:[%s2370_s6 + $0xb0] ss:$12 sps:$4 sm:$0xff]   ;;  %v1957_v60 = vld [vmem:[%s2370_s6 + $0x78] ss:$12 sps:$4 sm:$0xff]   ;;  %v1958_v61 = vld [vmem:[%s2370_s6 + $0x94] ss:$12 sps:$4 sm:$0xff]  }
  0x89   : > { %1713 = vmatprep.subr.bf16.mxu0 %v1922_v29  ;;  %v1960_v62 = vld [vmem:[%s2370_s6 + $0x90] ss:$12 sps:$4 sm:$0xff]   ;;  %v1963_v63 = vld [vmem:[%s2370_s6 + $0xac] ss:$12 sps:$4 sm:$0xff]   ;;  %v1965_v0 = vld [vmem:[%s2370_s6 + $0xa8] ss:$12 sps:$4 sm:$0xff]  }
  0x8a   : > { %1792 = vmatpush3.bf16.msra.mxu1 %v1921_v28  ;;  %v575_v7 = vld [vmem:[#allocation2] sm:$0xff]  ;;  %v576_v12 = vld [vmem:[#allocation2 + $0x8] sm:$0xff]  ;;  %v577_v22 = vld [vmem:[#allocation2 + $0x10] sm:$0xff] }
  0x8b   : > { %1793 = vmatprep.subr.bf16.mxu1 %v1924_v30  ;;  %v578_v28 = vld [vmem:[#allocation2 + $0x18] sm:$0xff] }
  0x8c   : > { %1714 = vmatpush3.bf16.msra.mxu0 %v1923_v31 }
  0x8d   : > { %1715 = vmatprep.subr.bf16.mxu0 %v1925_v32 }
  0x8e   : > { %1794 = vmatpush3.bf16.msra.mxu1 %v1924_v30 }
  0x8f   : > { %1795 = vmatprep.subr.bf16.mxu1 %v1927_v33 }
  0x90   : > { %1716 = vmatpush3.bf16.msra.mxu0 %v1926_v34 }
  0x91   : > { %1717 = vmatprep.subr.bf16.mxu0 %v1928_v35 }
  0x92   : > { %1796 = vmatpush3.bf16.msra.mxu1 %v1927_v33 }
  0x93   : > { %1797 = vmatprep.subr.bf16.mxu1 %v1930_v37 }
  0x94   : > { %1718 = vmatpush3.bf16.msra.mxu0 %v1929_v36 }
  0x95   : > { %1719 = vmatprep.subr.bf16.mxu0 %v1931_v38 }
  0x96   : > { %1798 = vmatpush3.bf16.msra.mxu1 %v1930_v37 }
  0x97   : > { %1799 = vmatprep.subr.bf16.mxu1 %v1933_v39 }
  0x98   : > { %1720 = vmatpush3.bf16.msra.mxu0 %v1932_v42 }
  0x9a   : > { %1800 = vmatpush3.bf16.msra.mxu1 %v1933_v39  ;;  %v579_v39 = vld [vmem:[#allocation2 + $0x20] sm:$0xff] }
  0x9b   : > { %976 = vmatmul.mubr.bf16.vlgmr.msra.gmra.mrb[0].mxu0 %v1934_v43 }
  0x9c   : > { %983 = vmatprep.mubr.bf16.mxu0 %v1939_v44  ;;  %v580_v44 = vld [vmem:[#allocation2 + $0x28] sm:$0xff] }
  0x9d   : > { %1802 = vmatmul.mubr.bf16.vlgmr.msra.gmra.mrb[0].mxu1 %v1938_v45 }
  0x9e   : > { %1805 = vmatprep.mubr.bf16.mxu1 %v1945_v46 }
  0xa3   : > { %984 = vmatmul.mubr.bf16.gmra.mrb[4].mxu0 %v1941_v47 }
  0xa4   : > { %991 = vmatprep.mubr.bf16.mxu0 %v1942_v48 }
  0xa5   : > { %1806 = vmatmul.mubr.bf16.gmra.mrb[4].mxu1 %v1946_v49 }
  0xa6   : > { %1809 = vmatprep.mubr.bf16.mxu1 %v1953_v50 }
  0xab   : > { %992 = vmatmul.mubr.bf16.gmra.mrb[8].mxu0 %v1944_v51 }
  0xac   : > { %999 = vmatprep.mubr.bf16.mxu0 %v1947_v52 }
  0xad   : > { %1810 = vmatmul.mubr.bf16.gmra.mrb[8].mxu1 %v1954_v53 }
  0xae   : > { %1813 = vmatprep.mubr.bf16.mxu1 %v1961_v54  ;;  %v581_v54 = vld [vmem:[#allocation2 + $0x30] sm:$0xff] }
  0xb3   : > { %1000 = vmatmul.mubr.bf16.gmra.mrb[12].mxu0 %v1949_v55 }
  0xb4   : > { %1007 = vmatprep.mubr.bf16.mxu0 %v1950_v56 }
  0xb5   : > { %1814 = vmatmul.mubr.bf16.gmra.mrb[12].mxu1 %v1962_v57 }
  0xbb   : > { %1008 = vmatmul.mubr.bf16.gmra.mrb[16].mxu0 %v1952_v58 }
  0xbc   : > { %1015 = vmatprep.mubr.bf16.mxu0 %v1955_v59 }
  0xc3   : > { %1016 = vmatmul.mubr.bf16.gmra.mrb[20].mxu0 %v1957_v60  ;;  %v582_v60 = vld [vmem:[#allocation2 + $0x38] sm:$0xff] }
  0xc4   : > { %1023 = vmatprep.mubr.bf16.mxu0 %v1958_v61 }
  0xcb   : > { %1024 = vmatmul.mubr.bf16.gmra.mrb[24].mxu0 %v1960_v62 }
  0xcc   : > { %1031 = vmatprep.mubr.bf16.mxu0 %v1963_v63 }
  0xd3   : > { %1032 = vmatmul.mubr.bf16.gmra.mrb[28].mxu0 %v1965_v0 }
 0x16e   : > { %v1721_v1 = vpop.f32.mrb[0].mxu0 }
 0x16f   : > { %v1722_v2 = vpop.f32.mrb[1].mxu0 }
 0x170   : > { %v1723_v3 = vadd.f32 %v1722_v2, %v1721_v1  ;;  %v1724_v4 = vpop.f32.mrb[2].mxu0  ;;  %v1803_v5 = vpop.f32.mrb[0].mxu1 }
 0x171   : > { %v1725_v6 = vpop.f32.mrb[3].mxu0  ;;  %v1074_v8 = vpop.f32.mrb[1].mxu1 }
 0x172   : > { %v1726_v9 = vadd.f32 %v1725_v6, %v1724_v4  ;;  %v1075_v10 = vadd.f32 %v1723_v3, %v1074_v8  ;;  %v1804_v11 = vpop.f32.mrb[2].mxu1  ;;  %v583_v6 = vld [vmem:[#allocation2 + $0x40] sm:$0xff] }
 0x173   : > { %v1077_v13 = vpop.f32.mrb[3].mxu1 }
 0x174   : > { %v1137_v14 = vadd.f32 %v1075_v10, %v575_v7  ;;  %v1078_v15 = vadd.f32 %v1726_v9, %v1077_v13  ;;  %v584_v9 = vld [vmem:[#allocation2 + $0x48] sm:$0xff] }
 0x176   : > { %1153 = vst [vmem:[#allocation2] sm:$0xff] %v1137_v14  ;;  %v1138_v16 = vadd.f32 %v1078_v15, %v576_v12  ;;  %v1727_v17 = vpop.f32.mrb[4].mxu0 }
 0x177   : > { %v1728_v18 = vpop.f32.mrb[5].mxu0 }
 0x178   : > { %1154 = vst [vmem:[#allocation2 + $0x8] sm:$0xff] %v1138_v16  ;;  %v1729_v19 = vadd.f32 %v1728_v18, %v1727_v17  ;;  %v1730_v20 = vpop.f32.mrb[6].mxu0  ;;  %v1807_v21 = vpop.f32.mrb[4].mxu1  ;;  %v585_v17 = vld [vmem:[#allocation2 + $0x50] sm:$0xff] }
 0x179   : > { %v1731_v23 = vpop.f32.mrb[7].mxu0  ;;  %v1090_v24 = vpop.f32.mrb[5].mxu1 }
 0x17a   : > { %v1083_v25 = vadd.f32 %v1803_v5, %v1729_v19  ;;  %v1732_v26 = vadd.f32 %v1731_v23, %v1730_v20  ;;  %v1808_v27 = vpop.f32.mrb[6].mxu1 }
 0x17b   : > { %v1093_v29 = vpop.f32.mrb[7].mxu1 }
 0x17c   : > { %v1139_v30 = vadd.f32 %v1083_v25, %v577_v22  ;;  %v1086_v31 = vadd.f32 %v1804_v11, %v1732_v26 }
 0x17e   : > { %1155 = vst [vmem:[#allocation2 + $0x10] sm:$0xff] %v1139_v30  ;;  %v1140_v32 = vadd.f32 %v1086_v31, %v578_v28  ;;  %v1733_v33 = vpop.f32.mrb[8].mxu0  ;;  %v587_v30 = vld [vmem:[#allocation2 + $0x60] sm:$0xff] }
 0x17f   : > { %v1734_v34 = vpop.f32.mrb[9].mxu0 }
 0x180   : > { %1156 = vst [vmem:[#allocation2 + $0x18] sm:$0xff] %v1140_v32  ;;  %v1735_v35 = vadd.f32 %v1734_v34, %v1733_v33  ;;  %v1736_v36 = vpop.f32.mrb[10].mxu0  ;;  %v1811_v37 = vpop.f32.mrb[8].mxu1  ;;  %v588_v33 = vld [vmem:[#allocation2 + $0x68] sm:$0xff] }
 0x181   : > { %v1737_v38 = vpop.f32.mrb[11].mxu0  ;;  %v1106_v40 = vpop.f32.mrb[9].mxu1 }
 0x182   : > { %v1738_v41 = vadd.f32 %v1737_v38, %v1736_v36  ;;  %v1091_v42 = vadd.f32 %v1735_v35, %v1090_v24  ;;  %v1812_v43 = vpop.f32.mrb[10].mxu1 }
 0x183   : > { %v1109_v45 = vpop.f32.mrb[11].mxu1 }
 0x184   : > { %v1141_v46 = vadd.f32 %v1091_v42, %v579_v39  ;;  %v1094_v47 = vadd.f32 %v1738_v41, %v1093_v29  ;;  %v589_v41 = vld [vmem:[#allocation2 + $0x70] sm:$0xff] }
 0x186   : > { %1157 = vst [vmem:[#allocation2 + $0x20] sm:$0xff] %v1141_v46  ;;  %v1142_v48 = vadd.f32 %v1094_v47, %v580_v44  ;;  %v1739_v49 = vpop.f32.mrb[12].mxu0 }
 0x187   : > { %v1740_v50 = vpop.f32.mrb[13].mxu0 }
 0x188   : > { %1158 = vst [vmem:[#allocation2 + $0x28] sm:$0xff] %v1142_v48  ;;  %v1741_v51 = vadd.f32 %v1740_v50, %v1739_v49  ;;  %v1742_v52 = vpop.f32.mrb[14].mxu0  ;;  %v1815_v53 = vpop.f32.mrb[12].mxu1  ;;  %v1173_v49 = vld [vmem:[#allocation2] sm:$0xff] (!%p1618_p5)  ;;  %v1174_v50 = vld [vmem:[#allocation2 + $0x8] sm:$0xff] (!%p1618_p5) }
 0x189   : > { %v1743_v55 = vpop.f32.mrb[15].mxu0  ;;  %v1122_v56 = vpop.f32.mrb[13].mxu1 }
 0x18a   : > { %v1099_v57 = vadd.f32 %v1807_v21, %v1741_v51  ;;  %v1744_v58 = vadd.f32 %v1743_v55, %v1742_v52  ;;  %v1816_v59 = vpop.f32.mrb[14].mxu1  ;;  %v586_v21 = vld [vmem:[#allocation2 + $0x58] sm:$0xff]  ;;  %v1619_v51 = vld [vmem:[%s552_s4] ss:$0 sm:$0xff] (!%p1618_p5) }
 0x18b   : > { %v1125_v61 = vpop.f32.mrb[15].mxu1  ;;  %v1196_v52 = vadd.f32 (!%p1618_p5), %v1619_v51, %v1173_v49  ;;  %v1176_v55 = vld [vmem:[#allocation2 + $0x18] sm:$0xff] (!%p1618_p5) }
 0x18c   : > { %v1143_v62 = vadd.f32 %v1099_v57, %v581_v54  ;;  %v1102_v63 = vadd.f32 %v1808_v27, %v1744_v58  ;;  %v1175_v54 = vld [vmem:[#allocation2 + $0x10] sm:$0xff] (!%p1618_p5)  ;;  %v1199_v58 = vadd.f32 (!%p1618_p5), %v1619_v51, %v1176_v55 }
 0x18d   : > { %v1198_v57 = vadd.f32 (!%p1618_p5), %v1619_v51, %v1175_v54 }
 0x18e   : > { %1159 = vst [vmem:[#allocation2 + $0x30] sm:$0xff] %v1143_v62  ;;  %v1144_v0 = vadd.f32 %v1102_v63, %v582_v60  ;;  %v1745_v1 = vpop.f32.mrb[16].mxu0  ;;  %v1212_v63 = vmax.f32 (!%p1618_p5), %v1196_v52, 0.0 }
 0x18f   : > { %v1746_v2 = vpop.f32.mrb[17].mxu0 }
 0x190   : > { %1160 = vst [vmem:[#allocation2 + $0x38] sm:$0xff] %v1144_v0  ;;  %v1747_v3 = vadd.f32 %v1746_v2, %v1745_v1  ;;  %v1748_v4 = vpop.f32.mrb[18].mxu0 }
 0x191   : > { %v1749_v5 = vpop.f32.mrb[19].mxu0 }
 0x192   : > { %v1750_v7 = vadd.f32 %v1749_v5, %v1748_v4  ;;  %v1107_v8 = vadd.f32 %v1747_v3, %v1106_v40 }
 0x194   : > { %v1145_v10 = vadd.f32 %v1107_v8, %v583_v6  ;;  %v1110_v11 = vadd.f32 %v1750_v7, %v1109_v45  ;;  %v590_v45 = vld [vmem:[#allocation2 + $0x78] sm:$0xff]  ;;  %v1214_v6 = vmax.f32 (!%p1618_p5), %v1198_v57, 0.0  ;;  %v1215_v7 = vmax.f32 (!%p1618_p5), %v1199_v58, 0.0 }
 0x196   : > { %1161 = vst [vmem:[#allocation2 + $0x40] sm:$0xff] %v1145_v10  ;;  %v1146_v12 = vadd.f32 %v1110_v11, %v584_v9  ;;  %v1751_v13 = vpop.f32.mrb[20].mxu0 }
 0x197   : > { %v1752_v14 = vpop.f32.mrb[21].mxu0  ;;  %v1180_v62 = vld [vmem:[#allocation2 + $0x38] sm:$0xff] (!%p1618_p5) }
 0x198   : > { %1162 = vst [vmem:[#allocation2 + $0x48] sm:$0xff] %v1146_v12  ;;  %v1753_v15 = vadd.f32 %v1752_v14, %v1751_v13  ;;  %v1754_v16 = vpop.f32.mrb[22].mxu0  ;;  %v1203_v9 = vadd.f32 (!%p1618_p5), %v1619_v51, %v1180_v62 }
 0x199   : > { %v1755_v18 = vpop.f32.mrb[23].mxu0 }
 0x19a   : > { %v1115_v19 = vadd.f32 %v1811_v37, %v1753_v15  ;;  %v1756_v20 = vadd.f32 %v1755_v18, %v1754_v16  ;;  %v1219_v18 = vmax.f32 (!%p1618_p5), %v1203_v9, 0.0 }
 0x19c   : > { %v1147_v22 = vadd.f32 %v1115_v19, %v585_v17  ;;  %v1118_v23 = vadd.f32 %v1812_v43, %v1756_v20  ;;  %v1666_v17 = vpack.c.bf16 (!%p1618_p5), %v1215_v7, %v1214_v6 }
 0x19d   : > { %v1181_v3 = vld [vmem:[#allocation2 + $0x40] sm:$0xff] (!%p1618_p5) }
 0x19e   : > { %1163 = vst [vmem:[#allocation2 + $0x50] sm:$0xff] %v1147_v22  ;;  %v1148_v24 = vadd.f32 %v1118_v23, %v586_v21  ;;  %v1757_v25 = vpop.f32.mrb[24].mxu0  ;;  %v1204_v15 = vadd.f32 (!%p1618_p5), %v1619_v51, %v1181_v3  ;;  %1698 = vst [vmem:[%s2374_s25 + $0x8] sm:$0xff] (!%p1618_p5), %v1666_v17  }
 0x19f   : > { %v1758_v26 = vpop.f32.mrb[25].mxu0  ;;  %v1182_v4 = vld [vmem:[#allocation2 + $0x48] sm:$0xff] (!%p1618_p5) }
 0x1a0   : > { %1164 = vst [vmem:[#allocation2 + $0x58] sm:$0xff] %v1148_v24  ;;  %v1759_v27 = vadd.f32 %v1758_v26, %v1757_v25  ;;  %v1760_v28 = vpop.f32.mrb[26].mxu0  ;;  %v1205_v19 = vadd.f32 (!%p1618_p5), %v1619_v51, %v1182_v4  ;;  %v1220_v24 = vmax.f32 (!%p1618_p5), %v1204_v15, 0.0 }
 0x1a1   : > { %v1761_v29 = vpop.f32.mrb[27].mxu0 }
 0x1a2   : > { %v1762_v31 = vadd.f32 %v1761_v29, %v1760_v28  ;;  %v1123_v32 = vadd.f32 %v1759_v27, %v1122_v56  ;;  %v1177_v56 = vld [vmem:[#allocation2 + $0x20] sm:$0xff] (!%p1618_p5)  ;;  %v1221_v28 = vmax.f32 (!%p1618_p5), %v1205_v19, 0.0 }
 0x1a3   : > { %v1200_v60 = vadd.f32 (!%p1618_p5), %v1619_v51, %v1177_v56 }
 0x1a4   : > { %v1149_v34 = vadd.f32 %v1123_v32, %v587_v30  ;;  %v1126_v35 = vadd.f32 %v1762_v31, %v1125_v61  ;;  %v1179_v61 = vld [vmem:[#allocation2 + $0x30] sm:$0xff] (!%p1618_p5) }
 0x1a5   : > { %v1202_v2 = vadd.f32 (!%p1618_p5), %v1619_v51, %v1179_v61  ;;  %v1183_v5 = vld [vmem:[#allocation2 + $0x50] sm:$0xff] (!%p1618_p5)  ;;  %v1216_v8 = vmax.f32 (!%p1618_p5), %v1200_v60, 0.0 }
 0x1a6   : > { %1165 = vst [vmem:[#allocation2 + $0x60] sm:$0xff] %v1149_v34  ;;  %v1150_v36 = vadd.f32 %v1126_v35, %v588_v33  ;;  %v1763_v37 = vpop.f32.mrb[28].mxu0  ;;  %v1206_v20 = vadd.f32 (!%p1618_p5), %v1619_v51, %v1183_v5  ;;  %v1681_v35 = vpack.c.bf16 (!%p1618_p5), %v1221_v28, %v1220_v24 }
 0x1a7   : > { %v1764_v38 = vpop.f32.mrb[29].mxu0  ;;  %v1184_v10 = vld [vmem:[#allocation2 + $0x58] sm:$0xff] (!%p1618_p5)  ;;  %v1218_v14 = vmax.f32 (!%p1618_p5), %v1202_v2, 0.0 }
 0x1a8   : > { %1166 = vst [vmem:[#allocation2 + $0x68] sm:$0xff] %v1150_v36  ;;  %v1765_v39 = vadd.f32 %v1764_v38, %v1763_v37  ;;  %v1766_v40 = vpop.f32.mrb[30].mxu0  ;;  %v1207_v25 = vadd.f32 (!%p1618_p5), %v1619_v51, %v1184_v10  ;;  %v1222_v29 = vmax.f32 (!%p1618_p5), %v1206_v20, 0.0  ;;  %1701 = vst [vmem:[%s2374_s25 + $0x20] sm:$0xff] (!%p1618_p5), %v1681_v35  }
 0x1a9   : > { %v1767_v42 = vpop.f32.mrb[31].mxu0  ;;  %v1676_v27 = vpack.c.bf16 (!%p1618_p5), %v1219_v18, %v1218_v14 }
 0x1aa   : > { %v1131_v43 = vadd.f32 %v1815_v53, %v1765_v39  ;;  %v1768_v44 = vadd.f32 %v1767_v42, %v1766_v40  ;;  %1172 = sbr.rel (%p1618_p5) target bundleno = 447 (0x1bf), region = 107  ;;  %v1197_v53 = vadd.f32 (!%p1618_p5), %v1619_v51, %v1174_v50  ;;  %v1223_v31 = vmax.f32 (!%p1618_p5), %v1207_v25, 0.0 }
 0x1ab   : > { %1700 = vst [vmem:[%s2374_s25 + $0x18] sm:$0xff] (!%p1618_p5), %v1676_v27  }
 0x1ac   : > { %v1151_v46 = vadd.f32 %v1131_v43, %v589_v41  ;;  %v1134_v47 = vadd.f32 %v1816_v59, %v1768_v44  ;;  %v1178_v59 = vld [vmem:[#allocation2 + $0x28] sm:$0xff] (!%p1618_p5)  ;;  %v1213_v0 = vmax.f32 (!%p1618_p5), %v1197_v53, 0.0  ;;  %v1686_v37 = vpack.c.bf16 (!%p1618_p5), %v1223_v31, %v1222_v29 }
 0x1ad   : > { %v1201_v1 = vadd.f32 (!%p1618_p5), %v1619_v51, %v1178_v59  ;;  %v1185_v11 = vld [vmem:[#allocation2 + $0x60] sm:$0xff] (!%p1618_p5) }
 0x1ae   : > { %1167 = vst [vmem:[#allocation2 + $0x70] sm:$0xff] %v1151_v46  ;;  %v1152_v48 = vadd.f32 %v1134_v47, %v590_v45  ;;  %v1661_v12 = vpack.c.bf16 (!%p1618_p5), %v1213_v0, %v1212_v63  ;;  %v1208_v26 = vadd.f32 (!%p1618_p5), %v1619_v51, %v1185_v11  ;;  %1702 = vst [vmem:[%s2374_s25 + $0x28] sm:$0xff] (!%p1618_p5), %v1686_v37  }
 0x1af   : > { %v1217_v13 = vmax.f32 (!%p1618_p5), %v1201_v1, 0.0  ;;  %v1186_v16 = vld [vmem:[#allocation2 + $0x68] sm:$0xff] (!%p1618_p5) }
 0x1b0   : > { %1168 = vst [vmem:[#allocation2 + $0x78] sm:$0xff] %v1152_v48  ;;  %1662 = vst [vmem:[%s2374_s25] sm:$0xff] (!%p1618_p5), %v1661_v12   ;;  %v1209_v30 = vadd.f32 (!%p1618_p5), %v1619_v51, %v1186_v16  ;;  %v1224_v32 = vmax.f32 (!%p1618_p5), %v1208_v26, 0.0 }
 0x1b1   : > { %v1671_v23 = vpack.c.bf16 %v1217_v13, %v1216_v8 }
 0x1b2   : > { %v1225_v36 = vmax.f32 %v1209_v30, 0.0 }
 0x1b3   : > { %1699 = vst [vmem:[%s2374_s25 + $0x10] sm:$0xff] %v1671_v23  }
 0x1b4   : > { %v1691_v40 = vpack.c.bf16 %v1225_v36, %v1224_v32 }
 0x1b5   : > { %v1187_v21 = vld [vmem:[#allocation2 + $0x70] sm:$0xff] }
 0x1b6   : > { %v1210_v33 = vadd.f32 %v1619_v51, %v1187_v21  ;;  %1703 = vst [vmem:[%s2374_s25 + $0x30] sm:$0xff] %v1691_v40  }
 0x1b7   : > { %v1188_v22 = vld [vmem:[#allocation2 + $0x78] sm:$0xff] }
 0x1b8   : > { %v1211_v34 = vadd.f32 %v1619_v51, %v1188_v22  ;;  %v1226_v38 = vmax.f32 %v1210_v33, 0.0 }
 0x1ba   : > { %v1227_v39 = vmax.f32 %v1211_v34, 0.0 }
 0x1bc   : > { %v1696_v41 = vpack.c.bf16 %v1227_v39, %v1226_v38 }
 0x1be   : > { %1704 = vst [vmem:[%s2374_s25 + $0x38] sm:$0xff] %v1696_v41  }
 0x1bf PF: > { %1314 = sbr.rel (!%p2169_p12) target bundleno = 459 (0x1cb), region = 111  ;;  %s1637_s14 = sshll.u32 (%p2169_p12), %s2040_s19, 2  ;;  %v1339_v44 = vld [vmem:[%s2374_s25 + $0x8] sm:$0xf] (%p2169_p12)  ;;  %v1341_v45 = vld [vmem:[%s2374_s25 + $0xc] sm:$0xf] (%p2169_p12) }
 0x1c0   : > { %s1319_s5 = scalar_lea.vmem (%p2169_p12), %s2497_s3, %s1637_s14  ;;  %v1343_v46 = vld [vmem:[%s2374_s25 + $0x10] sm:$0xf] (%p2169_p12)  ;;  %v1345_v47 = vld [vmem:[%s2374_s25 + $0x14] sm:$0xf] (%p2169_p12)  ;;  %v1347_v48 = vld [vmem:[%s2374_s25 + $0x18] sm:$0xf] (%p2169_p12) }
 0x1c1   : > { %1340 = vst [vmem:[%s1319_s5 + $0x10] sm:$0xf] (%p2169_p12), %v1339_v44  ;;  %1342 = vst [vmem:[%s1319_s5 + $0x18] sm:$0xf] (%p2169_p12), %v1341_v45  ;;  %v1349_v49 = vld [vmem:[%s2374_s25 + $0x1c] sm:$0xf] (%p2169_p12) }
 0x1c2   : > { %1344 = vst [vmem:[%s1319_s5 + $0x20] sm:$0xf] (%p2169_p12), %v1343_v46  ;;  %1346 = vst [vmem:[%s1319_s5 + $0x28] sm:$0xf] (%p2169_p12), %v1345_v47  ;;  %v1351_v50 = vld [vmem:[%s2374_s25 + $0x20] sm:$0xf] (%p2169_p12) }
 0x1c3   : > { %1348 = vst [vmem:[%s1319_s5 + $0x30] sm:$0xf] (%p2169_p12), %v1347_v48  ;;  %1350 = vst [vmem:[%s1319_s5 + $0x38] sm:$0xf] (%p2169_p12), %v1349_v49  ;;  %v1353_v51 = vld [vmem:[%s2374_s25 + $0x24] sm:$0xf] (%p2169_p12) }
 0x1c4   : > { %v1355_v52 = vld [vmem:[%s2374_s25 + $0x28] sm:$0xf] (%p2169_p12)  ;;  %1352 = vst [vmem:[%s1319_s5 + $0x40] sm:$0xf] (%p2169_p12), %v1351_v50  ;;  %1354 = vst [vmem:[%s1319_s5 + $0x48] sm:$0xf] (%p2169_p12), %v1353_v51 }
 0x1c5   : > { %v1335_v42 = vld [vmem:[%s2374_s25] sm:$0xf] (%p2169_p12)  ;;  %v1337_v43 = vld [vmem:[%s2374_s25 + $0x4] sm:$0xf] (%p2169_p12)  ;;  %1356 = vst [vmem:[%s1319_s5 + $0x50] sm:$0xf] (%p2169_p12), %v1355_v52 }
 0x1c6   : > { %1336 = vst [vmem:[%s1319_s5] sm:$0xf] %v1335_v42  ;;  %1338 = vst [vmem:[%s1319_s5 + $0x8] sm:$0xf] %v1337_v43  ;;  %v1357_v53 = vld [vmem:[%s2374_s25 + $0x2c] sm:$0xf] }
 0x1c7   : > { %v1359_v54 = vld [vmem:[%s2374_s25 + $0x30] sm:$0xf]  ;;  %v1361_v55 = vld [vmem:[%s2374_s25 + $0x34] sm:$0xf]  ;;  %1358 = vst [vmem:[%s1319_s5 + $0x58] sm:$0xf] %v1357_v53 }
 0x1c8   : > { %1360 = vst [vmem:[%s1319_s5 + $0x60] sm:$0xf] %v1359_v54  ;;  %1362 = vst [vmem:[%s1319_s5 + $0x68] sm:$0xf] %v1361_v55  ;;  %v1363_v56 = vld [vmem:[%s2374_s25 + $0x38] sm:$0xf] }
 0x1c9   : > { %v1365_v57 = vld [vmem:[%s2374_s25 + $0x3c] sm:$0xf]  ;;  %1364 = vst [vmem:[%s1319_s5 + $0x70] sm:$0xf] %v1363_v56 }
 0x1ca   : > { %1366 = vst [vmem:[%s1319_s5 + $0x78] sm:$0xf] %v1365_v57 }
 0x1cb PF: > { %s13_s22 = sadd.s32 1, %s2052_s22   ;;  %s2507_s10 = sld [smem:[#allocation6_spill]] }
 0x1cc   : > { %p10_p6 = scmp.ge.s32.totalorder %s13_s22, 14   ;;  %s2508_s12 = smov %s2016_s13 }
 0x1cd   : > { %s2509_s13 = smov %s2167_s9  ;;  %s2510_s14 = smov %s2024_s15 }
 0x1ce   : > { %s2511_s15 = smov %s2164_s8  ;;  %s2512_s16 = smov %s2032_s17 }
 0x1cf   : > { %s2513_s17 = smov %s2150_s30  ;;  %s2514_s18 = smov %s2044_s20 }
 0x1d0   : > { %s2515_s19 = smov %s2048_s21  ;;  %s2516_s20 = smov %s2519_s24 }
 0x1d1   : > { %s2517_s21 = smov %s2507_s10  ;;  %12 = sbr.rel (!%p10_p6) target bundleno = 9 (0x9), region = 200 }

// kernel: _lambda_.31
= control target key start
LH: loop header
LB: loop body
LE: loop exit
PB: predicated region body
PF: predicated region fallthrough
CT: control target
= control target key end

     0   :  { %s980_s1 = inlined_call_operand.vmem [shape: bf16[256,128], index: 1, kind: input, shape index: {}]   ;;  %s981_s0 = inlined_call_operand.vmem [shape: bf16[128,256], index: 0, kind: input, shape index: {}]   ;;  %s982_s2 = inlined_call_operand.vmem [shape: f32[1,128], index: 2, kind: input, shape index: {}]   ;;  %s983_s3 = inlined_call_operand.vmem [shape: f32[128,128], index: 3, kind: output, shape index: {}]  }
   0x1   :  { %v691_v0 = vld [vmem:[%s980_s1 + $0x40] sm:$0xff]   ;;  %v693_v2 = vld [vmem:[%s980_s1 + $0x48] sm:$0xff]   ;;  %v695_v4 = vld [vmem:[%s980_s1 + $0x50] sm:$0xff]  }
   0x2   :  { %v692_v1 = vld [vmem:[%s980_s1] sm:$0xff]   ;;  %611 = vmatprep.subr.bf16.mxu0 %v691_v0  ;;  %675 = vmatprep.subr.bf16.mxu1 %v691_v0  ;;  %v694_v3 = vld [vmem:[%s980_s1 + $0x8] sm:$0xff]   ;;  %v696_v5 = vld [vmem:[%s980_s1 + $0x10] sm:$0xff]  }
   0x3   :  { %612 = vmatpush3.bf16.msra.mxu0 %v692_v1  ;;  %683 = vmatpush3.bf16.msra.mxu1 %v692_v1  ;;  %v697_v6 = vld [vmem:[%s980_s1 + $0x58] sm:$0xff]   ;;  %v699_v8 = vld [vmem:[%s980_s1 + $0x60] sm:$0xff]   ;;  %v701_v10 = vld [vmem:[%s980_s1 + $0x68] sm:$0xff]  }
   0x4   :  { %613 = vmatprep.subr.bf16.mxu0 %v693_v2  ;;  %676 = vmatprep.subr.bf16.mxu1 %v693_v2  ;;  %v698_v7 = vld [vmem:[%s980_s1 + $0x18] sm:$0xff]   ;;  %v700_v9 = vld [vmem:[%s980_s1 + $0x20] sm:$0xff]   ;;  %v702_v13 = vld [vmem:[%s980_s1 + $0x28] sm:$0xff]  }
   0x5   :  { %v709_v11 = vld [vmem:[%s981_s0 + $0x4] ss:$8 sps:$4 sm:$0xff]   ;;  %v703_v14 = vld [vmem:[%s980_s1 + $0x70] sm:$0xff]   ;;  %v705_v16 = vld [vmem:[%s980_s1 + $0x78] sm:$0xff]  }
   0x6   :  { %v712_v12 = vld [vmem:[%s981_s0 + $0x44] ss:$8 sps:$4 sm:$0xff]   ;;  %307 = vmatprep.mubr.bf16.mxu0 %v709_v11  ;;  %v704_v15 = vld [vmem:[%s980_s1 + $0x30] sm:$0xff]   ;;  %v706_v17 = vld [vmem:[%s980_s1 + $0x38] sm:$0xff]  }
   0x7   :  { %614 = vmatpush3.bf16.msra.mxu0 %v694_v3  ;;  %684 = vmatpush3.bf16.msra.mxu1 %v694_v3  ;;  %v707_v18 = vld [vmem:[%s981_s0] ss:$8 sps:$4 sm:$0xff]   ;;  %v713_v20 = vld [vmem:[%s981_s0 + $0x14] ss:$8 sps:$4 sm:$0xff]   ;;  %v717_v22 = vld [vmem:[%s981_s0 + $0x10] ss:$8 sps:$4 sm:$0xff]  }
   0x8   :  { %615 = vmatprep.subr.bf16.mxu0 %v695_v4  ;;  %677 = vmatprep.subr.bf16.mxu1 %v695_v4  ;;  %v710_v19 = vld [vmem:[%s981_s0 + $0x40] ss:$8 sps:$4 sm:$0xff]   ;;  %v715_v21 = vld [vmem:[%s981_s0 + $0x54] ss:$8 sps:$4 sm:$0xff]   ;;  %v718_v23 = vld [vmem:[%s981_s0 + $0x50] ss:$8 sps:$4 sm:$0xff]  }
   0x9   :  { %339 = vmatprep.mubr.bf16.mxu1 %v712_v12  ;;  %v719_v24 = vld [vmem:[%s981_s0 + $0x24] ss:$8 sps:$4 sm:$0xff]   ;;  %v723_v26 = vld [vmem:[%s981_s0 + $0x20] ss:$8 sps:$4 sm:$0xff]   ;;  %v725_v28 = vld [vmem:[%s981_s0 + $0x34] ss:$8 sps:$4 sm:$0xff]  }
   0xa   :  { %v721_v25 = vld [vmem:[%s981_s0 + $0x64] ss:$8 sps:$4 sm:$0xff]   ;;  %v724_v27 = vld [vmem:[%s981_s0 + $0x60] ss:$8 sps:$4 sm:$0xff]   ;;  %v727_v29 = vld [vmem:[%s981_s0 + $0x74] ss:$8 sps:$4 sm:$0xff]  }
   0xb   :  { %616 = vmatpush3.bf16.msra.mxu0 %v696_v5  ;;  %685 = vmatpush3.bf16.msra.mxu1 %v696_v5  ;;  %v729_v30 = vld [vmem:[%s981_s0 + $0x30] ss:$8 sps:$4 sm:$0xff]   ;;  %v914_v35 = vld [vmem:[%s982_s2] ss:$0 sm:$0xff] }
   0xc   :  { %617 = vmatprep.subr.bf16.mxu0 %v697_v6  ;;  %678 = vmatprep.subr.bf16.mxu1 %v697_v6  ;;  %v730_v31 = vld [vmem:[%s981_s0 + $0x70] ss:$8 sps:$4 sm:$0xff]  }
   0xf   :  { %618 = vmatpush3.bf16.msra.mxu0 %v698_v7  ;;  %686 = vmatpush3.bf16.msra.mxu1 %v698_v7 }
  0x10   :  { %619 = vmatprep.subr.bf16.mxu0 %v699_v8  ;;  %679 = vmatprep.subr.bf16.mxu1 %v699_v8 }
  0x13   :  { %620 = vmatpush3.bf16.msra.mxu0 %v700_v9  ;;  %687 = vmatpush3.bf16.msra.mxu1 %v700_v9 }
  0x14   :  { %621 = vmatprep.subr.bf16.mxu0 %v701_v10  ;;  %680 = vmatprep.subr.bf16.mxu1 %v701_v10 }
  0x17   :  { %622 = vmatpush3.bf16.msra.mxu0 %v702_v13  ;;  %688 = vmatpush3.bf16.msra.mxu1 %v702_v13 }
  0x18   :  { %623 = vmatprep.subr.bf16.mxu0 %v703_v14  ;;  %681 = vmatprep.subr.bf16.mxu1 %v703_v14 }
  0x1b   :  { %624 = vmatpush3.bf16.msra.mxu0 %v704_v15  ;;  %689 = vmatpush3.bf16.msra.mxu1 %v704_v15 }
  0x1c   :  { %625 = vmatprep.subr.bf16.mxu0 %v705_v16  ;;  %682 = vmatprep.subr.bf16.mxu1 %v705_v16 }
  0x1f   :  { %626 = vmatpush3.bf16.msra.mxu0 %v706_v17  ;;  %690 = vmatpush3.bf16.msra.mxu1 %v706_v17 }
  0x22   :  { %308 = vmatmul.mubr.bf16.vlgmr.msra.gmra.mrb[0].mxu0 %v707_v18  ;;  %340 = vmatmul.mubr.bf16.vlgmr.msra.gmra.mrb[0].mxu1 %v710_v19 }
  0x23   :  { %315 = vmatprep.mubr.bf16.mxu0 %v713_v20  ;;  %347 = vmatprep.mubr.bf16.mxu1 %v715_v21 }
  0x2a   :  { %316 = vmatmul.mubr.bf16.gmra.mrb[4].mxu0 %v717_v22  ;;  %348 = vmatmul.mubr.bf16.gmra.mrb[4].mxu1 %v718_v23 }
  0x2b   :  { %323 = vmatprep.mubr.bf16.mxu0 %v719_v24  ;;  %355 = vmatprep.mubr.bf16.mxu1 %v721_v25 }
  0x32   :  { %324 = vmatmul.mubr.bf16.gmra.mrb[8].mxu0 %v723_v26  ;;  %356 = vmatmul.mubr.bf16.gmra.mrb[8].mxu1 %v724_v27 }
  0x33   :  { %331 = vmatprep.mubr.bf16.mxu0 %v725_v28  ;;  %363 = vmatprep.mubr.bf16.mxu1 %v727_v29 }
  0x3a   :  { %332 = vmatmul.mubr.bf16.gmra.mrb[12].mxu0 %v729_v30  ;;  %364 = vmatmul.mubr.bf16.gmra.mrb[12].mxu1 %v730_v31 }
  0xf5   :  { %v627_v32 = vpop.f32.mrb[0].mxu0  ;;  %v651_v33 = vpop.f32.mrb[0].mxu1 }
  0xf6   :  { %v628_v34 = vpop.f32.mrb[1].mxu0  ;;  %v652_v36 = vpop.f32.mrb[1].mxu1 }
  0xf7   :  { %v629_v37 = vadd.f32 %v628_v34, %v627_v32  ;;  %v653_v38 = vadd.f32 %v652_v36, %v651_v33  ;;  %v630_v39 = vpop.f32.mrb[2].mxu0  ;;  %v654_v40 = vpop.f32.mrb[2].mxu1 }
  0xf8   :  { %v631_v41 = vpop.f32.mrb[3].mxu0  ;;  %v655_v42 = vpop.f32.mrb[3].mxu1 }
  0xf9   :  { %v430_v43 = vadd.f32 %v629_v37, %v914_v35  ;;  %v438_v44 = vadd.f32 %v653_v38, %v914_v35  ;;  %v632_v45 = vadd.f32 %v631_v41, %v630_v39  ;;  %v656_v46 = vadd.f32 %v655_v42, %v654_v40 }
  0xfb   :  { %v595_v47 = vmul.f32 -1.442695, %v430_v43  ;;  %v603_v48 = vmul.f32 -1.442695, %v438_v44  ;;  %v431_v49 = vadd.f32 %v632_v45, %v914_v35  ;;  %v439_v50 = vadd.f32 %v656_v46, %v914_v35 }
  0xfd   :  { %731 = vpow2.f32 %v595_v47  ;;  %v596_v51 = vmul.f32 -1.442695, %v431_v49  ;;  %v604_v52 = vmul.f32 -1.442695, %v439_v50  ;;  %v633_v53 = vpop.f32.mrb[4].mxu0  ;;  %v657_v54 = vpop.f32.mrb[4].mxu1 }
  0xfe   :  { %733 = vpow2.f32 %v603_v48  ;;  %v634_v55 = vpop.f32.mrb[5].mxu0  ;;  %v658_v56 = vpop.f32.mrb[5].mxu1 }
  0xff   :  { %735 = vpow2.f32 %v596_v51  ;;  %v635_v57 = vadd.f32 %v634_v55, %v633_v53  ;;  %v659_v58 = vadd.f32 %v658_v56, %v657_v54  ;;  %v636_v59 = vpop.f32.mrb[6].mxu0  ;;  %v660_v60 = vpop.f32.mrb[6].mxu1 }
 0x100   :  { %737 = vpow2.f32 %v604_v52  ;;  %v637_v61 = vpop.f32.mrb[7].mxu0  ;;  %v661_v62 = vpop.f32.mrb[7].mxu1 }
 0x101   :  { %v432_v63 = vadd.f32 %v635_v57, %v914_v35  ;;  %v440_v0 = vadd.f32 %v659_v58, %v914_v35  ;;  %v638_v1 = vadd.f32 %v637_v61, %v636_v59  ;;  %v662_v2 = vadd.f32 %v661_v62, %v660_v60 }
 0x103   :  { %v597_v3 = vmul.f32 -1.442695, %v432_v63  ;;  %v605_v4 = vmul.f32 -1.442695, %v440_v0  ;;  %v433_v5 = vadd.f32 %v638_v1, %v914_v35  ;;  %v441_v6 = vadd.f32 %v662_v2, %v914_v35 }
 0x105   :  { %739 = vpow2.f32 %v597_v3  ;;  %v598_v7 = vmul.f32 -1.442695, %v433_v5  ;;  %v606_v8 = vmul.f32 -1.442695, %v441_v6  ;;  %v639_v9 = vpop.f32.mrb[8].mxu0  ;;  %v663_v10 = vpop.f32.mrb[8].mxu1 }
 0x106   :  { %741 = vpow2.f32 %v605_v4  ;;  %v640_v11 = vpop.f32.mrb[9].mxu0  ;;  %v664_v12 = vpop.f32.mrb[9].mxu1 }
 0x107   :  { %v732_v13 = vpop.eup %731  ;;  %743 = vpow2.f32 %v598_v7  ;;  %v641_v14 = vadd.f32 %v640_v11, %v639_v9  ;;  %v665_v15 = vadd.f32 %v664_v12, %v663_v10  ;;  %v642_v16 = vpop.f32.mrb[10].mxu0 }
 0x108   :  { %v666_v17 = vpop.f32.mrb[10].mxu1  ;;  %v734_v18 = vpop.eup %733  ;;  %v494_v19 = vadd.f32 1.0, %v732_v13  ;;  %745 = vpow2.f32 %v606_v8 }
 0x109   :  { %v643_v20 = vpop.f32.mrb[11].mxu0  ;;  %v667_v21 = vpop.f32.mrb[11].mxu1  ;;  %v502_v23 = vadd.f32 1.0, %v734_v18  ;;  %v434_v24 = vadd.f32 %v641_v14, %v914_v35  ;;  %v442_v25 = vadd.f32 %v665_v15, %v914_v35 }
 0x10a   :  { %v736_v22 = vpop.eup %735  ;;  %v644_v26 = vadd.f32 %v643_v20, %v642_v16  ;;  %747 = vrcp.f32 %v494_v19  ;;  %v668_v29 = vadd.f32 %v667_v21, %v666_v17 }
 0x10b   :  { %v738_v27 = vpop.eup %737  ;;  %v495_v28 = vadd.f32 1.0, %v736_v22  ;;  %749 = vrcp.f32 %v502_v23  ;;  %v599_v31 = vmul.f32 -1.442695, %v434_v24  ;;  %v607_v32 = vmul.f32 -1.442695, %v442_v25 }
 0x10c   :  { %v503_v30 = vadd.f32 1.0, %v738_v27  ;;  %v435_v33 = vadd.f32 %v644_v26, %v914_v35  ;;  %v443_v34 = vadd.f32 %v668_v29, %v914_v35 }
 0x10d   :  { %751 = vrcp.f32 %v495_v28  ;;  %v645_v36 = vpop.f32.mrb[12].mxu0  ;;  %v669_v37 = vpop.f32.mrb[12].mxu1 }
 0x10e   :  { %753 = vrcp.f32 %v503_v30  ;;  %v600_v38 = vmul.f32 -1.442695, %v435_v33  ;;  %v608_v39 = vmul.f32 -1.442695, %v443_v34  ;;  %v646_v40 = vpop.f32.mrb[13].mxu0  ;;  %v670_v41 = vpop.f32.mrb[13].mxu1 }
 0x10f   :  { %755 = vpow2.f32 %v599_v31  ;;  %v740_v42 = vpop.eup %739  ;;  %v647_v43 = vadd.f32 %v646_v40, %v645_v36  ;;  %v671_v44 = vadd.f32 %v670_v41, %v669_v37  ;;  %v648_v45 = vpop.f32.mrb[14].mxu0 }
 0x110   :  { %757 = vpow2.f32 %v607_v32  ;;  %v672_v46 = vpop.f32.mrb[14].mxu1  ;;  %v742_v47 = vpop.eup %741  ;;  %v496_v48 = vadd.f32 1.0, %v740_v42 }
 0x111   :  { %759 = vpow2.f32 %v600_v38  ;;  %v649_v49 = vpop.f32.mrb[15].mxu0  ;;  %v673_v50 = vpop.f32.mrb[15].mxu1  ;;  %v504_v52 = vadd.f32 1.0, %v742_v47  ;;  %v436_v53 = vadd.f32 %v647_v43, %v914_v35  ;;  %v444_v54 = vadd.f32 %v671_v44, %v914_v35 }
 0x112   :  { %v744_v51 = vpop.eup %743  ;;  %761 = vpow2.f32 %v608_v39  ;;  %v650_v57 = vadd.f32 %v649_v49, %v648_v45  ;;  %v674_v58 = vadd.f32 %v673_v50, %v672_v46 }
 0x113   :  { %v746_v55 = vpop.eup %745  ;;  %763 = vrcp.f32 %v496_v48  ;;  %v497_v56 = vadd.f32 1.0, %v744_v51  ;;  %v601_v60 = vmul.f32 -1.442695, %v436_v53  ;;  %v609_v61 = vmul.f32 -1.442695, %v444_v54 }
 0x114   :  { %765 = vrcp.f32 %v504_v52  ;;  %v505_v59 = vadd.f32 1.0, %v746_v55  ;;  %v748_v62 = vpop.eup %747  ;;  %v437_v63 = vadd.f32 %v650_v57, %v914_v35  ;;  %v445_v0 = vadd.f32 %v674_v58, %v914_v35 }
 0x115   :  { %767 = vrcp.f32 %v497_v56  ;;  %v750_v1 = vpop.eup %749  ;;  %542 = vst [vmem:[%s983_s3] sm:$0xff] %v748_v62 }
 0x116   :  { %769 = vrcp.f32 %v505_v59  ;;  %550 = vst [vmem:[%s983_s3 + $0x40] sm:$0xff] %v750_v1  ;;  %v602_v3 = vmul.f32 -1.442695, %v437_v63  ;;  %v610_v4 = vmul.f32 -1.442695, %v445_v0 }
 0x117   :  { %v752_v2 = vpop.eup %751  ;;  %771 = vpow2.f32 %v601_v60 }
 0x118   :  { %v754_v5 = vpop.eup %753  ;;  %543 = vst [vmem:[%s983_s3 + $0x8] sm:$0xff] %v752_v2  ;;  %773 = vpow2.f32 %v609_v61 }
 0x119   :  { %v756_v35 = vpop.eup %755  ;;  %551 = vst [vmem:[%s983_s3 + $0x48] sm:$0xff] %v754_v5  ;;  %775 = vpow2.f32 %v602_v3 }
 0x11a   :  { %v758_v6 = vpop.eup %757  ;;  %v498_v7 = vadd.f32 1.0, %v756_v35  ;;  %777 = vpow2.f32 %v610_v4 }
 0x11b   :  { %v760_v8 = vpop.eup %759  ;;  %v506_v9 = vadd.f32 1.0, %v758_v6 }
 0x11c   :  { %v762_v10 = vpop.eup %761  ;;  %779 = vrcp.f32 %v498_v7  ;;  %v499_v11 = vadd.f32 1.0, %v760_v8 }
 0x11d   :  { %v764_v12 = vpop.eup %763  ;;  %781 = vrcp.f32 %v506_v9  ;;  %v507_v13 = vadd.f32 1.0, %v762_v10 }
 0x11e   :  { %v766_v14 = vpop.eup %765  ;;  %544 = vst [vmem:[%s983_s3 + $0x10] sm:$0xff] %v764_v12  ;;  %783 = vrcp.f32 %v499_v11 }
 0x11f   :  { %v768_v15 = vpop.eup %767  ;;  %552 = vst [vmem:[%s983_s3 + $0x50] sm:$0xff] %v766_v14  ;;  %785 = vrcp.f32 %v507_v13 }
 0x120   :  { %v770_v16 = vpop.eup %769  ;;  %545 = vst [vmem:[%s983_s3 + $0x18] sm:$0xff] %v768_v15 }
 0x121   :  { %v772_v17 = vpop.eup %771  ;;  %553 = vst [vmem:[%s983_s3 + $0x58] sm:$0xff] %v770_v16 }
 0x122   :  { %v774_v18 = vpop.eup %773  ;;  %v500_v19 = vadd.f32 1.0, %v772_v17 }
 0x123   :  { %v776_v20 = vpop.eup %775  ;;  %v508_v21 = vadd.f32 1.0, %v774_v18 }
 0x124   :  { %v778_v22 = vpop.eup %777  ;;  %787 = vrcp.f32 %v500_v19  ;;  %v501_v23 = vadd.f32 1.0, %v776_v20 }
 0x125   :  { %789 = vrcp.f32 %v508_v21  ;;  %v509_v24 = vadd.f32 1.0, %v778_v22 }
 0x126   :  { %v780_v25 = vpop.eup %779  ;;  %791 = vrcp.f32 %v501_v23 }
 0x127   :  { %v782_v26 = vpop.eup %781  ;;  %546 = vst [vmem:[%s983_s3 + $0x20] sm:$0xff] %v780_v25  ;;  %793 = vrcp.f32 %v509_v24 }
 0x128   :  { %v784_v27 = vpop.eup %783  ;;  %554 = vst [vmem:[%s983_s3 + $0x60] sm:$0xff] %v782_v26 }
 0x129   :  { %v786_v28 = vpop.eup %785  ;;  %547 = vst [vmem:[%s983_s3 + $0x28] sm:$0xff] %v784_v27 }
 0x12a   :  { %555 = vst [vmem:[%s983_s3 + $0x68] sm:$0xff] %v786_v28 }
 0x12e   :  { %v788_v29 = vpop.eup %787 }
 0x12f   :  { %v790_v30 = vpop.eup %789  ;;  %548 = vst [vmem:[%s983_s3 + $0x30] sm:$0xff] %v788_v29 }
 0x130   :  { %v792_v31 = vpop.eup %791  ;;  %556 = vst [vmem:[%s983_s3 + $0x70] sm:$0xff] %v790_v30 }
 0x131   :  { %v794_v32 = vpop.eup %793  ;;  %549 = vst [vmem:[%s983_s3 + $0x38] sm:$0xff] %v792_v31 }
 0x132   :  { %557 = vst [vmem:[%s983_s3 + $0x78] sm:$0xff] %v794_v32 }

</bundles_post_ra>
